<compile_context>
chip_gen: v7x
topology: tpu7x:2x2x1
jax: 0.10.0
libtpu: 0.0.40
codegen_flags: <defaults>
</compile_context>

<pallas_src>
import functools

import jax
import jax.numpy as jnp
from jax.experimental import pallas as pl
from jax.experimental.pallas import tpu as pltpu

_LN_EPS = 1e-5


# ----------------------------------------------------------------------------
# TPU-generation gating (v5e/v6e: 128 MiB VMEM -> big tiles; v7x: 64 MiB/TC)
# ----------------------------------------------------------------------------

def _device_kind():
    try:
        return jax.devices()[0].device_kind.lower()
    except Exception:
        return ""

_KIND = _device_kind()
if "v7" in _KIND:
    _VMEM_LIMIT = 40 * 1024 * 1024
    _BM_TARGET = 256          # row-tile target for matmul/MLP kernels
    _BH_TARGET = 512          # MLP hidden-dim tile (keeps VMEM flat on v7x)
elif "v5" in _KIND or "v6" in _KIND:
    _VMEM_LIMIT = 64 * 1024 * 1024
    _BM_TARGET = 512
    _BH_TARGET = 2048
else:
    _VMEM_LIMIT = 32 * 1024 * 1024
    _BM_TARGET = 256
    _BH_TARGET = 1024


# ----------------------------------------------------------------------------
# Tile-size helpers (degrade to full blocks when dims are tiny / unaligned)
# ----------------------------------------------------------------------------

def _row_block(dim, target):
    """Largest sublane-aligned (x8) tile <= target dividing dim, else full."""
    if dim <= target or dim % 8:
        return dim
    t = (target // 8) * 8
    while dim % t:
        t -= 8
    return t


def _col_block(dim, target):
    """Largest lane-aligned (x128) tile <= target dividing dim, else full."""
    if dim <= target or dim % 128:
        return dim
    t = (target // 128) * 128
    while dim % t:
        t -= 128
    return t


def _divisor_block(dim, target):
    t = min(dim, target)
    while dim % t:
        t -= 1
    return t


# ----------------------------------------------------------------------------
# fused_linear: [LN ->] x @ W + b [-> GELU] [+ residual], weight resident
# ----------------------------------------------------------------------------

def _fused_linear_kernel(apply_ln, apply_gelu, has_res, *refs):
    x_ref, w_ref, b_ref = refs[0], refs[1], refs[2]
    pos = 3
    if apply_ln:
        g_ref, bb_ref = refs[pos], refs[pos + 1]
        pos += 2
    if has_res:
        r_ref = refs[pos]
        pos += 1
    o_ref = refs[pos]

    x = x_ref[...].astype(jnp.float32)
    if apply_ln:
        mu = jnp.mean(x, axis=-1, keepdims=True)
        var = jnp.mean(jnp.square(x - mu), axis=-1, keepdims=True)
        xn = (x - mu) * jax.lax.rsqrt(var + _LN_EPS) * g_ref[...] + bb_ref[...]
    else:
        xn = x
    acc = jnp.dot(xn.astype(jnp.bfloat16), w_ref[...],
                  preferred_element_type=jnp.float32) + b_ref[...]
    if apply_gelu:
        # TODO(synk): torch nn.GELU defaults to exact erf; tanh approx used.
        acc = jax.nn.gelu(acc, approximate=True)
    if has_res:
        acc = acc + r_ref[...].astype(jnp.float32)
    o_ref[...] = acc.astype(o_ref.dtype)


def fused_linear(x, w, bias=None, gamma=None, beta=None, residual=None,
                 gelu=False, out_dtype=jnp.bfloat16, bm_target=None):
    """[LayerNorm ->] x @ w + b [-> GELU] [+ residual].

    Grid is rows-only ('parallel'); the full (K, N) weight has a constant block
    index so it is DMA'd once and stays resident while activations stream.
    TODO(synk): add N/K tiling for embed dims large enough to overflow VMEM.
    """
    M, K = x.shape
    K2, N = w.shape
    assert K == K2
    if bias is None:
        bias = jnp.zeros((N,), jnp.float32)
    if bm_target is None:
        bm_target = _BM_TARGET
    bm = _row_block(M, bm_target)
    apply_ln = gamma is not None
    has_res = residual is not None

    in_specs = [
        pl.BlockSpec((bm, K), lambda i: (i, 0)),
        pl.BlockSpec((K, N), lambda i: (0, 0)),      # weight resident
        pl.BlockSpec((1, N), lambda i: (0, 0)),
    ]
    args = [x.astype(jnp.bfloat16), w.astype(jnp.bfloat16),
            bias.astype(jnp.float32).reshape(1, N)]
    if apply_ln:
        in_specs += [pl.BlockSpec((1, K), lambda i: (0, 0)),
                     pl.BlockSpec((1, K), lambda i: (0, 0))]
        args += [gamma.astype(jnp.float32).reshape(1, K),
                 beta.astype(jnp.float32).reshape(1, K)]
    if has_res:
        in_specs += [pl.BlockSpec((bm, N), lambda i: (i, 0))]
        args += [residual.astype(jnp.bfloat16)]
    return pl.pallas_call(
        functools.partial(_fused_linear_kernel, apply_ln, gelu, has_res),
        grid=(M // bm,),
        in_specs=in_specs,
        out_specs=pl.BlockSpec((bm, N), lambda i: (i, 0)),
        out_shape=jax.ShapeDtypeStruct((M, N), out_dtype),
        compiler_params=pltpu.CompilerParams(
            dimension_semantics=("parallel",),
            vmem_limit_bytes=_VMEM_LIMIT),
        cost_estimate=pl.CostEstimate(
            flops=2 * M * K * N, transcendentals=0,
            bytes_accessed=2 * (M * K + K * N + M * N)),
    )(*args)


# ----------------------------------------------------------------------------
# fused_mlp: (x [+ r]) + fc2(GELU(fc1(LN(x [+ r])))), hidden dim tiled
# ----------------------------------------------------------------------------

def _fused_mlp_kernel(has_res, *refs):
    if has_res:
        (x_ref, r_ref, g_ref, bb_ref, w1_ref, b1_ref, w2_ref, b2_ref,
         o_ref, xn_sc, acc_sc) = refs
    else:
        (x_ref, g_ref, bb_ref, w1_ref, b1_ref, w2_ref, b2_ref,
         o_ref, xn_sc, acc_sc) = refs
    hi = pl.program_id(1)

    @pl.when(hi == 0)
    def _():
        x = x_ref[...].astype(jnp.float32)
        if has_res:
            x = x + r_ref[...].astype(jnp.float32)   # fused residual add
        mu = jnp.mean(x, axis=-1, keepdims=True)
        var = jnp.mean(jnp.square(x - mu), axis=-1, keepdims=True)
        xn = (x - mu) * jax.lax.rsqrt(var + _LN_EPS) * g_ref[...] + bb_ref[...]
        xn_sc[...] = xn.astype(jnp.bfloat16)
        acc_sc[...] = x                              # MLP residual base

    hid = jnp.dot(xn_sc[...], w1_ref[...],
                  preferred_element_type=jnp.float32) + b1_ref[...]
    # TODO(synk): torch nn.GELU defaults to exact erf; tanh approximation used.
    hid = jax.nn.gelu(hid, approximate=True)
    acc_sc[...] += jnp.dot(hid.astype(jnp.bfloat16), w2_ref[...],
                           preferred_element_type=jnp.float32)

    @pl.when(hi == pl.num_programs(1) - 1)
    def _():
        o_ref[...] = (acc_sc[...] + b2_ref[...]).astype(o_ref.dtype)


def fused_mlp(x, gamma, beta, w1, b1, w2, b2, residual=None,
              bm_target=None, bh_target=None):
    """(x [+ r]) + fc2(GELU(fc1(LN(x [+ r])))); hidden H is tiled on an
    'arbitrary' grid axis with an f32 VMEM accumulator (VMEM-flat on v7x)."""
    M, D = x.shape
    H = w1.shape[1]
    if bm_target is None:
        bm_target = _BM_TARGET
    if bh_target is None:
        bh_target = _BH_TARGET
    bm = _row_block(M, bm_target)
    bh = _col_block(H, bh_target)
    has_res = residual is not None

    in_specs = [pl.BlockSpec((bm, D), lambda i, h: (i, 0))]
    args = [x.astype(jnp.bfloat16)]
    if has_res:
        in_specs.append(pl.BlockSpec((bm, D), lambda i, h: (i, 0)))
        args.append(residual.astype(jnp.bfloat16))
    in_specs += [
        pl.BlockSpec((1, D), lambda i, h: (0, 0)),
        pl.BlockSpec((1, D), lambda i, h: (0, 0)),
        pl.BlockSpec((D, bh), lambda i, h: (0, h)),
        pl.BlockSpec((1, bh), lambda i, h: (0, h)),
        pl.BlockSpec((bh, D), lambda i, h: (h, 0)),
        pl.BlockSpec((1, D), lambda i, h: (0, 0)),
    ]
    args += [gamma.astype(jnp.float32).reshape(1, D),
             beta.astype(jnp.float32).reshape(1, D),
             w1.astype(jnp.bfloat16), b1.astype(jnp.float32).reshape(1, H),
             w2.astype(jnp.bfloat16), b2.astype(jnp.float32).reshape(1, D)]
    return pl.pallas_call(
        functools.partial(_fused_mlp_kernel, has_res),
        grid=(M // bm, H // bh),
        in_specs=in_specs,
        out_specs=pl.BlockSpec((bm, D), lambda i, h: (i, 0)),
        out_shape=jax.ShapeDtypeStruct((M, D), jnp.bfloat16),
        scratch_shapes=[pltpu.VMEM((bm, D), jnp.bfloat16),
                        pltpu.VMEM((bm, D), jnp.float32)],
        compiler_params=pltpu.CompilerParams(
            dimension_semantics=("parallel", "arbitrary"),
            vmem_limit_bytes=_VMEM_LIMIT),
        cost_estimate=pl.CostEstimate(
            flops=4 * M * D * H, transcendentals=M * H,
            bytes_accessed=2 * (3 * M * D + 2 * D * H)),
    )(*args)


# ----------------------------------------------------------------------------
# Spatial multi-head attention over packed qkv (head-sliced by BlockSpec)
# ----------------------------------------------------------------------------

def _attention_kernel(scale, q_ref, k_ref, v_ref, o_ref):
    q = q_ref[...]
    k = k_ref[...]
    v = v_ref[...]
    s = jnp.einsum('bnd,bmd->bnm', q, k,
                   preferred_element_type=jnp.float32) * scale
    s = s - jnp.max(s, axis=-1, keepdims=True)
    p = jnp.exp(s)
    p = p / jnp.sum(p, axis=-1, keepdims=True)      # exact softmax denominator
    o = jnp.einsum('bnm,bmd->bnd', p.astype(v.dtype), v,
                   preferred_element_type=jnp.float32)
    o_ref[...] = o.astype(o_ref.dtype)


def _attention_row_block(M, Ntok, hd, cap=256):
    # per-row live bytes: ~3x f32 scores + double-buffered q/k/v + output
    per_row = 3 * Ntok * Ntok * 4 + 6 * Ntok * hd * 2 + 2 * Ntok * hd * 2
    budget = int(_VMEM_LIMIT * 0.6)
    target = max(1, min(cap, budget // max(per_row, 1)))
    return _divisor_block(M, target)


def fused_attention(qkv, num_heads):
    """MHSA over packed qkv (rows, tokens, 3*D); grid (rows/mb, heads), both
    'parallel'.  Head slices are taken by BlockSpec index maps; outputs are
    written head-merged (lane-dense).  Row block is sized from a VMEM budget.
    TODO(synk): online-softmax KV axis for very long token counts."""
    M, Ntok, threeD = qkv.shape
    D = threeD // 3
    hd = D // num_heads
    if hd % 128:
        # TODO(synk): pack two heads per 128-lane tile for head_dim < 128.
        raise NotImplementedError("fused_attention requires head_dim % 128 == 0")
    scale = hd ** -0.5
    mb = _attention_row_block(M, Ntok, hd)
    nh = num_heads
    qkv = qkv.astype(jnp.bfloat16)
    blk = (mb, Ntok, hd)
    return pl.pallas_call(
        functools.partial(_attention_kernel, scale),
        grid=(M // mb, nh),
        in_specs=[
            pl.BlockSpec(blk, lambda i, h: (i, 0, h)),            # q head h
            pl.BlockSpec(blk, lambda i, h: (i, 0, nh + h)),       # k head h
            pl.BlockSpec(blk, lambda i, h: (i, 0, 2 * nh + h)),   # v head h
        ],
        out_specs=pl.BlockSpec(blk, lambda i, h: (i, 0, h)),
        out_shape=jax.ShapeDtypeStruct((M, Ntok, D), jnp.bfloat16),
        compiler_params=pltpu.CompilerParams(
            dimension_semantics=("parallel", "parallel"),
            vmem_limit_bytes=_VMEM_LIMIT),
    )(qkv, qkv, qkv)


# ----------------------------------------------------------------------------
# Temporal attention fast path: T = 2 tokens, closed-form softmax on the VPU
# ----------------------------------------------------------------------------

def _temporal_attn2_kernel(D, num_heads, scale, x_ref, o_ref):
    # x_ref: (bm, 6*D) = [t0: q|k|v, t1: q|k|v]; o_ref: (bm, 2*D) = [o_t0|o_t1]
    hd = D // num_heads
    x = x_ref[...]
    for h in range(num_heads):
        lo, hi = h * hd, (h + 1) * hd
        q0 = x[:, lo:hi].astype(jnp.float32)
        k0 = x[:, D + lo:D + hi].astype(jnp.float32)
        v0 = x[:, 2 * D + lo:2 * D + hi].astype(jnp.float32)
        q1 = x[:, 3 * D + lo:3 * D + hi].astype(jnp.float32)
        k1 = x[:, 4 * D + lo:4 * D + hi].astype(jnp.float32)
        v1 = x[:, 5 * D + lo:5 * D + hi].astype(jnp.float32)
        s00 = jnp.sum(q0 * k0, axis=-1, keepdims=True) * scale
        s01 = jnp.sum(q0 * k1, axis=-1, keepdims=True) * scale
        s10 = jnp.sum(q1 * k0, axis=-1, keepdims=True) * scale
        s11 = jnp.sum(q1 * k1, axis=-1, keepdims=True) * scale
        p00 = jax.nn.sigmoid(s00 - s01)          # exact 2-way softmax
        p10 = jax.nn.sigmoid(s10 - s11)
        o0 = p00 * v0 + (1.0 - p00) * v1
        o1 = p10 * v0 + (1.0 - p10) * v1
        o_ref[:, lo:hi] = o0.astype(o_ref.dtype)
        o_ref[:, D + lo:D + hi] = o1.astype(o_ref.dtype)


def temporal_attention_t2(qkv_pairs, D, num_heads, bm_target=None):
    """qkv_pairs: (rows, 6*D) with columns [t0 qkv | t1 qkv] -> (rows, 2*D)."""
    M = qkv_pairs.shape[0]
    hd = D // num_heads
    scale = hd ** -0.5
    if bm_target is None:
        bm_target = _BM_TARGET
    bm = _row_block(M, bm_target)
    return pl.pallas_call(
        functools.partial(_temporal_attn2_kernel, D, num_heads, scale),
        grid=(M // bm,),
        in_specs=[pl.BlockSpec((bm, 6 * D), lambda i: (i, 0))],
        out_specs=pl.BlockSpec((bm, 2 * D), lambda i: (i, 0)),
        out_shape=jax.ShapeDtypeStruct((M, 2 * D), jnp.bfloat16),
        compiler_params=pltpu.CompilerParams(
            dimension_semantics=("parallel",),
            vmem_limit_bytes=_VMEM_LIMIT),
    )(qkv_pairs.astype(jnp.bfloat16))


# ----------------------------------------------------------------------------
# Model glue
# ----------------------------------------------------------------------------

def spatial_attention_block(x3, ln_g, ln_b, attn_p, num_heads):
    """Pre-norm MHSA: proj(MHSA(LN(x))); LN fused into the qkv matmul."""
    M, Ntok, D = x3.shape
    qkv = fused_linear(x3.reshape(M * Ntok, D), attn_p['qkv_w'],
                       bias=None, gamma=ln_g, beta=ln_b)          # qkv_bias=False
    o = fused_attention(qkv.reshape(M, Ntok, 3 * D), num_heads)
    o = fused_linear(o.reshape(M * Ntok, D), attn_p['proj_w'], attn_p['proj_b'])
    return o.reshape(M, Ntok, D)


def temporal_attention_pass(xt_flat, rows, T, D, ln_g, ln_b, attn_p, num_heads):
    """Temporal MHSA on (rows, T, D) token groups (T innermost in xt_flat)."""
    qkv = fused_linear(xt_flat, attn_p['qkv_w'], bias=None,
                       gamma=ln_g, beta=ln_b)                     # (rows*T, 3D)
    if T == 2:
        o = temporal_attention_t2(qkv.reshape(rows, T * 3 * D), D, num_heads)
        o = o.reshape(rows * T, D)
    else:
        o = fused_attention(qkv.reshape(rows, T, 3 * D), num_heads)
        o = o.reshape(rows * T, D)
    return fused_linear(o, attn_p['proj_w'], attn_p['proj_b'])    # (rows*T, D)


def patch_embed(x_bt, proj_w, proj_b, patch_size):
    """Conv2d(k=stride=patch) == non-overlapping patch extraction + matmul."""
    BT, C, H, W = x_bt.shape
    p = patch_size
    Hp, Wp = H // p, W // p
    # TODO(synk): patch gather could be folded into the matmul's BlockSpec (or
    # use lax.conv) to avoid this host-side relayout at large resolutions.
    patches = (x_bt.reshape(BT, C, Hp, p, Wp, p)
               .transpose(0, 2, 4, 1, 3, 5)
               .reshape(BT * Hp * Wp, C * p * p))
    out = fused_linear(patches, proj_w, proj_b)
    D = proj_w.shape[1]
    return out.reshape(BT, Hp * Wp, D)


def block_forward(x, p, B, T, num_heads):
    """Divided space-time TimeSformer block.  x: (B, 1 + N*T, D), tokens (h w t)."""
    _, L, D = x.shape
    N = (L - 1) // T
    # ---- temporal attention (+ temporal_fc with fused residual add) ----
    xt_in = x[:, 1:, :]                                           # (B, N*T, D)
    xt_in_flat = xt_in.reshape(B * N * T, D)
    res_t = temporal_attention_pass(xt_in_flat, B * N, T, D,
                                    p['tnorm_g'], p['tnorm_b'],
                                    p['tattn'], num_heads)
    xt_flat = fused_linear(res_t, p['tfc_w'], p['tfc_b'], residual=xt_in_flat)
    xt = xt_flat.reshape(B, N * T, D)
    # ---- spatial attention (cls averaged over T) ----
    init_cls = x[:, 0:1, :]                                       # (B, 1, D)
    cls_rep = jnp.broadcast_to(init_cls, (B, T, D)).reshape(B * T, 1, D)
    xs = xt.reshape(B, N, T, D).transpose(0, 2, 1, 3).reshape(B * T, N, D)
    xs = jnp.concatenate([cls_rep, xs], axis=1)                   # (B*T, N+1, D)
    res_s = spatial_attention_block(xs, p['norm1_g'], p['norm1_b'],
                                    p['attn'], num_heads)
    cls_out = jnp.mean(res_s[:, 0, :].reshape(B, T, D).astype(jnp.float32),
                       axis=1, keepdims=True)
    res_sp = (res_s[:, 1:, :].reshape(B, T, N, D)
              .transpose(0, 2, 1, 3).reshape(B, N * T, D))
    x_base = jnp.concatenate([init_cls, xt], axis=1)              # (B, L, D)
    x_res = jnp.concatenate([cls_out.astype(x.dtype), res_sp], axis=1)
    # ---- MLP: both the spatial residual add and the MLP residual are fused ----
    y = fused_mlp(x_base.reshape(B * L, D), p['norm2_g'], p['norm2_b'],
                  p['fc1_w'], p['fc1_b'], p['fc2_w'], p['fc2_b'],
                  residual=x_res.reshape(B * L, D))
    return y.reshape(B, L, D)


def cam_forward(x, p, *, patch_size, num_heads):
    """CAM.forward: x (B, T, C, H, W) -> cls_token (B, D) float32."""
    B, T, C, H, W = x.shape
    x_bt = x.reshape(B * T, C, H, W)      # == torch transpose + '(b t) c h w'
    tokens = patch_embed(x_bt, p['proj_w'], p['proj_b'], patch_size)
    BT, N, D = tokens.shape
    cls = jnp.broadcast_to(p['cls_token'].astype(tokens.dtype), (BT, 1, D))
    xx = jnp.concatenate([cls, tokens], axis=1)                   # (BT, N+1, D)
    # TODO(synk): pos_embed nearest-interpolation branch (token-count mismatch)
    # not implemented; Encoder_CAM always builds CAM with matching img_size.
    xx = xx + p['pos_embed'].astype(xx.dtype)
    cls_tokens = xx[:B, 0:1, :]                                   # as in reference
    xp = (xx[:, 1:, :].reshape(B, T, N, D)
          .transpose(0, 2, 1, 3).reshape(B * N, T, D))
    time_embed = p['time_embed']
    if T != time_embed.shape[1]:                                  # F.interpolate 'nearest'
        idx = (jnp.arange(T) * time_embed.shape[1]) // T
        time_embed = time_embed[:, idx, :]
    xp = xp + time_embed.astype(xp.dtype)
    xp = xp.reshape(B, N * T, D)
    xx = jnp.concatenate([cls_tokens, xp], axis=1)                # (B, 1 + N*T, D)
    for blk in p['blocks']:
        xx = block_forward(xx, blk, B, T, num_heads)
    # Final LayerNorm: only the cls row is observable (tiny -> plain JAX).
    # The CAM-internal head(cls) result is discarded by the reference.
    cls_row = xx[:, 0, :].astype(jnp.float32)
    mu = jnp.mean(cls_row, axis=-1, keepdims=True)
    var = jnp.mean(jnp.square(cls_row - mu), axis=-1, keepdims=True)
    return (cls_row - mu) * jax.lax.rsqrt(var + _LN_EPS) * p['norm_g'] + p['norm_b']


@functools.partial(jax.jit, static_argnames=("patch_size", "num_heads"))
def encoder_cam_forward(img, params, *, patch_size, num_heads):
    """Encoder_CAM.forward.  img: (B, L, C, H, W) -> (est_pose, decisions, probs)."""
    B, L = img.shape[0], img.shape[1]
    S = L - 1
    # Consecutive frame pairs folded into the batch dim -> CAM runs once.
    v = jnp.concatenate([img[:, :-1, None], img[:, 1:, None]], axis=2)
    v = v.reshape(B * S, 2, *img.shape[2:])                       # (B*S, T=2, C, H, W)
    cls = cam_forward(v, params['cam'], patch_size=patch_size,
                      num_heads=num_heads)                        # (B*S, D) f32
    cls_token = cls.reshape(B, S, -1)
    # Encoder head (D -> 6): tiny output, kept in plain JAX.
    est_pose = cls_token @ params['head_w'] + params['head_b']
    decisions = jnp.zeros((B, S, 2), jnp.float32)
    probs = jnp.zeros((B, S, 2), jnp.float32)
    return est_pose, decisions, probs


# ----------------------------------------------------------------------------
# Deterministic parameter init (bf16 matmul weights, f32 norms/biases)
# ----------------------------------------------------------------------------

def init_params(key, *, in_chans, patch_size, embed_dim, depth,
                mlp_ratio, num_patches, num_frames, v_f_len):
    keys = iter(jax.random.split(key, 8 + 8 * depth))

    def nrm(shape, std=0.02, dtype=jnp.bfloat16):
        return (jax.random.normal(next(keys), shape, jnp.float32) * std).astype(dtype)

    D = embed_dim
    H = int(D * mlp_ratio)
    P = patch_size
    cam = {
        # Conv2d(in_chans, D, k=P, s=P) weight flattened to a (C*P*P, D) matmul.
        'proj_w': nrm((in_chans * P * P, D)),
        'proj_b': jnp.zeros((D,), jnp.float32),
        'cls_token': nrm((1, 1, D), dtype=jnp.float32),
        'pos_embed': nrm((1, num_patches + 1, D), dtype=jnp.float32),
        'time_embed': jnp.zeros((1, num_frames, D), jnp.float32),
        'norm_g': jnp.ones((D,), jnp.float32),
        'norm_b': jnp.zeros((D,), jnp.float32),
        'blocks': [],
    }
    for _ in range(depth):
        cam['blocks'].append({
            'tnorm_g': jnp.ones((D,), jnp.float32),
            'tnorm_b': jnp.zeros((D,), jnp.float32),
            'tattn': {'qkv_w': nrm((D, 3 * D)),
                      'proj_w': nrm((D, D)),
                      'proj_b': jnp.zeros((D,), jnp.float32)},
            'tfc_w': nrm((D, D)),
            'tfc_b': jnp.zeros((D,), jnp.float32),
            'norm1_g': jnp.ones((D,), jnp.float32),
            'norm1_b': jnp.zeros((D,), jnp.float32),
            'attn': {'qkv_w': nrm((D, 3 * D)),
                     'proj_w': nrm((D, D)),
                     'proj_b': jnp.zeros((D,), jnp.float32)},
            'norm2_g': jnp.ones((D,), jnp.float32),
            'norm2_b': jnp.zeros((D,), jnp.float32),
            'fc1_w': nrm((D, H)),
            'fc1_b': jnp.zeros((H,), jnp.float32),
            'fc2_w': nrm((H, D)),
            'fc2_b': jnp.zeros((D,), jnp.float32),
        })
    return {
        'cam': cam,
        # Encoder_CAM.head: Linear(v_f_len, 6)
        'head_w': nrm((v_f_len, 6), dtype=jnp.float32),
        'head_b': jnp.zeros((6,), jnp.float32),
    }


# ----------------------------------------------------------------------------
# Main
# ----------------------------------------------------------------------------

if __name__ == "__main__":
    # Small, self-consistent configuration.
    B = 2
    num_images = 3                   # -> seq_len = 2 frame pairs, T = 2 per clip
    C, Himg, Wimg = 3, 32, 32
    patch_size = 16
    embed_dim = 256                  # opt.v_f_len; head_dim = 128 (lane-dense)
    depth = 2
    num_heads = 2
    mlp_ratio = 4.0
    num_frames = 8                   # CAM default -> time-embed nearest interp to T=2
    num_patches = (Himg // patch_size) * (Wimg // patch_size)

    key = jax.random.PRNGKey(0)
    pkey, xkey = jax.random.split(key)
    params = init_params(pkey, in_chans=C, patch_size=patch_size,
                         embed_dim=embed_dim, depth=depth,
                         mlp_ratio=mlp_ratio, num_patches=num_patches,
                         num_frames=num_frames, v_f_len=embed_dim)

    img = jax.random.normal(xkey, (B, num_images, C, Himg, Wimg), jnp.float32)

    est_pose, decisions, probs = encoder_cam_forward(
        img, params, patch_size=patch_size, num_heads=num_heads)
    est_pose = jax.block_until_ready(est_pose)
    decisions = jax.block_until_ready(decisions)
    probs = jax.block_until_ready(probs)

    assert est_pose.shape == (B, num_images - 1, 6), est_pose.shape
    assert decisions.shape == (B, num_images - 1, 2), decisions.shape
    assert probs.shape == (B, num_images - 1, 2), probs.shape
    assert bool(jnp.all(jnp.isfinite(est_pose)))
    print("KERNEL_OK")
</pallas_src>

<mosaic_0001>
module attributes {stable_mosaic.version = 11 : i64} {
  func.func @_fused_linear_kernel(%arg0: i32, %arg1: memref<32x768xbf16, #tpu.memory_space<vmem>>, %arg2: memref<768x256xbf16, #tpu.memory_space<vmem>>, %arg3: memref<1x256xf32, #tpu.memory_space<vmem>>, %arg4: memref<32x256xbf16, #tpu.memory_space<vmem>>) attributes {dimension_semantics = [#tpu.dimension_semantics<parallel>], iteration_bounds = array<i64: 1>, scalar_prefetch = 0 : i64, scratch_operands = 0 : i64, tpu.core_type = #tpu.core_type<tc>, window_params = [{transform_indices = @transform_0, window_bounds = array<i64: 32, 768>}, {pipeline_mode = #tpu.pipeline_mode<synchronous>, transform_indices = @transform_1, window_bounds = array<i64: 768, 256>}, {pipeline_mode = #tpu.pipeline_mode<synchronous>, transform_indices = @transform_2, window_bounds = array<i64: 1, 256>}, {transform_indices = @transform_3, window_bounds = array<i64: 32, 256>}]} {
    %c0 = arith.constant 0 : index
    %c0_0 = arith.constant 0 : index
    %0 = vector.load %arg1[%c0, %c0_0] : memref<32x768xbf16, #tpu.memory_space<vmem>>, vector<32x768xbf16>
    %1 = arith.extf %0 : vector<32x768xbf16> to vector<32x768xf32>
    %2 = arith.truncf %1 : vector<32x768xf32> to vector<32x768xbf16>
    %c0_1 = arith.constant 0 : index
    %c0_2 = arith.constant 0 : index
    %3 = vector.load %arg2[%c0_1, %c0_2] : memref<768x256xbf16, #tpu.memory_space<vmem>>, vector<768x256xbf16>
    %cst = arith.constant dense<0.000000e+00> : vector<32x256xf32>
    %4 = tpu.matmul %2, %3, %cst {dimension_numbers = #tpu.dot_dimension_numbers<[1], [0], [0], [1], [0, 0, 1, 1], [], []>} : vector<32x768xbf16>, vector<768x256xbf16>, vector<32x256xf32> -> vector<32x256xf32>
    %c0_3 = arith.constant 0 : index
    %c0_4 = arith.constant 0 : index
    %5 = vector.load %arg3[%c0_3, %c0_4] : memref<1x256xf32, #tpu.memory_space<vmem>>, vector<1x256xf32>
    %6 = vector.broadcast %5 : vector<1x256xf32> to vector<32x256xf32>
    %7 = arith.addf %4, %6 : vector<32x256xf32>
    %8 = arith.truncf %7 : vector<32x256xf32> to vector<32x256xbf16>
    %c0_5 = arith.constant 0 : index
    %c0_6 = arith.constant 0 : index
    %9 = vector.load %arg4[%c0_5, %c0_6] : memref<32x256xbf16, #tpu.memory_space<vmem>>, vector<32x256xbf16>
    tpu.vector_store %arg4[%c0_5, %c0_6], %8 {strides = array<i32>} : memref<32x256xbf16, #tpu.memory_space<vmem>>, vector<32x256xbf16>,
    return
  }
  func.func @transform_0(%arg0: i32) -> (i32, i32) {
    %c0_i32 = arith.constant 0 : i32
    %c0_i32_0 = arith.constant 0 : i32
    return %arg0, %c0_i32 : i32, i32
  }
  func.func @transform_1(%arg0: i32) -> (i32, i32) {
    %c0_i32 = arith.constant 0 : i32
    %c0_i32_0 = arith.constant 0 : i32
    %c0_i32_1 = arith.constant 0 : i32
    return %c0_i32, %c0_i32_0 : i32, i32
  }
  func.func @transform_2(%arg0: i32) -> (i32, i32) {
    %c0_i32 = arith.constant 0 : i32
    %c0_i32_0 = arith.constant 0 : i32
    %c0_i32_1 = arith.constant 0 : i32
    return %c0_i32, %c0_i32_0 : i32, i32
  }
  func.func @transform_3(%arg0: i32) -> (i32, i32) {
    %c0_i32 = arith.constant 0 : i32
    %c0_i32_0 = arith.constant 0 : i32
    return %arg0, %c0_i32 : i32, i32
  }
}

module attributes {stable_mosaic.version = 11 : i64} {
  func.func @_fused_linear_kernel(%arg0: i32, %arg1: memref<32x256xbf16, #tpu.memory_space<vmem>>, %arg2: memref<256x768xbf16, #tpu.memory_space<vmem>>, %arg3: memref<1x768xf32, #tpu.memory_space<vmem>>, %arg4: memref<1x256xf32, #tpu.memory_space<vmem>>, %arg5: memref<1x256xf32, #tpu.memory_space<vmem>>, %arg6: memref<32x768xbf16, #tpu.memory_space<vmem>>) attributes {dimension_semantics = [#tpu.dimension_semantics<parallel>], iteration_bounds = array<i64: 1>, scalar_prefetch = 0 : i64, scratch_operands = 0 : i64, tpu.core_type = #tpu.core_type<tc>, window_params = [{transform_indices = @transform_0, window_bounds = array<i64: 32, 256>}, {pipeline_mode = #tpu.pipeline_mode<synchronous>, transform_indices = @transform_1, window_bounds = array<i64: 256, 768>}, {pipeline_mode = #tpu.pipeline_mode<synchronous>, transform_indices = @transform_2, window_bounds = array<i64: 1, 768>}, {pipeline_mode = #tpu.pipeline_mode<synchronous>, transform_indices = @transform_3, window_bounds = array<i64: 1, 256>}, {pipeline_mode = #tpu.pipeline_mode<synchronous>, transform_indices = @transform_4, window_bounds = array<i64: 1, 256>}, {transform_indices = @transform_5, window_bounds = array<i64: 32, 768>}]} {
    %c0 = arith.constant 0 : index
    %c0_0 = arith.constant 0 : index
    %0 = vector.load %arg1[%c0, %c0_0] : memref<32x256xbf16, #tpu.memory_space<vmem>>, vector<32x256xbf16>
    %1 = arith.extf %0 : vector<32x256xbf16> to vector<32x256xf32>
    %cst = arith.constant dense<0.000000e+00> : vector<32xf32>
    %2 = vector.multi_reduction <add>, %1, %cst [1] : vector<32x256xf32> to vector<32xf32>
    %3 = vector.shape_cast %2 : vector<32xf32> to vector<32x1xf32>
    %cst_1 = arith.constant 2.560000e+02 : f32
    %4 = vector.broadcast %cst_1 : f32 to vector<32x1xf32>
    %5 = arith.divf %3, %4 : vector<32x1xf32>
    %6 = vector.broadcast %5 : vector<32x1xf32> to vector<32x256xf32>
    %7 = arith.subf %1, %6 : vector<32x256xf32>
    %8 = arith.mulf %7, %7 : vector<32x256xf32>
    %cst_2 = arith.constant dense<0.000000e+00> : vector<32xf32>
    %9 = vector.multi_reduction <add>, %8, %cst_2 [1] : vector<32x256xf32> to vector<32xf32>
    %10 = vector.shape_cast %9 : vector<32xf32> to vector<32x1xf32>
    %cst_3 = arith.constant 2.560000e+02 : f32
    %11 = vector.broadcast %cst_3 : f32 to vector<32x1xf32>
    %12 = arith.divf %10, %11 : vector<32x1xf32>
    %13 = vector.broadcast %5 : vector<32x1xf32> to vector<32x256xf32>
    %14 = arith.subf %1, %13 : vector<32x256xf32>
    %cst_4 = arith.constant 9.99999974E-6 : f32
    %15 = vector.broadcast %cst_4 : f32 to vector<32x1xf32>
    %16 = arith.addf %12, %15 : vector<32x1xf32>
    %17 = math.rsqrt %16 : vector<32x1xf32>
    %18 = vector.broadcast %17 : vector<32x1xf32> to vector<32x256xf32>
    %19 = arith.mulf %14, %18 : vector<32x256xf32>
    %c0_5 = arith.constant 0 : index
    %c0_6 = arith.constant 0 : index
    %20 = vector.load %arg4[%c0_5, %c0_6] : memref<1x256xf32, #tpu.memory_space<vmem>>, vector<1x256xf32>
    %21 = vector.broadcast %20 : vector<1x256xf32> to vector<32x256xf32>
    %22 = arith.mulf %19, %21 : vector<32x256xf32>
    %c0_7 = arith.constant 0 : index
    %c0_8 = arith.constant 0 : index
    %23 = vector.load %arg5[%c0_7, %c0_8] : memref<1x256xf32, #tpu.memory_space<vmem>>, vector<1x256xf32>
    %24 = vector.broadcast %23 : vector<1x256xf32> to vector<32x256xf32>
    %25 = arith.addf %22, %24 : vector<32x256xf32>
    %26 = arith.truncf %25 : vector<32x256xf32> to vector<32x256xbf16>
    %c0_9 = arith.constant 0 : index
    %c0_10 = arith.constant 0 : index
    %27 = vector.load %arg2[%c0_9, %c0_10] : memref<256x768xbf16, #tpu.memory_space<vmem>>, vector<256x768xbf16>
    %cst_11 = arith.constant dense<0.000000e+00> : vector<32x768xf32>
    %28 = tpu.matmul %26, %27, %cst_11 {dimension_numbers = #tpu.dot_dimension_numbers<[1], [0], [0], [1], [0, 0, 1, 1], [], []>} : vector<32x256xbf16>, vector<256x768xbf16>, vector<32x768xf32> -> vector<32x768xf32>
    %c0_12 = arith.constant 0 : index
    %c0_13 = arith.constant 0 : index
    %29 = vector.load %arg3[%c0_12, %c0_13] : memref<1x768xf32, #tpu.memory_space<vmem>>, vector<1x768xf32>
    %30 = vector.broadcast %29 : vector<1x768xf32> to vector<32x768xf32>
    %31 = arith.addf %28, %30 : vector<32x768xf32>
    %32 = arith.truncf %31 : vector<32x768xf32> to vector<32x768xbf16>
    %c0_14 = arith.constant 0 : index
    %c0_15 = arith.constant 0 : index
    %33 = vector.load %arg6[%c0_14, %c0_15] : memref<32x768xbf16, #tpu.memory_space<vmem>>, vector<32x768xbf16>
    tpu.vector_store %arg6[%c0_14, %c0_15], %32 {strides = array<i32>} : memref<32x768xbf16, #tpu.memory_space<vmem>>, vector<32x768xbf16>,
    return
  }
  func.func @transform_0(%arg0: i32) -> (i32, i32) {
    %c0_i32 = arith.constant 0 : i32
    %c0_i32_0 = arith.constant 0 : i32
    return %arg0, %c0_i32 : i32, i32
  }
  func.func @transform_1(%arg0: i32) -> (i32, i32) {
    %c0_i32 = arith.constant 0 : i32
    %c0_i32_0 = arith.constant 0 : i32
    %c0_i32_1 = arith.constant 0 : i32
    return %c0_i32, %c0_i32_0 : i32, i32
  }
  func.func @transform_2(%arg0: i32) -> (i32, i32) {
    %c0_i32 = arith.constant 0 : i32
    %c0_i32_0 = arith.constant 0 : i32
    %c0_i32_1 = arith.constant 0 : i32
    return %c0_i32, %c0_i32_0 : i32, i32
  }
  func.func @transform_3(%arg0: i32) -> (i32, i32) {
    %c0_i32 = arith.constant 0 : i32
    %c0_i32_0 = arith.constant 0 : i32
    %c0_i32_1 = arith.constant 0 : i32
    return %c0_i32, %c0_i32_0 : i32, i32
  }
  func.func @transform_4(%arg0: i32) -> (i32, i32) {
    %c0_i32 = arith.constant 0 : i32
    %c0_i32_0 = arith.constant 0 : i32
    %c0_i32_1 = arith.constant 0 : i32
    return %c0_i32, %c0_i32_0 : i32, i32
  }
  func.func @transform_5(%arg0: i32) -> (i32, i32) {
    %c0_i32 = arith.constant 0 : i32
    %c0_i32_0 = arith.constant 0 : i32
    return %arg0, %c0_i32 : i32, i32
  }
}

module attributes {stable_mosaic.version = 11 : i64} {
  func.func @_fused_linear_kernel(%arg0: i32, %arg1: memref<32x256xbf16, #tpu.memory_space<vmem>>, %arg2: memref<256x256xbf16, #tpu.memory_space<vmem>>, %arg3: memref<1x256xf32, #tpu.memory_space<vmem>>, %arg4: memref<32x256xbf16, #tpu.memory_space<vmem>>) attributes {dimension_semantics = [#tpu.dimension_semantics<parallel>], iteration_bounds = array<i64: 1>, scalar_prefetch = 0 : i64, scratch_operands = 0 : i64, tpu.core_type = #tpu.core_type<tc>, window_params = [{transform_indices = @transform_0, window_bounds = array<i64: 32, 256>}, {pipeline_mode = #tpu.pipeline_mode<synchronous>, transform_indices = @transform_1, window_bounds = array<i64: 256, 256>}, {pipeline_mode = #tpu.pipeline_mode<synchronous>, transform_indices = @transform_2, window_bounds = array<i64: 1, 256>}, {transform_indices = @transform_3, window_bounds = array<i64: 32, 256>}]} {
    %c0 = arith.constant 0 : index
    %c0_0 = arith.constant 0 : index
    %0 = vector.load %arg1[%c0, %c0_0] : memref<32x256xbf16, #tpu.memory_space<vmem>>, vector<32x256xbf16>
    %1 = arith.extf %0 : vector<32x256xbf16> to vector<32x256xf32>
    %2 = arith.truncf %1 : vector<32x256xf32> to vector<32x256xbf16>
    %c0_1 = arith.constant 0 : index
    %c0_2 = arith.constant 0 : index
    %3 = vector.load %arg2[%c0_1, %c0_2] : memref<256x256xbf16, #tpu.memory_space<vmem>>, vector<256x256xbf16>
    %cst = arith.constant dense<0.000000e+00> : vector<32x256xf32>
    %4 = tpu.matmul %2, %3, %cst {dimension_numbers = #tpu.dot_dimension_numbers<[1], [0], [0], [1], [0, 0, 1, 1], [], []>} : vector<32x256xbf16>, vector<256x256xbf16>, vector<32x256xf32> -> vector<32x256xf32>
    %c0_3 = arith.constant 0 : index
    %c0_4 = arith.constant 0 : index
    %5 = vector.load %arg3[%c0_3, %c0_4] : memref<1x256xf32, #tpu.memory_space<vmem>>, vector<1x256xf32>
    %6 = vector.broadcast %5 : vector<1x256xf32> to vector<32x256xf32>
    %7 = arith.addf %4, %6 : vector<32x256xf32>
    %8 = arith.truncf %7 : vector<32x256xf32> to vector<32x256xbf16>
    %c0_5 = arith.constant 0 : index
    %c0_6 = arith.constant 0 : index
    %9 = vector.load %arg4[%c0_5, %c0_6] : memref<32x256xbf16, #tpu.memory_space<vmem>>, vector<32x256xbf16>
    tpu.vector_store %arg4[%c0_5, %c0_6], %8 {strides = array<i32>} : memref<32x256xbf16, #tpu.memory_space<vmem>>, vector<32x256xbf16>,
    return
  }
  func.func @transform_0(%arg0: i32) -> (i32, i32) {
    %c0_i32 = arith.constant 0 : i32
    %c0_i32_0 = arith.constant 0 : i32
    return %arg0, %c0_i32 : i32, i32
  }
  func.func @transform_1(%arg0: i32) -> (i32, i32) {
    %c0_i32 = arith.constant 0 : i32
    %c0_i32_0 = arith.constant 0 : i32
    %c0_i32_1 = arith.constant 0 : i32
    return %c0_i32, %c0_i32_0 : i32, i32
  }
  func.func @transform_2(%arg0: i32) -> (i32, i32) {
    %c0_i32 = arith.constant 0 : i32
    %c0_i32_0 = arith.constant 0 : i32
    %c0_i32_1 = arith.constant 0 : i32
    return %c0_i32, %c0_i32_0 : i32, i32
  }
  func.func @transform_3(%arg0: i32) -> (i32, i32) {
    %c0_i32 = arith.constant 0 : i32
    %c0_i32_0 = arith.constant 0 : i32
    return %arg0, %c0_i32 : i32, i32
  }
}

module attributes {stable_mosaic.version = 11 : i64} {
  func.func @_temporal_attn2_kernel(%arg0: i32, %arg1: memref<16x1536xbf16, #tpu.memory_space<vmem>>, %arg2: memref<16x512xbf16, #tpu.memory_space<vmem>>) attributes {dimension_semantics = [#tpu.dimension_semantics<parallel>], iteration_bounds = array<i64: 1>, scalar_prefetch = 0 : i64, scratch_operands = 0 : i64, tpu.core_type = #tpu.core_type<tc>, window_params = [{transform_indices = @transform_0, window_bounds = array<i64: 16, 1536>}, {transform_indices = @transform_1, window_bounds = array<i64: 16, 512>}]} {
    %c0 = arith.constant 0 : index
    %c0_0 = arith.constant 0 : index
    %0 = vector.load %arg1[%c0, %c0_0] : memref<16x1536xbf16, #tpu.memory_space<vmem>>, vector<16x1536xbf16>
    %1 = vector.extract_strided_slice %0 {offsets = [0, 0], sizes = [16, 128], strides = [1, 1]} : vector<16x1536xbf16> to vector<16x128xbf16>
    %2 = arith.extf %1 : vector<16x128xbf16> to vector<16x128xf32>
    %3 = vector.extract_strided_slice %0 {offsets = [0, 256], sizes = [16, 128], strides = [1, 1]} : vector<16x1536xbf16> to vector<16x128xbf16>
    %4 = arith.extf %3 : vector<16x128xbf16> to vector<16x128xf32>
    %5 = vector.extract_strided_slice %0 {offsets = [0, 512], sizes = [16, 128], strides = [1, 1]} : vector<16x1536xbf16> to vector<16x128xbf16>
    %6 = arith.extf %5 : vector<16x128xbf16> to vector<16x128xf32>
    %7 = vector.extract_strided_slice %0 {offsets = [0, 768], sizes = [16, 128], strides = [1, 1]} : vector<16x1536xbf16> to vector<16x128xbf16>
    %8 = arith.extf %7 : vector<16x128xbf16> to vector<16x128xf32>
    %9 = vector.extract_strided_slice %0 {offsets = [0, 1024], sizes = [16, 128], strides = [1, 1]} : vector<16x1536xbf16> to vector<16x128xbf16>
    %10 = arith.extf %9 : vector<16x128xbf16> to vector<16x128xf32>
    %11 = vector.extract_strided_slice %0 {offsets = [0, 1280], sizes = [16, 128], strides = [1, 1]} : vector<16x1536xbf16> to vector<16x128xbf16>
    %12 = arith.extf %11 : vector<16x128xbf16> to vector<16x128xf32>
    %13 = arith.mulf %2, %4 : vector<16x128xf32>
    %cst = arith.constant dense<0.000000e+00> : vector<16xf32>
    %14 = vector.multi_reduction <add>, %13, %cst [1] : vector<16x128xf32> to vector<16xf32>
    %15 = vector.shape_cast %14 : vector<16xf32> to vector<16x1xf32>
    %cst_1 = arith.constant 0.0883883461 : f32
    %16 = vector.broadcast %cst_1 : f32 to vector<16x1xf32>
    %17 = arith.mulf %15, %16 : vector<16x1xf32>
    %18 = arith.mulf %2, %10 : vector<16x128xf32>
    %cst_2 = arith.constant dense<0.000000e+00> : vector<16xf32>
    %19 = vector.multi_reduction <add>, %18, %cst_2 [1] : vector<16x128xf32> to vector<16xf32>
    %20 = vector.shape_cast %19 : vector<16xf32> to vector<16x1xf32>
    %cst_3 = arith.constant 0.0883883461 : f32
    %21 = vector.broadcast %cst_3 : f32 to vector<16x1xf32>
    %22 = arith.mulf %20, %21 : vector<16x1xf32>
    %23 = arith.mulf %8, %4 : vector<16x128xf32>
    %cst_4 = arith.constant dense<0.000000e+00> : vector<16xf32>
    %24 = vector.multi_reduction <add>, %23, %cst_4 [1] : vector<16x128xf32> to vector<16xf32>
    %25 = vector.shape_cast %24 : vector<16xf32> to vector<16x1xf32>
    %cst_5 = arith.constant 0.0883883461 : f32
    %26 = vector.broadcast %cst_5 : f32 to vector<16x1xf32>
    %27 = arith.mulf %25, %26 : vector<16x1xf32>
    %28 = arith.mulf %8, %10 : vector<16x128xf32>
    %cst_6 = arith.constant dense<0.000000e+00> : vector<16xf32>
    %29 = vector.multi_reduction <add>, %28, %cst_6 [1] : vector<16x128xf32> to vector<16xf32>
    %30 = vector.shape_cast %29 : vector<16xf32> to vector<16x1xf32>
    %cst_7 = arith.constant 0.0883883461 : f32
    %31 = vector.broadcast %cst_7 : f32 to vector<16x1xf32>
    %32 = arith.mulf %30, %31 : vector<16x1xf32>
    %33 = arith.subf %17, %22 : vector<16x1xf32>
    %34 = arith.negf %33 : vector<16x1xf32>
    %35 = math.exp %34 : vector<16x1xf32>
    %cst_8 = arith.constant 1.000000e+00 : f32
    %36 = vector.broadcast %cst_8 : f32 to vector<16x1xf32>
    %37 = arith.addf %36, %35 : vector<16x1xf32>
    %38 = arith.divf %36, %37 : vector<16x1xf32>
    %39 = arith.subf %27, %32 : vector<16x1xf32>
    %40 = arith.negf %39 : vector<16x1xf32>
    %41 = math.exp %40 : vector<16x1xf32>
    %cst_9 = arith.constant 1.000000e+00 : f32
    %42 = vector.broadcast %cst_9 : f32 to vector<16x1xf32>
    %43 = arith.addf %42, %41 : vector<16x1xf32>
    %44 = arith.divf %42, %43 : vector<16x1xf32>
    %45 = vector.broadcast %38 : vector<16x1xf32> to vector<16x128xf32>
    %46 = arith.mulf %45, %6 : vector<16x128xf32>
    %cst_10 = arith.constant 1.000000e+00 : f32
    %47 = vector.broadcast %cst_10 : f32 to vector<16x1xf32>
    %48 = arith.subf %47, %38 : vector<16x1xf32>
    %49 = vector.broadcast %48 : vector<16x1xf32> to vector<16x128xf32>
    %50 = arith.mulf %49, %12 : vector<16x128xf32>
    %51 = arith.addf %46, %50 : vector<16x128xf32>
    %52 = vector.broadcast %44 : vector<16x1xf32> to vector<16x128xf32>
    %53 = arith.mulf %52, %6 : vector<16x128xf32>
    %cst_11 = arith.constant 1.000000e+00 : f32
    %54 = vector.broadcast %cst_11 : f32 to vector<16x1xf32>
    %55 = arith.subf %54, %44 : vector<16x1xf32>
    %56 = vector.broadcast %55 : vector<16x1xf32> to vector<16x128xf32>
    %57 = arith.mulf %56, %12 : vector<16x128xf32>
    %58 = arith.addf %53, %57 : vector<16x128xf32>
    %59 = arith.truncf %51 : vector<16x128xf32> to vector<16x128xbf16>
    %c0_12 = arith.constant 0 : index
    %c0_13 = arith.constant 0 : index
    %60 = vector.load %arg2[%c0_12, %c0_13] : memref<16x512xbf16, #tpu.memory_space<vmem>>, vector<16x128xbf16>
    tpu.vector_store %arg2[%c0_12, %c0_13], %59 {strides = array<i32>} : memref<16x512xbf16, #tpu.memory_space<vmem>>, vector<16x128xbf16>,
    %61 = arith.truncf %58 : vector<16x128xf32> to vector<16x128xbf16>
    %c0_14 = arith.constant 0 : index
    %c256 = arith.constant 256 : index
    %62 = vector.load %arg2[%c0_14, %c256] : memref<16x512xbf16, #tpu.memory_space<vmem>>, vector<16x128xbf16>
    tpu.vector_store %arg2[%c0_14, %c256], %61 {strides = array<i32>} : memref<16x512xbf16, #tpu.memory_space<vmem>>, vector<16x128xbf16>,
    %63 = vector.extract_strided_slice %0 {offsets = [0, 128], sizes = [16, 128], strides = [1, 1]} : vector<16x1536xbf16> to vector<16x128xbf16>
    %64 = arith.extf %63 : vector<16x128xbf16> to vector<16x128xf32>
    %65 = vector.extract_strided_slice %0 {offsets = [0, 384], sizes = [16, 128], strides = [1, 1]} : vector<16x1536xbf16> to vector<16x128xbf16>
    %66 = arith.extf %65 : vector<16x128xbf16> to vector<16x128xf32>
    %67 = vector.extract_strided_slice %0 {offsets = [0, 640], sizes = [16, 128], strides = [1, 1]} : vector<16x1536xbf16> to vector<16x128xbf16>
    %68 = arith.extf %67 : vector<16x128xbf16> to vector<16x128xf32>
    %69 = vector.extract_strided_slice %0 {offsets = [0, 896], sizes = [16, 128], strides = [1, 1]} : vector<16x1536xbf16> to vector<16x128xbf16>
    %70 = arith.extf %69 : vector<16x128xbf16> to vector<16x128xf32>
    %71 = vector.extract_strided_slice %0 {offsets = [0, 1152], sizes = [16, 128], strides = [1, 1]} : vector<16x1536xbf16> to vector<16x128xbf16>
    %72 = arith.extf %71 : vector<16x128xbf16> to vector<16x128xf32>
    %73 = vector.extract_strided_slice %0 {offsets = [0, 1408], sizes = [16, 128], strides = [1, 1]} : vector<16x1536xbf16> to vector<16x128xbf16>
    %74 = arith.extf %73 : vector<16x128xbf16> to vector<16x128xf32>
    %75 = arith.mulf %64, %66 : vector<16x128xf32>
    %cst_15 = arith.constant dense<0.000000e+00> : vector<16xf32>
    %76 = vector.multi_reduction <add>, %75, %cst_15 [1] : vector<16x128xf32> to vector<16xf32>
    %77 = vector.shape_cast %76 : vector<16xf32> to vector<16x1xf32>
    %cst_16 = arith.constant 0.0883883461 : f32
    %78 = vector.broadcast %cst_16 : f32 to vector<16x1xf32>
    %79 = arith.mulf %77, %78 : vector<16x1xf32>
    %80 = arith.mulf %64, %72 : vector<16x128xf32>
    %cst_17 = arith.constant dense<0.000000e+00> : vector<16xf32>
    %81 = vector.multi_reduction <add>, %80, %cst_17 [1] : vector<16x128xf32> to vector<16xf32>
    %82 = vector.shape_cast %81 : vector<16xf32> to vector<16x1xf32>
    %cst_18 = arith.constant 0.0883883461 : f32
    %83 = vector.broadcast %cst_18 : f32 to vector<16x1xf32>
    %84 = arith.mulf %82, %83 : vector<16x1xf32>
    %85 = arith.mulf %70, %66 : vector<16x128xf32>
    %cst_19 = arith.constant dense<0.000000e+00> : vector<16xf32>
    %86 = vector.multi_reduction <add>, %85, %cst_19 [1] : vector<16x128xf32> to vector<16xf32>
    %87 = vector.shape_cast %86 : vector<16xf32> to vector<16x1xf32>
    %cst_20 = arith.constant 0.0883883461 : f32
    %88 = vector.broadcast %cst_20 : f32 to vector<16x1xf32>
    %89 = arith.mulf %87, %88 : vector<16x1xf32>
    %90 = arith.mulf %70, %72 : vector<16x128xf32>
    %cst_21 = arith.constant dense<0.000000e+00> : vector<16xf32>
    %91 = vector.multi_reduction <add>, %90, %cst_21 [1] : vector<16x128xf32> to vector<16xf32>
    %92 = vector.shape_cast %91 : vector<16xf32> to vector<16x1xf32>
    %cst_22 = arith.constant 0.0883883461 : f32
    %93 = vector.broadcast %cst_22 : f32 to vector<16x1xf32>
    %94 = arith.mulf %92, %93 : vector<16x1xf32>
    %95 = arith.subf %79, %84 : vector<16x1xf32>
    %96 = arith.negf %95 : vector<16x1xf32>
    %97 = math.exp %96 : vector<16x1xf32>
    %cst_23 = arith.constant 1.000000e+00 : f32
    %98 = vector.broadcast %cst_23 : f32 to vector<16x1xf32>
    %99 = arith.addf %98, %97 : vector<16x1xf32>
    %100 = arith.divf %98, %99 : vector<16x1xf32>
    %101 = arith.subf %89, %94 : vector<16x1xf32>
    %102 = arith.negf %101 : vector<16x1xf32>
    %103 = math.exp %102 : vector<16x1xf32>
    %cst_24 = arith.constant 1.000000e+00 : f32
    %104 = vector.broadcast %cst_24 : f32 to vector<16x1xf32>
    %105 = arith.addf %104, %103 : vector<16x1xf32>
    %106 = arith.divf %104, %105 : vector<16x1xf32>
    %107 = vector.broadcast %100 : vector<16x1xf32> to vector<16x128xf32>
    %108 = arith.mulf %107, %68 : vector<16x128xf32>
    %cst_25 = arith.constant 1.000000e+00 : f32
    %109 = vector.broadcast %cst_25 : f32 to vector<16x1xf32>
    %110 = arith.subf %109, %100 : vector<16x1xf32>
    %111 = vector.broadcast %110 : vector<16x1xf32> to vector<16x128xf32>
    %112 = arith.mulf %111, %74 : vector<16x128xf32>
    %113 = arith.addf %108, %112 : vector<16x128xf32>
    %114 = vector.broadcast %106 : vector<16x1xf32> to vector<16x128xf32>
    %115 = arith.mulf %114, %68 : vector<16x128xf32>
    %cst_26 = arith.constant 1.000000e+00 : f32
    %116 = vector.broadcast %cst_26 : f32 to vector<16x1xf32>
    %117 = arith.subf %116, %106 : vector<16x1xf32>
    %118 = vector.broadcast %117 : vector<16x1xf32> to vector<16x128xf32>
    %119 = arith.mulf %118, %74 : vector<16x128xf32>
    %120 = arith.addf %115, %119 : vector<16x128xf32>
    %121 = arith.truncf %113 : vector<16x128xf32> to vector<16x128xbf16>
    %c0_27 = arith.constant 0 : index
    %c128 = arith.constant 128 : index
    %122 = vector.load %arg2[%c0_27, %c128] : memref<16x512xbf16, #tpu.memory_space<vmem>>, vector<16x128xbf16>
    tpu.vector_store %arg2[%c0_27, %c128], %121 {strides = array<i32>} : memref<16x512xbf16, #tpu.memory_space<vmem>>, vector<16x128xbf16>,
    %123 = arith.truncf %120 : vector<16x128xf32> to vector<16x128xbf16>
    %c0_28 = arith.constant 0 : index
    %c384 = arith.constant 384 : index
    %124 = vector.load %arg2[%c0_28, %c384] : memref<16x512xbf16, #tpu.memory_space<vmem>>, vector<16x128xbf16>
    tpu.vector_store %arg2[%c0_28, %c384], %123 {strides = array<i32>} : memref<16x512xbf16, #tpu.memory_space<vmem>>, vector<16x128xbf16>,
    return
  }
  func.func @transform_0(%arg0: i32) -> (i32, i32) {
    %c0_i32 = arith.constant 0 : i32
    %c0_i32_0 = arith.constant 0 : i32
    return %arg0, %c0_i32 : i32, i32
  }
  func.func @transform_1(%arg0: i32) -> (i32, i32) {
    %c0_i32 = arith.constant 0 : i32
    %c0_i32_0 = arith.constant 0 : i32
    return %arg0, %c0_i32 : i32, i32
  }
}

module attributes {stable_mosaic.version = 11 : i64} {
  func.func @_fused_linear_kernel(%arg0: i32, %arg1: memref<40x256xbf16, #tpu.memory_space<vmem>>, %arg2: memref<256x256xbf16, #tpu.memory_space<vmem>>, %arg3: memref<1x256xf32, #tpu.memory_space<vmem>>, %arg4: memref<40x256xbf16, #tpu.memory_space<vmem>>) attributes {dimension_semantics = [#tpu.dimension_semantics<parallel>], iteration_bounds = array<i64: 1>, scalar_prefetch = 0 : i64, scratch_operands = 0 : i64, tpu.core_type = #tpu.core_type<tc>, window_params = [{transform_indices = @transform_0, window_bounds = array<i64: 40, 256>}, {pipeline_mode = #tpu.pipeline_mode<synchronous>, transform_indices = @transform_1, window_bounds = array<i64: 256, 256>}, {pipeline_mode = #tpu.pipeline_mode<synchronous>, transform_indices = @transform_2, window_bounds = array<i64: 1, 256>}, {transform_indices = @transform_3, window_bounds = array<i64: 40, 256>}]} {
    %c0 = arith.constant 0 : index
    %c0_0 = arith.constant 0 : index
    %0 = vector.load %arg1[%c0, %c0_0] : memref<40x256xbf16, #tpu.memory_space<vmem>>, vector<40x256xbf16>
    %1 = arith.extf %0 : vector<40x256xbf16> to vector<40x256xf32>
    %2 = arith.truncf %1 : vector<40x256xf32> to vector<40x256xbf16>
    %c0_1 = arith.constant 0 : index
    %c0_2 = arith.constant 0 : index
    %3 = vector.load %arg2[%c0_1, %c0_2] : memref<256x256xbf16, #tpu.memory_space<vmem>>, vector<256x256xbf16>
    %cst = arith.constant dense<0.000000e+00> : vector<40x256xf32>
    %4 = tpu.matmul %2, %3, %cst {dimension_numbers = #tpu.dot_dimension_numbers<[1], [0], [0], [1], [0, 0, 1, 1], [], []>} : vector<40x256xbf16>, vector<256x256xbf16>, vector<40x256xf32> -> vector<40x256xf32>
    %c0_3 = arith.constant 0 : index
    %c0_4 = arith.constant 0 : index
    %5 = vector.load %arg3[%c0_3, %c0_4] : memref<1x256xf32, #tpu.memory_space<vmem>>, vector<1x256xf32>
    %6 = vector.broadcast %5 : vector<1x256xf32> to vector<40x256xf32>
    %7 = arith.addf %4, %6 : vector<40x256xf32>
    %8 = arith.truncf %7 : vector<40x256xf32> to vector<40x256xbf16>
    %c0_5 = arith.constant 0 : index
    %c0_6 = arith.constant 0 : index
    %9 = vector.load %arg4[%c0_5, %c0_6] : memref<40x256xbf16, #tpu.memory_space<vmem>>, vector<40x256xbf16>
    tpu.vector_store %arg4[%c0_5, %c0_6], %8 {strides = array<i32>} : memref<40x256xbf16, #tpu.memory_space<vmem>>, vector<40x256xbf16>,
    return
  }
  func.func @transform_0(%arg0: i32) -> (i32, i32) {
    %c0_i32 = arith.constant 0 : i32
    %c0_i32_0 = arith.constant 0 : i32
    return %arg0, %c0_i32 : i32, i32
  }
  func.func @transform_1(%arg0: i32) -> (i32, i32) {
    %c0_i32 = arith.constant 0 : i32
    %c0_i32_0 = arith.constant 0 : i32
    %c0_i32_1 = arith.constant 0 : i32
    return %c0_i32, %c0_i32_0 : i32, i32
  }
  func.func @transform_2(%arg0: i32) -> (i32, i32) {
    %c0_i32 = arith.constant 0 : i32
    %c0_i32_0 = arith.constant 0 : i32
    %c0_i32_1 = arith.constant 0 : i32
    return %c0_i32, %c0_i32_0 : i32, i32
  }
  func.func @transform_3(%arg0: i32) -> (i32, i32) {
    %c0_i32 = arith.constant 0 : i32
    %c0_i32_0 = arith.constant 0 : i32
    return %arg0, %c0_i32 : i32, i32
  }
}

module attributes {stable_mosaic.version = 11 : i64} {
  func.func @_attention_kernel(%arg0: i32, %arg1: i32, %arg2: memref<8x5x128xbf16, #tpu.memory_space<vmem>>, %arg3: memref<8x5x128xbf16, #tpu.memory_space<vmem>>, %arg4: memref<8x5x128xbf16, #tpu.memory_space<vmem>>, %arg5: memref<8x5x128xbf16, #tpu.memory_space<vmem>>) attributes {dimension_semantics = [#tpu.dimension_semantics<parallel>, #tpu.dimension_semantics<parallel>], iteration_bounds = array<i64: 1, 2>, scalar_prefetch = 0 : i64, scratch_operands = 0 : i64, tpu.core_type = #tpu.core_type<tc>, window_params = [{transform_indices = @transform_0, window_bounds = array<i64: 8, 5, 128>}, {transform_indices = @transform_1, window_bounds = array<i64: 8, 5, 128>}, {transform_indices = @transform_2, window_bounds = array<i64: 8, 5, 128>}, {transform_indices = @transform_3, window_bounds = array<i64: 8, 5, 128>}]} {
    %c0 = arith.constant 0 : index
    %c0_0 = arith.constant 0 : index
    %c0_1 = arith.constant 0 : index
    %0 = vector.load %arg2[%c0, %c0_0, %c0_1] : memref<8x5x128xbf16, #tpu.memory_space<vmem>>, vector<8x5x128xbf16>
    %c0_2 = arith.constant 0 : index
    %c0_3 = arith.constant 0 : index
    %c0_4 = arith.constant 0 : index
    %1 = vector.load %arg3[%c0_2, %c0_3, %c0_4] : memref<8x5x128xbf16, #tpu.memory_space<vmem>>, vector<8x5x128xbf16>
    %c0_5 = arith.constant 0 : index
    %c0_6 = arith.constant 0 : index
    %c0_7 = arith.constant 0 : index
    %2 = vector.load %arg4[%c0_5, %c0_6, %c0_7] : memref<8x5x128xbf16, #tpu.memory_space<vmem>>, vector<8x5x128xbf16>
    "tpu.trace_start"() <{level = 10 : i32, message = "bnd,bmd->bnm"}> : () -> ()
    %cst = arith.constant dense<0.000000e+00> : vector<8x5x5xf32>
    %3 = tpu.matmul %0, %1, %cst {dimension_numbers = #tpu.dot_dimension_numbers<[2], [2], [1], [1], [0, 0, 0, 1, 1, 1], [0], [0]>} : vector<8x5x128xbf16>, vector<8x5x128xbf16>, vector<8x5x5xf32> -> vector<8x5x5xf32>
    "tpu.trace_stop"() : () -> ()
    %cst_8 = arith.constant 0.0883883461 : f32
    %4 = vector.broadcast %cst_8 : f32 to vector<8x5x5xf32>
    %5 = arith.mulf %3, %4 : vector<8x5x5xf32>
    %cst_9 = arith.constant dense<0xFF800000> : vector<8x5xf32>
    %6 = vector.multi_reduction <maximumf>, %5, %cst_9 [2] : vector<8x5x5xf32> to vector<8x5xf32>
    %7 = vector.shape_cast %6 : vector<8x5xf32> to vector<8x5x1xf32>
    %8 = vector.broadcast %7 : vector<8x5x1xf32> to vector<8x5x5xf32>
    %9 = arith.subf %5, %8 : vector<8x5x5xf32>
    %10 = math.exp %9 : vector<8x5x5xf32>
    %cst_10 = arith.constant dense<0.000000e+00> : vector<8x5xf32>
    %11 = vector.multi_reduction <add>, %10, %cst_10 [2] : vector<8x5x5xf32> to vector<8x5xf32>
    %12 = vector.shape_cast %11 : vector<8x5xf32> to vector<8x5x1xf32>
    %13 = vector.broadcast %12 : vector<8x5x1xf32> to vector<8x5x5xf32>
    %14 = arith.divf %10, %13 : vector<8x5x5xf32>
    %15 = arith.truncf %14 : vector<8x5x5xf32> to vector<8x5x5xbf16>
    "tpu.trace_start"() <{level = 10 : i32, message = "bnm,bmd->bnd"}> : () -> ()
    %cst_11 = arith.constant dense<0.000000e+00> : vector<8x5x128xf32>
    %16 = tpu.matmul %15, %2, %cst_11 {dimension_numbers = #tpu.dot_dimension_numbers<[2], [1], [1], [2], [0, 0, 0, 1, 1, 2], [0], [0]>} : vector<8x5x5xbf16>, vector<8x5x128xbf16>, vector<8x5x128xf32> -> vector<8x5x128xf32>
    "tpu.trace_stop"() : () -> ()
    %17 = arith.truncf %16 : vector<8x5x128xf32> to vector<8x5x128xbf16>
    %c0_12 = arith.constant 0 : index
    %c0_13 = arith.constant 0 : index
    %c0_14 = arith.constant 0 : index
    %18 = vector.load %arg5[%c0_12, %c0_13, %c0_14] : memref<8x5x128xbf16, #tpu.memory_space<vmem>>, vector<8x5x128xbf16>
    tpu.vector_store %arg5[%c0_12, %c0_13, %c0_14], %17 {strides = array<i32>} : memref<8x5x128xbf16, #tpu.memory_space<vmem>>, vector<8x5x128xbf16>,
    return
  }
  func.func @transform_0(%arg0: i32, %arg1: i32) -> (i32, i32, i32) {
    %c0_i32 = arith.constant 0 : i32
    %c0_i32_0 = arith.constant 0 : i32
    return %arg0, %c0_i32, %arg1 : i32, i32, i32
  }
  func.func @transform_1(%arg0: i32, %arg1: i32) -> (i32, i32, i32) {
    %c2_i32 = arith.constant 2 : i32
    %0 = arith.addi %c2_i32, %arg1 : i32
    %c0_i32 = arith.constant 0 : i32
    %c0_i32_0 = arith.constant 0 : i32
    return %arg0, %c0_i32, %0 : i32, i32, i32
  }
  func.func @transform_2(%arg0: i32, %arg1: i32) -> (i32, i32, i32) {
    %c4_i32 = arith.constant 4 : i32
    %0 = arith.addi %c4_i32, %arg1 : i32
    %c0_i32 = arith.constant 0 : i32
    %c0_i32_0 = arith.constant 0 : i32
    return %arg0, %c0_i32, %0 : i32, i32, i32
  }
  func.func @transform_3(%arg0: i32, %arg1: i32) -> (i32, i32, i32) {
    %c0_i32 = arith.constant 0 : i32
    %c0_i32_0 = arith.constant 0 : i32
    return %arg0, %c0_i32, %arg1 : i32, i32, i32
  }
}

module attributes {stable_mosaic.version = 11 : i64} {
  func.func @_fused_linear_kernel(%arg0: i32, %arg1: memref<40x256xbf16, #tpu.memory_space<vmem>>, %arg2: memref<256x768xbf16, #tpu.memory_space<vmem>>, %arg3: memref<1x768xf32, #tpu.memory_space<vmem>>, %arg4: memref<1x256xf32, #tpu.memory_space<vmem>>, %arg5: memref<1x256xf32, #tpu.memory_space<vmem>>, %arg6: memref<40x768xbf16, #tpu.memory_space<vmem>>) attributes {dimension_semantics = [#tpu.dimension_semantics<parallel>], iteration_bounds = array<i64: 1>, scalar_prefetch = 0 : i64, scratch_operands = 0 : i64, tpu.core_type = #tpu.core_type<tc>, window_params = [{transform_indices = @transform_0, window_bounds = array<i64: 40, 256>}, {pipeline_mode = #tpu.pipeline_mode<synchronous>, transform_indices = @transform_1, window_bounds = array<i64: 256, 768>}, {pipeline_mode = #tpu.pipeline_mode<synchronous>, transform_indices = @transform_2, window_bounds = array<i64: 1, 768>}, {pipeline_mode = #tpu.pipeline_mode<synchronous>, transform_indices = @transform_3, window_bounds = array<i64: 1, 256>}, {pipeline_mode = #tpu.pipeline_mode<synchronous>, transform_indices = @transform_4, window_bounds = array<i64: 1, 256>}, {transform_indices = @transform_5, window_bounds = array<i64: 40, 768>}]} {
    %c0 = arith.constant 0 : index
    %c0_0 = arith.constant 0 : index
    %0 = vector.load %arg1[%c0, %c0_0] : memref<40x256xbf16, #tpu.memory_space<vmem>>, vector<40x256xbf16>
    %1 = arith.extf %0 : vector<40x256xbf16> to vector<40x256xf32>
    %cst = arith.constant dense<0.000000e+00> : vector<40xf32>
    %2 = vector.multi_reduction <add>, %1, %cst [1] : vector<40x256xf32> to vector<40xf32>
    %3 = vector.shape_cast %2 : vector<40xf32> to vector<40x1xf32>
    %cst_1 = arith.constant 2.560000e+02 : f32
    %4 = vector.broadcast %cst_1 : f32 to vector<40x1xf32>
    %5 = arith.divf %3, %4 : vector<40x1xf32>
    %6 = vector.broadcast %5 : vector<40x1xf32> to vector<40x256xf32>
    %7 = arith.subf %1, %6 : vector<40x256xf32>
    %8 = arith.mulf %7, %7 : vector<40x256xf32>
    %cst_2 = arith.constant dense<0.000000e+00> : vector<40xf32>
    %9 = vector.multi_reduction <add>, %8, %cst_2 [1] : vector<40x256xf32> to vector<40xf32>
    %10 = vector.shape_cast %9 : vector<40xf32> to vector<40x1xf32>
    %cst_3 = arith.constant 2.560000e+02 : f32
    %11 = vector.broadcast %cst_3 : f32 to vector<40x1xf32>
    %12 = arith.divf %10, %11 : vector<40x1xf32>
    %13 = vector.broadcast %5 : vector<40x1xf32> to vector<40x256xf32>
    %14 = arith.subf %1, %13 : vector<40x256xf32>
    %cst_4 = arith.constant 9.99999974E-6 : f32
    %15 = vector.broadcast %cst_4 : f32 to vector<40x1xf32>
    %16 = arith.addf %12, %15 : vector<40x1xf32>
    %17 = math.rsqrt %16 : vector<40x1xf32>
    %18 = vector.broadcast %17 : vector<40x1xf32> to vector<40x256xf32>
    %19 = arith.mulf %14, %18 : vector<40x256xf32>
    %c0_5 = arith.constant 0 : index
    %c0_6 = arith.constant 0 : index
    %20 = vector.load %arg4[%c0_5, %c0_6] : memref<1x256xf32, #tpu.memory_space<vmem>>, vector<1x256xf32>
    %21 = vector.broadcast %20 : vector<1x256xf32> to vector<40x256xf32>
    %22 = arith.mulf %19, %21 : vector<40x256xf32>
    %c0_7 = arith.constant 0 : index
    %c0_8 = arith.constant 0 : index
    %23 = vector.load %arg5[%c0_7, %c0_8] : memref<1x256xf32, #tpu.memory_space<vmem>>, vector<1x256xf32>
    %24 = vector.broadcast %23 : vector<1x256xf32> to vector<40x256xf32>
    %25 = arith.addf %22, %24 : vector<40x256xf32>
    %26 = arith.truncf %25 : vector<40x256xf32> to vector<40x256xbf16>
    %c0_9 = arith.constant 0 : index
    %c0_10 = arith.constant 0 : index
    %27 = vector.load %arg2[%c0_9, %c0_10] : memref<256x768xbf16, #tpu.memory_space<vmem>>, vector<256x768xbf16>
    %cst_11 = arith.constant dense<0.000000e+00> : vector<40x768xf32>
    %28 = tpu.matmul %26, %27, %cst_11 {dimension_numbers = #tpu.dot_dimension_numbers<[1], [0], [0], [1], [0, 0, 1, 1], [], []>} : vector<40x256xbf16>, vector<256x768xbf16>, vector<40x768xf32> -> vector<40x768xf32>
    %c0_12 = arith.constant 0 : index
    %c0_13 = arith.constant 0 : index
    %29 = vector.load %arg3[%c0_12, %c0_13] : memref<1x768xf32, #tpu.memory_space<vmem>>, vector<1x768xf32>
    %30 = vector.broadcast %29 : vector<1x768xf32> to vector<40x768xf32>
    %31 = arith.addf %28, %30 : vector<40x768xf32>
    %32 = arith.truncf %31 : vector<40x768xf32> to vector<40x768xbf16>
    %c0_14 = arith.constant 0 : index
    %c0_15 = arith.constant 0 : index
    %33 = vector.load %arg6[%c0_14, %c0_15] : memref<40x768xbf16, #tpu.memory_space<vmem>>, vector<40x768xbf16>
    tpu.vector_store %arg6[%c0_14, %c0_15], %32 {strides = array<i32>} : memref<40x768xbf16, #tpu.memory_space<vmem>>, vector<40x768xbf16>,
    return
  }
  func.func @transform_0(%arg0: i32) -> (i32, i32) {
    %c0_i32 = arith.constant 0 : i32
    %c0_i32_0 = arith.constant 0 : i32
    return %arg0, %c0_i32 : i32, i32
  }
  func.func @transform_1(%arg0: i32) -> (i32, i32) {
    %c0_i32 = arith.constant 0 : i32
    %c0_i32_0 = arith.constant 0 : i32
    %c0_i32_1 = arith.constant 0 : i32
    return %c0_i32, %c0_i32_0 : i32, i32
  }
  func.func @transform_2(%arg0: i32) -> (i32, i32) {
    %c0_i32 = arith.constant 0 : i32
    %c0_i32_0 = arith.constant 0 : i32
    %c0_i32_1 = arith.constant 0 : i32
    return %c0_i32, %c0_i32_0 : i32, i32
  }
  func.func @transform_3(%arg0: i32) -> (i32, i32) {
    %c0_i32 = arith.constant 0 : i32
    %c0_i32_0 = arith.constant 0 : i32
    %c0_i32_1 = arith.constant 0 : i32
    return %c0_i32, %c0_i32_0 : i32, i32
  }
  func.func @transform_4(%arg0: i32) -> (i32, i32) {
    %c0_i32 = arith.constant 0 : i32
    %c0_i32_0 = arith.constant 0 : i32
    %c0_i32_1 = arith.constant 0 : i32
    return %c0_i32, %c0_i32_0 : i32, i32
  }
  func.func @transform_5(%arg0: i32) -> (i32, i32) {
    %c0_i32 = arith.constant 0 : i32
    %c0_i32_0 = arith.constant 0 : i32
    return %arg0, %c0_i32 : i32, i32
  }
}

module attributes {stable_mosaic.version = 11 : i64} {
  func.func @_fused_linear_kernel(%arg0: i32, %arg1: memref<32x256xbf16, #tpu.memory_space<vmem>>, %arg2: memref<256x256xbf16, #tpu.memory_space<vmem>>, %arg3: memref<1x256xf32, #tpu.memory_space<vmem>>, %arg4: memref<32x256xbf16, #tpu.memory_space<vmem>>, %arg5: memref<32x256xbf16, #tpu.memory_space<vmem>>) attributes {dimension_semantics = [#tpu.dimension_semantics<parallel>], iteration_bounds = array<i64: 1>, scalar_prefetch = 0 : i64, scratch_operands = 0 : i64, tpu.core_type = #tpu.core_type<tc>, window_params = [{transform_indices = @transform_0, window_bounds = array<i64: 32, 256>}, {pipeline_mode = #tpu.pipeline_mode<synchronous>, transform_indices = @transform_1, window_bounds = array<i64: 256, 256>}, {pipeline_mode = #tpu.pipeline_mode<synchronous>, transform_indices = @transform_2, window_bounds = array<i64: 1, 256>}, {transform_indices = @transform_3, window_bounds = array<i64: 32, 256>}, {transform_indices = @transform_4, window_bounds = array<i64: 32, 256>}]} {
    %c0 = arith.constant 0 : index
    %c0_0 = arith.constant 0 : index
    %0 = vector.load %arg1[%c0, %c0_0] : memref<32x256xbf16, #tpu.memory_space<vmem>>, vector<32x256xbf16>
    %1 = arith.extf %0 : vector<32x256xbf16> to vector<32x256xf32>
    %2 = arith.truncf %1 : vector<32x256xf32> to vector<32x256xbf16>
    %c0_1 = arith.constant 0 : index
    %c0_2 = arith.constant 0 : index
    %3 = vector.load %arg2[%c0_1, %c0_2] : memref<256x256xbf16, #tpu.memory_space<vmem>>, vector<256x256xbf16>
    %cst = arith.constant dense<0.000000e+00> : vector<32x256xf32>
    %4 = tpu.matmul %2, %3, %cst {dimension_numbers = #tpu.dot_dimension_numbers<[1], [0], [0], [1], [0, 0, 1, 1], [], []>} : vector<32x256xbf16>, vector<256x256xbf16>, vector<32x256xf32> -> vector<32x256xf32>
    %c0_3 = arith.constant 0 : index
    %c0_4 = arith.constant 0 : index
    %5 = vector.load %arg3[%c0_3, %c0_4] : memref<1x256xf32, #tpu.memory_space<vmem>>, vector<1x256xf32>
    %6 = vector.broadcast %5 : vector<1x256xf32> to vector<32x256xf32>
    %7 = arith.addf %4, %6 : vector<32x256xf32>
    %c0_5 = arith.constant 0 : index
    %c0_6 = arith.constant 0 : index
    %8 = vector.load %arg4[%c0_5, %c0_6] : memref<32x256xbf16, #tpu.memory_space<vmem>>, vector<32x256xbf16>
    %9 = arith.extf %8 : vector<32x256xbf16> to vector<32x256xf32>
    %10 = arith.addf %7, %9 : vector<32x256xf32>
    %11 = arith.truncf %10 : vector<32x256xf32> to vector<32x256xbf16>
    %c0_7 = arith.constant 0 : index
    %c0_8 = arith.constant 0 : index
    %12 = vector.load %arg5[%c0_7, %c0_8] : memref<32x256xbf16, #tpu.memory_space<vmem>>, vector<32x256xbf16>
    tpu.vector_store %arg5[%c0_7, %c0_8], %11 {strides = array<i32>} : memref<32x256xbf16, #tpu.memory_space<vmem>>, vector<32x256xbf16>,
    return
  }
  func.func @transform_0(%arg0: i32) -> (i32, i32) {
    %c0_i32 = arith.constant 0 : i32
    %c0_i32_0 = arith.constant 0 : i32
    return %arg0, %c0_i32 : i32, i32
  }
  func.func @transform_1(%arg0: i32) -> (i32, i32) {
    %c0_i32 = arith.constant 0 : i32
    %c0_i32_0 = arith.constant 0 : i32
    %c0_i32_1 = arith.constant 0 : i32
    return %c0_i32, %c0_i32_0 : i32, i32
  }
  func.func @transform_2(%arg0: i32) -> (i32, i32) {
    %c0_i32 = arith.constant 0 : i32
    %c0_i32_0 = arith.constant 0 : i32
    %c0_i32_1 = arith.constant 0 : i32
    return %c0_i32, %c0_i32_0 : i32, i32
  }
  func.func @transform_3(%arg0: i32) -> (i32, i32) {
    %c0_i32 = arith.constant 0 : i32
    %c0_i32_0 = arith.constant 0 : i32
    return %arg0, %c0_i32 : i32, i32
  }
  func.func @transform_4(%arg0: i32) -> (i32, i32) {
    %c0_i32 = arith.constant 0 : i32
    %c0_i32_0 = arith.constant 0 : i32
    return %arg0, %c0_i32 : i32, i32
  }
}

module attributes {stable_mosaic.version = 11 : i64} {
  func.func @_fused_mlp_kernel(%arg0: i32, %arg1: i32, %arg2: memref<36x256xbf16, #tpu.memory_space<vmem>>, %arg3: memref<36x256xbf16, #tpu.memory_space<vmem>>, %arg4: memref<1x256xf32, #tpu.memory_space<vmem>>, %arg5: memref<1x256xf32, #tpu.memory_space<vmem>>, %arg6: memref<256x1024xbf16, #tpu.memory_space<vmem>>, %arg7: memref<1x1024xf32, #tpu.memory_space<vmem>>, %arg8: memref<1024x256xbf16, #tpu.memory_space<vmem>>, %arg9: memref<1x256xf32, #tpu.memory_space<vmem>>, %arg10: memref<36x256xbf16, #tpu.memory_space<vmem>>, %arg11: memref<36x256xbf16, #tpu.memory_space<vmem>>, %arg12: memref<36x256xf32, #tpu.memory_space<vmem>>) attributes {dimension_semantics = [#tpu.dimension_semantics<parallel>, #tpu.dimension_semantics<arbitrary>], iteration_bounds = array<i64: 1, 1>, scalar_prefetch = 0 : i64, scratch_operands = 2 : i64, tpu.core_type = #tpu.core_type<tc>, window_params = [{transform_indices = @transform_0, window_bounds = array<i64: 36, 256>}, {transform_indices = @transform_1, window_bounds = array<i64: 36, 256>}, {pipeline_mode = #tpu.pipeline_mode<synchronous>, transform_indices = @transform_2, window_bounds = array<i64: 1, 256>}, {pipeline_mode = #tpu.pipeline_mode<synchronous>, transform_indices = @transform_3, window_bounds = array<i64: 1, 256>}, {transform_indices = @transform_4, window_bounds = array<i64: 256, 1024>}, {transform_indices = @transform_5, window_bounds = array<i64: 1, 1024>}, {transform_indices = @transform_6, window_bounds = array<i64: 1024, 256>}, {pipeline_mode = #tpu.pipeline_mode<synchronous>, transform_indices = @transform_7, window_bounds = array<i64: 1, 256>}, {transform_indices = @transform_8, window_bounds = array<i64: 36, 256>}]} {
    %c0_i32 = arith.constant 0 : i32
    %0 = arith.cmpi eq, %arg1, %c0_i32 : i32
    %1 = arith.extui %0 : i1 to i32
    %c0_i32_0 = arith.constant 0 : i32
    %2 = arith.cmpi ne, %1, %c0_i32_0 : i32
    scf.if %2 {
      %c0_19 = arith.constant 0 : index
      %c0_20 = arith.constant 0 : index
      %31 = vector.load %arg2[%c0_19, %c0_20] : memref<36x256xbf16, #tpu.memory_space<vmem>>, vector<36x256xbf16>
      %32 = arith.extf %31 : vector<36x256xbf16> to vector<36x256xf32>
      %c0_21 = arith.constant 0 : index
      %c0_22 = arith.constant 0 : index
      %33 = vector.load %arg3[%c0_21, %c0_22] : memref<36x256xbf16, #tpu.memory_space<vmem>>, vector<36x256xbf16>
      %34 = arith.extf %33 : vector<36x256xbf16> to vector<36x256xf32>
      %35 = arith.addf %32, %34 : vector<36x256xf32>
      %cst_23 = arith.constant dense<0.000000e+00> : vector<36xf32>
      %36 = vector.multi_reduction <add>, %35, %cst_23 [1] : vector<36x256xf32> to vector<36xf32>
      %37 = vector.shape_cast %36 : vector<36xf32> to vector<36x1xf32>
      %cst_24 = arith.constant 2.560000e+02 : f32
      %38 = vector.broadcast %cst_24 : f32 to vector<36x1xf32>
      %39 = arith.divf %37, %38 : vector<36x1xf32>
      %40 = vector.broadcast %39 : vector<36x1xf32> to vector<36x256xf32>
      %41 = arith.subf %35, %40 : vector<36x256xf32>
      %42 = arith.mulf %41, %41 : vector<36x256xf32>
      %cst_25 = arith.constant dense<0.000000e+00> : vector<36xf32>
      %43 = vector.multi_reduction <add>, %42, %cst_25 [1] : vector<36x256xf32> to vector<36xf32>
      %44 = vector.shape_cast %43 : vector<36xf32> to vector<36x1xf32>
      %cst_26 = arith.constant 2.560000e+02 : f32
      %45 = vector.broadcast %cst_26 : f32 to vector<36x1xf32>
      %46 = arith.divf %44, %45 : vector<36x1xf32>
      %47 = vector.broadcast %39 : vector<36x1xf32> to vector<36x256xf32>
      %48 = arith.subf %35, %47 : vector<36x256xf32>
      %cst_27 = arith.constant 9.99999974E-6 : f32
      %49 = vector.broadcast %cst_27 : f32 to vector<36x1xf32>
      %50 = arith.addf %46, %49 : vector<36x1xf32>
      %51 = math.rsqrt %50 : vector<36x1xf32>
      %52 = vector.broadcast %51 : vector<36x1xf32> to vector<36x256xf32>
      %53 = arith.mulf %48, %52 : vector<36x256xf32>
      %c0_28 = arith.constant 0 : index
      %c0_29 = arith.constant 0 : index
      %54 = vector.load %arg4[%c0_28, %c0_29] : memref<1x256xf32, #tpu.memory_space<vmem>>, vector<1x256xf32>
      %55 = vector.broadcast %54 : vector<1x256xf32> to vector<36x256xf32>
      %56 = arith.mulf %53, %55 : vector<36x256xf32>
      %c0_30 = arith.constant 0 : index
      %c0_31 = arith.constant 0 : index
      %57 = vector.load %arg5[%c0_30, %c0_31] : memref<1x256xf32, #tpu.memory_space<vmem>>, vector<1x256xf32>
      %58 = vector.broadcast %57 : vector<1x256xf32> to vector<36x256xf32>
      %59 = arith.addf %56, %58 : vector<36x256xf32>
      %60 = arith.truncf %59 : vector<36x256xf32> to vector<36x256xbf16>
      %c0_32 = arith.constant 0 : index
      %c0_33 = arith.constant 0 : index
      %61 = vector.load %arg11[%c0_32, %c0_33] : memref<36x256xbf16, #tpu.memory_space<vmem>>, vector<36x256xbf16>
      tpu.vector_store %arg11[%c0_32, %c0_33], %60 {strides = array<i32>} : memref<36x256xbf16, #tpu.memory_space<vmem>>, vector<36x256xbf16>,
      %c0_34 = arith.constant 0 : index
      %c0_35 = arith.constant 0 : index
      %62 = vector.load %arg12[%c0_34, %c0_35] : memref<36x256xf32, #tpu.memory_space<vmem>>, vector<36x256xf32>
      tpu.vector_store %arg12[%c0_34, %c0_35], %35 {strides = array<i32>} : memref<36x256xf32, #tpu.memory_space<vmem>>, vector<36x256xf32>,
    } else {
    }
    %c0 = arith.constant 0 : index
    %c0_1 = arith.constant 0 : index
    %3 = vector.load %arg11[%c0, %c0_1] : memref<36x256xbf16, #tpu.memory_space<vmem>>, vector<36x256xbf16>
    %c0_2 = arith.constant 0 : index
    %c0_3 = arith.constant 0 : index
    %4 = vector.load %arg6[%c0_2, %c0_3] : memref<256x1024xbf16, #tpu.memory_space<vmem>>, vector<256x1024xbf16>
    %cst = arith.constant dense<0.000000e+00> : vector<36x1024xf32>
    %5 = tpu.matmul %3, %4, %cst {dimension_numbers = #tpu.dot_dimension_numbers<[1], [0], [0], [1], [0, 0, 1, 1], [], []>} : vector<36x256xbf16>, vector<256x1024xbf16>, vector<36x1024xf32> -> vector<36x1024xf32>
    %c0_4 = arith.constant 0 : index
    %c0_5 = arith.constant 0 : index
    %6 = vector.load %arg7[%c0_4, %c0_5] : memref<1x1024xf32, #tpu.memory_space<vmem>>, vector<1x1024xf32>
    %7 = vector.broadcast %6 : vector<1x1024xf32> to vector<36x1024xf32>
    %8 = arith.addf %5, %7 : vector<36x1024xf32>
    %9 = arith.mulf %8, %8 : vector<36x1024xf32>
    %10 = arith.mulf %8, %9 : vector<36x1024xf32>
    %cst_6 = arith.constant 4.471500e-02 : f32
    %11 = vector.broadcast %cst_6 : f32 to vector<36x1024xf32>
    %12 = arith.mulf %11, %10 : vector<36x1024xf32>
    %13 = arith.addf %8, %12 : vector<36x1024xf32>
    %cst_7 = arith.constant 0.797884583 : f32
    %14 = vector.broadcast %cst_7 : f32 to vector<36x1024xf32>
    %15 = arith.mulf %14, %13 : vector<36x1024xf32>
    %16 = math.tanh %15 : vector<36x1024xf32>
    %cst_8 = arith.constant 1.000000e+00 : f32
    %17 = vector.broadcast %cst_8 : f32 to vector<36x1024xf32>
    %18 = arith.addf %17, %16 : vector<36x1024xf32>
    %cst_9 = arith.constant 5.000000e-01 : f32
    %19 = vector.broadcast %cst_9 : f32 to vector<36x1024xf32>
    %20 = arith.mulf %19, %18 : vector<36x1024xf32>
    %21 = arith.mulf %8, %20 : vector<36x1024xf32>
    %c0_10 = arith.constant 0 : index
    %c0_11 = arith.constant 0 : index
    %22 = vector.load %arg12[%c0_10, %c0_11] : memref<36x256xf32, #tpu.memory_space<vmem>>, vector<36x256xf32>
    %23 = arith.truncf %21 : vector<36x1024xf32> to vector<36x1024xbf16>
    %c0_12 = arith.constant 0 : index
    %c0_13 = arith.constant 0 : index
    %24 = vector.load %arg8[%c0_12, %c0_13] : memref<1024x256xbf16, #tpu.memory_space<vmem>>, vector<1024x256xbf16>
    %cst_14 = arith.constant dense<0.000000e+00> : vector<36x256xf32>
    %25 = tpu.matmul %23, %24, %cst_14 {dimension_numbers = #tpu.dot_dimension_numbers<[1], [0], [0], [1], [0, 0, 1, 1], [], []>} : vector<36x1024xbf16>, vector<1024x256xbf16>, vector<36x256xf32> -> vector<36x256xf32>
    %26 = arith.addf %22, %25 : vector<36x256xf32>
    %c0_15 = arith.constant 0 : index
    %c0_16 = arith.constant 0 : index
    %27 = vector.load %arg12[%c0_15, %c0_16] : memref<36x256xf32, #tpu.memory_space<vmem>>, vector<36x256xf32>
    tpu.vector_store %arg12[%c0_15, %c0_16], %26 {strides = array<i32>} : memref<36x256xf32, #tpu.memory_space<vmem>>, vector<36x256xf32>,
    %c0_i32_17 = arith.constant 0 : i32
    %28 = arith.cmpi eq, %arg1, %c0_i32_17 : i32
    %29 = arith.extui %28 : i1 to i32
    %c0_i32_18 = arith.constant 0 : i32
    %30 = arith.cmpi ne, %29, %c0_i32_18 : i32
    scf.if %30 {
      %c0_19 = arith.constant 0 : index
      %c0_20 = arith.constant 0 : index
      %31 = vector.load %arg12[%c0_19, %c0_20] : memref<36x256xf32, #tpu.memory_space<vmem>>, vector<36x256xf32>
      %c0_21 = arith.constant 0 : index
      %c0_22 = arith.constant 0 : index
      %32 = vector.load %arg9[%c0_21, %c0_22] : memref<1x256xf32, #tpu.memory_space<vmem>>, vector<1x256xf32>
      %33 = vector.broadcast %32 : vector<1x256xf32> to vector<36x256xf32>
      %34 = arith.addf %31, %33 : vector<36x256xf32>
      %35 = arith.truncf %34 : vector<36x256xf32> to vector<36x256xbf16>
      %c0_23 = arith.constant 0 : index
      %c0_24 = arith.constant 0 : index
      %36 = vector.load %arg10[%c0_23, %c0_24] : memref<36x256xbf16, #tpu.memory_space<vmem>>, vector<36x256xbf16>
      tpu.vector_store %arg10[%c0_23, %c0_24], %35 {strides = array<i32>} : memref<36x256xbf16, #tpu.memory_space<vmem>>, vector<36x256xbf16>,
    } else {
    }
    return
  }
  func.func @transform_0(%arg0: i32, %arg1: i32) -> (i32, i32) {
    %c0_i32 = arith.constant 0 : i32
    %c0_i32_0 = arith.constant 0 : i32
    return %arg0, %c0_i32 : i32, i32
  }
  func.func @transform_1(%arg0: i32, %arg1: i32) -> (i32, i32) {
    %c0_i32 = arith.constant 0 : i32
    %c0_i32_0 = arith.constant 0 : i32
    return %arg0, %c0_i32 : i32, i32
  }
  func.func @transform_2(%arg0: i32, %arg1: i32) -> (i32, i32) {
    %c0_i32 = arith.constant 0 : i32
    %c0_i32_0 = arith.constant 0 : i32
    %c0_i32_1 = arith.constant 0 : i32
    return %c0_i32, %c0_i32_0 : i32, i32
  }
  func.func @transform_3(%arg0: i32, %arg1: i32) -> (i32, i32) {
    %c0_i32 = arith.constant 0 : i32
    %c0_i32_0 = arith.constant 0 : i32
    %c0_i32_1 = arith.constant 0 : i32
    return %c0_i32, %c0_i32_0 : i32, i32
  }
  func.func @transform_4(%arg0: i32, %arg1: i32) -> (i32, i32) {
    %c0_i32 = arith.constant 0 : i32
    %c0_i32_0 = arith.constant 0 : i32
    return %c0_i32, %arg1 : i32, i32
  }
  func.func @transform_5(%arg0: i32, %arg1: i32) -> (i32, i32) {
    %c0_i32 = arith.constant 0 : i32
    %c0_i32_0 = arith.constant 0 : i32
    return %c0_i32, %arg1 : i32, i32
  }
  func.func @transform_6(%arg0: i32, %arg1: i32) -> (i32, i32) {
    %c0_i32 = arith.constant 0 : i32
    %c0_i32_0 = arith.constant 0 : i32
    return %arg1, %c0_i32 : i32, i32
  }
  func.func @transform_7(%arg0: i32, %arg1: i32) -> (i32, i32) {
    %c0_i32 = arith.constant 0 : i32
    %c0_i32_0 = arith.constant 0 : i32
    %c0_i32_1 = arith.constant 0 : i32
    return %c0_i32, %c0_i32_0 : i32, i32
  }
  func.func @transform_8(%arg0: i32, %arg1: i32) -> (i32, i32) {
    %c0_i32 = arith.constant 0 : i32
    %c0_i32_0 = arith.constant 0 : i32
    return %arg0, %c0_i32 : i32, i32
  }
}

</mosaic_0001>

<bundles_post_ra>
// kernel: encoder_cam_forward.17
= control target key start
LH: loop header
LB: loop body
LE: loop exit
PB: predicated region body
PF: predicated region fallthrough
CT: control target
= control target key end

     0   :  { %s1558_s1 = inlined_call_operand.vmem [shape: bf16[768,256], index: 1, kind: input, shape index: {}]   ;;  %s1559_s0 = inlined_call_operand.vmem [shape: bf16[32,768], index: 0, kind: input, shape index: {}]   ;;  %s1560_s2 = inlined_call_operand.vmem [shape: f32[1,256], index: 2, kind: input, shape index: {}]   ;;  %s1561_s3 = inlined_call_operand.vmem [shape: bf16[32,256], index: 3, kind: output, shape index: {}]  }
   0x1   :  { %v1037_v0 = vld [vmem:[%s1558_s1 + $0x4] ss:$8 sps:$4 sm:$0xff]   ;;  %v1041_v2 = vld [vmem:[%s1558_s1] ss:$8 sps:$4 sm:$0xff]   ;;  %v1043_v4 = vld [vmem:[%s1558_s1 + $0x14] ss:$8 sps:$4 sm:$0xff]  }
   0x2   :  { %v1039_v1 = vld [vmem:[%s1558_s1 + $0x104] ss:$8 sps:$4 sm:$0xff]   ;;  %674 = vmatprep.subr.bf16.mxu1 %v1037_v0  ;;  %v1042_v3 = vld [vmem:[%s1558_s1 + $0x100] ss:$8 sps:$4 sm:$0xff]   ;;  %v1045_v5 = vld [vmem:[%s1558_s1 + $0x114] ss:$8 sps:$4 sm:$0xff]  }
   0x3   :  { %727 = vmatprep.subr.bf16.mxu0 %v1039_v1  ;;  %675 = vmatpush1.bf16.msra.mxu1 %v1041_v2  ;;  %v1047_v6 = vld [vmem:[%s1558_s1 + $0x10] ss:$8 sps:$4 sm:$0xff]   ;;  %v1049_v8 = vld [vmem:[%s1558_s1 + $0x24] ss:$8 sps:$4 sm:$0xff]   ;;  %v1053_v10 = vld [vmem:[%s1558_s1 + $0x20] ss:$8 sps:$4 sm:$0xff]  }
   0x4   :  { %728 = vmatpush1.bf16.msra.mxu0 %v1042_v3  ;;  %676 = vmatprep.subr.bf16.mxu1 %v1043_v4  ;;  %v1048_v7 = vld [vmem:[%s1558_s1 + $0x110] ss:$8 sps:$4 sm:$0xff]   ;;  %v1051_v9 = vld [vmem:[%s1558_s1 + $0x124] ss:$8 sps:$4 sm:$0xff]   ;;  %v1054_v11 = vld [vmem:[%s1558_s1 + $0x120] ss:$8 sps:$4 sm:$0xff]  }
   0x5   :  { %729 = vmatprep.subr.bf16.mxu0 %v1045_v5  ;;  %v1055_v12 = vld [vmem:[%s1558_s1 + $0x34] ss:$8 sps:$4 sm:$0xff]   ;;  %v1059_v14 = vld [vmem:[%s1558_s1 + $0x30] ss:$8 sps:$4 sm:$0xff]   ;;  %v1061_v16 = vld [vmem:[%s1558_s1 + $0x44] ss:$8 sps:$4 sm:$0xff]  }
   0x6   :  { %v1057_v13 = vld [vmem:[%s1558_s1 + $0x134] ss:$8 sps:$4 sm:$0xff]   ;;  %v1060_v15 = vld [vmem:[%s1558_s1 + $0x130] ss:$8 sps:$4 sm:$0xff]   ;;  %v1063_v17 = vld [vmem:[%s1558_s1 + $0x144] ss:$8 sps:$4 sm:$0xff]  }
   0x7   :  { %677 = vmatpush1.bf16.msra.mxu1 %v1047_v6  ;;  %v1065_v18 = vld [vmem:[%s1558_s1 + $0x40] ss:$8 sps:$4 sm:$0xff]   ;;  %v1067_v20 = vld [vmem:[%s1558_s1 + $0x54] ss:$8 sps:$4 sm:$0xff]   ;;  %v1071_v22 = vld [vmem:[%s1558_s1 + $0x50] ss:$8 sps:$4 sm:$0xff]  }
   0x8   :  { %730 = vmatpush1.bf16.msra.mxu0 %v1048_v7  ;;  %678 = vmatprep.subr.bf16.mxu1 %v1049_v8  ;;  %v1066_v19 = vld [vmem:[%s1558_s1 + $0x140] ss:$8 sps:$4 sm:$0xff]   ;;  %v1069_v21 = vld [vmem:[%s1558_s1 + $0x154] ss:$8 sps:$4 sm:$0xff]   ;;  %v1072_v23 = vld [vmem:[%s1558_s1 + $0x150] ss:$8 sps:$4 sm:$0xff]  }
   0x9   :  { %731 = vmatprep.subr.bf16.mxu0 %v1051_v9  ;;  %v1073_v24 = vld [vmem:[%s1558_s1 + $0x64] ss:$8 sps:$4 sm:$0xff]   ;;  %v1077_v26 = vld [vmem:[%s1558_s1 + $0x60] ss:$8 sps:$4 sm:$0xff]   ;;  %v1079_v28 = vld [vmem:[%s1558_s1 + $0x74] ss:$8 sps:$4 sm:$0xff]  }
   0xa   :  { %v1075_v25 = vld [vmem:[%s1558_s1 + $0x164] ss:$8 sps:$4 sm:$0xff]   ;;  %v1078_v27 = vld [vmem:[%s1558_s1 + $0x160] ss:$8 sps:$4 sm:$0xff]   ;;  %v1081_v29 = vld [vmem:[%s1558_s1 + $0x174] ss:$8 sps:$4 sm:$0xff]  }
   0xb   :  { %679 = vmatpush1.bf16.msra.mxu1 %v1053_v10  ;;  %v1083_v30 = vld [vmem:[%s1558_s1 + $0x70] ss:$8 sps:$4 sm:$0xff]   ;;  %v1085_v32 = vld [vmem:[%s1558_s1 + $0x84] ss:$8 sps:$4 sm:$0xff]   ;;  %v1089_v34 = vld [vmem:[%s1558_s1 + $0x80] ss:$8 sps:$4 sm:$0xff]  }
   0xc   :  { %732 = vmatpush1.bf16.msra.mxu0 %v1054_v11  ;;  %680 = vmatprep.subr.bf16.mxu1 %v1055_v12  ;;  %v1084_v31 = vld [vmem:[%s1558_s1 + $0x170] ss:$8 sps:$4 sm:$0xff]   ;;  %v1087_v33 = vld [vmem:[%s1558_s1 + $0x184] ss:$8 sps:$4 sm:$0xff]   ;;  %v1090_v35 = vld [vmem:[%s1558_s1 + $0x180] ss:$8 sps:$4 sm:$0xff]  }
   0xd   :  { %733 = vmatprep.subr.bf16.mxu0 %v1057_v13  ;;  %v1091_v36 = vld [vmem:[%s1558_s1 + $0x94] ss:$8 sps:$4 sm:$0xff]   ;;  %v1095_v38 = vld [vmem:[%s1558_s1 + $0x90] ss:$8 sps:$4 sm:$0xff]   ;;  %v1097_v40 = vld [vmem:[%s1558_s1 + $0xa4] ss:$8 sps:$4 sm:$0xff]  }
   0xe   :  { %v1093_v37 = vld [vmem:[%s1558_s1 + $0x194] ss:$8 sps:$4 sm:$0xff]   ;;  %v1096_v39 = vld [vmem:[%s1558_s1 + $0x190] ss:$8 sps:$4 sm:$0xff]   ;;  %v1099_v41 = vld [vmem:[%s1558_s1 + $0x1a4] ss:$8 sps:$4 sm:$0xff]  }
   0xf   :  { %681 = vmatpush1.bf16.msra.mxu1 %v1059_v14  ;;  %v1101_v42 = vld [vmem:[%s1558_s1 + $0xa0] ss:$8 sps:$4 sm:$0xff]   ;;  %v1103_v44 = vld [vmem:[%s1558_s1 + $0xb4] ss:$8 sps:$4 sm:$0xff]   ;;  %v1107_v46 = vld [vmem:[%s1558_s1 + $0xb0] ss:$8 sps:$4 sm:$0xff]  }
  0x10   :  { %734 = vmatpush1.bf16.msra.mxu0 %v1060_v15  ;;  %682 = vmatprep.subr.bf16.mxu1 %v1061_v16  ;;  %v1102_v43 = vld [vmem:[%s1558_s1 + $0x1a0] ss:$8 sps:$4 sm:$0xff]   ;;  %v1105_v45 = vld [vmem:[%s1558_s1 + $0x1b4] ss:$8 sps:$4 sm:$0xff]   ;;  %v1108_v47 = vld [vmem:[%s1558_s1 + $0x1b0] ss:$8 sps:$4 sm:$0xff]  }
  0x11   :  { %735 = vmatprep.subr.bf16.mxu0 %v1063_v17  ;;  %v1109_v48 = vld [vmem:[%s1558_s1 + $0xc4] ss:$8 sps:$4 sm:$0xff]   ;;  %v1113_v52 = vld [vmem:[%s1558_s1 + $0xc0] ss:$8 sps:$4 sm:$0xff]   ;;  %v1115_v54 = vld [vmem:[%s1558_s1 + $0xd4] ss:$8 sps:$4 sm:$0xff]  }
  0x12   :  { %v1135_v49 = vld [vmem:[%s1559_s0 + $0x4] ss:$24 sps:$4 sm:$0xff]   ;;  %v1114_v53 = vld [vmem:[%s1558_s1 + $0x1c0] ss:$8 sps:$4 sm:$0xff]   ;;  %v1119_v56 = vld [vmem:[%s1558_s1 + $0xd0] ss:$8 sps:$4 sm:$0xff]  }
  0x13   :  { %683 = vmatpush1.bf16.msra.mxu1 %v1065_v18  ;;  %v1111_v50 = vld [vmem:[%s1558_s1 + $0x1c4] ss:$8 sps:$4 sm:$0xff]   ;;  %706 = vmatprep.mubr.bf16.mxu1 %v1135_v49  ;;  %v1117_v55 = vld [vmem:[%s1558_s1 + $0x1d4] ss:$8 sps:$4 sm:$0xff]   ;;  %v1120_v57 = vld [vmem:[%s1558_s1 + $0x1d0] ss:$8 sps:$4 sm:$0xff]  }
  0x14   :  { %736 = vmatpush1.bf16.msra.mxu0 %v1066_v19  ;;  %684 = vmatprep.subr.bf16.mxu1 %v1067_v20  ;;  %v1138_v51 = vld [vmem:[%s1559_s0 + $0xc] ss:$24 sps:$4 sm:$0xff]   ;;  %v1125_v60 = vld [vmem:[%s1558_s1 + $0xe0] ss:$8 sps:$4 sm:$0xff]   ;;  %v1127_v62 = vld [vmem:[%s1558_s1 + $0xf4] ss:$8 sps:$4 sm:$0xff]  }
  0x15   :  { %737 = vmatprep.subr.bf16.mxu0 %v1069_v21  ;;  %759 = vmatprep.mubr.bf16.mxu0 %v1138_v51  ;;  %v1121_v58 = vld [vmem:[%s1558_s1 + $0xe4] ss:$8 sps:$4 sm:$0xff]   ;;  %v1126_v61 = vld [vmem:[%s1558_s1 + $0x1e0] ss:$8 sps:$4 sm:$0xff]   ;;  %v1129_v63 = vld [vmem:[%s1558_s1 + $0x1f4] ss:$8 sps:$4 sm:$0xff]  }
  0x16   :  { %v1123_v59 = vld [vmem:[%s1558_s1 + $0x1e4] ss:$8 sps:$4 sm:$0xff]   ;;  %v1131_v0 = vld [vmem:[%s1558_s1 + $0xf0] ss:$8 sps:$4 sm:$0xff]   ;;  %v1136_v4 = vld [vmem:[%s1559_s0 + $0x8] ss:$24 sps:$4 sm:$0xff]  }
  0x17   :  { %685 = vmatpush1.bf16.msra.mxu1 %v1071_v22  ;;  %v1132_v1 = vld [vmem:[%s1558_s1 + $0x1f0] ss:$8 sps:$4 sm:$0xff]   ;;  %v1141_v2 = vld [vmem:[%s1558_s1 + $0x204] ss:$8 sps:$4 sm:$0xff]   ;;  %v1139_v5 = vld [vmem:[%s1558_s1 + $0x200] ss:$8 sps:$4 sm:$0xff]  }
  0x18   :  { %738 = vmatpush1.bf16.msra.mxu0 %v1072_v23  ;;  %686 = vmatprep.subr.bf16.mxu1 %v1073_v24  ;;  %v1133_v3 = vld [vmem:[%s1559_s0] ss:$24 sps:$4 sm:$0xff]   ;;  %v1144_v6 = vld [vmem:[%s1558_s1 + $0x214] ss:$8 sps:$4 sm:$0xff]   ;;  %v1147_v10 = vld [vmem:[%s1558_s1 + $0x224] ss:$8 sps:$4 sm:$0xff]  }
  0x19   :  { %739 = vmatprep.subr.bf16.mxu0 %v1075_v25  ;;  %v1178_v7 = vld [vmem:[%s1559_s0 + $0x34] ss:$24 sps:$4 sm:$0xff]   ;;  %v1142_v9 = vld [vmem:[%s1558_s1 + $0x210] ss:$8 sps:$4 sm:$0xff]   ;;  %v1145_v13 = vld [vmem:[%s1558_s1 + $0x220] ss:$8 sps:$4 sm:$0xff]  }
  0x1a   :  { %v1181_v8 = vld [vmem:[%s1559_s0 + $0x3c] ss:$24 sps:$4 sm:$0xff]   ;;  %v1180_v11 = vld [vmem:[%s1559_s0 + $0x30] ss:$24 sps:$4 sm:$0xff]   ;;  %v1153_v18 = vld [vmem:[%s1558_s1 + $0x244] ss:$8 sps:$4 sm:$0xff]  }
  0x1b   :  { %687 = vmatpush1.bf16.msra.mxu1 %v1077_v26  ;;  %v1186_v12 = vld [vmem:[%s1559_s0 + $0x38] ss:$24 sps:$4 sm:$0xff]   ;;  %v1150_v14 = vld [vmem:[%s1558_s1 + $0x234] ss:$8 sps:$4 sm:$0xff]   ;;  %v1151_v19 = vld [vmem:[%s1558_s1 + $0x240] ss:$8 sps:$4 sm:$0xff]  }
  0x1c   :  { %740 = vmatpush1.bf16.msra.mxu0 %v1078_v27  ;;  %688 = vmatprep.subr.bf16.mxu1 %v1079_v28  ;;  %v1195_v15 = vld [vmem:[%s1559_s0 + $0x14] ss:$24 sps:$4 sm:$0xff]   ;;  %v1198_v16 = vld [vmem:[%s1559_s0 + $0x44] ss:$24 sps:$4 sm:$0xff]   ;;  %v1148_v17 = vld [vmem:[%s1558_s1 + $0x230] ss:$8 sps:$4 sm:$0xff]  }
  0x1d   :  { %741 = vmatprep.subr.bf16.mxu0 %v1081_v29  ;;  %v1156_v20 = vld [vmem:[%s1558_s1 + $0x254] ss:$8 sps:$4 sm:$0xff]   ;;  %v1154_v21 = vld [vmem:[%s1558_s1 + $0x250] ss:$8 sps:$4 sm:$0xff]   ;;  %v1159_v22 = vld [vmem:[%s1558_s1 + $0x264] ss:$8 sps:$4 sm:$0xff]  }
  0x1e   :  { %v1157_v23 = vld [vmem:[%s1558_s1 + $0x260] ss:$8 sps:$4 sm:$0xff]   ;;  %v1162_v24 = vld [vmem:[%s1558_s1 + $0x274] ss:$8 sps:$4 sm:$0xff]   ;;  %v1160_v25 = vld [vmem:[%s1558_s1 + $0x270] ss:$8 sps:$4 sm:$0xff]  }
  0x1f   :  { %689 = vmatpush1.bf16.msra.mxu1 %v1083_v30  ;;  %v1165_v26 = vld [vmem:[%s1558_s1 + $0x284] ss:$8 sps:$4 sm:$0xff]   ;;  %v1163_v27 = vld [vmem:[%s1558_s1 + $0x280] ss:$8 sps:$4 sm:$0xff]   ;;  %v1168_v28 = vld [vmem:[%s1558_s1 + $0x294] ss:$8 sps:$4 sm:$0xff]  }
  0x20   :  { %742 = vmatpush1.bf16.msra.mxu0 %v1084_v31  ;;  %690 = vmatprep.subr.bf16.mxu1 %v1085_v32  ;;  %v1166_v29 = vld [vmem:[%s1558_s1 + $0x290] ss:$8 sps:$4 sm:$0xff]   ;;  %v1171_v30 = vld [vmem:[%s1558_s1 + $0x2a4] ss:$8 sps:$4 sm:$0xff]   ;;  %v1169_v31 = vld [vmem:[%s1558_s1 + $0x2a0] ss:$8 sps:$4 sm:$0xff]  }
  0x21   :  { %743 = vmatprep.subr.bf16.mxu0 %v1087_v33  ;;  %v1174_v32 = vld [vmem:[%s1558_s1 + $0x2b4] ss:$8 sps:$4 sm:$0xff]   ;;  %v1172_v33 = vld [vmem:[%s1558_s1 + $0x2b0] ss:$8 sps:$4 sm:$0xff]   ;;  %v122_v51 = vld [vmem:[%s1560_s2] sm:$0x3] }
  0x23   :  { %691 = vmatpush1.bf16.msra.mxu1 %v1089_v34  ;;  %v1177_v34 = vld [vmem:[%s1558_s1 + $0x2c4] ss:$8 sps:$4 sm:$0xff]  }
  0x24   :  { %744 = vmatpush1.bf16.msra.mxu0 %v1090_v35  ;;  %692 = vmatprep.subr.bf16.mxu1 %v1091_v36  ;;  %v1175_v35 = vld [vmem:[%s1558_s1 + $0x2c0] ss:$8 sps:$4 sm:$0xff]   ;;  %v1185_v36 = vld [vmem:[%s1558_s1 + $0x2d4] ss:$8 sps:$4 sm:$0xff]  }
  0x25   :  { %745 = vmatprep.subr.bf16.mxu0 %v1093_v37  ;;  %v1183_v37 = vld [vmem:[%s1558_s1 + $0x2d0] ss:$8 sps:$4 sm:$0xff]  }
  0x27   :  { %693 = vmatpush1.bf16.msra.mxu1 %v1095_v38  ;;  %v1189_v38 = vld [vmem:[%s1558_s1 + $0x2e4] ss:$8 sps:$4 sm:$0xff]  }
  0x28   :  { %746 = vmatpush1.bf16.msra.mxu0 %v1096_v39  ;;  %694 = vmatprep.subr.bf16.mxu1 %v1097_v40  ;;  %v1187_v39 = vld [vmem:[%s1558_s1 + $0x2e0] ss:$8 sps:$4 sm:$0xff]   ;;  %v1192_v40 = vld [vmem:[%s1558_s1 + $0x2f4] ss:$8 sps:$4 sm:$0xff]  }
  0x29   :  { %747 = vmatprep.subr.bf16.mxu0 %v1099_v41  ;;  %v1190_v41 = vld [vmem:[%s1558_s1 + $0x2f0] ss:$8 sps:$4 sm:$0xff]  }
  0x2b   :  { %695 = vmatpush1.bf16.msra.mxu1 %v1101_v42  ;;  %v1193_v42 = vld [vmem:[%s1559_s0 + $0x10] ss:$24 sps:$4 sm:$0xff]  }
  0x2c   :  { %748 = vmatpush1.bf16.msra.mxu0 %v1102_v43  ;;  %696 = vmatprep.subr.bf16.mxu1 %v1103_v44  ;;  %v1196_v43 = vld [vmem:[%s1559_s0 + $0x40] ss:$24 sps:$4 sm:$0xff]   ;;  %v124_v44 = vlaneseq }
  0x2d   :  { %749 = vmatprep.subr.bf16.mxu0 %v1105_v45 }
  0x2e   :  { %v125_v45 = vshrl.u32 %v124_v44, 7 }
  0x2f   :  { %697 = vmatpush1.bf16.msra.mxu1 %v1107_v46 }
  0x30   :  { %750 = vmatpush1.bf16.msra.mxu0 %v1108_v47  ;;  %698 = vmatprep.subr.bf16.mxu1 %v1109_v48  ;;  %v126_v49 = vsub.s32 0, %v125_v45 }
  0x31   :  { %751 = vmatprep.subr.bf16.mxu0 %v1111_v50 }
  0x33   :  { %699 = vmatpush1.bf16.msra.mxu1 %v1113_v52  ;;  %v130_v52 = vsub.s32 1, %v125_v45 }
  0x34   :  { %752 = vmatpush1.bf16.msra.mxu0 %v1114_v53  ;;  %700 = vmatprep.subr.bf16.mxu1 %v1115_v54  ;;  %v127_v53 = vrot.slane %v122_v51, %v126_v49 }
  0x35   :  { %753 = vmatprep.subr.bf16.mxu0 %v1117_v55  ;;  %v131_v54 = vrot.slane %v122_v51, %v130_v52 }
  0x37   :  { %701 = vmatpush1.bf16.msra.mxu1 %v1119_v56 }
  0x38   :  { %754 = vmatpush1.bf16.msra.mxu0 %v1120_v57  ;;  %702 = vmatprep.subr.bf16.mxu1 %v1121_v58 }
  0x39   :  { %755 = vmatprep.subr.bf16.mxu0 %v1123_v59 }
  0x3b   :  { %703 = vmatpush1.bf16.msra.mxu1 %v1125_v60 }
  0x3c   :  { %756 = vmatpush1.bf16.msra.mxu0 %v1126_v61  ;;  %704 = vmatprep.subr.bf16.mxu1 %v1127_v62 }
  0x3d   :  { %757 = vmatprep.subr.bf16.mxu0 %v1129_v63 }
  0x3f   :  { %705 = vmatpush1.bf16.msra.mxu1 %v1131_v0 }
  0x40   :  { %758 = vmatpush1.bf16.msra.mxu0 %v1132_v1  ;;  %981 = vmatprep.subr.bf16.mxu1 %v1141_v2 }
  0x41   :  { %780 = vmatprep.subr.bf16.mxu0 %v1141_v2 }
  0x42   :  { %707 = vmatmul.mubr.bf16.vlgmr.msra.gmra.mrb[0].mxu1 %v1133_v3 }
  0x43   :  { %760 = vmatmul.mubr.bf16.vlgmr.msra.gmra.mrb[0].mxu0 %v1136_v4  ;;  %997 = vmatpush1.bf16.msra.mxu1 %v1139_v5 }
  0x44   :  { %781 = vmatpush1.bf16.msra.mxu0 %v1139_v5  ;;  %982 = vmatprep.subr.bf16.mxu1 %v1144_v6 }
  0x45   :  { %782 = vmatprep.subr.bf16.mxu0 %v1144_v6  ;;  %716 = vmatprep.mubr.bf16.mxu1 %v1178_v7 }
  0x46   :  { %769 = vmatprep.mubr.bf16.mxu0 %v1181_v8 }
  0x47   :  { %998 = vmatpush1.bf16.msra.mxu1 %v1142_v9 }
  0x48   :  { %783 = vmatpush1.bf16.msra.mxu0 %v1142_v9  ;;  %983 = vmatprep.subr.bf16.mxu1 %v1147_v10 }
  0x49   :  { %784 = vmatprep.subr.bf16.mxu0 %v1147_v10 }
  0x4a   :  { %717 = vmatmul.mubr.bf16.gmra.mrb[4].mxu1 %v1180_v11 }
  0x4b   :  { %770 = vmatmul.mubr.bf16.gmra.mrb[4].mxu0 %v1186_v12  ;;  %999 = vmatpush1.bf16.msra.mxu1 %v1145_v13 }
  0x4c   :  { %785 = vmatpush1.bf16.msra.mxu0 %v1145_v13  ;;  %984 = vmatprep.subr.bf16.mxu1 %v1150_v14 }
  0x4d   :  { %786 = vmatprep.subr.bf16.mxu0 %v1150_v14  ;;  %812 = vmatprep.mubr.bf16.mxu0 %v1195_v15 }
  0x4e   :  { %822 = vmatprep.mubr.bf16.mxu1 %v1198_v16 }
  0x4f   :  { %1000 = vmatpush1.bf16.msra.mxu1 %v1148_v17 }
  0x50   :  { %787 = vmatpush1.bf16.msra.mxu0 %v1148_v17  ;;  %985 = vmatprep.subr.bf16.mxu1 %v1153_v18 }
  0x51   :  { %788 = vmatprep.subr.bf16.mxu0 %v1153_v18 }
  0x53   :  { %1001 = vmatpush1.bf16.msra.mxu1 %v1151_v19 }
  0x54   :  { %789 = vmatpush1.bf16.msra.mxu0 %v1151_v19  ;;  %986 = vmatprep.subr.bf16.mxu1 %v1156_v20 }
  0x55   :  { %790 = vmatprep.subr.bf16.mxu0 %v1156_v20 }
  0x57   :  { %1002 = vmatpush1.bf16.msra.mxu1 %v1154_v21 }
  0x58   :  { %791 = vmatpush1.bf16.msra.mxu0 %v1154_v21  ;;  %987 = vmatprep.subr.bf16.mxu1 %v1159_v22 }
  0x59   :  { %792 = vmatprep.subr.bf16.mxu0 %v1159_v22 }
  0x5b   :  { %1003 = vmatpush1.bf16.msra.mxu1 %v1157_v23 }
  0x5c   :  { %793 = vmatpush1.bf16.msra.mxu0 %v1157_v23  ;;  %988 = vmatprep.subr.bf16.mxu1 %v1162_v24 }
  0x5d   :  { %794 = vmatprep.subr.bf16.mxu0 %v1162_v24 }
  0x5f   :  { %1004 = vmatpush1.bf16.msra.mxu1 %v1160_v25 }
  0x60   :  { %795 = vmatpush1.bf16.msra.mxu0 %v1160_v25  ;;  %989 = vmatprep.subr.bf16.mxu1 %v1165_v26 }
  0x61   :  { %796 = vmatprep.subr.bf16.mxu0 %v1165_v26 }
  0x63   :  { %1005 = vmatpush1.bf16.msra.mxu1 %v1163_v27 }
  0x64   :  { %797 = vmatpush1.bf16.msra.mxu0 %v1163_v27  ;;  %990 = vmatprep.subr.bf16.mxu1 %v1168_v28 }
  0x65   :  { %798 = vmatprep.subr.bf16.mxu0 %v1168_v28 }
  0x67   :  { %1006 = vmatpush1.bf16.msra.mxu1 %v1166_v29 }
  0x68   :  { %799 = vmatpush1.bf16.msra.mxu0 %v1166_v29  ;;  %991 = vmatprep.subr.bf16.mxu1 %v1171_v30 }
  0x69   :  { %800 = vmatprep.subr.bf16.mxu0 %v1171_v30 }
  0x6b   :  { %1007 = vmatpush1.bf16.msra.mxu1 %v1169_v31 }
  0x6c   :  { %801 = vmatpush1.bf16.msra.mxu0 %v1169_v31  ;;  %992 = vmatprep.subr.bf16.mxu1 %v1174_v32 }
  0x6d   :  { %802 = vmatprep.subr.bf16.mxu0 %v1174_v32 }
  0x6f   :  { %1008 = vmatpush1.bf16.msra.mxu1 %v1172_v33 }
  0x70   :  { %803 = vmatpush1.bf16.msra.mxu0 %v1172_v33  ;;  %993 = vmatprep.subr.bf16.mxu1 %v1177_v34 }
  0x71   :  { %804 = vmatprep.subr.bf16.mxu0 %v1177_v34 }
  0x73   :  { %1009 = vmatpush1.bf16.msra.mxu1 %v1175_v35 }
  0x74   :  { %805 = vmatpush1.bf16.msra.mxu0 %v1175_v35  ;;  %994 = vmatprep.subr.bf16.mxu1 %v1185_v36 }
  0x75   :  { %806 = vmatprep.subr.bf16.mxu0 %v1185_v36 }
  0x77   :  { %1010 = vmatpush1.bf16.msra.mxu1 %v1183_v37 }
  0x78   :  { %807 = vmatpush1.bf16.msra.mxu0 %v1183_v37  ;;  %995 = vmatprep.subr.bf16.mxu1 %v1189_v38 }
  0x79   :  { %808 = vmatprep.subr.bf16.mxu0 %v1189_v38 }
  0x7b   :  { %1011 = vmatpush1.bf16.msra.mxu1 %v1187_v39 }
  0x7c   :  { %809 = vmatpush1.bf16.msra.mxu0 %v1187_v39  ;;  %996 = vmatprep.subr.bf16.mxu1 %v1192_v40 }
  0x7d   :  { %810 = vmatprep.subr.bf16.mxu0 %v1192_v40 }
  0x7f   :  { %1012 = vmatpush1.bf16.msra.mxu1 %v1190_v41 }
  0x80   :  { %811 = vmatpush1.bf16.msra.mxu0 %v1190_v41 }
  0x82   :  { %823 = vmatmul.mubr.bf16.vlgmr.msra.gmra.mrb[8].mxu1 %v1196_v43 }
  0x83   :  { %813 = vmatmul.mubr.bf16.vlgmr.msra.gmra.mrb[0].mxu0 %v1193_v42 }
 0x115   :  { %v708_v46 = vpop.f32.mrb[0].mxu1 }
 0x116   :  { %v710_v47 = vpop.f32.mrb[1].mxu1  ;;  %v709_v7 = vadd.f32 %v708_v46, %v127_v53 }
 0x117   :  { %v712_v48 = vpop.f32.mrb[2].mxu1  ;;  %v711_v8 = vadd.f32 %v710_v47, %v131_v54 }
 0x118   :  { %v714_v50 = vpop.f32.mrb[3].mxu1  ;;  %v713_v11 = vadd.f32 %v712_v48, %v127_v53 }
 0x119   :  { %v715_v16 = vadd.f32 %v714_v50, %v131_v54 }
 0x11d   :  { %v718_v55 = vpop.f32.mrb[4].mxu1 }
 0x11e   :  { %v771_v56 = vpop.f32.mrb[4].mxu0  ;;  %v719_v57 = vadd.f32 %v718_v55, %v127_v53  ;;  %v720_v58 = vpop.f32.mrb[5].mxu1 }
 0x11f   :  { %v773_v59 = vpop.f32.mrb[5].mxu0  ;;  %v721_v60 = vadd.f32 %v720_v58, %v131_v54  ;;  %v722_v61 = vpop.f32.mrb[6].mxu1 }
 0x120   :  { %v775_v62 = vpop.f32.mrb[6].mxu0  ;;  %v723_v63 = vadd.f32 %v722_v61, %v127_v53  ;;  %v772_v0 = vadd.f32 %v771_v56, %v719_v57  ;;  %v724_v1 = vpop.f32.mrb[7].mxu1 }
 0x121   :  { %v777_v2 = vpop.f32.mrb[7].mxu0  ;;  %v725_v3 = vadd.f32 %v724_v1, %v131_v54  ;;  %v774_v4 = vadd.f32 %v773_v59, %v721_v60 }
 0x122   :  { %v776_v5 = vadd.f32 %v775_v62, %v723_v63 }
 0x123   :  { %v778_v6 = vadd.f32 %v777_v2, %v725_v3 }
 0x155   :  { %v824_v10 = vpop.f32.mrb[8].mxu1 }
 0x156   :  { %v814_v9 = vpop.f32.mrb[0].mxu0  ;;  %v825_v13 = vadd.f32 %v824_v10, %v772_v0  ;;  %v826_v15 = vpop.f32.mrb[9].mxu1 }
 0x157   :  { %v1014_v12 = vadd.f32 %v814_v9, %v709_v7  ;;  %v816_v14 = vpop.f32.mrb[1].mxu0  ;;  %v827_v18 = vadd.f32 %v826_v15, %v774_v4  ;;  %v828_v20 = vpop.f32.mrb[10].mxu1 }
 0x158   :  { %v1016_v17 = vadd.f32 %v816_v14, %v711_v8  ;;  %v818_v19 = vpop.f32.mrb[2].mxu0  ;;  %v829_v22 = vadd.f32 %v828_v20, %v776_v5  ;;  %v830_v24 = vpop.f32.mrb[11].mxu1 }
 0x159   :  { %v1018_v21 = vadd.f32 %v818_v19, %v713_v11  ;;  %v820_v23 = vpop.f32.mrb[3].mxu0  ;;  %v979_v26 = vpack.c.bf16 %v827_v18, %v825_v13  ;;  %v831_v28 = vadd.f32 %v830_v24, %v778_v6 }
 0x15a   :  { %v977_v25 = vpack.c.bf16 %v1016_v17, %v1014_v12  ;;  %v1020_v27 = vadd.f32 %v820_v23, %v715_v16 }
 0x15b   :  { %859 = vst [vmem:[%s1561_s3 + $0x10] sm:$0xff] %v979_v26  ;;  %v980_v30 = vpack.c.bf16 %v831_v28, %v829_v22 }
 0x15c   :  { %857 = vst [vmem:[%s1561_s3] sm:$0xff] %v977_v25  ;;  %v978_v29 = vpack.c.bf16 %v1020_v27, %v1018_v21 }
 0x15d   :  { %860 = vst [vmem:[%s1561_s3 + $0x18] sm:$0xff] %v980_v30 }
 0x15e   :  { %858 = vst [vmem:[%s1561_s3 + $0x8] sm:$0xff] %v978_v29 }

// kernel: encoder_cam_forward.18
= control target key start
LH: loop header
LB: loop body
LE: loop exit
PB: predicated region body
PF: predicated region fallthrough
CT: control target
= control target key end

     0   :  { %s1791_s0 = inlined_call_operand.vmem [shape: bf16[32,256], index: 0, kind: input, shape index: {}]   ;;  %s1792_s1 = inlined_call_operand.vmem [shape: bf16[256,768], index: 1, kind: input, shape index: {}]   ;;  %s1793_s3 = inlined_call_operand.vmem [shape: f32[1,256], index: 3, kind: input, shape index: {}]   ;;  %s1794_s4 = inlined_call_operand.vmem [shape: f32[1,256], index: 4, kind: input, shape index: {}]   ;;  %s1795_s2 = inlined_call_operand.vmem [shape: f32[1,768], index: 2, kind: input, shape index: {}]   ;;  %s1796_s5 = inlined_call_operand.vmem [shape: bf16[32,768], index: 5, kind: output, shape index: {}]  }
   0x1   :  { %v1333_v0 = vld [vmem:[%s1791_s0] sm:$0xff]  ;;  %v1338_v1 = vld [vmem:[%s1791_s0 + $0x10] sm:$0xff]  ;;  %v1343_v2 = vld [vmem:[%s1791_s0 + $0x8] sm:$0xff] }
   0x2   :  { %v24_v3 = vunpack.c.l.bf16 %v1333_v0  ;;  %v25_v4 = vunpack.c.h.bf16 %v1333_v0  ;;  %v28_v5 = vunpack.c.l.bf16 %v1338_v1  ;;  %v29_v6 = vunpack.c.h.bf16 %v1338_v1  ;;  %v1352_v7 = vld [vmem:[%s1791_s0 + $0x18] sm:$0xff]  ;;  %v1150_v17 = vld [vmem:[%s1792_s1 + $0xc] ss:$24 sps:$4 sm:$0xff]   ;;  %v1153_v19 = vld [vmem:[%s1792_s1 + $0x8] ss:$24 sps:$4 sm:$0xff]  }
   0x3   :  { %v26_v8 = vunpack.c.l.bf16 %v1343_v2  ;;  %v27_v9 = vunpack.c.h.bf16 %v1343_v2  ;;  %v30_v10 = vunpack.c.l.bf16 %v1352_v7  ;;  %v31_v11 = vunpack.c.h.bf16 %v1352_v7  ;;  %v1148_v16 = vld [vmem:[%s1792_s1 + $0x4] ss:$24 sps:$4 sm:$0xff]   ;;  %v1152_v18 = vld [vmem:[%s1792_s1] ss:$24 sps:$4 sm:$0xff]   ;;  %802 = vmatprep.subr.bf16.mxu1 %v1150_v17  ;;  %v1154_v20 = vld [vmem:[%s1792_s1 + $0x34] ss:$24 sps:$4 sm:$0xff]  }
   0x4   :  { %v32_v12 = vadd.f32 %v25_v4, %v24_v3  ;;  %v38_v13 = vadd.f32 %v29_v6, %v28_v5  ;;  %749 = vmatprep.subr.bf16.mxu0 %v1148_v16  ;;  %803 = vmatpush1.bf16.msra.mxu1 %v1153_v19  ;;  %v1156_v21 = vld [vmem:[%s1792_s1 + $0x3c] ss:$24 sps:$4 sm:$0xff]   ;;  %v1158_v22 = vld [vmem:[%s1792_s1 + $0x30] ss:$24 sps:$4 sm:$0xff]   ;;  %v1162_v25 = vld [vmem:[%s1792_s1 + $0x6c] ss:$24 sps:$4 sm:$0xff]  }
   0x5   :  { %v35_v14 = vadd.f32 %v27_v9, %v26_v8  ;;  %v41_v15 = vadd.f32 %v31_v11, %v30_v10  ;;  %750 = vmatpush1.bf16.msra.mxu0 %v1152_v18  ;;  %v1159_v23 = vld [vmem:[%s1792_s1 + $0x38] ss:$24 sps:$4 sm:$0xff]   ;;  %804 = vmatprep.subr.bf16.mxu1 %v1156_v21  ;;  %v1160_v24 = vld [vmem:[%s1792_s1 + $0x64] ss:$24 sps:$4 sm:$0xff]   ;;  %v1165_v27 = vld [vmem:[%s1792_s1 + $0x68] ss:$24 sps:$4 sm:$0xff]  }
   0x6   :  { %33 = vadd.xlane.f32.xlu0 %v32_v12  ;;  %39 = vadd.xlane.f32.xlu1 %v38_v13  ;;  %v1164_v26 = vld [vmem:[%s1792_s1 + $0x60] ss:$24 sps:$4 sm:$0xff]   ;;  %v1166_v28 = vld [vmem:[%s1792_s1 + $0x94] ss:$24 sps:$4 sm:$0xff]   ;;  %v1170_v30 = vld [vmem:[%s1792_s1 + $0x90] ss:$24 sps:$4 sm:$0xff]  }
   0x7   :  { %751 = vmatprep.subr.bf16.mxu0 %v1154_v20  ;;  %v1168_v29 = vld [vmem:[%s1792_s1 + $0x9c] ss:$24 sps:$4 sm:$0xff]   ;;  %v1171_v31 = vld [vmem:[%s1792_s1 + $0x98] ss:$24 sps:$4 sm:$0xff]   ;;  %v1174_v33 = vld [vmem:[%s1792_s1 + $0xcc] ss:$24 sps:$4 sm:$0xff]  }
   0x8   :  { %805 = vmatpush1.bf16.msra.mxu1 %v1159_v23  ;;  %v1172_v32 = vld [vmem:[%s1792_s1 + $0xc4] ss:$24 sps:$4 sm:$0xff]   ;;  %v1176_v34 = vld [vmem:[%s1792_s1 + $0xc0] ss:$24 sps:$4 sm:$0xff]   ;;  %v1178_v36 = vld [vmem:[%s1792_s1 + $0xf4] ss:$24 sps:$4 sm:$0xff]  }
   0x9   :  { %752 = vmatpush1.bf16.msra.mxu0 %v1158_v22  ;;  %806 = vmatprep.subr.bf16.mxu1 %v1162_v25  ;;  %v1177_v35 = vld [vmem:[%s1792_s1 + $0xc8] ss:$24 sps:$4 sm:$0xff]   ;;  %v1180_v37 = vld [vmem:[%s1792_s1 + $0xfc] ss:$24 sps:$4 sm:$0xff]   ;;  %v1183_v39 = vld [vmem:[%s1792_s1 + $0xf8] ss:$24 sps:$4 sm:$0xff]  }
   0xa   :  { %36 = vadd.xlane.f32.xlu0 %v35_v14  ;;  %42 = vadd.xlane.f32.xlu1 %v41_v15  ;;  %v1182_v38 = vld [vmem:[%s1792_s1 + $0xf0] ss:$24 sps:$4 sm:$0xff]   ;;  %v1184_v40 = vld [vmem:[%s1792_s1 + $0x124] ss:$24 sps:$4 sm:$0xff]   ;;  %v1188_v42 = vld [vmem:[%s1792_s1 + $0x120] ss:$24 sps:$4 sm:$0xff]  }
   0xb   :  { %753 = vmatprep.subr.bf16.mxu0 %v1160_v24  ;;  %v1186_v41 = vld [vmem:[%s1792_s1 + $0x12c] ss:$24 sps:$4 sm:$0xff]   ;;  %v1189_v43 = vld [vmem:[%s1792_s1 + $0x128] ss:$24 sps:$4 sm:$0xff]   ;;  %v1192_v45 = vld [vmem:[%s1792_s1 + $0x15c] ss:$24 sps:$4 sm:$0xff]  }
   0xc   :  { %807 = vmatpush1.bf16.msra.mxu1 %v1165_v27  ;;  %v1190_v44 = vld [vmem:[%s1792_s1 + $0x154] ss:$24 sps:$4 sm:$0xff]   ;;  %v1194_v46 = vld [vmem:[%s1792_s1 + $0x150] ss:$24 sps:$4 sm:$0xff]   ;;  %v1196_v48 = vld [vmem:[%s1792_s1 + $0x184] ss:$24 sps:$4 sm:$0xff]  }
   0xd   :  { %754 = vmatpush1.bf16.msra.mxu0 %v1164_v26  ;;  %808 = vmatprep.subr.bf16.mxu1 %v1168_v29  ;;  %v1195_v47 = vld [vmem:[%s1792_s1 + $0x158] ss:$24 sps:$4 sm:$0xff]   ;;  %v1198_v49 = vld [vmem:[%s1792_s1 + $0x18c] ss:$24 sps:$4 sm:$0xff]   ;;  %v1201_v51 = vld [vmem:[%s1792_s1 + $0x188] ss:$24 sps:$4 sm:$0xff]  }
   0xe   :  { %755 = vmatprep.subr.bf16.mxu0 %v1166_v28  ;;  %v1200_v50 = vld [vmem:[%s1792_s1 + $0x180] ss:$24 sps:$4 sm:$0xff]   ;;  %v1202_v52 = vld [vmem:[%s1792_s1 + $0x1b4] ss:$24 sps:$4 sm:$0xff]   ;;  %v1208_v20 = vld [vmem:[%s1792_s1 + $0x1e4] ss:$24 sps:$4 sm:$0xff]  }
   0xf   :  { %v1204_v53 = vld [vmem:[%s1792_s1 + $0x1bc] ss:$24 sps:$4 sm:$0xff]   ;;  %v1207_v19 = vld [vmem:[%s1792_s1 + $0x1b8] ss:$24 sps:$4 sm:$0xff]   ;;  %v1210_v21 = vld [vmem:[%s1792_s1 + $0x1ec] ss:$24 sps:$4 sm:$0xff]  }
  0x10   :  { %809 = vmatpush1.bf16.msra.mxu1 %v1171_v31  ;;  %v1212_v22 = vld [vmem:[%s1792_s1 + $0x1e0] ss:$24 sps:$4 sm:$0xff]   ;;  %v1214_v24 = vld [vmem:[%s1792_s1 + $0x214] ss:$24 sps:$4 sm:$0xff]   ;;  %v1218_v26 = vld [vmem:[%s1792_s1 + $0x210] ss:$24 sps:$4 sm:$0xff]  }
  0x11   :  { %756 = vmatpush1.bf16.msra.mxu0 %v1170_v30  ;;  %810 = vmatprep.subr.bf16.mxu1 %v1174_v33  ;;  %v1213_v23 = vld [vmem:[%s1792_s1 + $0x1e8] ss:$24 sps:$4 sm:$0xff]   ;;  %v1216_v25 = vld [vmem:[%s1792_s1 + $0x21c] ss:$24 sps:$4 sm:$0xff]   ;;  %v1219_v27 = vld [vmem:[%s1792_s1 + $0x218] ss:$24 sps:$4 sm:$0xff]  }
  0x12   :  { %757 = vmatprep.subr.bf16.mxu0 %v1172_v32  ;;  %v1220_v28 = vld [vmem:[%s1792_s1 + $0x244] ss:$24 sps:$4 sm:$0xff]   ;;  %v1224_v30 = vld [vmem:[%s1792_s1 + $0x240] ss:$24 sps:$4 sm:$0xff]   ;;  %v1226_v32 = vld [vmem:[%s1792_s1 + $0x274] ss:$24 sps:$4 sm:$0xff]  }
  0x13   :  { %v1222_v29 = vld [vmem:[%s1792_s1 + $0x24c] ss:$24 sps:$4 sm:$0xff]   ;;  %v1225_v31 = vld [vmem:[%s1792_s1 + $0x248] ss:$24 sps:$4 sm:$0xff]   ;;  %v1228_v33 = vld [vmem:[%s1792_s1 + $0x27c] ss:$24 sps:$4 sm:$0xff]  }
  0x14   :  { %811 = vmatpush1.bf16.msra.mxu1 %v1177_v35  ;;  %v1231_v35 = vld [vmem:[%s1792_s1 + $0x278] ss:$24 sps:$4 sm:$0xff]  }
  0x15   :  { %758 = vmatpush1.bf16.msra.mxu0 %v1176_v34  ;;  %812 = vmatprep.subr.bf16.mxu1 %v1180_v37  ;;  %v1230_v34 = vld [vmem:[%s1792_s1 + $0x270] ss:$24 sps:$4 sm:$0xff]   ;;  %v1234_v37 = vld [vmem:[%s1792_s1 + $0x2ac] ss:$24 sps:$4 sm:$0xff]  }
  0x16   :  { %759 = vmatprep.subr.bf16.mxu0 %v1178_v36  ;;  %v1232_v36 = vld [vmem:[%s1792_s1 + $0x2a4] ss:$24 sps:$4 sm:$0xff]  }
  0x18   :  { %813 = vmatpush1.bf16.msra.mxu1 %v1183_v39  ;;  %v1237_v39 = vld [vmem:[%s1792_s1 + $0x2a8] ss:$24 sps:$4 sm:$0xff]  }
  0x19   :  { %760 = vmatpush1.bf16.msra.mxu0 %v1182_v38  ;;  %814 = vmatprep.subr.bf16.mxu1 %v1186_v41  ;;  %v1236_v38 = vld [vmem:[%s1792_s1 + $0x2a0] ss:$24 sps:$4 sm:$0xff]   ;;  %v1240_v41 = vld [vmem:[%s1792_s1 + $0x2dc] ss:$24 sps:$4 sm:$0xff]  }
  0x1a   :  { %761 = vmatprep.subr.bf16.mxu0 %v1184_v40  ;;  %v1238_v40 = vld [vmem:[%s1792_s1 + $0x2d4] ss:$24 sps:$4 sm:$0xff]  }
  0x1c   :  { %815 = vmatpush1.bf16.msra.mxu1 %v1189_v43  ;;  %v1243_v43 = vld [vmem:[%s1792_s1 + $0x2d8] ss:$24 sps:$4 sm:$0xff]  }
  0x1d   :  { %762 = vmatpush1.bf16.msra.mxu0 %v1188_v42  ;;  %816 = vmatprep.subr.bf16.mxu1 %v1192_v45  ;;  %v1242_v42 = vld [vmem:[%s1792_s1 + $0x2d0] ss:$24 sps:$4 sm:$0xff]  }
  0x1e   :  { %763 = vmatprep.subr.bf16.mxu0 %v1190_v44  ;;  %v1246_v44 = vld [vmem:[%s1792_s1 + $0x14] ss:$24 sps:$4 sm:$0xff]  }
  0x20   :  { %817 = vmatpush1.bf16.msra.mxu1 %v1195_v47  ;;  %v99_v47 = vlaneseq }
  0x21   :  { %764 = vmatpush1.bf16.msra.mxu0 %v1194_v46  ;;  %818 = vmatprep.subr.bf16.mxu1 %v1198_v49 }
  0x22   :  { %765 = vmatprep.subr.bf16.mxu0 %v1196_v48 }
  0x24   :  { %819 = vmatpush1.bf16.msra.mxu1 %v1201_v51 }
  0x25   :  { %766 = vmatpush1.bf16.msra.mxu0 %v1200_v50  ;;  %820 = vmatprep.subr.bf16.mxu1 %v1204_v53 }
  0x26   :  { %767 = vmatprep.subr.bf16.mxu0 %v1202_v52 }
  0x28   :  { %821 = vmatpush1.bf16.msra.mxu1 %v1207_v19 }
  0x29   :  { %822 = vmatprep.subr.bf16.mxu1 %v1210_v21 }
  0x2c   :  { %823 = vmatpush1.bf16.msra.mxu1 %v1213_v23 }
  0x2d   :  { %824 = vmatprep.subr.bf16.mxu1 %v1216_v25 }
  0x30   :  { %825 = vmatpush1.bf16.msra.mxu1 %v1219_v27 }
  0x31   :  { %826 = vmatprep.subr.bf16.mxu1 %v1222_v29 }
  0x34   :  { %827 = vmatpush1.bf16.msra.mxu1 %v1225_v31  ;;  %v1249_v31 = vld [vmem:[%s1792_s1 + $0x44] ss:$24 sps:$4 sm:$0xff]  }
  0x35   :  { %828 = vmatprep.subr.bf16.mxu1 %v1228_v33 }
  0x38   :  { %829 = vmatpush1.bf16.msra.mxu1 %v1231_v35  ;;  %v1252_v35 = vld [vmem:[%s1792_s1 + $0x74] ss:$24 sps:$4 sm:$0xff]  }
  0x39   :  { %830 = vmatprep.subr.bf16.mxu1 %v1234_v37 }
  0x3c   :  { %831 = vmatpush1.bf16.msra.mxu1 %v1237_v39 }
  0x3d   :  { %832 = vmatprep.subr.bf16.mxu1 %v1240_v41  ;;  %v1253_v41 = vld [vmem:[%s1792_s1 + $0xa0] ss:$24 sps:$4 sm:$0xff]  }
  0x40   :  { %833 = vmatpush1.bf16.msra.mxu1 %v1243_v43  ;;  %v1256_v43 = vld [vmem:[%s1792_s1 + $0xd0] ss:$24 sps:$4 sm:$0xff]  }
  0x41   :  { %1116 = vmatprep.subr.bf16.mxu1 %v1246_v44 }
  0x93   :  { %v34_v54 = vpop.xlane.xlu0 %33  ;;  %v40_v55 = vpop.xlane.xlu1 %39 }
  0x94   :  { %v45_v56 = vmul.f32 0.00390625, %v34_v54  ;;  %v47_v57 = vmul.f32 0.00390625, %v40_v55  ;;  %v1617_v54 = vshrl.u32 %v99_v47, 7  ;;  %v1262_v47 = vld [vmem:[%s1792_s1 + $0x130] ss:$24 sps:$4 sm:$0xff]  }
  0x96   :  { %v1490_v58 = vsub.f32 %v24_v3, %v45_v56  ;;  %v1494_v59 = vsub.f32 %v25_v4, %v45_v56  ;;  %v1498_v60 = vsub.f32 %v28_v5, %v47_v57  ;;  %v1502_v61 = vsub.f32 %v29_v6, %v47_v57 }
  0x97   :  { %v37_v62 = vpop.xlane.xlu0 %36  ;;  %v43_v63 = vpop.xlane.xlu1 %42 }
  0x98   :  { %v46_v12 = vmul.f32 0.00390625, %v37_v62  ;;  %v48_v13 = vmul.f32 0.00390625, %v43_v63  ;;  %v57_v3 = vmul.f32 %v1490_v58, %v1490_v58  ;;  %v58_v0 = vmul.f32 %v1494_v59, %v1494_v59 }
  0x99   :  { %v61_v4 = vmul.f32 %v1498_v60, %v1498_v60  ;;  %v62_v5 = vmul.f32 %v1502_v61, %v1502_v61  ;;  %v1620_v63 = vsub.s32 1, %v1617_v54 }
  0x9a   :  { %v1514_v1 = vsub.f32 %v26_v8, %v46_v12  ;;  %v1518_v6 = vsub.f32 %v27_v9, %v46_v12  ;;  %v1522_v14 = vsub.f32 %v30_v10, %v48_v13  ;;  %v1526_v15 = vsub.f32 %v31_v11, %v48_v13  ;;  %v1206_v11 = vld [vmem:[%s1792_s1 + $0x1b0] ss:$24 sps:$4 sm:$0xff]   ;;  %v97_v13 = vld [vmem:[%s1793_s3] sm:$0x3] }
  0x9b   :  { %v65_v16 = vadd.f32 %v58_v0, %v57_v3  ;;  %v71_v10 = vadd.f32 %v62_v5, %v61_v4  ;;  %768 = vmatpush1.bf16.msra.mxu0 %v1206_v11  ;;  %v1623_v12 = vsub.s32 0, %v1617_v54  ;;  %v106_v3 = vrot.slane %v97_v13, %v1620_v63  ;;  %v117_v5 = vld [vmem:[%s1794_s4] sm:$0x3] }
  0x9c   :  { %v59_v17 = vmul.f32 %v1514_v1, %v1514_v1  ;;  %v60_v8 = vmul.f32 %v1518_v6, %v1518_v6  ;;  %v63_v2 = vmul.f32 %v1522_v14, %v1522_v14  ;;  %v64_v9 = vmul.f32 %v1526_v15, %v1526_v15  ;;  %769 = vmatprep.subr.bf16.mxu0 %v1208_v20 }
  0x9d   :  { %66 = vadd.xlane.f32.xlu0 %v65_v16  ;;  %v102_v0 = vrot.slane %v97_v13, %v1623_v12  ;;  %v1282_v13 = vld [vmem:[%s1792_s1 + $0x254] ss:$24 sps:$4 sm:$0xff]  }
  0x9e   :  { %v68_v18 = vadd.f32 %v60_v8, %v59_v17  ;;  %v74_v7 = vadd.f32 %v64_v9, %v63_v2  ;;  %v126_v9 = vrot.slane %v117_v5, %v1620_v63 }
  0x9f   :  { %770 = vmatpush1.bf16.msra.mxu0 %v1212_v22 }
  0xa0   :  { %69 = vadd.xlane.f32.xlu1 %v68_v18  ;;  %771 = vmatprep.subr.bf16.mxu0 %v1214_v24  ;;  %v122_v18 = vrot.slane %v117_v5, %v1623_v12  ;;  %v1288_v5 = vld [vmem:[%s1792_s1 + $0x2b4] ss:$24 sps:$4 sm:$0xff]  }
  0xa1   :  { %72 = vadd.xlane.f32.xlu0 %v71_v10 }
  0xa3   :  { %772 = vmatpush1.bf16.msra.mxu0 %v1218_v26 }
  0xa4   :  { %75 = vadd.xlane.f32.xlu1 %v74_v7  ;;  %773 = vmatprep.subr.bf16.mxu0 %v1220_v28 }
  0xa7   :  { %774 = vmatpush1.bf16.msra.mxu0 %v1224_v30 }
  0xa8   :  { %775 = vmatprep.subr.bf16.mxu0 %v1226_v32 }
  0xab   :  { %776 = vmatpush1.bf16.msra.mxu0 %v1230_v34  ;;  %v1247_v34 = vld [vmem:[%s1792_s1 + $0x40] ss:$24 sps:$4 sm:$0xff]  }
  0xac   :  { %777 = vmatprep.subr.bf16.mxu0 %v1232_v36 }
  0xaf   :  { %778 = vmatpush1.bf16.msra.mxu0 %v1236_v38  ;;  %v1250_v38 = vld [vmem:[%s1792_s1 + $0x70] ss:$24 sps:$4 sm:$0xff]  }
  0xb0   :  { %779 = vmatprep.subr.bf16.mxu0 %v1238_v40  ;;  %v1255_v40 = vld [vmem:[%s1792_s1 + $0xa4] ss:$24 sps:$4 sm:$0xff]  }
  0xb3   :  { %780 = vmatpush1.bf16.msra.mxu0 %v1242_v42  ;;  %v1258_v42 = vld [vmem:[%s1792_s1 + $0xd4] ss:$24 sps:$4 sm:$0xff]  }
  0xb4   :  { %855 = vmatprep.subr.bf16.mxu0 %v1246_v44  ;;  %v1261_v44 = vld [vmem:[%s1792_s1 + $0x104] ss:$24 sps:$4 sm:$0xff]  }
 0x12a   :  { %v67_v45 = vpop.xlane.xlu0 %66 }
 0x12b   :  { %v77_v46 = vmul.f32 0.00390625, %v67_v45  ;;  %v1259_v45 = vld [vmem:[%s1792_s1 + $0x100] ss:$24 sps:$4 sm:$0xff]  }
 0x12d   :  { %v81_v48 = vadd.f32 1e-05, %v77_v46  ;;  %v70_v49 = vpop.xlane.xlu1 %69  ;;  %v1264_v46 = vld [vmem:[%s1792_s1 + $0x134] ss:$24 sps:$4 sm:$0xff]  }
 0x12e   :  { %v78_v50 = vmul.f32 0.00390625, %v70_v49  ;;  %v73_v51 = vpop.xlane.xlu0 %72  ;;  %v1265_v49 = vld [vmem:[%s1792_s1 + $0x160] ss:$24 sps:$4 sm:$0xff]  }
 0x12f   :  { %1292 = vrsqrt.f32 %v81_v48  ;;  %v79_v52 = vmul.f32 0.00390625, %v73_v51  ;;  %v1267_v48 = vld [vmem:[%s1792_s1 + $0x164] ss:$24 sps:$4 sm:$0xff]   ;;  %v1268_v51 = vld [vmem:[%s1792_s1 + $0x190] ss:$24 sps:$4 sm:$0xff]  }
 0x130   :  { %v82_v53 = vadd.f32 1e-05, %v78_v50  ;;  %v1270_v50 = vld [vmem:[%s1792_s1 + $0x194] ss:$24 sps:$4 sm:$0xff]  }
 0x131   :  { %v83_v55 = vadd.f32 1e-05, %v79_v52  ;;  %v76_v56 = vpop.xlane.xlu1 %75  ;;  %v1273_v52 = vld [vmem:[%s1792_s1 + $0x1c4] ss:$24 sps:$4 sm:$0xff]  }
 0x132   :  { %1294 = vrsqrt.f32 %v82_v53  ;;  %v80_v57 = vmul.f32 0.00390625, %v76_v56  ;;  %v1271_v53 = vld [vmem:[%s1792_s1 + $0x1c0] ss:$24 sps:$4 sm:$0xff]   ;;  %v1274_v56 = vld [vmem:[%s1792_s1 + $0x1f0] ss:$24 sps:$4 sm:$0xff]  }
 0x133   :  { %1296 = vrsqrt.f32 %v83_v55  ;;  %v1276_v55 = vld [vmem:[%s1792_s1 + $0x1f4] ss:$24 sps:$4 sm:$0xff]  }
 0x134   :  { %v84_v62 = vadd.f32 1e-05, %v80_v57  ;;  %v1279_v57 = vld [vmem:[%s1792_s1 + $0x224] ss:$24 sps:$4 sm:$0xff]  }
 0x136   :  { %1298 = vrsqrt.f32 %v84_v62  ;;  %v1277_v62 = vld [vmem:[%s1792_s1 + $0x220] ss:$24 sps:$4 sm:$0xff]  }
 0x139   :  { %v1293_v4 = vpop.eup %1292 }
 0x13a   :  { %v90_v16 = vmul.f32 %v1293_v4, %v1494_v59  ;;  %v89_v17 = vmul.f32 %v1293_v4, %v1490_v58  ;;  %v1283_v4 = vld [vmem:[%s1792_s1 + $0x280] ss:$24 sps:$4 sm:$0xff]  }
 0x13c   :  { %v1295_v8 = vpop.eup %1294  ;;  %v110_v2 = vmul.f32 %v106_v3, %v90_v16  ;;  %v109_v10 = vmul.f32 %v102_v0, %v89_v17  ;;  %v1286_v16 = vld [vmem:[%s1792_s1 + $0x2b0] ss:$24 sps:$4 sm:$0xff]   ;;  %v1291_v17 = vld [vmem:[%s1792_s1 + $0x2e4] ss:$24 sps:$4 sm:$0xff]  }
 0x13d   :  { %v1297_v7 = vpop.eup %1296  ;;  %v92_v11 = vmul.f32 %v1295_v8, %v1518_v6  ;;  %v91_v19 = vmul.f32 %v1295_v8, %v1514_v1  ;;  %v1244_v1 = vld [vmem:[%s1792_s1 + $0x10] ss:$24 sps:$4 sm:$0xff]   ;;  %v1289_v8 = vld [vmem:[%s1792_s1 + $0x2e0] ss:$24 sps:$4 sm:$0xff]  }
 0x13e   :  { %v94_v20 = vmul.f32 %v1297_v7, %v1502_v61  ;;  %v130_v59 = vadd.f32 %v126_v9, %v110_v2  ;;  %v129_v24 = vadd.f32 %v122_v18, %v109_v10  ;;  %v93_v29 = vmul.f32 %v1297_v7, %v1498_v60 }
 0x13f   :  { %v112_v21 = vmul.f32 %v106_v3, %v92_v11  ;;  %v111_v22 = vmul.f32 %v102_v0, %v91_v19  ;;  %v249_v2 = vsub.s32 2, %v1617_v54  ;;  %v253_v10 = vsub.s32 3, %v1617_v54 }
 0x140   :  { %v1299_v23 = vpop.eup %1298  ;;  %v114_v58 = vmul.f32 %v106_v3, %v94_v20  ;;  %v113_v60 = vmul.f32 %v102_v0, %v93_v29 }
 0x141   :  { %v132_v25 = vadd.f32 %v126_v9, %v112_v21  ;;  %v131_v26 = vadd.f32 %v122_v18, %v111_v22  ;;  %v96_v27 = vmul.f32 %v1299_v23, %v1526_v15  ;;  %v95_v28 = vmul.f32 %v1299_v23, %v1522_v14 }
 0x142   :  { %v134_v15 = vadd.f32 %v126_v9, %v114_v58  ;;  %v133_v37 = vadd.f32 %v122_v18, %v113_v60 }
 0x143   :  { %v138_v30 = vpack.c.bf16 %v132_v25, %v130_v59  ;;  %v1646_v61 = vpack.c.bf16 %v131_v26, %v129_v24  ;;  %v116_v6 = vmul.f32 %v106_v3, %v96_v27  ;;  %v115_v32 = vmul.f32 %v102_v0, %v95_v28  ;;  %v1280_v3 = vld [vmem:[%s1792_s1 + $0x250] ss:$24 sps:$4 sm:$0xff]   ;;  %v1285_v0 = vld [vmem:[%s1792_s1 + $0x284] ss:$24 sps:$4 sm:$0xff]  }
 0x145   :  { %781 = vmatprep.mubr.bf16.mxu0 %v138_v30  ;;  %834 = vmatprep.mubr.bf16.mxu1 %v138_v30  ;;  %v136_v33 = vadd.f32 %v126_v9, %v116_v6  ;;  %v135_v36 = vadd.f32 %v122_v18, %v115_v32  ;;  %v237_v9 = vld [vmem:[%s1795_s2] sm:$0x3f] }
 0x146   :  { %782 = vmatmul.mubr.bf16.vlgmr.msra.gmra.mrb[0].mxu0 %v1646_v61  ;;  %835 = vmatmul.mubr.bf16.vlgmr.msra.gmra.mrb[0].mxu1 %v1646_v61  ;;  %v242_v18 = vrot.slane %v237_v9, %v1623_v12  ;;  %v250_v7 = vrot.slane %v237_v9, %v249_v2  ;;  %v246_v11 = vrot.slane %v237_v9, %v1620_v63 }
 0x147   :  { %856 = vmatpush1.bf16.msra.mxu0 %v1244_v1  ;;  %1132 = vmatpush1.bf16.msra.mxu1 %v1244_v1  ;;  %v140_v14 = vpack.c.bf16 %v136_v33, %v134_v15  ;;  %v1662_v39 = vpack.c.bf16 %v135_v36, %v133_v37  ;;  %v254_v19 = vrot.slane %v237_v9, %v253_v10 }
 0x148   :  { %857 = vmatprep.subr.bf16.mxu0 %v1249_v31  ;;  %1117 = vmatprep.subr.bf16.mxu1 %v1249_v31 }
 0x149   :  { %791 = vmatprep.mubr.bf16.mxu0 %v140_v14  ;;  %844 = vmatprep.mubr.bf16.mxu1 %v140_v14 }
 0x14b   :  { %858 = vmatpush1.bf16.msra.mxu0 %v1247_v34  ;;  %1133 = vmatpush1.bf16.msra.mxu1 %v1247_v34 }
 0x14c   :  { %859 = vmatprep.subr.bf16.mxu0 %v1252_v35  ;;  %1118 = vmatprep.subr.bf16.mxu1 %v1252_v35 }
 0x14e   :  { %792 = vmatmul.mubr.bf16.gmra.mrb[4].mxu0 %v1662_v39  ;;  %845 = vmatmul.mubr.bf16.gmra.mrb[4].mxu1 %v1662_v39 }
 0x14f   :  { %860 = vmatpush1.bf16.msra.mxu0 %v1250_v38  ;;  %1134 = vmatpush1.bf16.msra.mxu1 %v1250_v38 }
 0x150   :  { %887 = vmatprep.mubr.bf16.mxu0 %v138_v30  ;;  %897 = vmatprep.mubr.bf16.mxu1 %v140_v14 }
 0x151   :  { %861 = vmatprep.subr.bf16.mxu0 %v1255_v40  ;;  %1119 = vmatprep.subr.bf16.mxu1 %v1255_v40 }
 0x153   :  { %862 = vmatpush1.bf16.msra.mxu0 %v1253_v41  ;;  %1135 = vmatpush1.bf16.msra.mxu1 %v1253_v41 }
 0x154   :  { %863 = vmatprep.subr.bf16.mxu0 %v1258_v42  ;;  %1120 = vmatprep.subr.bf16.mxu1 %v1258_v42 }
 0x157   :  { %864 = vmatpush1.bf16.msra.mxu0 %v1256_v43  ;;  %1136 = vmatpush1.bf16.msra.mxu1 %v1256_v43 }
 0x158   :  { %865 = vmatprep.subr.bf16.mxu0 %v1261_v44  ;;  %1121 = vmatprep.subr.bf16.mxu1 %v1261_v44 }
 0x15b   :  { %866 = vmatpush1.bf16.msra.mxu0 %v1259_v45  ;;  %1137 = vmatpush1.bf16.msra.mxu1 %v1259_v45 }
 0x15c   :  { %867 = vmatprep.subr.bf16.mxu0 %v1264_v46  ;;  %1122 = vmatprep.subr.bf16.mxu1 %v1264_v46 }
 0x15f   :  { %868 = vmatpush1.bf16.msra.mxu0 %v1262_v47  ;;  %1138 = vmatpush1.bf16.msra.mxu1 %v1262_v47 }
 0x160   :  { %869 = vmatprep.subr.bf16.mxu0 %v1267_v48  ;;  %1123 = vmatprep.subr.bf16.mxu1 %v1267_v48 }
 0x163   :  { %870 = vmatpush1.bf16.msra.mxu0 %v1265_v49  ;;  %1139 = vmatpush1.bf16.msra.mxu1 %v1265_v49 }
 0x164   :  { %871 = vmatprep.subr.bf16.mxu0 %v1270_v50  ;;  %1124 = vmatprep.subr.bf16.mxu1 %v1270_v50  ;;  %v257_v50 = vsub.s32 4, %v1617_v54 }
 0x167   :  { %872 = vmatpush1.bf16.msra.mxu0 %v1268_v51  ;;  %1140 = vmatpush1.bf16.msra.mxu1 %v1268_v51  ;;  %v261_v51 = vsub.s32 5, %v1617_v54 }
 0x168   :  { %873 = vmatprep.subr.bf16.mxu0 %v1273_v52  ;;  %1125 = vmatprep.subr.bf16.mxu1 %v1273_v52  ;;  %v258_v52 = vrot.slane %v237_v9, %v257_v50 }
 0x16b   :  { %874 = vmatpush1.bf16.msra.mxu0 %v1271_v53  ;;  %1141 = vmatpush1.bf16.msra.mxu1 %v1271_v53  ;;  %v262_v53 = vrot.slane %v237_v9, %v261_v51 }
 0x16c   :  { %875 = vmatprep.subr.bf16.mxu0 %v1276_v55  ;;  %1126 = vmatprep.subr.bf16.mxu1 %v1276_v55 }
 0x16f   :  { %876 = vmatpush1.bf16.msra.mxu0 %v1274_v56  ;;  %1142 = vmatpush1.bf16.msra.mxu1 %v1274_v56 }
 0x170   :  { %877 = vmatprep.subr.bf16.mxu0 %v1279_v57  ;;  %1127 = vmatprep.subr.bf16.mxu1 %v1279_v57 }
 0x173   :  { %878 = vmatpush1.bf16.msra.mxu0 %v1277_v62  ;;  %1143 = vmatpush1.bf16.msra.mxu1 %v1277_v62 }
 0x174   :  { %879 = vmatprep.subr.bf16.mxu0 %v1282_v13  ;;  %1128 = vmatprep.subr.bf16.mxu1 %v1282_v13 }
 0x177   :  { %880 = vmatpush1.bf16.msra.mxu0 %v1280_v3  ;;  %1144 = vmatpush1.bf16.msra.mxu1 %v1280_v3 }
 0x178   :  { %881 = vmatprep.subr.bf16.mxu0 %v1285_v0  ;;  %1129 = vmatprep.subr.bf16.mxu1 %v1285_v0 }
 0x17b   :  { %882 = vmatpush1.bf16.msra.mxu0 %v1283_v4  ;;  %1145 = vmatpush1.bf16.msra.mxu1 %v1283_v4 }
 0x17c   :  { %883 = vmatprep.subr.bf16.mxu0 %v1288_v5  ;;  %1130 = vmatprep.subr.bf16.mxu1 %v1288_v5 }
 0x17f   :  { %884 = vmatpush1.bf16.msra.mxu0 %v1286_v16  ;;  %1146 = vmatpush1.bf16.msra.mxu1 %v1286_v16 }
 0x180   :  { %885 = vmatprep.subr.bf16.mxu0 %v1291_v17  ;;  %1131 = vmatprep.subr.bf16.mxu1 %v1291_v17 }
 0x183   :  { %886 = vmatpush1.bf16.msra.mxu0 %v1289_v8  ;;  %1147 = vmatpush1.bf16.msra.mxu1 %v1289_v8 }
 0x186   :  { %888 = vmatmul.mubr.bf16.vlgmr.msra.gmra.mrb[8].mxu0 %v1646_v61  ;;  %898 = vmatmul.mubr.bf16.vlgmr.msra.gmra.mrb[8].mxu1 %v1662_v39 }
 0x219   :  { %v783_v20 = vpop.f32.mrb[0].mxu0  ;;  %v836_v21 = vpop.f32.mrb[0].mxu1 }
 0x21a   :  { %v784_v22 = vadd.f32 %v783_v20, %v242_v18  ;;  %v837_v23 = vadd.f32 %v836_v21, %v250_v7  ;;  %v785_v59 = vpop.f32.mrb[1].mxu0  ;;  %v838_v24 = vpop.f32.mrb[1].mxu1 }
 0x21b   :  { %v786_v58 = vadd.f32 %v785_v59, %v246_v11  ;;  %v839_v25 = vadd.f32 %v838_v24, %v254_v19  ;;  %v787_v26 = vpop.f32.mrb[2].mxu0  ;;  %v840_v27 = vpop.f32.mrb[2].mxu1 }
 0x21c   :  { %v788_v28 = vadd.f32 %v787_v26, %v242_v18  ;;  %v841_v29 = vadd.f32 %v840_v27, %v250_v7  ;;  %v789_v30 = vpop.f32.mrb[3].mxu0  ;;  %v842_v1 = vpop.f32.mrb[3].mxu1 }
 0x21d   :  { %v1104_v61 = vpack.c.bf16 %v786_v58, %v784_v22  ;;  %v1105_v12 = vpack.c.bf16 %v839_v25, %v837_v23  ;;  %v790_v6 = vadd.f32 %v789_v30, %v246_v11  ;;  %v843_v31 = vadd.f32 %v842_v1, %v254_v19 }
 0x21f   :  { %980 = vst [vmem:[%s1796_s5] sm:$0xff] %v1104_v61  ;;  %981 = vst [vmem:[%s1796_s5 + $0x8] sm:$0xff] %v1105_v12  ;;  %v1107_v63 = vpack.c.bf16 %v790_v6, %v788_v28  ;;  %v1108_v32 = vpack.c.bf16 %v843_v31, %v841_v29 }
 0x221   :  { %983 = vst [vmem:[%s1796_s5 + $0x18] sm:$0xff] %v1107_v63  ;;  %984 = vst [vmem:[%s1796_s5 + $0x20] sm:$0xff] %v1108_v32  ;;  %v793_v15 = vpop.f32.mrb[4].mxu0  ;;  %v846_v33 = vpop.f32.mrb[4].mxu1 }
 0x222   :  { %v794_v60 = vadd.f32 %v793_v15, %v242_v18  ;;  %v847_v14 = vadd.f32 %v846_v33, %v250_v7  ;;  %v795_v34 = vpop.f32.mrb[5].mxu0  ;;  %v848_v35 = vpop.f32.mrb[5].mxu1 }
 0x223   :  { %v796_v36 = vadd.f32 %v795_v34, %v246_v11  ;;  %v849_v37 = vadd.f32 %v848_v35, %v254_v19  ;;  %v797_v38 = vpop.f32.mrb[6].mxu0  ;;  %v850_v39 = vpop.f32.mrb[6].mxu1 }
 0x224   :  { %v798_v40 = vadd.f32 %v797_v38, %v242_v18  ;;  %v851_v41 = vadd.f32 %v850_v39, %v250_v7  ;;  %v799_v42 = vpop.f32.mrb[7].mxu0  ;;  %v852_v43 = vpop.f32.mrb[7].mxu1 }
 0x225   :  { %v1110_v44 = vpack.c.bf16 %v796_v36, %v794_v60  ;;  %v1111_v45 = vpack.c.bf16 %v849_v37, %v847_v14  ;;  %v800_v46 = vadd.f32 %v799_v42, %v246_v11  ;;  %v853_v47 = vadd.f32 %v852_v43, %v254_v19 }
 0x227   :  { %986 = vst [vmem:[%s1796_s5 + $0x30] sm:$0xff] %v1110_v44  ;;  %987 = vst [vmem:[%s1796_s5 + $0x38] sm:$0xff] %v1111_v45  ;;  %v1113_v48 = vpack.c.bf16 %v800_v46, %v798_v40  ;;  %v1114_v49 = vpack.c.bf16 %v853_v47, %v851_v41 }
 0x229   :  { %989 = vst [vmem:[%s1796_s5 + $0x48] sm:$0xff] %v1113_v48  ;;  %990 = vst [vmem:[%s1796_s5 + $0x50] sm:$0xff] %v1114_v49 }
 0x259   :  { %v889_v55 = vpop.f32.mrb[8].mxu0  ;;  %v899_v56 = vpop.f32.mrb[8].mxu1 }
 0x25a   :  { %v890_v57 = vadd.f32 %v889_v55, %v258_v52  ;;  %v900_v62 = vadd.f32 %v899_v56, %v258_v52  ;;  %v891_v13 = vpop.f32.mrb[9].mxu0  ;;  %v901_v3 = vpop.f32.mrb[9].mxu1 }
 0x25b   :  { %v892_v0 = vadd.f32 %v891_v13, %v262_v53  ;;  %v902_v4 = vadd.f32 %v901_v3, %v262_v53  ;;  %v893_v5 = vpop.f32.mrb[10].mxu0  ;;  %v903_v16 = vpop.f32.mrb[10].mxu1 }
 0x25c   :  { %v894_v17 = vadd.f32 %v893_v5, %v258_v52  ;;  %v904_v8 = vadd.f32 %v903_v16, %v258_v52  ;;  %v895_v2 = vpop.f32.mrb[11].mxu0  ;;  %v905_v10 = vpop.f32.mrb[11].mxu1 }
 0x25d   :  { %v1106_v18 = vpack.c.bf16 %v892_v0, %v890_v57  ;;  %v1112_v7 = vpack.c.bf16 %v902_v4, %v900_v62  ;;  %v896_v11 = vadd.f32 %v895_v2, %v262_v53  ;;  %v906_v54 = vadd.f32 %v905_v10, %v262_v53 }
 0x25f   :  { %982 = vst [vmem:[%s1796_s5 + $0x10] sm:$0xff] %v1106_v18  ;;  %988 = vst [vmem:[%s1796_s5 + $0x40] sm:$0xff] %v1112_v7  ;;  %v1109_v9 = vpack.c.bf16 %v896_v11, %v894_v17  ;;  %v1115_v19 = vpack.c.bf16 %v906_v54, %v904_v8 }
 0x261   :  { %985 = vst [vmem:[%s1796_s5 + $0x28] sm:$0xff] %v1109_v9  ;;  %991 = vst [vmem:[%s1796_s5 + $0x58] sm:$0xff] %v1115_v19 }

// kernel: encoder_cam_forward.20
= control target key start
LH: loop header
LB: loop body
LE: loop exit
PB: predicated region body
PF: predicated region fallthrough
CT: control target
= control target key end

     0   :  { %v52_v36 = vlaneseq  ;;  %s600_s1 = inlined_call_operand.vmem [shape: bf16[256,256], index: 1, kind: input, shape index: {}]   ;;  %s601_s0 = inlined_call_operand.vmem [shape: bf16[32,256], index: 0, kind: input, shape index: {}]   ;;  %s602_s2 = inlined_call_operand.vmem [shape: f32[1,256], index: 2, kind: input, shape index: {}]   ;;  %s603_s3 = inlined_call_operand.vmem [shape: bf16[32,256], index: 3, kind: output, shape index: {}]  }
   0x1   :  { %v403_v0 = vld [vmem:[%s600_s1 + $0x4] ss:$8 sps:$4 sm:$0xff]   ;;  %v405_v1 = vld [vmem:[%s600_s1] ss:$8 sps:$4 sm:$0xff]   ;;  %v406_v2 = vld [vmem:[%s600_s1 + $0x14] ss:$8 sps:$4 sm:$0xff]  }
   0x2   :  { %242 = vmatprep.subr.bf16.mxu0 %v403_v0  ;;  %371 = vmatprep.subr.bf16.mxu1 %v403_v0  ;;  %v408_v3 = vld [vmem:[%s600_s1 + $0x10] ss:$8 sps:$4 sm:$0xff]   ;;  %v409_v4 = vld [vmem:[%s600_s1 + $0x24] ss:$8 sps:$4 sm:$0xff]   ;;  %v411_v5 = vld [vmem:[%s600_s1 + $0x20] ss:$8 sps:$4 sm:$0xff]  }
   0x3   :  { %243 = vmatpush1.bf16.msra.mxu0 %v405_v1  ;;  %387 = vmatpush1.bf16.msra.mxu1 %v405_v1  ;;  %v412_v6 = vld [vmem:[%s600_s1 + $0x34] ss:$8 sps:$4 sm:$0xff]   ;;  %v414_v7 = vld [vmem:[%s600_s1 + $0x30] ss:$8 sps:$4 sm:$0xff]   ;;  %v415_v8 = vld [vmem:[%s600_s1 + $0x44] ss:$8 sps:$4 sm:$0xff]  }
   0x4   :  { %244 = vmatprep.subr.bf16.mxu0 %v406_v2  ;;  %372 = vmatprep.subr.bf16.mxu1 %v406_v2  ;;  %v417_v9 = vld [vmem:[%s600_s1 + $0x40] ss:$8 sps:$4 sm:$0xff]   ;;  %v418_v10 = vld [vmem:[%s600_s1 + $0x54] ss:$8 sps:$4 sm:$0xff]   ;;  %v420_v11 = vld [vmem:[%s600_s1 + $0x50] ss:$8 sps:$4 sm:$0xff]  }
   0x5   :  { %v421_v12 = vld [vmem:[%s600_s1 + $0x64] ss:$8 sps:$4 sm:$0xff]   ;;  %v423_v14 = vld [vmem:[%s600_s1 + $0x60] ss:$8 sps:$4 sm:$0xff]   ;;  %v456_v15 = vld [vmem:[%s601_s0 + $0x14] ss:$8 sps:$4 sm:$0xff]  }
   0x6   :  { %v453_v13 = vld [vmem:[%s601_s0 + $0x4] ss:$8 sps:$4 sm:$0xff]   ;;  %v424_v16 = vld [vmem:[%s600_s1 + $0x74] ss:$8 sps:$4 sm:$0xff]   ;;  %284 = vmatprep.mubr.bf16.mxu1 %v456_v15  ;;  %v426_v17 = vld [vmem:[%s600_s1 + $0x70] ss:$8 sps:$4 sm:$0xff]  }
   0x7   :  { %245 = vmatpush1.bf16.msra.mxu0 %v408_v3  ;;  %388 = vmatpush1.bf16.msra.mxu1 %v408_v3  ;;  %v427_v18 = vld [vmem:[%s600_s1 + $0x84] ss:$8 sps:$4 sm:$0xff]   ;;  %v429_v19 = vld [vmem:[%s600_s1 + $0x80] ss:$8 sps:$4 sm:$0xff]   ;;  %v430_v20 = vld [vmem:[%s600_s1 + $0x94] ss:$8 sps:$4 sm:$0xff]  }
   0x8   :  { %246 = vmatprep.subr.bf16.mxu0 %v409_v4  ;;  %373 = vmatprep.subr.bf16.mxu1 %v409_v4  ;;  %v432_v21 = vld [vmem:[%s600_s1 + $0x90] ss:$8 sps:$4 sm:$0xff]   ;;  %v433_v22 = vld [vmem:[%s600_s1 + $0xa4] ss:$8 sps:$4 sm:$0xff]   ;;  %v435_v23 = vld [vmem:[%s600_s1 + $0xa0] ss:$8 sps:$4 sm:$0xff]  }
   0x9   :  { %274 = vmatprep.mubr.bf16.mxu0 %v453_v13  ;;  %v436_v24 = vld [vmem:[%s600_s1 + $0xb4] ss:$8 sps:$4 sm:$0xff]   ;;  %v438_v25 = vld [vmem:[%s600_s1 + $0xb0] ss:$8 sps:$4 sm:$0xff]   ;;  %v439_v26 = vld [vmem:[%s600_s1 + $0xc4] ss:$8 sps:$4 sm:$0xff]  }
   0xa   :  { %v441_v27 = vld [vmem:[%s600_s1 + $0xc0] ss:$8 sps:$4 sm:$0xff]   ;;  %v442_v28 = vld [vmem:[%s600_s1 + $0xd4] ss:$8 sps:$4 sm:$0xff]   ;;  %v444_v29 = vld [vmem:[%s600_s1 + $0xd0] ss:$8 sps:$4 sm:$0xff]  }
   0xb   :  { %247 = vmatpush1.bf16.msra.mxu0 %v411_v5  ;;  %389 = vmatpush1.bf16.msra.mxu1 %v411_v5  ;;  %v445_v30 = vld [vmem:[%s600_s1 + $0xe4] ss:$8 sps:$4 sm:$0xff]   ;;  %v447_v31 = vld [vmem:[%s600_s1 + $0xe0] ss:$8 sps:$4 sm:$0xff]   ;;  %v448_v32 = vld [vmem:[%s600_s1 + $0xf4] ss:$8 sps:$4 sm:$0xff]  }
   0xc   :  { %248 = vmatprep.subr.bf16.mxu0 %v412_v6  ;;  %374 = vmatprep.subr.bf16.mxu1 %v412_v6  ;;  %v450_v33 = vld [vmem:[%s600_s1 + $0xf0] ss:$8 sps:$4 sm:$0xff]   ;;  %v451_v34 = vld [vmem:[%s601_s0] ss:$8 sps:$4 sm:$0xff]   ;;  %v53_v37 = vshrl.u32 %v52_v36, 7 }
   0xd   :  { %v454_v35 = vld [vmem:[%s601_s0 + $0x10] ss:$8 sps:$4 sm:$0xff]   ;;  %v50_v39 = vld [vmem:[%s602_s2] sm:$0x3] }
   0xe   :  { %v54_v38 = vsub.s32 0, %v53_v37  ;;  %v58_v40 = vsub.s32 1, %v53_v37 }
   0xf   :  { %249 = vmatpush1.bf16.msra.mxu0 %v414_v7  ;;  %390 = vmatpush1.bf16.msra.mxu1 %v414_v7 }
  0x10   :  { %250 = vmatprep.subr.bf16.mxu0 %v415_v8  ;;  %375 = vmatprep.subr.bf16.mxu1 %v415_v8  ;;  %v55_v41 = vrot.slane %v50_v39, %v54_v38  ;;  %v59_v42 = vrot.slane %v50_v39, %v58_v40 }
  0x13   :  { %251 = vmatpush1.bf16.msra.mxu0 %v417_v9  ;;  %391 = vmatpush1.bf16.msra.mxu1 %v417_v9 }
  0x14   :  { %252 = vmatprep.subr.bf16.mxu0 %v418_v10  ;;  %376 = vmatprep.subr.bf16.mxu1 %v418_v10 }
  0x17   :  { %253 = vmatpush1.bf16.msra.mxu0 %v420_v11  ;;  %392 = vmatpush1.bf16.msra.mxu1 %v420_v11 }
  0x18   :  { %254 = vmatprep.subr.bf16.mxu0 %v421_v12  ;;  %377 = vmatprep.subr.bf16.mxu1 %v421_v12 }
  0x1b   :  { %255 = vmatpush1.bf16.msra.mxu0 %v423_v14  ;;  %393 = vmatpush1.bf16.msra.mxu1 %v423_v14 }
  0x1c   :  { %256 = vmatprep.subr.bf16.mxu0 %v424_v16  ;;  %378 = vmatprep.subr.bf16.mxu1 %v424_v16 }
  0x1f   :  { %257 = vmatpush1.bf16.msra.mxu0 %v426_v17  ;;  %394 = vmatpush1.bf16.msra.mxu1 %v426_v17 }
  0x20   :  { %258 = vmatprep.subr.bf16.mxu0 %v427_v18  ;;  %379 = vmatprep.subr.bf16.mxu1 %v427_v18 }
  0x23   :  { %259 = vmatpush1.bf16.msra.mxu0 %v429_v19  ;;  %395 = vmatpush1.bf16.msra.mxu1 %v429_v19 }
  0x24   :  { %260 = vmatprep.subr.bf16.mxu0 %v430_v20  ;;  %380 = vmatprep.subr.bf16.mxu1 %v430_v20 }
  0x27   :  { %261 = vmatpush1.bf16.msra.mxu0 %v432_v21  ;;  %396 = vmatpush1.bf16.msra.mxu1 %v432_v21 }
  0x28   :  { %262 = vmatprep.subr.bf16.mxu0 %v433_v22  ;;  %381 = vmatprep.subr.bf16.mxu1 %v433_v22 }
  0x2b   :  { %263 = vmatpush1.bf16.msra.mxu0 %v435_v23  ;;  %397 = vmatpush1.bf16.msra.mxu1 %v435_v23 }
  0x2c   :  { %264 = vmatprep.subr.bf16.mxu0 %v436_v24  ;;  %382 = vmatprep.subr.bf16.mxu1 %v436_v24 }
  0x2f   :  { %265 = vmatpush1.bf16.msra.mxu0 %v438_v25  ;;  %398 = vmatpush1.bf16.msra.mxu1 %v438_v25 }
  0x30   :  { %266 = vmatprep.subr.bf16.mxu0 %v439_v26  ;;  %383 = vmatprep.subr.bf16.mxu1 %v439_v26 }
  0x33   :  { %267 = vmatpush1.bf16.msra.mxu0 %v441_v27  ;;  %399 = vmatpush1.bf16.msra.mxu1 %v441_v27 }
  0x34   :  { %268 = vmatprep.subr.bf16.mxu0 %v442_v28  ;;  %384 = vmatprep.subr.bf16.mxu1 %v442_v28 }
  0x37   :  { %269 = vmatpush1.bf16.msra.mxu0 %v444_v29  ;;  %400 = vmatpush1.bf16.msra.mxu1 %v444_v29 }
  0x38   :  { %270 = vmatprep.subr.bf16.mxu0 %v445_v30  ;;  %385 = vmatprep.subr.bf16.mxu1 %v445_v30 }
  0x3b   :  { %271 = vmatpush1.bf16.msra.mxu0 %v447_v31  ;;  %401 = vmatpush1.bf16.msra.mxu1 %v447_v31 }
  0x3c   :  { %272 = vmatprep.subr.bf16.mxu0 %v448_v32  ;;  %386 = vmatprep.subr.bf16.mxu1 %v448_v32 }
  0x3f   :  { %273 = vmatpush1.bf16.msra.mxu0 %v450_v33  ;;  %402 = vmatpush1.bf16.msra.mxu1 %v450_v33 }
  0x42   :  { %275 = vmatmul.mubr.bf16.vlgmr.msra.gmra.mrb[0].mxu0 %v451_v34  ;;  %285 = vmatmul.mubr.bf16.vlgmr.msra.gmra.mrb[0].mxu1 %v454_v35 }
 0x115   :  { %v276_v43 = vpop.f32.mrb[0].mxu0  ;;  %v286_v44 = vpop.f32.mrb[0].mxu1 }
 0x116   :  { %v277_v45 = vadd.f32 %v276_v43, %v55_v41  ;;  %v287_v46 = vadd.f32 %v286_v44, %v55_v41  ;;  %v278_v47 = vpop.f32.mrb[1].mxu0  ;;  %v288_v48 = vpop.f32.mrb[1].mxu1 }
 0x117   :  { %v279_v49 = vadd.f32 %v278_v47, %v59_v42  ;;  %v289_v50 = vadd.f32 %v288_v48, %v59_v42  ;;  %v280_v51 = vpop.f32.mrb[2].mxu0  ;;  %v290_v52 = vpop.f32.mrb[2].mxu1 }
 0x118   :  { %v281_v53 = vadd.f32 %v280_v51, %v55_v41  ;;  %v291_v54 = vadd.f32 %v290_v52, %v55_v41  ;;  %v282_v55 = vpop.f32.mrb[3].mxu0  ;;  %v292_v56 = vpop.f32.mrb[3].mxu1 }
 0x119   :  { %v367_v57 = vpack.c.bf16 %v279_v49, %v277_v45  ;;  %v369_v58 = vpack.c.bf16 %v289_v50, %v287_v46  ;;  %v283_v59 = vadd.f32 %v282_v55, %v59_v42  ;;  %v293_v60 = vadd.f32 %v292_v56, %v59_v42 }
 0x11b   :  { %319 = vst [vmem:[%s603_s3] sm:$0xff] %v367_v57  ;;  %321 = vst [vmem:[%s603_s3 + $0x10] sm:$0xff] %v369_v58  ;;  %v368_v61 = vpack.c.bf16 %v283_v59, %v281_v53  ;;  %v370_v62 = vpack.c.bf16 %v293_v60, %v291_v54 }
 0x11d   :  { %320 = vst [vmem:[%s603_s3 + $0x8] sm:$0xff] %v368_v61  ;;  %322 = vst [vmem:[%s603_s3 + $0x18] sm:$0xff] %v370_v62 }

// kernel: encoder_cam_forward.19
= control target key start
LH: loop header
LB: loop body
LE: loop exit
PB: predicated region body
PF: predicated region fallthrough
CT: control target
= control target key end

     0   :  { %s414_s0 = inlined_call_operand.vmem [shape: bf16[16,1536], index: 0, kind: input, shape index: {}]   ;;  %s415_s1 = inlined_call_operand.vmem [shape: bf16[16,512], index: 1, kind: output, shape index: {}]  }
   0x1   :  { %v8_v0 = vld [vmem:[%s414_s0] sm:$0xff]  ;;  %v9_v2 = vld [vmem:[%s414_s0 + $0x8] sm:$0xff]  ;;  %v14_v6 = vld [vmem:[%s414_s0 + $0x30] sm:$0xff] }
   0x2   :  { %v12_v1 = vld [vmem:[%s414_s0 + $0x20] sm:$0xff]  ;;  %v20_v3 = vunpack.c.l.bf16 %v8_v0  ;;  %v22_v5 = vunpack.c.l.bf16 %v9_v2  ;;  %v18_v7 = vld [vmem:[%s414_s0 + $0x50] sm:$0xff]  ;;  %v15_v8 = vld [vmem:[%s414_s0 + $0x38] sm:$0xff]  ;;  %v21_v9 = vunpack.c.l.bf16 %v14_v6  ;;  %v131_v20 = vrot.slane %v14_v6, 4 }
   0x3   :  { %v28_v4 = vunpack.c.l.bf16 %v12_v1  ;;  %v29_v10 = vunpack.c.l.bf16 %v18_v7  ;;  %v23_v11 = vunpack.c.l.bf16 %v15_v8  ;;  %v17_v12 = vld [vmem:[%s414_s0 + $0x48] sm:$0xff]  ;;  %v11_v13 = vld [vmem:[%s414_s0 + $0x18] sm:$0xff]  ;;  %v130_v21 = vrot.slane %v8_v0, 4 }
   0x4   :  { %v32_v15 = vmul.f32 %v22_v5, %v20_v3  ;;  %v27_v18 = vunpack.c.l.bf16 %v17_v12  ;;  %v26_v19 = vunpack.c.l.bf16 %v11_v13  ;;  %v139_v24 = vrot.slane %v15_v8, 4 }
   0x5   :  { %v40_v14 = vmul.f32 %v28_v4, %v20_v3  ;;  %v41_v16 = vmul.f32 %v29_v10, %v21_v9  ;;  %v33_v17 = vmul.f32 %v23_v11, %v21_v9  ;;  %v138_v25 = vrot.slane %v9_v2, 4 }
   0x6   :  { %34 = vadd.xlane.f32.xlu0 %v32_v15  ;;  %v49_v22 = vmul.f32 %v27_v18, %v23_v11  ;;  %v48_v23 = vmul.f32 %v26_v19, %v22_v5  ;;  %v57_v26 = vmul.f32 %v29_v10, %v27_v18  ;;  %v56_v27 = vmul.f32 %v28_v4, %v26_v19 }
   0x7   :  { %42 = vadd.xlane.f32.xlu1 %v40_v14  ;;  %v135_v28 = vunpack.c.l.bf16 %v131_v20  ;;  %v134_v29 = vunpack.c.l.bf16 %v130_v21  ;;  %v143_v30 = vunpack.c.l.bf16 %v139_v24  ;;  %v142_v31 = vunpack.c.l.bf16 %v138_v25  ;;  %v369_v24 = vld [vmem:[%s414_s0 + $0x10] sm:$0xff] }
   0x8   :  { %v163_v32 = vrot.slane %v18_v7, 4  ;;  %v162_v33 = vrot.slane %v12_v1, 4  ;;  %v155_v34 = vrot.slane %v17_v12, 4  ;;  %v154_v35 = vrot.slane %v11_v13, 4 }
   0x9   :  { %v177_v36 = vmul.f32 %v143_v30, %v135_v28  ;;  %v176_v37 = vmul.f32 %v142_v31, %v134_v29 }
   0xa   :  { %36 = vadd.xlane.f32.xlu0 %v33_v17  ;;  %v167_v38 = vunpack.c.l.bf16 %v163_v32  ;;  %v166_v39 = vunpack.c.l.bf16 %v162_v33  ;;  %v159_v42 = vunpack.c.l.bf16 %v155_v34  ;;  %v158_v43 = vunpack.c.l.bf16 %v154_v35 }
   0xb   :  { %44 = vadd.xlane.f32.xlu1 %v41_v16 }
   0xc   :  { %v185_v40 = vmul.f32 %v167_v38, %v135_v28  ;;  %v184_v41 = vmul.f32 %v166_v39, %v134_v29  ;;  %v193_v44 = vmul.f32 %v159_v42, %v143_v30  ;;  %v192_v45 = vmul.f32 %v158_v43, %v142_v31  ;;  %v16_v29 = vld [vmem:[%s414_s0 + $0x40] sm:$0xff]  ;;  %v383_v30 = vld [vmem:[%s414_s0 + $0x58] sm:$0xff] }
   0xd   :  { %v201_v46 = vmul.f32 %v167_v38, %v159_v42  ;;  %v200_v47 = vmul.f32 %v166_v39, %v158_v43  ;;  %v24_v28 = vunpack.c.l.bf16 %v369_v24 }
   0xe   :  { %50 = vadd.xlane.f32.xlu0 %v48_v23 }
   0xf   :  { %52 = vadd.xlane.f32.xlu1 %v49_v22 }
  0x12   :  { %58 = vadd.xlane.f32.xlu0 %v56_v27  ;;  %v374_v27 = vld [vmem:[%s414_s0 + $0x28] sm:$0xff] }
  0x13   :  { %60 = vadd.xlane.f32.xlu1 %v57_v26  ;;  %v30_v35 = vunpack.c.l.bf16 %v374_v27 }
  0x16   :  { %178 = vadd.xlane.f32.xlu0 %v176_v37 }
  0x17   :  { %180 = vadd.xlane.f32.xlu1 %v177_v36 }
  0x1a   :  { %186 = vadd.xlane.f32.xlu0 %v184_v41 }
  0x1b   :  { %188 = vadd.xlane.f32.xlu1 %v185_v40 }
  0x1e   :  { %194 = vadd.xlane.f32.xlu0 %v192_v45  ;;  %v25_v45 = vunpack.c.l.bf16 %v16_v29 }
  0x1f   :  { %196 = vadd.xlane.f32.xlu1 %v193_v44 }
  0x22   :  { %202 = vadd.xlane.f32.xlu0 %v200_v47 }
  0x23   :  { %204 = vadd.xlane.f32.xlu1 %v201_v46  ;;  %v31_v46 = vunpack.c.l.bf16 %v383_v30 }
  0x93   :  { %v35_v49 = vpop.xlane.xlu0 %34 }
  0x94   :  { %v43_v48 = vpop.xlane.xlu1 %42  ;;  %v38_v51 = vmul.f32 0.088388346, %v35_v49 }
  0x95   :  { %v46_v50 = vmul.f32 0.088388346, %v43_v48 }
  0x97   :  { %v64_v52 = vsub.f32 %v38_v51, %v46_v50  ;;  %v37_v54 = vpop.xlane.xlu0 %36 }
  0x98   :  { %v45_v53 = vpop.xlane.xlu1 %44  ;;  %v39_v57 = vmul.f32 0.088388346, %v37_v54 }
  0x99   :  { %v276_v55 = vmul.f32 -1.442695, %v64_v52  ;;  %v47_v56 = vmul.f32 0.088388346, %v45_v53 }
  0x9b   :  { %300 = vpow2.f32 %v276_v55  ;;  %v65_v58 = vsub.f32 %v39_v57, %v47_v56  ;;  %v51_v60 = vpop.xlane.xlu0 %50 }
  0x9c   :  { %v53_v59 = vpop.xlane.xlu1 %52  ;;  %v54_v1 = vmul.f32 0.088388346, %v51_v60 }
  0x9d   :  { %v277_v61 = vmul.f32 -1.442695, %v65_v58  ;;  %v55_v62 = vmul.f32 0.088388346, %v53_v59 }
  0x9f   :  { %302 = vpow2.f32 %v277_v61  ;;  %v59_v0 = vpop.xlane.xlu0 %58 }
  0xa0   :  { %v61_v63 = vpop.xlane.xlu1 %60  ;;  %v62_v3 = vmul.f32 0.088388346, %v59_v0 }
  0xa1   :  { %v63_v2 = vmul.f32 0.088388346, %v61_v63 }
  0xa2   :  { %v78_v5 = vsub.f32 %v54_v1, %v62_v3  ;;  %v147_v3 = vrot.slane %v16_v29, 4 }
  0xa3   :  { %v79_v4 = vsub.f32 %v55_v62, %v63_v2  ;;  %v179_v7 = vpop.xlane.xlu0 %178 }
  0xa4   :  { %v181_v6 = vpop.xlane.xlu1 %180  ;;  %v278_v10 = vmul.f32 -1.442695, %v78_v5  ;;  %v182_v16 = vmul.f32 0.088388346, %v179_v7 }
  0xa5   :  { %v301_v8 = vpop.eup %300  ;;  %v279_v9 = vmul.f32 -1.442695, %v79_v4  ;;  %v183_v12 = vmul.f32 0.088388346, %v181_v6 }
  0xa6   :  { %v72_v11 = vadd.f32 1.0, %v301_v8  ;;  %v171_v8 = vrot.slane %v383_v30, 4 }
  0xa7   :  { %304 = vpow2.f32 %v279_v9  ;;  %v187_v14 = vpop.xlane.xlu0 %186 }
  0xa8   :  { %306 = vrcp.f32 %v72_v11  ;;  %v189_v13 = vpop.xlane.xlu1 %188  ;;  %v190_v18 = vmul.f32 0.088388346, %v187_v14  ;;  %v170_v11 = vrot.slane %v374_v27, 4 }
  0xa9   :  { %v303_v15 = vpop.eup %302  ;;  %308 = vpow2.f32 %v278_v10  ;;  %v191_v17 = vmul.f32 0.088388346, %v189_v13  ;;  %v146_v10 = vrot.slane %v369_v24, 4 }
  0xaa   :  { %v73_v19 = vadd.f32 1.0, %v303_v15  ;;  %v208_v21 = vsub.f32 %v182_v16, %v190_v18 }
  0xab   :  { %v209_v20 = vsub.f32 %v183_v12, %v191_v17  ;;  %v195_v23 = vpop.xlane.xlu0 %194  ;;  %v151_v17 = vunpack.c.l.bf16 %v147_v3 }
  0xac   :  { %310 = vrcp.f32 %v73_v19  ;;  %v197_v22 = vpop.xlane.xlu1 %196  ;;  %v284_v26 = vmul.f32 -1.442695, %v208_v21  ;;  %v198_v36 = vmul.f32 0.088388346, %v195_v23  ;;  %v174_v23 = vunpack.c.l.bf16 %v170_v11 }
  0xad   :  { %v285_v25 = vmul.f32 -1.442695, %v209_v20  ;;  %v199_v31 = vmul.f32 0.088388346, %v197_v22  ;;  %v175_v20 = vunpack.c.l.bf16 %v171_v8  ;;  %v150_v22 = vunpack.c.l.bf16 %v146_v10 }
  0xaf   :  { %312 = vpow2.f32 %v285_v25  ;;  %v203_v33 = vpop.xlane.xlu0 %202 }
  0xb0   :  { %314 = vpow2.f32 %v284_v26  ;;  %v205_v32 = vpop.xlane.xlu1 %204  ;;  %v206_v38 = vmul.f32 0.088388346, %v203_v33 }
  0xb1   :  { %v305_v34 = vpop.eup %304  ;;  %v207_v37 = vmul.f32 0.088388346, %v205_v32 }
  0xb2   :  { %v307_v39 = vpop.eup %306  ;;  %v87_v40 = vadd.f32 1.0, %v305_v34  ;;  %v222_v44 = vsub.f32 %v198_v36, %v206_v38 }
  0xb3   :  { %v309_v41 = vpop.eup %308  ;;  %v94_v42 = vsub.f32 1.0, %v307_v39  ;;  %v223_v43 = vsub.f32 %v199_v31, %v207_v37  ;;  %v92_v48 = vmul.f32 %v307_v39, %v24_v28 }
  0xb4   :  { %316 = vrcp.f32 %v87_v40  ;;  %v86_v47 = vadd.f32 1.0, %v309_v41  ;;  %v286_v51 = vmul.f32 -1.442695, %v222_v44 }
  0xb5   :  { %v96_v49 = vmul.f32 %v94_v42, %v30_v35  ;;  %v287_v50 = vmul.f32 -1.442695, %v223_v43 }
  0xb6   :  { %v311_v52 = vpop.eup %310  ;;  %318 = vrcp.f32 %v86_v47 }
  0xb7   :  { %v98_v53 = vadd.f32 %v96_v49, %v92_v48  ;;  %v95_v54 = vsub.f32 1.0, %v311_v52  ;;  %320 = vpow2.f32 %v287_v50  ;;  %v93_v57 = vmul.f32 %v311_v52, %v25_v45 }
  0xb8   :  { %322 = vpow2.f32 %v286_v51 }
  0xb9   :  { %v313_v55 = vpop.eup %312  ;;  %v292_v56 = vpack.c.bf16 %v98_v53, %v98_v53  ;;  %v97_v58 = vmul.f32 %v95_v54, %v31_v46 }
  0xba   :  { %v315_v59 = vpop.eup %314  ;;  %v217_v60 = vadd.f32 1.0, %v313_v55 }
  0xbb   :  { %116 = vst [vmem:[%s415_s1] sm:$0xf] %v292_v56  ;;  %v99_v61 = vadd.f32 %v97_v58, %v93_v57  ;;  %v216_v62 = vadd.f32 1.0, %v315_v59 }
  0xbc   :  { %324 = vrcp.f32 %v217_v60 }
  0xbd   :  { %v293_v63 = vpack.c.bf16 %v99_v61, %v99_v61  ;;  %326 = vrcp.f32 %v216_v62 }
  0xbe   :  { %v317_v0 = vpop.eup %316 }
  0xbf   :  { %117 = vst [vmem:[%s415_s1 + $0x10] sm:$0xf] %v293_v63  ;;  %v103_v1 = vsub.f32 1.0, %v317_v0  ;;  %v101_v5 = vmul.f32 %v317_v0, %v25_v45 }
  0xc0   :  { %v319_v2 = vpop.eup %318 }
  0xc1   :  { %v321_v4 = vpop.eup %320  ;;  %v105_v6 = vmul.f32 %v103_v1, %v31_v46  ;;  %v102_v7 = vsub.f32 1.0, %v319_v2  ;;  %v100_v14 = vmul.f32 %v319_v2, %v24_v28 }
  0xc2   :  { %v323_v9 = vpop.eup %322  ;;  %v231_v12 = vadd.f32 1.0, %v321_v4 }
  0xc3   :  { %v107_v13 = vadd.f32 %v105_v6, %v101_v5  ;;  %v104_v15 = vmul.f32 %v102_v7, %v30_v35  ;;  %v230_v16 = vadd.f32 1.0, %v323_v9 }
  0xc4   :  { %328 = vrcp.f32 %v231_v12 }
  0xc5   :  { %v295_v18 = vpack.c.bf16 %v107_v13, %v107_v13  ;;  %v106_v19 = vadd.f32 %v104_v15, %v100_v14  ;;  %330 = vrcp.f32 %v230_v16 }
  0xc6   :  { %v325_v21 = vpop.eup %324 }
  0xc7   :  { %v327_v25 = vpop.eup %326  ;;  %127 = vst [vmem:[%s415_s1 + $0x18] sm:$0xf] %v295_v18  ;;  %v294_v24 = vpack.c.bf16 %v106_v19, %v106_v19  ;;  %v239_v26 = vsub.f32 1.0, %v325_v21  ;;  %v237_v28 = vmul.f32 %v325_v21, %v151_v17 }
  0xc8   :  { %v238_v27 = vsub.f32 1.0, %v327_v25  ;;  %v236_v30 = vmul.f32 %v327_v25, %v150_v22 }
  0xc9   :  { %126 = vst [vmem:[%s415_s1 + $0x8] sm:$0xf] %v294_v24  ;;  %v241_v29 = vmul.f32 %v239_v26, %v175_v20 }
  0xca   :  { %v240_v31 = vmul.f32 %v238_v27, %v174_v23 }
  0xcb   :  { %v243_v32 = vadd.f32 %v241_v29, %v237_v28 }
  0xcc   :  { %v242_v33 = vadd.f32 %v240_v31, %v236_v30 }
  0xcd   :  { %v297_v34 = vpack.c.bf16 %v243_v32, %v243_v32 }
  0xce   :  { %v329_v35 = vpop.eup %328  ;;  %v296_v36 = vpack.c.bf16 %v242_v33, %v242_v33 }
  0xcf   :  { %v331_v37 = vpop.eup %330  ;;  %261 = vst [vmem:[%s415_s1 + $0x14] sm:$0xf] %v297_v34  ;;  %v247_v38 = vsub.f32 1.0, %v329_v35  ;;  %v245_v40 = vmul.f32 %v329_v35, %v151_v17 }
  0xd0   :  { %260 = vst [vmem:[%s415_s1 + $0x4] sm:$0xf] %v296_v36  ;;  %v246_v39 = vsub.f32 1.0, %v331_v37  ;;  %v244_v42 = vmul.f32 %v331_v37, %v150_v22 }
  0xd1   :  { %v249_v41 = vmul.f32 %v247_v38, %v175_v20 }
  0xd2   :  { %v248_v43 = vmul.f32 %v246_v39, %v174_v23 }
  0xd3   :  { %v251_v44 = vadd.f32 %v249_v41, %v245_v40 }
  0xd4   :  { %v250_v45 = vadd.f32 %v248_v43, %v244_v42 }
  0xd5   :  { %v299_v46 = vpack.c.bf16 %v251_v44, %v251_v44 }
  0xd6   :  { %v298_v47 = vpack.c.bf16 %v250_v45, %v250_v45 }
  0xd7   :  { %271 = vst [vmem:[%s415_s1 + $0x1c] sm:$0xf] %v299_v46 }
  0xd8   :  { %270 = vst [vmem:[%s415_s1 + $0xc] sm:$0xf] %v298_v47 }

// kernel: encoder_cam_forward.24
= control target key start
LH: loop header
LB: loop body
LE: loop exit
PB: predicated region body
PF: predicated region fallthrough
CT: control target
= control target key end

     0   :  { %v53_v39 = vlaneseq  ;;  %s637_s1 = inlined_call_operand.vmem [shape: bf16[256,256], index: 1, kind: input, shape index: {}]   ;;  %s638_s0 = inlined_call_operand.vmem [shape: bf16[40,256], index: 0, kind: input, shape index: {}]   ;;  %s639_s2 = inlined_call_operand.vmem [shape: f32[1,256], index: 2, kind: input, shape index: {}]   ;;  %s640_s3 = inlined_call_operand.vmem [shape: bf16[40,256], index: 3, kind: output, shape index: {}]  }
   0x1   :  { %v432_v0 = vld [vmem:[%s637_s1 + $0x4] ss:$8 sps:$4 sm:$0xff]   ;;  %v434_v1 = vld [vmem:[%s637_s1] ss:$8 sps:$4 sm:$0xff]   ;;  %v435_v2 = vld [vmem:[%s637_s1 + $0x14] ss:$8 sps:$4 sm:$0xff]  }
   0x2   :  { %400 = vmatprep.subr.bf16.mxu1 %v432_v0  ;;  %250 = vmatprep.subr.bf16.mxu0 %v432_v0  ;;  %v437_v3 = vld [vmem:[%s637_s1 + $0x10] ss:$8 sps:$4 sm:$0xff]   ;;  %v438_v4 = vld [vmem:[%s637_s1 + $0x24] ss:$8 sps:$4 sm:$0xff]   ;;  %v440_v5 = vld [vmem:[%s637_s1 + $0x20] ss:$8 sps:$4 sm:$0xff]  }
   0x3   :  { %416 = vmatpush1.bf16.msra.mxu1 %v434_v1  ;;  %251 = vmatpush1.bf16.msra.mxu0 %v434_v1  ;;  %v441_v6 = vld [vmem:[%s637_s1 + $0x34] ss:$8 sps:$4 sm:$0xff]   ;;  %v443_v7 = vld [vmem:[%s637_s1 + $0x30] ss:$8 sps:$4 sm:$0xff]   ;;  %v444_v8 = vld [vmem:[%s637_s1 + $0x44] ss:$8 sps:$4 sm:$0xff]  }
   0x4   :  { %401 = vmatprep.subr.bf16.mxu1 %v435_v2  ;;  %252 = vmatprep.subr.bf16.mxu0 %v435_v2  ;;  %v446_v9 = vld [vmem:[%s637_s1 + $0x40] ss:$8 sps:$4 sm:$0xff]   ;;  %v447_v10 = vld [vmem:[%s637_s1 + $0x54] ss:$8 sps:$4 sm:$0xff]   ;;  %v449_v11 = vld [vmem:[%s637_s1 + $0x50] ss:$8 sps:$4 sm:$0xff]  }
   0x5   :  { %v450_v12 = vld [vmem:[%s637_s1 + $0x64] ss:$8 sps:$4 sm:$0xff]   ;;  %v482_v13 = vld [vmem:[%s638_s0 + $0x14] ss:$8 sps:$4 sm:$0xff]   ;;  %v452_v14 = vld [vmem:[%s637_s1 + $0x60] ss:$8 sps:$4 sm:$0xff]  }
   0x6   :  { %v485_v15 = vld [vmem:[%s638_s0 + $0x4] ss:$8 sps:$4 sm:$0xff]   ;;  %v453_v16 = vld [vmem:[%s637_s1 + $0x74] ss:$8 sps:$4 sm:$0xff]   ;;  %292 = vmatprep.mubr.bf16.mxu1 %v482_v13  ;;  %v455_v17 = vld [vmem:[%s637_s1 + $0x70] ss:$8 sps:$4 sm:$0xff]  }
   0x7   :  { %417 = vmatpush1.bf16.msra.mxu1 %v437_v3  ;;  %253 = vmatpush1.bf16.msra.mxu0 %v437_v3  ;;  %v456_v18 = vld [vmem:[%s637_s1 + $0x84] ss:$8 sps:$4 sm:$0xff]   ;;  %v458_v19 = vld [vmem:[%s637_s1 + $0x80] ss:$8 sps:$4 sm:$0xff]   ;;  %v459_v20 = vld [vmem:[%s637_s1 + $0x94] ss:$8 sps:$4 sm:$0xff]  }
   0x8   :  { %402 = vmatprep.subr.bf16.mxu1 %v438_v4  ;;  %254 = vmatprep.subr.bf16.mxu0 %v438_v4  ;;  %v461_v21 = vld [vmem:[%s637_s1 + $0x90] ss:$8 sps:$4 sm:$0xff]   ;;  %v462_v22 = vld [vmem:[%s637_s1 + $0xa4] ss:$8 sps:$4 sm:$0xff]   ;;  %v464_v23 = vld [vmem:[%s637_s1 + $0xa0] ss:$8 sps:$4 sm:$0xff]  }
   0x9   :  { %282 = vmatprep.mubr.bf16.mxu0 %v485_v15  ;;  %v465_v24 = vld [vmem:[%s637_s1 + $0xb4] ss:$8 sps:$4 sm:$0xff]   ;;  %v467_v25 = vld [vmem:[%s637_s1 + $0xb0] ss:$8 sps:$4 sm:$0xff]   ;;  %v468_v26 = vld [vmem:[%s637_s1 + $0xc4] ss:$8 sps:$4 sm:$0xff]  }
   0xa   :  { %v470_v27 = vld [vmem:[%s637_s1 + $0xc0] ss:$8 sps:$4 sm:$0xff]   ;;  %v471_v28 = vld [vmem:[%s637_s1 + $0xd4] ss:$8 sps:$4 sm:$0xff]   ;;  %v473_v29 = vld [vmem:[%s637_s1 + $0xd0] ss:$8 sps:$4 sm:$0xff]  }
   0xb   :  { %418 = vmatpush1.bf16.msra.mxu1 %v440_v5  ;;  %255 = vmatpush1.bf16.msra.mxu0 %v440_v5  ;;  %v474_v30 = vld [vmem:[%s637_s1 + $0xe4] ss:$8 sps:$4 sm:$0xff]   ;;  %v476_v31 = vld [vmem:[%s637_s1 + $0xe0] ss:$8 sps:$4 sm:$0xff]   ;;  %v477_v32 = vld [vmem:[%s637_s1 + $0xf4] ss:$8 sps:$4 sm:$0xff]  }
   0xc   :  { %403 = vmatprep.subr.bf16.mxu1 %v441_v6  ;;  %256 = vmatprep.subr.bf16.mxu0 %v441_v6  ;;  %v479_v33 = vld [vmem:[%s637_s1 + $0xf0] ss:$8 sps:$4 sm:$0xff]   ;;  %v18_v34 = vld [vmem:[%s638_s0 + $0x20] sm:$0xff]  ;;  %v54_v40 = vshrl.u32 %v53_v39, 7 }
   0xd   :  { %v480_v35 = vld [vmem:[%s638_s0 + $0x10] ss:$8 sps:$4 sm:$0xff]   ;;  %v483_v36 = vld [vmem:[%s638_s0] ss:$8 sps:$4 sm:$0xff]   ;;  %v357_v37 = vcombine.high %v18_v34, %v18_v34  ;;  %v356_v38 = vcombine.low %v18_v34, %v18_v34 }
   0xe   :  { %v55_v41 = vsub.s32 0, %v54_v40  ;;  %v51_v42 = vld [vmem:[%s639_s2] sm:$0x3]  ;;  %v59_v43 = vsub.s32 1, %v54_v40 }
   0xf   :  { %419 = vmatpush1.bf16.msra.mxu1 %v443_v7  ;;  %257 = vmatpush1.bf16.msra.mxu0 %v443_v7 }
  0x10   :  { %404 = vmatprep.subr.bf16.mxu1 %v444_v8  ;;  %258 = vmatprep.subr.bf16.mxu0 %v444_v8  ;;  %v56_v44 = vrot.slane %v51_v42, %v55_v41  ;;  %v60_v45 = vrot.slane %v51_v42, %v59_v43 }
  0x13   :  { %420 = vmatpush1.bf16.msra.mxu1 %v446_v9  ;;  %259 = vmatpush1.bf16.msra.mxu0 %v446_v9 }
  0x14   :  { %405 = vmatprep.subr.bf16.mxu1 %v447_v10  ;;  %260 = vmatprep.subr.bf16.mxu0 %v447_v10 }
  0x17   :  { %421 = vmatpush1.bf16.msra.mxu1 %v449_v11  ;;  %261 = vmatpush1.bf16.msra.mxu0 %v449_v11 }
  0x18   :  { %406 = vmatprep.subr.bf16.mxu1 %v450_v12  ;;  %262 = vmatprep.subr.bf16.mxu0 %v450_v12 }
  0x1b   :  { %422 = vmatpush1.bf16.msra.mxu1 %v452_v14  ;;  %263 = vmatpush1.bf16.msra.mxu0 %v452_v14 }
  0x1c   :  { %407 = vmatprep.subr.bf16.mxu1 %v453_v16  ;;  %264 = vmatprep.subr.bf16.mxu0 %v453_v16 }
  0x1f   :  { %423 = vmatpush1.bf16.msra.mxu1 %v455_v17  ;;  %265 = vmatpush1.bf16.msra.mxu0 %v455_v17 }
  0x20   :  { %408 = vmatprep.subr.bf16.mxu1 %v456_v18  ;;  %266 = vmatprep.subr.bf16.mxu0 %v456_v18 }
  0x23   :  { %424 = vmatpush1.bf16.msra.mxu1 %v458_v19  ;;  %267 = vmatpush1.bf16.msra.mxu0 %v458_v19 }
  0x24   :  { %409 = vmatprep.subr.bf16.mxu1 %v459_v20  ;;  %268 = vmatprep.subr.bf16.mxu0 %v459_v20 }
  0x27   :  { %425 = vmatpush1.bf16.msra.mxu1 %v461_v21  ;;  %269 = vmatpush1.bf16.msra.mxu0 %v461_v21 }
  0x28   :  { %410 = vmatprep.subr.bf16.mxu1 %v462_v22  ;;  %270 = vmatprep.subr.bf16.mxu0 %v462_v22 }
  0x2b   :  { %426 = vmatpush1.bf16.msra.mxu1 %v464_v23  ;;  %271 = vmatpush1.bf16.msra.mxu0 %v464_v23 }
  0x2c   :  { %411 = vmatprep.subr.bf16.mxu1 %v465_v24  ;;  %272 = vmatprep.subr.bf16.mxu0 %v465_v24 }
  0x2f   :  { %427 = vmatpush1.bf16.msra.mxu1 %v467_v25  ;;  %273 = vmatpush1.bf16.msra.mxu0 %v467_v25 }
  0x30   :  { %412 = vmatprep.subr.bf16.mxu1 %v468_v26  ;;  %274 = vmatprep.subr.bf16.mxu0 %v468_v26 }
  0x33   :  { %428 = vmatpush1.bf16.msra.mxu1 %v470_v27  ;;  %275 = vmatpush1.bf16.msra.mxu0 %v470_v27 }
  0x34   :  { %413 = vmatprep.subr.bf16.mxu1 %v471_v28  ;;  %276 = vmatprep.subr.bf16.mxu0 %v471_v28 }
  0x37   :  { %429 = vmatpush1.bf16.msra.mxu1 %v473_v29  ;;  %277 = vmatpush1.bf16.msra.mxu0 %v473_v29 }
  0x38   :  { %414 = vmatprep.subr.bf16.mxu1 %v474_v30  ;;  %278 = vmatprep.subr.bf16.mxu0 %v474_v30 }
  0x3b   :  { %430 = vmatpush1.bf16.msra.mxu1 %v476_v31  ;;  %279 = vmatpush1.bf16.msra.mxu0 %v476_v31 }
  0x3c   :  { %415 = vmatprep.subr.bf16.mxu1 %v477_v32  ;;  %280 = vmatprep.subr.bf16.mxu0 %v477_v32 }
  0x3f   :  { %431 = vmatpush1.bf16.msra.mxu1 %v479_v33  ;;  %281 = vmatpush1.bf16.msra.mxu0 %v479_v33 }
  0x42   :  { %293 = vmatmul.mubr.bf16.vlgmr.msra.gmra.mrb[0].mxu1 %v480_v35  ;;  %283 = vmatmul.mubr.bf16.vlgmr.msra.gmra.mrb[0].mxu0 %v483_v36 }
  0x43   :  { %302 = vmatprep.mubr.bf16.mxu1 %v357_v37 }
  0x4a   :  { %303 = vmatmul.mubr.bf16.gmra.mrb[4].mxu1 %v356_v38 }
 0x115   :  { %v294_v46 = vpop.f32.mrb[0].mxu1  ;;  %v284_v47 = vpop.f32.mrb[0].mxu0 }
 0x116   :  { %v295_v48 = vadd.f32 %v294_v46, %v56_v44  ;;  %v296_v49 = vpop.f32.mrb[1].mxu1  ;;  %v285_v50 = vadd.f32 %v284_v47, %v56_v44  ;;  %v286_v51 = vpop.f32.mrb[1].mxu0 }
 0x117   :  { %v297_v52 = vadd.f32 %v296_v49, %v60_v45  ;;  %v298_v53 = vpop.f32.mrb[2].mxu1  ;;  %v287_v54 = vadd.f32 %v286_v51, %v60_v45  ;;  %v288_v55 = vpop.f32.mrb[2].mxu0 }
 0x118   :  { %v299_v56 = vadd.f32 %v298_v53, %v56_v44  ;;  %v300_v57 = vpop.f32.mrb[3].mxu1  ;;  %v289_v58 = vadd.f32 %v288_v55, %v56_v44  ;;  %v290_v59 = vpop.f32.mrb[3].mxu0 }
 0x119   :  { %v397_v60 = vpack.c.bf16 %v297_v52, %v295_v48  ;;  %v301_v61 = vadd.f32 %v300_v57, %v60_v45  ;;  %v395_v62 = vpack.c.bf16 %v287_v54, %v285_v50  ;;  %v291_v63 = vadd.f32 %v290_v59, %v60_v45 }
 0x11b   :  { %345 = vst [vmem:[%s640_s3 + $0x10] sm:$0xff] %v397_v60  ;;  %v398_v0 = vpack.c.bf16 %v301_v61, %v299_v56  ;;  %343 = vst [vmem:[%s640_s3] sm:$0xff] %v395_v62  ;;  %v396_v1 = vpack.c.bf16 %v291_v63, %v289_v58 }
 0x11d   :  { %346 = vst [vmem:[%s640_s3 + $0x18] sm:$0xff] %v398_v0  ;;  %344 = vst [vmem:[%s640_s3 + $0x8] sm:$0xff] %v396_v1  ;;  %v304_v2 = vpop.f32.mrb[4].mxu1 }
 0x11e   :  { %v305_v3 = vadd.f32 %v304_v2, %v56_v44  ;;  %v306_v4 = vpop.f32.mrb[5].mxu1 }
 0x11f   :  { %v307_v5 = vadd.f32 %v306_v4, %v60_v45  ;;  %v308_v6 = vpop.f32.mrb[6].mxu1 }
 0x120   :  { %v309_v7 = vpop.f32.mrb[7].mxu1 }
 0x121   :  { %v399_v8 = vpack.c.bf16 %v307_v5, %v305_v3 }
 0x123   :  { %347 = vst [vmem:[%s640_s3 + $0x20] sm:$0xff] %v399_v8 }

// kernel: encoder_cam_forward.21
= control target key start
LH: loop header
LB: loop body
LE: loop exit
PB: predicated region body
PF: predicated region fallthrough
CT: control target
= control target key end

     0   :  { %v55_v36 = vlaneseq  ;;  %s640_s1 = inlined_call_operand.vmem [shape: bf16[256,256], index: 1, kind: input, shape index: {}]   ;;  %s641_s0 = inlined_call_operand.vmem [shape: bf16[32,256], index: 0, kind: input, shape index: {}]   ;;  %s642_s2 = inlined_call_operand.vmem [shape: f32[1,256], index: 2, kind: input, shape index: {}]   ;;  %s643_s3 = inlined_call_operand.vmem [shape: bf16[32,256], index: 3, kind: input, shape index: {}]   ;;  %s644_s4 = inlined_call_operand.vmem [shape: bf16[32,256], index: 4, kind: output, shape index: {}]  }
   0x1   :  { %v426_v0 = vld [vmem:[%s640_s1 + $0x4] ss:$8 sps:$4 sm:$0xff]   ;;  %v428_v1 = vld [vmem:[%s640_s1] ss:$8 sps:$4 sm:$0xff]   ;;  %v429_v2 = vld [vmem:[%s640_s1 + $0x14] ss:$8 sps:$4 sm:$0xff]  }
   0x2   :  { %245 = vmatprep.subr.bf16.mxu0 %v426_v0  ;;  %394 = vmatprep.subr.bf16.mxu1 %v426_v0  ;;  %v431_v3 = vld [vmem:[%s640_s1 + $0x10] ss:$8 sps:$4 sm:$0xff]   ;;  %v432_v4 = vld [vmem:[%s640_s1 + $0x24] ss:$8 sps:$4 sm:$0xff]   ;;  %v434_v5 = vld [vmem:[%s640_s1 + $0x20] ss:$8 sps:$4 sm:$0xff]  }
   0x3   :  { %246 = vmatpush1.bf16.msra.mxu0 %v428_v1  ;;  %410 = vmatpush1.bf16.msra.mxu1 %v428_v1  ;;  %v435_v6 = vld [vmem:[%s640_s1 + $0x34] ss:$8 sps:$4 sm:$0xff]   ;;  %v437_v7 = vld [vmem:[%s640_s1 + $0x30] ss:$8 sps:$4 sm:$0xff]   ;;  %v438_v8 = vld [vmem:[%s640_s1 + $0x44] ss:$8 sps:$4 sm:$0xff]  }
   0x4   :  { %247 = vmatprep.subr.bf16.mxu0 %v429_v2  ;;  %395 = vmatprep.subr.bf16.mxu1 %v429_v2  ;;  %v440_v9 = vld [vmem:[%s640_s1 + $0x40] ss:$8 sps:$4 sm:$0xff]   ;;  %v441_v10 = vld [vmem:[%s640_s1 + $0x54] ss:$8 sps:$4 sm:$0xff]   ;;  %v443_v11 = vld [vmem:[%s640_s1 + $0x50] ss:$8 sps:$4 sm:$0xff]  }
   0x5   :  { %v444_v12 = vld [vmem:[%s640_s1 + $0x64] ss:$8 sps:$4 sm:$0xff]   ;;  %v446_v14 = vld [vmem:[%s640_s1 + $0x60] ss:$8 sps:$4 sm:$0xff]   ;;  %v479_v15 = vld [vmem:[%s641_s0 + $0x14] ss:$8 sps:$4 sm:$0xff]  }
   0x6   :  { %v476_v13 = vld [vmem:[%s641_s0 + $0x4] ss:$8 sps:$4 sm:$0xff]   ;;  %v447_v16 = vld [vmem:[%s640_s1 + $0x74] ss:$8 sps:$4 sm:$0xff]   ;;  %287 = vmatprep.mubr.bf16.mxu1 %v479_v15  ;;  %v449_v17 = vld [vmem:[%s640_s1 + $0x70] ss:$8 sps:$4 sm:$0xff]  }
   0x7   :  { %248 = vmatpush1.bf16.msra.mxu0 %v431_v3  ;;  %411 = vmatpush1.bf16.msra.mxu1 %v431_v3  ;;  %v450_v18 = vld [vmem:[%s640_s1 + $0x84] ss:$8 sps:$4 sm:$0xff]   ;;  %v452_v19 = vld [vmem:[%s640_s1 + $0x80] ss:$8 sps:$4 sm:$0xff]   ;;  %v453_v20 = vld [vmem:[%s640_s1 + $0x94] ss:$8 sps:$4 sm:$0xff]  }
   0x8   :  { %249 = vmatprep.subr.bf16.mxu0 %v432_v4  ;;  %396 = vmatprep.subr.bf16.mxu1 %v432_v4  ;;  %v455_v21 = vld [vmem:[%s640_s1 + $0x90] ss:$8 sps:$4 sm:$0xff]   ;;  %v456_v22 = vld [vmem:[%s640_s1 + $0xa4] ss:$8 sps:$4 sm:$0xff]   ;;  %v458_v23 = vld [vmem:[%s640_s1 + $0xa0] ss:$8 sps:$4 sm:$0xff]  }
   0x9   :  { %277 = vmatprep.mubr.bf16.mxu0 %v476_v13  ;;  %v459_v24 = vld [vmem:[%s640_s1 + $0xb4] ss:$8 sps:$4 sm:$0xff]   ;;  %v461_v25 = vld [vmem:[%s640_s1 + $0xb0] ss:$8 sps:$4 sm:$0xff]   ;;  %v462_v26 = vld [vmem:[%s640_s1 + $0xc4] ss:$8 sps:$4 sm:$0xff]  }
   0xa   :  { %v464_v27 = vld [vmem:[%s640_s1 + $0xc0] ss:$8 sps:$4 sm:$0xff]   ;;  %v465_v28 = vld [vmem:[%s640_s1 + $0xd4] ss:$8 sps:$4 sm:$0xff]   ;;  %v467_v29 = vld [vmem:[%s640_s1 + $0xd0] ss:$8 sps:$4 sm:$0xff]  }
   0xb   :  { %250 = vmatpush1.bf16.msra.mxu0 %v434_v5  ;;  %412 = vmatpush1.bf16.msra.mxu1 %v434_v5  ;;  %v468_v30 = vld [vmem:[%s640_s1 + $0xe4] ss:$8 sps:$4 sm:$0xff]   ;;  %v470_v31 = vld [vmem:[%s640_s1 + $0xe0] ss:$8 sps:$4 sm:$0xff]   ;;  %v471_v32 = vld [vmem:[%s640_s1 + $0xf4] ss:$8 sps:$4 sm:$0xff]  }
   0xc   :  { %251 = vmatprep.subr.bf16.mxu0 %v435_v6  ;;  %397 = vmatprep.subr.bf16.mxu1 %v435_v6  ;;  %v473_v33 = vld [vmem:[%s640_s1 + $0xf0] ss:$8 sps:$4 sm:$0xff]   ;;  %v474_v34 = vld [vmem:[%s641_s0] ss:$8 sps:$4 sm:$0xff]   ;;  %v56_v37 = vshrl.u32 %v55_v36, 7 }
   0xd   :  { %v477_v35 = vld [vmem:[%s641_s0 + $0x10] ss:$8 sps:$4 sm:$0xff]   ;;  %v53_v39 = vld [vmem:[%s642_s2] sm:$0x3]  ;;  %v299_v45 = vld [vmem:[%s643_s3 + $0x8] sm:$0xff] }
   0xe   :  { %v57_v38 = vsub.s32 0, %v56_v37  ;;  %v61_v40 = vsub.s32 1, %v56_v37  ;;  %v298_v41 = vld [vmem:[%s643_s3] sm:$0xff]  ;;  %v300_v42 = vld [vmem:[%s643_s3 + $0x10] sm:$0xff]  ;;  %v301_v46 = vld [vmem:[%s643_s3 + $0x18] sm:$0xff]  ;;  %v304_v57 = vunpack.c.l.bf16 %v299_v45  ;;  %v305_v63 = vunpack.c.h.bf16 %v299_v45 }
   0xf   :  { %252 = vmatpush1.bf16.msra.mxu0 %v437_v7  ;;  %413 = vmatpush1.bf16.msra.mxu1 %v437_v7  ;;  %v302_v47 = vunpack.c.l.bf16 %v298_v41  ;;  %v306_v48 = vunpack.c.l.bf16 %v300_v42  ;;  %v303_v51 = vunpack.c.h.bf16 %v298_v41  ;;  %v307_v52 = vunpack.c.h.bf16 %v300_v42 }
  0x10   :  { %253 = vmatprep.subr.bf16.mxu0 %v438_v8  ;;  %398 = vmatprep.subr.bf16.mxu1 %v438_v8  ;;  %v58_v43 = vrot.slane %v53_v39, %v57_v38  ;;  %v62_v44 = vrot.slane %v53_v39, %v61_v40  ;;  %v308_v58 = vunpack.c.l.bf16 %v301_v46  ;;  %v309_v0 = vunpack.c.h.bf16 %v301_v46 }
  0x13   :  { %254 = vmatpush1.bf16.msra.mxu0 %v440_v9  ;;  %414 = vmatpush1.bf16.msra.mxu1 %v440_v9 }
  0x14   :  { %255 = vmatprep.subr.bf16.mxu0 %v441_v10  ;;  %399 = vmatprep.subr.bf16.mxu1 %v441_v10 }
  0x17   :  { %256 = vmatpush1.bf16.msra.mxu0 %v443_v11  ;;  %415 = vmatpush1.bf16.msra.mxu1 %v443_v11 }
  0x18   :  { %257 = vmatprep.subr.bf16.mxu0 %v444_v12  ;;  %400 = vmatprep.subr.bf16.mxu1 %v444_v12 }
  0x1b   :  { %258 = vmatpush1.bf16.msra.mxu0 %v446_v14  ;;  %416 = vmatpush1.bf16.msra.mxu1 %v446_v14 }
  0x1c   :  { %259 = vmatprep.subr.bf16.mxu0 %v447_v16  ;;  %401 = vmatprep.subr.bf16.mxu1 %v447_v16 }
  0x1f   :  { %260 = vmatpush1.bf16.msra.mxu0 %v449_v17  ;;  %417 = vmatpush1.bf16.msra.mxu1 %v449_v17 }
  0x20   :  { %261 = vmatprep.subr.bf16.mxu0 %v450_v18  ;;  %402 = vmatprep.subr.bf16.mxu1 %v450_v18 }
  0x23   :  { %262 = vmatpush1.bf16.msra.mxu0 %v452_v19  ;;  %418 = vmatpush1.bf16.msra.mxu1 %v452_v19 }
  0x24   :  { %263 = vmatprep.subr.bf16.mxu0 %v453_v20  ;;  %403 = vmatprep.subr.bf16.mxu1 %v453_v20 }
  0x27   :  { %264 = vmatpush1.bf16.msra.mxu0 %v455_v21  ;;  %419 = vmatpush1.bf16.msra.mxu1 %v455_v21 }
  0x28   :  { %265 = vmatprep.subr.bf16.mxu0 %v456_v22  ;;  %404 = vmatprep.subr.bf16.mxu1 %v456_v22 }
  0x2b   :  { %266 = vmatpush1.bf16.msra.mxu0 %v458_v23  ;;  %420 = vmatpush1.bf16.msra.mxu1 %v458_v23 }
  0x2c   :  { %267 = vmatprep.subr.bf16.mxu0 %v459_v24  ;;  %405 = vmatprep.subr.bf16.mxu1 %v459_v24 }
  0x2f   :  { %268 = vmatpush1.bf16.msra.mxu0 %v461_v25  ;;  %421 = vmatpush1.bf16.msra.mxu1 %v461_v25 }
  0x30   :  { %269 = vmatprep.subr.bf16.mxu0 %v462_v26  ;;  %406 = vmatprep.subr.bf16.mxu1 %v462_v26 }
  0x33   :  { %270 = vmatpush1.bf16.msra.mxu0 %v464_v27  ;;  %422 = vmatpush1.bf16.msra.mxu1 %v464_v27 }
  0x34   :  { %271 = vmatprep.subr.bf16.mxu0 %v465_v28  ;;  %407 = vmatprep.subr.bf16.mxu1 %v465_v28 }
  0x37   :  { %272 = vmatpush1.bf16.msra.mxu0 %v467_v29  ;;  %423 = vmatpush1.bf16.msra.mxu1 %v467_v29 }
  0x38   :  { %273 = vmatprep.subr.bf16.mxu0 %v468_v30  ;;  %408 = vmatprep.subr.bf16.mxu1 %v468_v30 }
  0x3b   :  { %274 = vmatpush1.bf16.msra.mxu0 %v470_v31  ;;  %424 = vmatpush1.bf16.msra.mxu1 %v470_v31 }
  0x3c   :  { %275 = vmatprep.subr.bf16.mxu0 %v471_v32  ;;  %409 = vmatprep.subr.bf16.mxu1 %v471_v32 }
  0x3f   :  { %276 = vmatpush1.bf16.msra.mxu0 %v473_v33  ;;  %425 = vmatpush1.bf16.msra.mxu1 %v473_v33 }
  0x42   :  { %278 = vmatmul.mubr.bf16.vlgmr.msra.gmra.mrb[0].mxu0 %v474_v34  ;;  %288 = vmatmul.mubr.bf16.vlgmr.msra.gmra.mrb[0].mxu1 %v477_v35 }
 0x115   :  { %v279_v49 = vpop.f32.mrb[0].mxu0  ;;  %v289_v50 = vpop.f32.mrb[0].mxu1 }
 0x116   :  { %v280_v53 = vadd.f32 %v279_v49, %v58_v43  ;;  %v290_v54 = vadd.f32 %v289_v50, %v58_v43  ;;  %v281_v55 = vpop.f32.mrb[1].mxu0  ;;  %v291_v56 = vpop.f32.mrb[1].mxu1 }
 0x117   :  { %v282_v59 = vadd.f32 %v281_v55, %v62_v44  ;;  %v292_v60 = vadd.f32 %v291_v56, %v62_v44  ;;  %v283_v61 = vpop.f32.mrb[2].mxu0  ;;  %v293_v62 = vpop.f32.mrb[2].mxu1 }
 0x118   :  { %v310_v1 = vadd.f32 %v302_v47, %v280_v53  ;;  %v314_v2 = vadd.f32 %v306_v48, %v290_v54  ;;  %v284_v3 = vadd.f32 %v283_v61, %v58_v43  ;;  %v294_v4 = vadd.f32 %v293_v62, %v58_v43  ;;  %v285_v5 = vpop.f32.mrb[3].mxu0  ;;  %v295_v6 = vpop.f32.mrb[3].mxu1 }
 0x119   :  { %v311_v7 = vadd.f32 %v303_v51, %v282_v59  ;;  %v315_v8 = vadd.f32 %v307_v52, %v292_v60  ;;  %v286_v9 = vadd.f32 %v285_v5, %v62_v44  ;;  %v296_v10 = vadd.f32 %v295_v6, %v62_v44 }
 0x11a   :  { %v312_v11 = vadd.f32 %v304_v57, %v284_v3  ;;  %v316_v12 = vadd.f32 %v308_v58, %v294_v4 }
 0x11b   :  { %v390_v13 = vpack.c.bf16 %v311_v7, %v310_v1  ;;  %v392_v14 = vpack.c.bf16 %v315_v8, %v314_v2  ;;  %v313_v15 = vadd.f32 %v305_v63, %v286_v9  ;;  %v317_v16 = vadd.f32 %v309_v0, %v296_v10 }
 0x11d   :  { %342 = vst [vmem:[%s644_s4] sm:$0xff] %v390_v13  ;;  %344 = vst [vmem:[%s644_s4 + $0x10] sm:$0xff] %v392_v14  ;;  %v391_v17 = vpack.c.bf16 %v313_v15, %v312_v11  ;;  %v393_v18 = vpack.c.bf16 %v317_v16, %v316_v12 }
 0x11f   :  { %343 = vst [vmem:[%s644_s4 + $0x8] sm:$0xff] %v391_v17  ;;  %345 = vst [vmem:[%s644_s4 + $0x18] sm:$0xff] %v393_v18 }

// kernel: encoder_cam_forward.23
= control target key start
LH: loop header
LB: loop body
LE: loop exit
PB: predicated region body
PF: predicated region fallthrough
CT: control target
= control target key end

     0   :  { %s1874_s12 = smov 0   ;;  %s1876_s13 = smov 0   ;;  %s2222_s0 = inlined_call_operand.vmem [shape: bf16[8,5,768], index: 0, kind: input, shape index: {}, may-alias: {0,1,2}]   ;;  %s2223_s1 = inlined_call_operand.vmem [shape: bf16[8,5,768], index: 1, kind: input, shape index: {}, may-alias: {0,1,2}]   ;;  %s2224_s2 = inlined_call_operand.vmem [shape: bf16[8,5,768], index: 2, kind: input, shape index: {}, may-alias: {0,1,2}]   ;;  %s2225_s3 = inlined_call_operand.vmem [shape: bf16[8,5,256], index: 3, kind: output, shape index: {}]  }
   0x1   :  { %s1878_s14 = smov 0   ;;  %s1880_s15 = smov 0  }
   0x2   :  { %s1882_s16 = smov 0   ;;  %s1884_s17 = smov 0  }
   0x3   :  { %s1886_s18 = smov 0   ;;  %s1888_s19 = smov 0  }
   0x4   :  { %s1890_s20 = smov 0  }
   0x5 LB: > { %s1501_s21 = sadd.s32 4294967295, %s1849_s20   ;;  %s22_s22 = sadd.s32 1, %s1845_s19  ;;  %s1849_s20 = sphi %s1890_s20, %s13_s20   ;;  %s1845_s19 = sphi %s1888_s19, %s2239_s19   ;;  %s1841_s18 = sphi %s1886_s18, %s2238_s18   ;;  %s1837_s17 = sphi %s1884_s17, %s2237_s17   ;;  %s1833_s16 = sphi %s1882_s16, %s2236_s16   ;;  %s1829_s15 = sphi %s1880_s15, %s2235_s15   ;;  %s1825_s14 = sphi %s1878_s14, %s2234_s14   ;;  %s1821_s13 = sphi %s1876_s13, %s2233_s13   ;;  %s1817_s12 = sphi %s1874_s12, %s2232_s12  }
   0x6   : > { %p23_p0 = scmp.ge.s32.totalorder %s22_s22, 2  ;;  %s34_s23 = sadd.s32 1, %s1837_s17 }
   0x7   : > { %p41_p1 = scmp.ne.s32.totalorder %s1837_s17, %s1833_s16  ;;  %p42_p2 = scmp.eq.s32.totalorder %s1849_s20, 0 }
   0x8   : > { %s2241_s22 = smov (%p23_p0, %s22_s22), 0  ;;  %s57_s25 = sadd.s32 2, %s1845_s19 }
   0x9   : > { %p1932_p3 = por %p42_p2, %p41_p1  ;;  %s30_s26 = ssub.s32 %s1845_s19, %s2241_s22 }
   0xa   : > { %s58_s27 = sadd.s32 2, %s2241_s22  ;;  %p32_p4 = scmp.eq.s32.totalorder %s30_s26, 0 }
   0xb   : > { %s60_s28 = ssub.s32 %s57_s25, %s58_s27  ;;  %s64_s29 = sadd.s32 1, %s1829_s15 }
   0xc   : > { %p62_p5 = scmp.eq.s32.totalorder %s60_s28, 0  ;;  %p71_p6 = scmp.ne.s32.totalorder %s1829_s15, %s1825_s14 }
   0xd   : > { %s1942_s30 = scalar_select %p32_p4, %s1837_s17, %s34_s23  }
   0xe   : > { %s1945_s4 = scalar_select %p62_p5, %s1829_s15, %s64_s29  }
   0xf   : > { %s87_s5 = sadd.s32 4, %s1845_s19  ;;  %s88_s6 = sadd.s32 4, %s2241_s22 }
  0x10   : > { %s94_s7 = sadd.s32 1, %s1821_s13  ;;  %p1954_p7 = por %p71_p6, %p42_p2 }
  0x11   : > { %s90_s9 = ssub.s32 %s87_s5, %s88_s6  ;;  %p101_p9 = scmp.ne.s32.totalorder %s1821_s13, %s1817_s12 }
  0x12   : > { %p92_p8 = scmp.eq.s32.totalorder %s90_s9, 0  ;;  %p133_p10 = scmp.eq.s32.totalorder %s1501_s21, 1 }
  0x13   : > { %p1965_p11 = por %p101_p9, %p42_p2  ;;  %p1504_p13 = scmp.ge.s32.totalorder %s1849_s20, 2 }
  0x14   : > { %s1961_s10 = scalar_select %p92_p8, %s1821_s13, %s94_s7  }
  0x15   : > { %p1972_p12 = por %p133_p10, %p41_p1  ;;  %155 = sbr.rel (%p1504_p13) target bundleno = 55 (0x37), region = 16 }
  0x1c   : > { %158 = sbr.rel (!%p1932_p3) target bundleno = 37 (0x25), region = 20  ;;  %s160_s21 = sand.u32 (%p1932_p3), 1, %s1837_s17  }
  0x1d   : > { %s1506_s25 = sshll.u32 (%p1932_p3), %s1845_s19, 2  ;;  %s1505_s26 = sshll.u32 (%p1932_p3), %s160_s21, 5 }
  0x1e   : > { %s167_s29 = scalar_lea.vmem (%p1932_p3), %s2222_s0, %s1506_s25  ;;  %s162_s5 = scalar_lea.vmem (%p1932_p3), [#allocation2], %s1505_s26 }
  0x1f   : > { %v183_v0 = vld [vmem:[%s167_s29] sm:$0xf] (%p1932_p3)  ;;  %v185_v1 = vld [vmem:[%s167_s29 + $0x18] sm:$0xf] (%p1932_p3)  ;;  %v187_v2 = vld [vmem:[%s167_s29 + $0x30] sm:$0xf] (%p1932_p3) }
  0x20   : > { %184 = vst [vmem:[%s162_s5] sm:$0xf] (%p1932_p3), %v183_v0  ;;  %186 = vst [vmem:[%s162_s5 + $0x4] sm:$0xf] (%p1932_p3), %v185_v1  ;;  %v189_v3 = vld [vmem:[%s167_s29 + $0x48] sm:$0xf] (%p1932_p3) }
  0x21   : > { %v191_v4 = vld [vmem:[%s167_s29 + $0x60] sm:$0xf] (%p1932_p3)  ;;  %188 = vst [vmem:[%s162_s5 + $0x8] sm:$0xf] (%p1932_p3), %v187_v2  ;;  %190 = vst [vmem:[%s162_s5 + $0xc] sm:$0xf] (%p1932_p3), %v189_v3 }
  0x22   : > { %192 = vst [vmem:[%s162_s5 + $0x10] sm:$0xf] (%p1932_p3), %v191_v4  ;;  %v193_v5 = vld [vmem:[%s167_s29 + $0x78] sm:$0xf] (%p1932_p3)  ;;  %v195_v6 = vld [vmem:[%s167_s29 + $0x90] sm:$0xf] (%p1932_p3) }
  0x23   : > { %v197_v7 = vld [vmem:[%s167_s29 + $0xa8] sm:$0xf]  ;;  %194 = vst [vmem:[%s162_s5 + $0x14] sm:$0xf] %v193_v5  ;;  %196 = vst [vmem:[%s162_s5 + $0x18] sm:$0xf] %v195_v6 }
  0x24   : > { %198 = vst [vmem:[%s162_s5 + $0x1c] sm:$0xf] %v197_v7 }
  0x25 PF: > { %237 = sbr.rel (!%p1954_p7) target bundleno = 46 (0x2e), region = 61  ;;  %s239_s24 = sand.u32 (%p1954_p7), 1, %s1829_s15  }
  0x26   : > { %s1508_s6 = sshll.u32 (%p1954_p7), %s1845_s19, 2  ;;  %s1507_s7 = sshll.u32 (%p1954_p7), %s239_s24, 5 }
  0x27   : > { %s1413_s25 = scalar_lea.vmem (%p1954_p7), %s2223_s1, %s1508_s6  ;;  %s241_s26 = scalar_lea.vmem (%p1954_p7), [#allocation3], %s1507_s7 }
  0x28   : > { %v1509_v8 = vld [vmem:[%s1413_s25 + $0x8] sm:$0xf] (%p1954_p7)  ;;  %v1510_v9 = vld [vmem:[%s1413_s25 + $0x20] sm:$0xf] (%p1954_p7)  ;;  %v1511_v10 = vld [vmem:[%s1413_s25 + $0x38] sm:$0xf] (%p1954_p7) }
  0x29   : > { %264 = vst [vmem:[%s241_s26] sm:$0xf] (%p1954_p7), %v1509_v8  ;;  %266 = vst [vmem:[%s241_s26 + $0x4] sm:$0xf] (%p1954_p7), %v1510_v9  ;;  %v1512_v11 = vld [vmem:[%s1413_s25 + $0x50] sm:$0xf] (%p1954_p7) }
  0x2a   : > { %v1513_v12 = vld [vmem:[%s1413_s25 + $0x68] sm:$0xf] (%p1954_p7)  ;;  %268 = vst [vmem:[%s241_s26 + $0x8] sm:$0xf] (%p1954_p7), %v1511_v10  ;;  %270 = vst [vmem:[%s241_s26 + $0xc] sm:$0xf] (%p1954_p7), %v1512_v11 }
  0x2b   : > { %272 = vst [vmem:[%s241_s26 + $0x10] sm:$0xf] (%p1954_p7), %v1513_v12  ;;  %v1514_v13 = vld [vmem:[%s1413_s25 + $0x80] sm:$0xf] (%p1954_p7)  ;;  %v1515_v14 = vld [vmem:[%s1413_s25 + $0x98] sm:$0xf] (%p1954_p7) }
  0x2c   : > { %v1516_v15 = vld [vmem:[%s1413_s25 + $0xb0] sm:$0xf]  ;;  %274 = vst [vmem:[%s241_s26 + $0x14] sm:$0xf] %v1514_v13  ;;  %276 = vst [vmem:[%s241_s26 + $0x18] sm:$0xf] %v1515_v14 }
  0x2d   : > { %278 = vst [vmem:[%s241_s26 + $0x1c] sm:$0xf] %v1516_v15 }
  0x2e PF: > { %317 = sbr.rel (!%p1965_p11) target bundleno = 55 (0x37), region = 102  ;;  %s319_s8 = sand.u32 (%p1965_p11), 1, %s1821_s13  }
  0x2f   : > { %s1518_s27 = sshll.u32 (%p1965_p11), %s1845_s19, 2  ;;  %s1517_s28 = sshll.u32 (%p1965_p11), %s319_s8, 5 }
  0x30   : > { %s1420_s24 = scalar_lea.vmem (%p1965_p11), %s2224_s2, %s1518_s27  ;;  %s321_s6 = scalar_lea.vmem (%p1965_p11), [#allocation4], %s1517_s28 }
  0x31   : > { %v1519_v16 = vld [vmem:[%s1420_s24 + $0x10] sm:$0xf] (%p1965_p11)  ;;  %v1520_v17 = vld [vmem:[%s1420_s24 + $0x28] sm:$0xf] (%p1965_p11)  ;;  %v1521_v18 = vld [vmem:[%s1420_s24 + $0x40] sm:$0xf] (%p1965_p11) }
  0x32   : > { %344 = vst [vmem:[%s321_s6] sm:$0xf] (%p1965_p11), %v1519_v16  ;;  %346 = vst [vmem:[%s321_s6 + $0x4] sm:$0xf] (%p1965_p11), %v1520_v17  ;;  %v1522_v19 = vld [vmem:[%s1420_s24 + $0x58] sm:$0xf] (%p1965_p11) }
  0x33   : > { %v1523_v20 = vld [vmem:[%s1420_s24 + $0x70] sm:$0xf] (%p1965_p11)  ;;  %348 = vst [vmem:[%s321_s6 + $0x8] sm:$0xf] (%p1965_p11), %v1521_v18  ;;  %350 = vst [vmem:[%s321_s6 + $0xc] sm:$0xf] (%p1965_p11), %v1522_v19 }
  0x34   : > { %352 = vst [vmem:[%s321_s6 + $0x10] sm:$0xf] (%p1965_p11), %v1523_v20  ;;  %v1524_v21 = vld [vmem:[%s1420_s24 + $0x88] sm:$0xf] (%p1965_p11)  ;;  %v1525_v22 = vld [vmem:[%s1420_s24 + $0xa0] sm:$0xf] (%p1965_p11) }
  0x35   : > { %v1526_v23 = vld [vmem:[%s1420_s24 + $0xb8] sm:$0xf]  ;;  %354 = vst [vmem:[%s321_s6 + $0x14] sm:$0xf] %v1524_v21  ;;  %356 = vst [vmem:[%s321_s6 + $0x18] sm:$0xf] %v1525_v22 }
  0x36   : > { %358 = vst [vmem:[%s321_s6 + $0x1c] sm:$0xf] %v1526_v23 }
  0x37 PF: > { %p1527_p0 = scmp.ge.s32.totalorder %s1849_s20, 1  ;;  %p396_p1 = scmp.lt.s32.totalorder %s1849_s20, 3 }
  0x39   : > { %p397_p2 = pnand %p1527_p0, %p396_p1 }
  0x3a   : > { %s410_s11 = sand.u32 (!%p397_p2), 1, %s1825_s14   ;;  %s403_s7 = sand.u32 (!%p397_p2), 1, %s1833_s16   ;;  %v1851_v24 = vmov (!%p397_p2), 0.0   ;;  %vm1852_vm0 = vmmov (!%p397_p2), 0   ;;  %vm806_vm1 = vcmask (!%p397_p2), 36864   ;;  %vm907_vm2 = vcmask (!%p397_p2), 1041408  }
  0x3b   : > { %400 = sbr.rel (%p397_p2) target bundleno = 851 (0x353), region = 143  ;;  %1576 = vmatprep.subr.bf16.mxu0 (!%p397_p2), %v1851_v24  ;;  %1582 = vmatprep.subr.bf16.mxu1 (!%p397_p2), %v1851_v24  ;;  %s1529_s9 = sshll.u32 (!%p397_p2), %s410_s11, 5  ;;  %vm908_vm3 = vcmask (!%p397_p2), 1042432   ;;  %vm903_vm4 = vcmask (!%p397_p2), 39936   ;;  %vm1285_vm5 = vsmask.f32 (!%p397_p2), 2304 }
  0x3c   : > { %1578 = vmatprep.mubr.msk.bf16.mxu0 (!%p397_p2), %vm1852_vm0, %v1851_v24  ;;  %1584 = vmatprep.mubr.msk.bf16.mxu1 (!%p397_p2), %vm1852_vm0, %v1851_v24  ;;  %s2008_s21 = sshll.u32 (!%p397_p2), %s403_s7, 5  ;;  %s2010_s25 = scalar_lea.vmem (!%p397_p2), [#allocation3], %s1529_s9  ;;  %vm2142_vm6 = vmand (!%p397_p2), %vm908_vm3, %vm1285_vm5 }
  0x3d   : > { %v462_v25 = vld [vmem:[%s2010_s25] sm:$0x7] (!%p397_p2)  ;;  %v463_v26 = vld [vmem:[%s2010_s25 + $0x4] sm:$0x7] (!%p397_p2)  ;;  %s2017_s14 = scalar_lea.vmem (!%p397_p2), [#allocation2], %s2008_s21  ;;  %s417_s16 = sand.u32 (!%p397_p2), 1, %s1817_s12  }
  0x3e   : > { %1577 = vmatpush3.bf16.xpose.msra.mxu0 (!%p397_p2), %v462_v25  ;;  %1583 = vmatpush3.bf16.xpose.msra.mxu1 (!%p397_p2), %v463_v26  ;;  %v454_v27 = vld [vmem:[%s2017_s14] sm:$0x7] (!%p397_p2)  ;;  %v455_v28 = vld [vmem:[%s2017_s14 + $0x4] sm:$0x7] (!%p397_p2)  ;;  %v464_v29 = vld [vmem:[%s2010_s25 + $0x8] sm:$0x7] (!%p397_p2) }
  0x3f   : > { %1588 = vmatprep.subr.bf16.mxu0 (!%p397_p2), %v1851_v24  ;;  %1594 = vmatprep.subr.bf16.mxu1 (!%p397_p2), %v1851_v24  ;;  %v465_v30 = vld [vmem:[%s2010_s25 + $0xc] sm:$0x7] (!%p397_p2)  ;;  %v456_v31 = vld [vmem:[%s2017_s14 + $0x8] sm:$0x7] (!%p397_p2)  ;;  %v466_v33 = vld [vmem:[%s2010_s25 + $0x10] sm:$0x7] (!%p397_p2) }
  0x40   : > { %v457_v32 = vld [vmem:[%s2017_s14 + $0xc] sm:$0x7] (!%p397_p2)  ;;  %v467_v34 = vld [vmem:[%s2010_s25 + $0x14] sm:$0x7] (!%p397_p2)  ;;  %v458_v35 = vld [vmem:[%s2017_s14 + $0x10] sm:$0x7] (!%p397_p2) }
  0x41   : > { %v459_v36 = vld [vmem:[%s2017_s14 + $0x14] sm:$0x7] (!%p397_p2)  ;;  %v468_v37 = vld [vmem:[%s2010_s25 + $0x18] sm:$0x7] (!%p397_p2)  ;;  %v469_v38 = vld [vmem:[%s2010_s25 + $0x1c] sm:$0x7] (!%p397_p2) }
  0x42   : > { %v460_v39 = vld [vmem:[%s2017_s14 + $0x18] sm:$0x7]  ;;  %v461_v40 = vld [vmem:[%s2017_s14 + $0x1c] sm:$0x7]  ;;  %s1530_s26 = sshll.u32 %s417_s16, 5  ;;  %s2147_s12 = scalar_lea.vmem [#allocation5], %s2008_s21 }
  0x43   : > { %s419_s8 = scalar_lea.vmem [#allocation4], %s1530_s26  ;;  %s1541_s27 = sshll.u32 (%p1972_p12), %s1841_s18, 2 }
  0x44   : > { %s1322_s5 = scalar_lea.vmem (%p1972_p12), %s2225_s3, %s1541_s27 }
  0x45   : > { %1579 = vmatmul.mubr.bf16.vlgmr.msra.gmra.mrb[0].mxu0 %v454_v27  ;;  %1585 = vmatmul.mubr.bf16.vlgmr.msra.gmra.mrb[0].mxu1 %v455_v28 }
  0x46   : > { %1589 = vmatpush3.bf16.xpose.msra.mxu0 %v464_v29  ;;  %1595 = vmatpush3.bf16.xpose.msra.mxu1 %v465_v30 }
  0x47   : > { %1590 = vmatprep.mubr.msk.bf16.mxu0 %vm1852_vm0, %v1851_v24  ;;  %1596 = vmatprep.mubr.msk.bf16.mxu1 %vm1852_vm0, %v1851_v24 }
  0x48   : > { %1600 = vmatprep.subr.bf16.mxu0 %v1851_v24  ;;  %1606 = vmatprep.subr.bf16.mxu1 %v1851_v24 }
  0x4d   : > { %1591 = vmatmul.mubr.bf16.vlgmr.msra.gmra.mrb[4].mxu0 %v456_v31  ;;  %1597 = vmatmul.mubr.bf16.vlgmr.msra.gmra.mrb[4].mxu1 %v457_v32 }
  0x4e   : > { %1601 = vmatpush3.bf16.xpose.msra.mxu0 %v466_v33  ;;  %1607 = vmatpush3.bf16.xpose.msra.mxu1 %v467_v34 }
  0x4f   : > { %1602 = vmatprep.mubr.msk.bf16.mxu0 %vm1852_vm0, %v1851_v24  ;;  %1608 = vmatprep.mubr.msk.bf16.mxu1 %vm1852_vm0, %v1851_v24 }
  0x50   : > { %1612 = vmatprep.subr.bf16.mxu0 %v1851_v24  ;;  %1618 = vmatprep.subr.bf16.mxu1 %v1851_v24 }
  0x55   : > { %1603 = vmatmul.mubr.bf16.vlgmr.msra.gmra.mrb[8].mxu0 %v458_v35  ;;  %1609 = vmatmul.mubr.bf16.vlgmr.msra.gmra.mrb[8].mxu1 %v459_v36 }
  0x56   : > { %1613 = vmatpush3.bf16.xpose.msra.mxu0 %v468_v37  ;;  %1619 = vmatpush3.bf16.xpose.msra.mxu1 %v469_v38 }
  0x57   : > { %1614 = vmatprep.mubr.msk.bf16.mxu0 %vm1852_vm0, %v1851_v24  ;;  %1620 = vmatprep.mubr.msk.bf16.mxu1 %vm1852_vm0, %v1851_v24 }
  0x58   : > { %1624 = vmatprep.subr.bf16.mxu0 %v1851_v24  ;;  %1630 = vmatprep.subr.bf16.mxu1 %v1851_v24 }
  0x5d   : > { %1615 = vmatmul.mubr.bf16.vlgmr.msra.gmra.mrb[12].mxu0 %v460_v39  ;;  %1621 = vmatmul.mubr.bf16.vlgmr.msra.gmra.mrb[12].mxu1 %v461_v40 }
  0x5e   : > { %1626 = vmatprep.mubr.msk.bf16.mxu0 %vm1852_vm0, %v1851_v24  ;;  %1632 = vmatprep.mubr.msk.bf16.mxu1 %vm1852_vm0, %v1851_v24 }
 0x118   : > { %v512_v41 = vpop.f32.mrb[0].mxu0  ;;  %v552_v42 = vpop.f32.mrb[0].mxu1 }
 0x119   : > { %v798_v43 = vmul.f32 0.088388346, %v512_v41  ;;  %v1580_v44 = vpop.f32.mrb[1].mxu0  ;;  %v799_v45 = vmul.f32 0.088388346, %v552_v42  ;;  %v1586_v46 = vpop.f32.mrb[1].mxu1 }
 0x11a   : > { %v515_v47 = vpop.f32.mrb[2].mxu0  ;;  %v555_v48 = vpop.f32.mrb[2].mxu1 }
 0x11b   : > { %v1581_v49 = vpop.f32.mrb[3].mxu0  ;;  %v807_v50 = vsel %vm806_vm1, %v798_v43, -inf  ;;  %v1587_v51 = vpop.f32.mrb[3].mxu1  ;;  %v810_v52 = vsel %vm806_vm1, %v799_v45, -inf }
 0x11c   : > { %808 = vmax.xlane.f32.xlu0 %v807_v50 }
 0x120   : > { %811 = vmax.xlane.f32.xlu0 %v810_v52  ;;  %v592_v53 = vpop.f32.mrb[4].mxu0  ;;  %v632_v54 = vpop.f32.mrb[4].mxu1 }
 0x121   : > { %v800_v55 = vmul.f32 0.088388346, %v592_v53  ;;  %v1592_v56 = vpop.f32.mrb[5].mxu0  ;;  %v801_v57 = vmul.f32 0.088388346, %v632_v54  ;;  %v1598_v58 = vpop.f32.mrb[5].mxu1 }
 0x122   : > { %v595_v59 = vpop.f32.mrb[6].mxu0  ;;  %v635_v60 = vpop.f32.mrb[6].mxu1 }
 0x123   : > { %v1593_v61 = vpop.f32.mrb[7].mxu0  ;;  %v813_v62 = vsel %vm806_vm1, %v800_v55, -inf  ;;  %v1599_v63 = vpop.f32.mrb[7].mxu1  ;;  %v816_v0 = vsel %vm806_vm1, %v801_v57, -inf }
 0x124   : > { %814 = vmax.xlane.f32.xlu1 %v813_v62 }
 0x128   : > { %v712_v1 = vpop.f32.mrb[8].mxu1  ;;  %817 = vmax.xlane.f32.xlu1 %v816_v0  ;;  %v672_v2 = vpop.f32.mrb[8].mxu0 }
 0x129   : > { %v803_v3 = vmul.f32 0.088388346, %v712_v1  ;;  %v802_v4 = vmul.f32 0.088388346, %v672_v2  ;;  %v1604_v5 = vpop.f32.mrb[9].mxu0  ;;  %v1610_v6 = vpop.f32.mrb[9].mxu1 }
 0x12a   : > { %v715_v7 = vpop.f32.mrb[10].mxu1  ;;  %v675_v8 = vpop.f32.mrb[10].mxu0  ;;  %v1853_v1 = vmov 65535  }
 0x12b   : > { %v822_v9 = vsel %vm806_vm1, %v803_v3, -inf  ;;  %v819_v10 = vsel %vm806_vm1, %v802_v4, -inf  ;;  %v1605_v11 = vpop.f32.mrb[11].mxu0  ;;  %v1611_v12 = vpop.f32.mrb[11].mxu1  ;;  %v909_v2 = vsel %vm907_vm2, 4294967295, %v1853_v1 }
 0x12c   : > { %823 = vmax.xlane.f32.xlu1 %v822_v9  ;;  %820 = vmax.xlane.f32.xlu0 %v819_v10  ;;  %v2097_v5 = vsel %vm908_vm3, %v909_v2, 0  ;;  %v471_v7 = vld [vmem:[%s419_s8 + $0x4] sm:$0x7]  ;;  %v472_v9 = vld [vmem:[%s419_s8 + $0x8] sm:$0x7] }
 0x12d   : > { %v958_v8 = vand.u32 %v2097_v5, %v471_v7  ;;  %v1004_v10 = vand.u32 %v2097_v5, %v472_v9  ;;  %v473_v11 = vld [vmem:[%s419_s8 + $0xc] sm:$0x7] }
 0x12e   : > { %v1050_v12 = vand.u32 %v2097_v5, %v473_v11 }
 0x12f   : > { %1631 = vmatpush3.bf16.msra.mxu1 %v958_v8 }
 0x130   : > { %v752_v13 = vpop.f32.mrb[12].mxu0  ;;  %v792_v14 = vpop.f32.mrb[12].mxu1  ;;  %1642 = vmatprep.subr.bf16.mxu1 %v1851_v24 }
 0x131   : > { %v804_v15 = vmul.f32 0.088388346, %v752_v13  ;;  %v805_v16 = vmul.f32 0.088388346, %v792_v14  ;;  %v1616_v17 = vpop.f32.mrb[13].mxu0  ;;  %v1622_v18 = vpop.f32.mrb[13].mxu1 }
 0x132   : > { %v795_v19 = vpop.f32.mrb[14].mxu1  ;;  %v755_v20 = vpop.f32.mrb[14].mxu0  ;;  %v474_v13 = vld [vmem:[%s419_s8 + $0x10] sm:$0x7]  ;;  %v476_v17 = vld [vmem:[%s419_s8 + $0x18] sm:$0x7] }
 0x133   : > { %v828_v21 = vsel %vm806_vm1, %v805_v16, -inf  ;;  %v825_v22 = vsel %vm806_vm1, %v804_v15, -inf  ;;  %v1617_v23 = vpop.f32.mrb[15].mxu0  ;;  %v1623_v25 = vpop.f32.mrb[15].mxu1  ;;  %v1096_v14 = vand.u32 %v2097_v5, %v474_v13  ;;  %v1188_v18 = vand.u32 %v2097_v5, %v476_v17  ;;  %v477_v19 = vld [vmem:[%s419_s8 + $0x1c] sm:$0x7] }
 0x134   : > { %829 = vmax.xlane.f32.xlu1 %v828_v21  ;;  %826 = vmax.xlane.f32.xlu0 %v825_v22  ;;  %v1234_v20 = vand.u32 %v2097_v5, %v477_v19  ;;  %v1299_v19 = vld [vmem:[%s2147_s12 + $0x10] sm:$0x7] }
 0x1a9   : > { %v809_v26 = vpop.xlane.xlu0 %808 }
 0x1aa   : > { %v831_v27 = vsub.f32 %v798_v43, %v809_v26 }
 0x1ac   : > { %v839_v28 = vmul.f32 1.442695, %v831_v27 }
 0x1ad   : > { %v812_v29 = vpop.xlane.xlu0 %811 }
 0x1ae   : > { %1747 = vpow2.f32 %v839_v28  ;;  %v832_v30 = vsub.f32 %v799_v45, %v812_v29 }
 0x1b0   : > { %v841_v31 = vmul.f32 1.442695, %v832_v30 }
 0x1b1   : > { %v815_v32 = vpop.xlane.xlu1 %814 }
 0x1b2   : > { %1749 = vpow2.f32 %v841_v31  ;;  %v833_v33 = vsub.f32 %v800_v55, %v815_v32 }
 0x1b4   : > { %v843_v34 = vmul.f32 1.442695, %v833_v33 }
 0x1b5   : > { %v818_v35 = vpop.xlane.xlu1 %817 }
 0x1b6   : > { %1751 = vpow2.f32 %v843_v34  ;;  %v834_v36 = vsub.f32 %v801_v57, %v818_v35 }
 0x1b8   : > { %v2063_v37 = vpop.eup %1747  ;;  %v845_v38 = vmul.f32 1.442695, %v834_v36 }
 0x1b9   : > { %v824_v39 = vpop.xlane.xlu1 %823  ;;  %v821_v40 = vpop.xlane.xlu0 %820  ;;  %v855_v41 = vsel %vm806_vm1, %v2063_v37, 0.0 }
 0x1ba   : > { %1753 = vpow2.f32 %v845_v38  ;;  %v836_v42 = vsub.f32 %v803_v3, %v824_v39  ;;  %v835_v43 = vsub.f32 %v802_v4, %v821_v40  ;;  %856 = vadd.xlane.f32.xlu0 %v855_v41  ;;  %v470_v4 = vld [vmem:[%s419_s8] sm:$0x7] }
 0x1bb   : > { %v912_v6 = vand.u32 %v2097_v5, %v470_v4 }
 0x1bc   : > { %v2067_v44 = vpop.eup %1749  ;;  %v849_v45 = vmul.f32 1.442695, %v836_v42  ;;  %v847_v46 = vmul.f32 1.442695, %v835_v43 }
 0x1bd   : > { %v858_v47 = vsel %vm806_vm1, %v2067_v44, 0.0  ;;  %1625 = vmatpush3.bf16.msra.mxu0 %v912_v6 }
 0x1be   : > { %1755 = vpow2.f32 %v849_v45  ;;  %859 = vadd.xlane.f32.xlu1 %v858_v47  ;;  %1636 = vmatprep.subr.bf16.mxu0 %v1851_v24 }
 0x1bf   : > { %1757 = vpow2.f32 %v847_v46 }
 0x1c0   : > { %v2071_v48 = vpop.eup %1751 }
 0x1c1   : > { %v830_v49 = vpop.xlane.xlu1 %829  ;;  %v827_v50 = vpop.xlane.xlu0 %826  ;;  %v861_v51 = vsel %vm806_vm1, %v2071_v48, 0.0 }
 0x1c2   : > { %v838_v52 = vsub.f32 %v805_v16, %v830_v49  ;;  %v837_v53 = vsub.f32 %v804_v15, %v827_v50  ;;  %862 = vadd.xlane.f32.xlu0 %v861_v51  ;;  %v475_v15 = vld [vmem:[%s419_s8 + $0x14] sm:$0x7] }
 0x1c3   : > { %v1142_v16 = vand.u32 %v2097_v5, %v475_v15  ;;  %v1293_v5 = vld [vmem:[%s2147_s12 + $0x8] sm:$0x7] }
 0x1c4   : > { %v2075_v54 = vpop.eup %1753  ;;  %v853_v55 = vmul.f32 1.442695, %v838_v52  ;;  %v851_v56 = vmul.f32 1.442695, %v837_v53 }
 0x1c5   : > { %v864_v57 = vsel %vm806_vm1, %v2075_v54, 0.0 }
 0x1c6   : > { %1759 = vpow2.f32 %v853_v55  ;;  %865 = vadd.xlane.f32.xlu1 %v864_v57 }
 0x1c7   : > { %1761 = vpow2.f32 %v851_v56 }
 0x1c8   : > { %v2079_v58 = vpop.eup %1755 }
 0x1c9   : > { %v2081_v59 = vpop.eup %1757  ;;  %v870_v60 = vsel %vm806_vm1, %v2079_v58, 0.0 }
 0x1ca   : > { %871 = vadd.xlane.f32.xlu1 %v870_v60  ;;  %v867_v61 = vsel %vm806_vm1, %v2081_v59, 0.0 }
 0x1cb   : > { %868 = vadd.xlane.f32.xlu0 %v867_v61 }
 0x1d0   : > { %v2088_v62 = vpop.eup %1759 }
 0x1d1   : > { %v2090_v63 = vpop.eup %1761  ;;  %v876_v0 = vsel %vm806_vm1, %v2088_v62, 0.0 }
 0x1d2   : > { %877 = vadd.xlane.f32.xlu1 %v876_v0  ;;  %v873_v3 = vsel %vm806_vm1, %v2090_v63, 0.0 }
 0x1d3   : > { %874 = vadd.xlane.f32.xlu0 %v873_v3 }
 0x247   : > { %v857_v21 = vpop.xlane.xlu0 %856 }
 0x248   : > { %1763 = vrcp.f32 %v857_v21 }
 0x24b   : > { %v860_v22 = vpop.xlane.xlu1 %859 }
 0x24c   : > { %1765 = vrcp.f32 %v860_v22 }
 0x24f   : > { %v863_v23 = vpop.xlane.xlu0 %862 }
 0x250   : > { %1767 = vrcp.f32 %v863_v23 }
 0x252   : > { %v1764_v25 = vpop.eup %1763 }
 0x253   : > { %v880_v26 = vmul.f32 %v1764_v25, %v2063_v37  ;;  %v866_v27 = vpop.xlane.xlu1 %865 }
 0x254   : > { %1769 = vrcp.f32 %v866_v27  ;;  %v1302_v27 = vld [vmem:[%s2147_s12 + $0x14] sm:$0x7] }
 0x255   : > { %v895_v28 = vpack.c.bf16 %v880_v26, %v880_v26 }
 0x256   : > { %v1766_v29 = vpop.eup %1765 }
 0x257   : > { %v882_v30 = vmul.f32 %v1766_v29, %v2067_v44  ;;  %v872_v31 = vpop.xlane.xlu1 %871  ;;  %1627 = vmatmul.mubr.msk.bf16.vlgmr.msra.gmra.mrb[16].mxu0 %vm903_vm4, %v895_v28 }
 0x258   : > { %1771 = vrcp.f32 %v872_v31  ;;  %v869_v32 = vpop.xlane.xlu0 %868  ;;  %1637 = vmatpush3.bf16.msra.mxu0 %v1004_v10  ;;  %1638 = vmatprep.mubr.msk.bf16.mxu0 %vm1852_vm0, %v1851_v24 }
 0x259   : > { %1773 = vrcp.f32 %v869_v32  ;;  %v896_v33 = vpack.c.bf16 %v882_v30, %v882_v30  ;;  %1648 = vmatprep.subr.bf16.mxu0 %v1851_v24 }
 0x25a   : > { %v1768_v34 = vpop.eup %1767 }
 0x25b   : > { %v884_v35 = vmul.f32 %v1768_v34, %v2071_v48  ;;  %1633 = vmatmul.mubr.msk.bf16.vlgmr.msra.gmra.mrb[16].mxu1 %vm903_vm4, %v896_v33  ;;  %v1305_v34 = vld [vmem:[%s2147_s12 + $0x18] sm:$0x7] }
 0x25c   : > { %1643 = vmatpush3.bf16.msra.mxu1 %v1050_v12  ;;  %1644 = vmatprep.mubr.msk.bf16.mxu1 %vm1852_vm0, %v1851_v24  ;;  %v1296_v12 = vld [vmem:[%s2147_s12 + $0xc] sm:$0x7] }
 0x25d   : > { %v897_v36 = vpack.c.bf16 %v884_v35, %v884_v35  ;;  %1654 = vmatprep.subr.bf16.mxu1 %v1851_v24 }
 0x25e   : > { %v1770_v37 = vpop.eup %1769 }
 0x25f   : > { %v886_v38 = vmul.f32 %v1770_v37, %v2075_v54  ;;  %v878_v39 = vpop.xlane.xlu1 %877  ;;  %1639 = vmatmul.mubr.msk.bf16.vlgmr.msra.gmra.mrb[20].mxu0 %vm903_vm4, %v897_v36 }
 0x260   : > { %1775 = vrcp.f32 %v878_v39  ;;  %v875_v40 = vpop.xlane.xlu0 %874  ;;  %1649 = vmatpush3.bf16.msra.mxu0 %v1096_v14  ;;  %1650 = vmatprep.mubr.msk.bf16.mxu0 %vm1852_vm0, %v1851_v24 }
 0x261   : > { %1777 = vrcp.f32 %v875_v40  ;;  %v898_v41 = vpack.c.bf16 %v886_v38, %v886_v38  ;;  %1660 = vmatprep.subr.bf16.mxu0 %v1851_v24 }
 0x262   : > { %v1772_v42 = vpop.eup %1771 }
 0x263   : > { %v1774_v43 = vpop.eup %1773  ;;  %1645 = vmatmul.mubr.msk.bf16.vlgmr.msra.gmra.mrb[20].mxu1 %vm903_vm4, %v898_v41  ;;  %v890_v45 = vmul.f32 %v1772_v42, %v2079_v58  ;;  %v1308_v41 = vld [vmem:[%s2147_s12 + $0x1c] sm:$0x7] }
 0x264   : > { %v888_v44 = vmul.f32 %v1774_v43, %v2081_v59  ;;  %1655 = vmatpush3.bf16.msra.mxu1 %v1142_v16  ;;  %1656 = vmatprep.mubr.msk.bf16.mxu1 %vm1852_vm0, %v1851_v24 }
 0x265   : > { %1666 = vmatprep.subr.bf16.mxu1 %v1851_v24  ;;  %v900_v47 = vpack.c.bf16 %v890_v45, %v890_v45 }
 0x266   : > { %v899_v46 = vpack.c.bf16 %v888_v44, %v888_v44 }
 0x268   : > { %1651 = vmatmul.mubr.msk.bf16.vlgmr.msra.gmra.mrb[24].mxu0 %vm903_vm4, %v899_v46 }
 0x269   : > { %1661 = vmatpush3.bf16.msra.mxu0 %v1188_v18  ;;  %1662 = vmatprep.mubr.msk.bf16.mxu0 %vm1852_vm0, %v1851_v24 }
 0x26a   : > { %v1776_v48 = vpop.eup %1775 }
 0x26b   : > { %v1778_v49 = vpop.eup %1777  ;;  %1657 = vmatmul.mubr.msk.bf16.vlgmr.msra.gmra.mrb[24].mxu1 %vm903_vm4, %v900_v47  ;;  %v894_v51 = vmul.f32 %v1776_v48, %v2088_v62  ;;  %v1290_v62 = vld [vmem:[%s2147_s12 + $0x4] sm:$0x7] }
 0x26c   : > { %v892_v50 = vmul.f32 %v1778_v49, %v2090_v63  ;;  %1667 = vmatpush3.bf16.msra.mxu1 %v1234_v20  ;;  %1668 = vmatprep.mubr.msk.bf16.mxu1 %vm1852_vm0, %v1851_v24  ;;  %v1287_v24 = vld [vmem:[%s2147_s12] sm:$0x7] }
 0x26d   : > { %v902_v53 = vpack.c.bf16 %v894_v51, %v894_v51 }
 0x26e   : > { %v901_v52 = vpack.c.bf16 %v892_v50, %v892_v50 }
 0x270   : > { %1663 = vmatmul.mubr.msk.bf16.vlgmr.msra.gmra.mrb[28].mxu0 %vm903_vm4, %v901_v52 }
 0x273   : > { %1669 = vmatmul.mubr.msk.bf16.vlgmr.msra.gmra.mrb[28].mxu1 %vm903_vm4, %v902_v53 }
 0x32a   : > { %v948_v54 = vpop.f32.mrb[16].mxu0 }
 0x32b   : > { %v1276_v56 = vpack.c.bf16 %v948_v54, %v948_v54  ;;  %v1628_v57 = vpop.f32.mrb[17].mxu0 }
 0x32c   : > { %v951_v58 = vpop.f32.mrb[18].mxu0 }
 0x32d   : > { %v1288_v59 = vsel %vm2142_vm6, %v1276_v56, %v1287_v24  ;;  %v1629_v60 = vpop.f32.mrb[19].mxu0 }
 0x32e   : > { %1289 = vst [vmem:[%s2147_s12] sm:$0x7] %v1288_v59  ;;  %v994_v61 = vpop.f32.mrb[16].mxu1 }
 0x32f   : > { %v1277_v63 = vpack.c.bf16 %v994_v61, %v994_v61  ;;  %v1634_v0 = vpop.f32.mrb[17].mxu1 }
 0x330   : > { %v997_v1 = vpop.f32.mrb[18].mxu1 }
 0x331   : > { %v1291_v2 = vsel %vm2142_vm6, %v1277_v63, %v1290_v62  ;;  %v1635_v3 = vpop.f32.mrb[19].mxu1 }
 0x332   : > { %1292 = vst [vmem:[%s2147_s12 + $0x4] sm:$0x7] %v1291_v2  ;;  %v1040_v4 = vpop.f32.mrb[20].mxu0 }
 0x333   : > { %v1278_v6 = vpack.c.bf16 %v1040_v4, %v1040_v4  ;;  %v1640_v7 = vpop.f32.mrb[21].mxu0 }
 0x334   : > { %v1043_v8 = vpop.f32.mrb[22].mxu0 }
 0x335   : > { %v1294_v9 = vsel %vm2142_vm6, %v1278_v6, %v1293_v5  ;;  %v1641_v10 = vpop.f32.mrb[23].mxu0  ;;  %v1338_v47 = vld [vmem:[%s2147_s12] sm:$0xf] (%p1972_p12) }
 0x336   : > { %1295 = vst [vmem:[%s2147_s12 + $0x8] sm:$0x7] %v1294_v9  ;;  %v1086_v11 = vpop.f32.mrb[20].mxu1  ;;  %1339 = vst [vmem:[%s1322_s5] sm:$0xf] (%p1972_p12), %v1338_v47 }
 0x337   : > { %v1279_v13 = vpack.c.bf16 %v1086_v11, %v1086_v11  ;;  %v1646_v14 = vpop.f32.mrb[21].mxu1 }
 0x338   : > { %v1089_v15 = vpop.f32.mrb[22].mxu1 }
 0x339   : > { %v1297_v16 = vsel %vm2142_vm6, %v1279_v13, %v1296_v12  ;;  %v1647_v17 = vpop.f32.mrb[23].mxu1  ;;  %v1340_v48 = vld [vmem:[%s2147_s12 + $0x4] sm:$0xf] (%p1972_p12) }
 0x33a   : > { %1298 = vst [vmem:[%s2147_s12 + $0xc] sm:$0x7] %v1297_v16  ;;  %1341 = vst [vmem:[%s1322_s5 + $0x8] sm:$0xf] (%p1972_p12), %v1340_v48 }
 0x33b   : > { %v1132_v18 = vpop.f32.mrb[24].mxu0 }
 0x33c   : > { %v1280_v20 = vpack.c.bf16 %v1132_v18, %v1132_v18  ;;  %v1652_v21 = vpop.f32.mrb[25].mxu0 }
 0x33d   : > { %v1135_v22 = vpop.f32.mrb[26].mxu0  ;;  %v1342_v49 = vld [vmem:[%s2147_s12 + $0x8] sm:$0xf] (%p1972_p12) }
 0x33e   : > { %v1300_v23 = vsel %vm2142_vm6, %v1280_v20, %v1299_v19  ;;  %v1653_v25 = vpop.f32.mrb[27].mxu0  ;;  %v1178_v26 = vpop.f32.mrb[24].mxu1  ;;  %1343 = vst [vmem:[%s1322_s5 + $0x10] sm:$0xf] (%p1972_p12), %v1342_v49 }
 0x33f   : > { %1301 = vst [vmem:[%s2147_s12 + $0x10] sm:$0x7] %v1300_v23  ;;  %v1281_v28 = vpack.c.bf16 %v1178_v26, %v1178_v26  ;;  %v1658_v29 = vpop.f32.mrb[25].mxu1 }
 0x340   : > { %v1181_v30 = vpop.f32.mrb[26].mxu1 }
 0x341   : > { %v1303_v31 = vsel %vm2142_vm6, %v1281_v28, %v1302_v27  ;;  %v1659_v32 = vpop.f32.mrb[27].mxu1  ;;  %v1344_v50 = vld [vmem:[%s2147_s12 + $0xc] sm:$0xf] (%p1972_p12) }
 0x342   : > { %1304 = vst [vmem:[%s2147_s12 + $0x14] sm:$0x7] %v1303_v31  ;;  %1345 = vst [vmem:[%s1322_s5 + $0x18] sm:$0xf] (%p1972_p12), %v1344_v50 }
 0x343   : > { %v1224_v33 = vpop.f32.mrb[28].mxu0 }
 0x344   : > { %v1282_v35 = vpack.c.bf16 %v1224_v33, %v1224_v33  ;;  %v1664_v36 = vpop.f32.mrb[29].mxu0  ;;  %1317 = sbr.rel (!%p1972_p12) target bundleno = 851 (0x353), region = 159 }
 0x345   : > { %v1227_v37 = vpop.f32.mrb[30].mxu0 }
 0x346   : > { %v1306_v38 = vsel %vm2142_vm6, %v1282_v35, %v1305_v34  ;;  %v1665_v39 = vpop.f32.mrb[31].mxu0  ;;  %v1270_v40 = vpop.f32.mrb[28].mxu1  ;;  %v1346_v51 = vld [vmem:[%s2147_s12 + $0x10] sm:$0xf] (%p1972_p12) }
 0x347   : > { %1307 = vst [vmem:[%s2147_s12 + $0x18] sm:$0x7] %v1306_v38  ;;  %v1283_v42 = vpack.c.bf16 %v1270_v40, %v1270_v40  ;;  %v1670_v43 = vpop.f32.mrb[29].mxu1  ;;  %1347 = vst [vmem:[%s1322_s5 + $0x20] sm:$0xf] (%p1972_p12), %v1346_v51 }
 0x348   : > { %v1273_v44 = vpop.f32.mrb[30].mxu1 }
 0x349   : > { %v1309_v45 = vsel %vm2142_vm6, %v1283_v42, %v1308_v41  ;;  %v1671_v46 = vpop.f32.mrb[31].mxu1  ;;  %v1348_v52 = vld [vmem:[%s2147_s12 + $0x14] sm:$0xf] (%p1972_p12) }
 0x34a   : > { %1310 = vst [vmem:[%s2147_s12 + $0x1c] sm:$0x7] %v1309_v45  ;;  %1349 = vst [vmem:[%s1322_s5 + $0x28] sm:$0xf] (%p1972_p12), %v1348_v52 }
 0x34e   : > { %v1350_v53 = vld [vmem:[%s2147_s12 + $0x18] sm:$0xf] }
 0x34f   : > { %1351 = vst [vmem:[%s1322_s5 + $0x30] sm:$0xf] %v1350_v53 }
 0x351   : > { %v1352_v54 = vld [vmem:[%s2147_s12 + $0x1c] sm:$0xf] }
 0x352   : > { %1353 = vst [vmem:[%s1322_s5 + $0x38] sm:$0xf] %v1352_v54 }
 0x353 PF: > { %s13_s20 = sadd.s32 1, %s1849_s20   ;;  %s2232_s12 = smov %s1821_s13 }
 0x354   : > { %p10_p3 = scmp.ge.s32.totalorder %s13_s20, 4   ;;  %s2233_s13 = smov %s1961_s10 }
 0x355   : > { %s2234_s14 = smov %s1829_s15  ;;  %s2235_s15 = smov %s1945_s4 }
 0x356   : > { %s2236_s16 = smov %s1837_s17  ;;  %s2237_s17 = smov %s1942_s30 }
 0x357   : > { %s2238_s18 = smov %s1845_s19  ;;  %s2239_s19 = smov %s2241_s22 }
 0x358   :  { %12 = sbr.rel (!%p10_p3) target bundleno = 5 (0x5), region = 247 }

// kernel: encoder_cam_forward.22
= control target key start
LH: loop header
LB: loop body
LE: loop exit
PB: predicated region body
PF: predicated region fallthrough
CT: control target
= control target key end

     0   :  { %s1927_s0 = inlined_call_operand.vmem [shape: bf16[40,256], index: 0, kind: input, shape index: {}]   ;;  %s1928_s1 = inlined_call_operand.vmem [shape: bf16[256,768], index: 1, kind: input, shape index: {}]   ;;  %s1929_s3 = inlined_call_operand.vmem [shape: f32[1,256], index: 3, kind: input, shape index: {}]   ;;  %s1930_s4 = inlined_call_operand.vmem [shape: f32[1,256], index: 4, kind: input, shape index: {}]   ;;  %s1931_s2 = inlined_call_operand.vmem [shape: f32[1,768], index: 2, kind: input, shape index: {}]   ;;  %s1932_s5 = inlined_call_operand.vmem [shape: bf16[40,768], index: 5, kind: output, shape index: {}]  }
   0x1   :  { %v1417_v0 = vld [vmem:[%s1927_s0] sm:$0xff]  ;;  %v1422_v1 = vld [vmem:[%s1927_s0 + $0x10] sm:$0xff]  ;;  %v1427_v2 = vld [vmem:[%s1927_s0 + $0x8] sm:$0xff] }
   0x2   :  { %v25_v3 = vunpack.c.l.bf16 %v1417_v0  ;;  %v26_v4 = vunpack.c.h.bf16 %v1417_v0  ;;  %v29_v5 = vunpack.c.l.bf16 %v1422_v1  ;;  %v30_v6 = vunpack.c.h.bf16 %v1422_v1  ;;  %v1436_v7 = vld [vmem:[%s1927_s0 + $0x18] sm:$0xff]  ;;  %v1445_v12 = vld [vmem:[%s1927_s0 + $0x20] sm:$0xff]  ;;  %v1236_v24 = vld [vmem:[%s1928_s1 + $0x34] ss:$24 sps:$4 sm:$0xff]  }
   0x3   :  { %v27_v8 = vunpack.c.l.bf16 %v1427_v2  ;;  %v28_v9 = vunpack.c.h.bf16 %v1427_v2  ;;  %v31_v10 = vunpack.c.l.bf16 %v1436_v7  ;;  %v32_v11 = vunpack.c.h.bf16 %v1436_v7  ;;  %v1230_v20 = vld [vmem:[%s1928_s1 + $0x4] ss:$24 sps:$4 sm:$0xff]   ;;  %v1234_v22 = vld [vmem:[%s1928_s1] ss:$24 sps:$4 sm:$0xff]   ;;  %v1240_v26 = vld [vmem:[%s1928_s1 + $0x30] ss:$24 sps:$4 sm:$0xff]  }
   0x4   :  { %v35_v13 = vadd.f32 %v26_v4, %v25_v3  ;;  %v41_v14 = vadd.f32 %v30_v6, %v29_v5  ;;  %v33_v17 = vunpack.c.l.bf16 %v1445_v12  ;;  %v34_v18 = vunpack.c.h.bf16 %v1445_v12  ;;  %v1232_v21 = vld [vmem:[%s1928_s1 + $0xc] ss:$24 sps:$4 sm:$0xff]   ;;  %774 = vmatprep.subr.bf16.mxu0 %v1230_v20  ;;  %v1235_v23 = vld [vmem:[%s1928_s1 + $0x8] ss:$24 sps:$4 sm:$0xff]   ;;  %v1238_v25 = vld [vmem:[%s1928_s1 + $0x3c] ss:$24 sps:$4 sm:$0xff]  }
   0x5   :  { %v38_v15 = vadd.f32 %v28_v9, %v27_v8  ;;  %v44_v16 = vadd.f32 %v32_v11, %v31_v10  ;;  %835 = vmatprep.subr.bf16.mxu1 %v1232_v21  ;;  %775 = vmatpush1.bf16.msra.mxu0 %v1234_v22  ;;  %v1241_v27 = vld [vmem:[%s1928_s1 + $0x38] ss:$24 sps:$4 sm:$0xff]   ;;  %v1242_v28 = vld [vmem:[%s1928_s1 + $0x64] ss:$24 sps:$4 sm:$0xff]   ;;  %v1247_v31 = vld [vmem:[%s1928_s1 + $0x68] ss:$24 sps:$4 sm:$0xff]  }
   0x6   :  { %36 = vadd.xlane.f32.xlu0 %v35_v13  ;;  %42 = vadd.xlane.f32.xlu1 %v41_v14  ;;  %v47_v19 = vadd.f32 %v34_v18, %v33_v17  ;;  %v1244_v29 = vld [vmem:[%s1928_s1 + $0x6c] ss:$24 sps:$4 sm:$0xff]   ;;  %v1246_v30 = vld [vmem:[%s1928_s1 + $0x60] ss:$24 sps:$4 sm:$0xff]   ;;  %v1250_v33 = vld [vmem:[%s1928_s1 + $0x9c] ss:$24 sps:$4 sm:$0xff]  }
   0x7   :  { %836 = vmatpush1.bf16.msra.mxu1 %v1235_v23  ;;  %776 = vmatprep.subr.bf16.mxu0 %v1236_v24  ;;  %v1248_v32 = vld [vmem:[%s1928_s1 + $0x94] ss:$24 sps:$4 sm:$0xff]   ;;  %v1252_v34 = vld [vmem:[%s1928_s1 + $0x90] ss:$24 sps:$4 sm:$0xff]   ;;  %v1254_v36 = vld [vmem:[%s1928_s1 + $0xc4] ss:$24 sps:$4 sm:$0xff]  }
   0x8   :  { %837 = vmatprep.subr.bf16.mxu1 %v1238_v25  ;;  %v1253_v35 = vld [vmem:[%s1928_s1 + $0x98] ss:$24 sps:$4 sm:$0xff]   ;;  %v1256_v37 = vld [vmem:[%s1928_s1 + $0xcc] ss:$24 sps:$4 sm:$0xff]   ;;  %v1259_v39 = vld [vmem:[%s1928_s1 + $0xc8] ss:$24 sps:$4 sm:$0xff]  }
   0x9   :  { %777 = vmatpush1.bf16.msra.mxu0 %v1240_v26  ;;  %v1258_v38 = vld [vmem:[%s1928_s1 + $0xc0] ss:$24 sps:$4 sm:$0xff]   ;;  %v1260_v40 = vld [vmem:[%s1928_s1 + $0xf4] ss:$24 sps:$4 sm:$0xff]   ;;  %v1264_v42 = vld [vmem:[%s1928_s1 + $0xf0] ss:$24 sps:$4 sm:$0xff]  }
   0xa   :  { %39 = vadd.xlane.f32.xlu0 %v38_v15  ;;  %45 = vadd.xlane.f32.xlu1 %v44_v16  ;;  %v1262_v41 = vld [vmem:[%s1928_s1 + $0xfc] ss:$24 sps:$4 sm:$0xff]   ;;  %v1265_v43 = vld [vmem:[%s1928_s1 + $0xf8] ss:$24 sps:$4 sm:$0xff]   ;;  %v1268_v45 = vld [vmem:[%s1928_s1 + $0x12c] ss:$24 sps:$4 sm:$0xff]  }
   0xb   :  { %838 = vmatpush1.bf16.msra.mxu1 %v1241_v27  ;;  %778 = vmatprep.subr.bf16.mxu0 %v1242_v28  ;;  %v1266_v44 = vld [vmem:[%s1928_s1 + $0x124] ss:$24 sps:$4 sm:$0xff]   ;;  %v1270_v46 = vld [vmem:[%s1928_s1 + $0x120] ss:$24 sps:$4 sm:$0xff]   ;;  %v1272_v48 = vld [vmem:[%s1928_s1 + $0x154] ss:$24 sps:$4 sm:$0xff]  }
   0xc   :  { %839 = vmatprep.subr.bf16.mxu1 %v1244_v29  ;;  %v1271_v47 = vld [vmem:[%s1928_s1 + $0x128] ss:$24 sps:$4 sm:$0xff]   ;;  %v1274_v49 = vld [vmem:[%s1928_s1 + $0x15c] ss:$24 sps:$4 sm:$0xff]   ;;  %v1277_v51 = vld [vmem:[%s1928_s1 + $0x158] ss:$24 sps:$4 sm:$0xff]  }
   0xd   :  { %779 = vmatpush1.bf16.msra.mxu0 %v1246_v30  ;;  %v1276_v50 = vld [vmem:[%s1928_s1 + $0x150] ss:$24 sps:$4 sm:$0xff]   ;;  %v1278_v52 = vld [vmem:[%s1928_s1 + $0x184] ss:$24 sps:$4 sm:$0xff]   ;;  %v1282_v54 = vld [vmem:[%s1928_s1 + $0x180] ss:$24 sps:$4 sm:$0xff]  }
   0xe   :  { %48 = vadd.xlane.f32.xlu0 %v47_v19  ;;  %780 = vmatprep.subr.bf16.mxu0 %v1248_v32  ;;  %v1280_v53 = vld [vmem:[%s1928_s1 + $0x18c] ss:$24 sps:$4 sm:$0xff]   ;;  %v1283_v55 = vld [vmem:[%s1928_s1 + $0x188] ss:$24 sps:$4 sm:$0xff]   ;;  %v1286_v57 = vld [vmem:[%s1928_s1 + $0x1bc] ss:$24 sps:$4 sm:$0xff]  }
   0xf   :  { %840 = vmatpush1.bf16.msra.mxu1 %v1247_v31  ;;  %v1284_v56 = vld [vmem:[%s1928_s1 + $0x1b4] ss:$24 sps:$4 sm:$0xff]   ;;  %v1289_v12 = vld [vmem:[%s1928_s1 + $0x1b8] ss:$24 sps:$4 sm:$0xff]  }
  0x10   :  { %841 = vmatprep.subr.bf16.mxu1 %v1250_v33  ;;  %v1292_v32 = vld [vmem:[%s1928_s1 + $0x1ec] ss:$24 sps:$4 sm:$0xff]   ;;  %v1294_v33 = vld [vmem:[%s1928_s1 + $0x1e0] ss:$24 sps:$4 sm:$0xff]  }
  0x11   :  { %781 = vmatpush1.bf16.msra.mxu0 %v1252_v34  ;;  %v1295_v34 = vld [vmem:[%s1928_s1 + $0x1e8] ss:$24 sps:$4 sm:$0xff]  }
  0x12   :  { %782 = vmatprep.subr.bf16.mxu0 %v1254_v36  ;;  %v1298_v36 = vld [vmem:[%s1928_s1 + $0x21c] ss:$24 sps:$4 sm:$0xff]  }
  0x13   :  { %842 = vmatpush1.bf16.msra.mxu1 %v1253_v35  ;;  %v1296_v35 = vld [vmem:[%s1928_s1 + $0x214] ss:$24 sps:$4 sm:$0xff]  }
  0x14   :  { %843 = vmatprep.subr.bf16.mxu1 %v1256_v37  ;;  %v1300_v37 = vld [vmem:[%s1928_s1 + $0x210] ss:$24 sps:$4 sm:$0xff]  }
  0x15   :  { %783 = vmatpush1.bf16.msra.mxu0 %v1258_v38  ;;  %v1301_v38 = vld [vmem:[%s1928_s1 + $0x218] ss:$24 sps:$4 sm:$0xff]  }
  0x16   :  { %784 = vmatprep.subr.bf16.mxu0 %v1260_v40  ;;  %v1304_v40 = vld [vmem:[%s1928_s1 + $0x24c] ss:$24 sps:$4 sm:$0xff]  }
  0x17   :  { %844 = vmatpush1.bf16.msra.mxu1 %v1259_v39  ;;  %v1302_v39 = vld [vmem:[%s1928_s1 + $0x244] ss:$24 sps:$4 sm:$0xff]  }
  0x18   :  { %845 = vmatprep.subr.bf16.mxu1 %v1262_v41  ;;  %v1306_v41 = vld [vmem:[%s1928_s1 + $0x240] ss:$24 sps:$4 sm:$0xff]  }
  0x19   :  { %785 = vmatpush1.bf16.msra.mxu0 %v1264_v42  ;;  %v1307_v42 = vld [vmem:[%s1928_s1 + $0x248] ss:$24 sps:$4 sm:$0xff]  }
  0x1a   :  { %786 = vmatprep.subr.bf16.mxu0 %v1266_v44  ;;  %v1310_v44 = vld [vmem:[%s1928_s1 + $0x27c] ss:$24 sps:$4 sm:$0xff]  }
  0x1b   :  { %846 = vmatpush1.bf16.msra.mxu1 %v1265_v43  ;;  %v1308_v43 = vld [vmem:[%s1928_s1 + $0x274] ss:$24 sps:$4 sm:$0xff]  }
  0x1c   :  { %847 = vmatprep.subr.bf16.mxu1 %v1268_v45  ;;  %v1312_v45 = vld [vmem:[%s1928_s1 + $0x270] ss:$24 sps:$4 sm:$0xff]  }
  0x1d   :  { %787 = vmatpush1.bf16.msra.mxu0 %v1270_v46  ;;  %v1313_v46 = vld [vmem:[%s1928_s1 + $0x278] ss:$24 sps:$4 sm:$0xff]  }
  0x1e   :  { %788 = vmatprep.subr.bf16.mxu0 %v1272_v48  ;;  %v1316_v48 = vld [vmem:[%s1928_s1 + $0x2ac] ss:$24 sps:$4 sm:$0xff]  }
  0x1f   :  { %848 = vmatpush1.bf16.msra.mxu1 %v1271_v47  ;;  %v1314_v47 = vld [vmem:[%s1928_s1 + $0x2a4] ss:$24 sps:$4 sm:$0xff]  }
  0x20   :  { %849 = vmatprep.subr.bf16.mxu1 %v1274_v49  ;;  %v1318_v49 = vld [vmem:[%s1928_s1 + $0x2a0] ss:$24 sps:$4 sm:$0xff]  }
  0x21   :  { %789 = vmatpush1.bf16.msra.mxu0 %v1276_v50  ;;  %v1319_v50 = vld [vmem:[%s1928_s1 + $0x2a8] ss:$24 sps:$4 sm:$0xff]  }
  0x22   :  { %790 = vmatprep.subr.bf16.mxu0 %v1278_v52  ;;  %v1322_v52 = vld [vmem:[%s1928_s1 + $0x2dc] ss:$24 sps:$4 sm:$0xff]  }
  0x23   :  { %850 = vmatpush1.bf16.msra.mxu1 %v1277_v51  ;;  %v1320_v51 = vld [vmem:[%s1928_s1 + $0x2d4] ss:$24 sps:$4 sm:$0xff]  }
  0x24   :  { %851 = vmatprep.subr.bf16.mxu1 %v1280_v53  ;;  %v1324_v53 = vld [vmem:[%s1928_s1 + $0x2d0] ss:$24 sps:$4 sm:$0xff]  }
  0x25   :  { %791 = vmatpush1.bf16.msra.mxu0 %v1282_v54  ;;  %v1325_v54 = vld [vmem:[%s1928_s1 + $0x2d8] ss:$24 sps:$4 sm:$0xff]  }
  0x26   :  { %792 = vmatprep.subr.bf16.mxu0 %v1284_v56 }
  0x27   :  { %852 = vmatpush1.bf16.msra.mxu1 %v1283_v55  ;;  %v1328_v55 = vld [vmem:[%s1928_s1 + $0x14] ss:$24 sps:$4 sm:$0xff]  }
  0x28   :  { %853 = vmatprep.subr.bf16.mxu1 %v1286_v57 }
  0x2b   :  { %854 = vmatpush1.bf16.msra.mxu1 %v1289_v12 }
  0x2c   :  { %855 = vmatprep.subr.bf16.mxu1 %v1292_v32 }
  0x2f   :  { %856 = vmatpush1.bf16.msra.mxu1 %v1295_v34 }
  0x30   :  { %857 = vmatprep.subr.bf16.mxu1 %v1298_v36 }
  0x33   :  { %858 = vmatpush1.bf16.msra.mxu1 %v1301_v38 }
  0x34   :  { %859 = vmatprep.subr.bf16.mxu1 %v1304_v40 }
  0x37   :  { %860 = vmatpush1.bf16.msra.mxu1 %v1307_v42 }
  0x38   :  { %861 = vmatprep.subr.bf16.mxu1 %v1310_v44 }
  0x3b   :  { %862 = vmatpush1.bf16.msra.mxu1 %v1313_v46 }
  0x3c   :  { %863 = vmatprep.subr.bf16.mxu1 %v1316_v48 }
  0x3f   :  { %864 = vmatpush1.bf16.msra.mxu1 %v1319_v50 }
  0x40   :  { %865 = vmatprep.subr.bf16.mxu1 %v1322_v52  ;;  %v1329_v52 = vld [vmem:[%s1928_s1 + $0x40] ss:$24 sps:$4 sm:$0xff]  }
  0x43   :  { %866 = vmatpush1.bf16.msra.mxu1 %v1325_v54 }
  0x44   :  { %1198 = vmatprep.subr.bf16.mxu1 %v1328_v55 }
  0x93   :  { %v37_v58 = vpop.xlane.xlu0 %36  ;;  %v43_v59 = vpop.xlane.xlu1 %42 }
  0x94   :  { %v51_v60 = vmul.f32 0.00390625, %v37_v58  ;;  %v53_v61 = vmul.f32 0.00390625, %v43_v59  ;;  %v118_v58 = vlaneseq }
  0x96   :  { %v1585_v62 = vsub.f32 %v25_v3, %v51_v60  ;;  %v1589_v63 = vsub.f32 %v26_v4, %v51_v60  ;;  %v1593_v13 = vsub.f32 %v29_v5, %v53_v61  ;;  %v1597_v14 = vsub.f32 %v30_v6, %v53_v61 }
  0x97   :  { %v40_v15 = vpop.xlane.xlu0 %39  ;;  %v46_v16 = vpop.xlane.xlu1 %45 }
  0x98   :  { %v52_v19 = vmul.f32 0.00390625, %v40_v15  ;;  %v54_v20 = vmul.f32 0.00390625, %v46_v16  ;;  %v66_v3 = vmul.f32 %v1585_v62, %v1585_v62  ;;  %v67_v0 = vmul.f32 %v1589_v63, %v1589_v63 }
  0x99   :  { %v70_v4 = vmul.f32 %v1593_v13, %v1593_v13  ;;  %v71_v5 = vmul.f32 %v1597_v14, %v1597_v14 }
  0x9a   :  { %v1609_v1 = vsub.f32 %v27_v8, %v52_v19  ;;  %v1613_v6 = vsub.f32 %v28_v9, %v52_v19  ;;  %v1617_v21 = vsub.f32 %v31_v10, %v54_v20  ;;  %v1621_v22 = vsub.f32 %v32_v11, %v54_v20 }
  0x9b   :  { %v49_v23 = vpop.xlane.xlu0 %48  ;;  %v76_v24 = vadd.f32 %v67_v0, %v66_v3  ;;  %v82_v9 = vadd.f32 %v71_v5, %v70_v4  ;;  %v1724_v20 = vshrl.u32 %v118_v58, 7  ;;  %v1332_v58 = vld [vmem:[%s1928_s1 + $0x70] ss:$24 sps:$4 sm:$0xff]  }
  0x9c   :  { %v55_v25 = vmul.f32 0.00390625, %v49_v23  ;;  %v68_v26 = vmul.f32 %v1609_v1, %v1609_v1  ;;  %v69_v8 = vmul.f32 %v1613_v6, %v1613_v6  ;;  %v72_v2 = vmul.f32 %v1617_v21, %v1617_v21 }
  0x9d   :  { %77 = vadd.xlane.f32.xlu1 %v76_v24  ;;  %v73_v10 = vmul.f32 %v1621_v22, %v1621_v22 }
  0x9e   :  { %v1633_v7 = vsub.f32 %v33_v17, %v55_v25  ;;  %v1637_v11 = vsub.f32 %v34_v18, %v55_v25  ;;  %v79_v27 = vadd.f32 %v69_v8, %v68_v26  ;;  %v1288_v17 = vld [vmem:[%s1928_s1 + $0x1b0] ss:$24 sps:$4 sm:$0xff]   ;;  %v1290_v18 = vld [vmem:[%s1928_s1 + $0x1e4] ss:$24 sps:$4 sm:$0xff]   ;;  %v1727_v25 = vsub.s32 1, %v1724_v20 }
  0x9f   :  { %v85_v28 = vadd.f32 %v73_v10, %v72_v2  ;;  %793 = vmatpush1.bf16.msra.mxu0 %v1288_v17  ;;  %v1730_v26 = vsub.s32 0, %v1724_v20  ;;  %v116_v2 = vld [vmem:[%s1929_s3] sm:$0x3] }
  0xa0   :  { %80 = vadd.xlane.f32.xlu0 %v79_v27  ;;  %v74_v29 = vmul.f32 %v1633_v7, %v1633_v7  ;;  %v75_v30 = vmul.f32 %v1637_v11, %v1637_v11  ;;  %794 = vmatprep.subr.bf16.mxu0 %v1290_v18 }
  0xa1   :  { %83 = vadd.xlane.f32.xlu1 %v82_v9  ;;  %v125_v9 = vrot.slane %v116_v2, %v1727_v25  ;;  %v121_v10 = vrot.slane %v116_v2, %v1730_v26  ;;  %v1347_v2 = vld [vmem:[%s1928_s1 + $0x160] ss:$24 sps:$4 sm:$0xff]  }
  0xa2   :  { %v88_v31 = vadd.f32 %v75_v30, %v74_v29 }
  0xa3   :  { %795 = vmatpush1.bf16.msra.mxu0 %v1294_v33 }
  0xa4   :  { %86 = vadd.xlane.f32.xlu0 %v85_v28  ;;  %796 = vmatprep.subr.bf16.mxu0 %v1296_v35  ;;  %v138_v28 = vld [vmem:[%s1930_s4] sm:$0x3] }
  0xa5   :  { %89 = vadd.xlane.f32.xlu1 %v88_v31  ;;  %v147_v12 = vrot.slane %v138_v28, %v1727_v25  ;;  %v143_v32 = vrot.slane %v138_v28, %v1730_v26  ;;  %v1353_v28 = vld [vmem:[%s1928_s1 + $0x1c0] ss:$24 sps:$4 sm:$0xff]  }
  0xa7   :  { %797 = vmatpush1.bf16.msra.mxu0 %v1300_v37 }
  0xa8   :  { %798 = vmatprep.subr.bf16.mxu0 %v1302_v39 }
  0xab   :  { %799 = vmatpush1.bf16.msra.mxu0 %v1306_v41 }
  0xac   :  { %800 = vmatprep.subr.bf16.mxu0 %v1308_v43 }
  0xaf   :  { %801 = vmatpush1.bf16.msra.mxu0 %v1312_v45 }
  0xb0   :  { %802 = vmatprep.subr.bf16.mxu0 %v1314_v47 }
  0xb3   :  { %803 = vmatpush1.bf16.msra.mxu0 %v1318_v49  ;;  %v1331_v49 = vld [vmem:[%s1928_s1 + $0x44] ss:$24 sps:$4 sm:$0xff]  }
  0xb4   :  { %804 = vmatprep.subr.bf16.mxu0 %v1320_v51 }
  0xb7   :  { %805 = vmatpush1.bf16.msra.mxu0 %v1324_v53  ;;  %v1334_v53 = vld [vmem:[%s1928_s1 + $0x74] ss:$24 sps:$4 sm:$0xff]  }
  0xb8   :  { %896 = vmatprep.subr.bf16.mxu0 %v1328_v55 }
 0x12a   :  { %v78_v56 = vpop.xlane.xlu1 %77 }
 0x12b   :  { %v91_v57 = vmul.f32 0.00390625, %v78_v56 }
 0x12d   :  { %v96_v59 = vadd.f32 1e-05, %v91_v57  ;;  %v81_v60 = vpop.xlane.xlu0 %80 }
 0x12e   :  { %v84_v61 = vpop.xlane.xlu1 %83  ;;  %v92_v15 = vmul.f32 0.00390625, %v81_v60 }
 0x12f   :  { %1374 = vrsqrt.f32 %v96_v59  ;;  %v93_v16 = vmul.f32 0.00390625, %v84_v61  ;;  %v1337_v61 = vld [vmem:[%s1928_s1 + $0xa4] ss:$24 sps:$4 sm:$0xff]  }
 0x130   :  { %v97_v19 = vadd.f32 1e-05, %v92_v15  ;;  %v1335_v15 = vld [vmem:[%s1928_s1 + $0xa0] ss:$24 sps:$4 sm:$0xff]  }
 0x131   :  { %v98_v3 = vadd.f32 1e-05, %v93_v16  ;;  %v87_v0 = vpop.xlane.xlu0 %86  ;;  %v1340_v16 = vld [vmem:[%s1928_s1 + $0xd4] ss:$24 sps:$4 sm:$0xff]  }
 0x132   :  { %1376 = vrsqrt.f32 %v97_v19  ;;  %v90_v4 = vpop.xlane.xlu1 %89  ;;  %v94_v5 = vmul.f32 0.00390625, %v87_v0 }
 0x133   :  { %1378 = vrsqrt.f32 %v98_v3  ;;  %v95_v23 = vmul.f32 0.00390625, %v90_v4  ;;  %v1338_v3 = vld [vmem:[%s1928_s1 + $0xd0] ss:$24 sps:$4 sm:$0xff]   ;;  %v1343_v4 = vld [vmem:[%s1928_s1 + $0x104] ss:$24 sps:$4 sm:$0xff]  }
 0x134   :  { %v99_v24 = vadd.f32 1e-05, %v94_v5  ;;  %v1341_v5 = vld [vmem:[%s1928_s1 + $0x100] ss:$24 sps:$4 sm:$0xff]  }
 0x135   :  { %v100_v8 = vadd.f32 1e-05, %v95_v23  ;;  %v1346_v23 = vld [vmem:[%s1928_s1 + $0x134] ss:$24 sps:$4 sm:$0xff]  }
 0x136   :  { %1380 = vrsqrt.f32 %v99_v24  ;;  %v1344_v24 = vld [vmem:[%s1928_s1 + $0x130] ss:$24 sps:$4 sm:$0xff]  }
 0x137   :  { %1382 = vrsqrt.f32 %v100_v8  ;;  %v1349_v8 = vld [vmem:[%s1928_s1 + $0x164] ss:$24 sps:$4 sm:$0xff]  }
 0x139   :  { %v1375_v27 = vpop.eup %1374 }
 0x13a   :  { %v107_v29 = vmul.f32 %v1375_v27, %v1589_v63  ;;  %v106_v30 = vmul.f32 %v1375_v27, %v1585_v62  ;;  %v1355_v27 = vld [vmem:[%s1928_s1 + $0x1c4] ss:$24 sps:$4 sm:$0xff]  }
 0x13c   :  { %v1377_v31 = vpop.eup %1376  ;;  %v129_v17 = vmul.f32 %v125_v9, %v107_v29  ;;  %v128_v18 = vmul.f32 %v121_v10, %v106_v30  ;;  %v1358_v29 = vld [vmem:[%s1928_s1 + $0x1f4] ss:$24 sps:$4 sm:$0xff]   ;;  %v1356_v30 = vld [vmem:[%s1928_s1 + $0x1f0] ss:$24 sps:$4 sm:$0xff]  }
 0x13d   :  { %v1379_v33 = vpop.eup %1378  ;;  %v109_v34 = vmul.f32 %v1377_v31, %v1613_v6  ;;  %v108_v35 = vmul.f32 %v1377_v31, %v1609_v1  ;;  %v1361_v31 = vld [vmem:[%s1928_s1 + $0x224] ss:$24 sps:$4 sm:$0xff]  }
 0x13e   :  { %v111_v36 = vmul.f32 %v1379_v33, %v1597_v14  ;;  %v151_v63 = vadd.f32 %v147_v12, %v129_v17  ;;  %v150_v40 = vadd.f32 %v143_v32, %v128_v18  ;;  %v110_v46 = vmul.f32 %v1379_v33, %v1593_v13  ;;  %v1326_v14 = vld [vmem:[%s1928_s1 + $0x10] ss:$24 sps:$4 sm:$0xff]   ;;  %v1359_v17 = vld [vmem:[%s1928_s1 + $0x220] ss:$24 sps:$4 sm:$0xff]  }
 0x13f   :  { %v131_v37 = vmul.f32 %v125_v9, %v109_v34  ;;  %v130_v38 = vmul.f32 %v121_v10, %v108_v35  ;;  %v1362_v18 = vld [vmem:[%s1928_s1 + $0x250] ss:$24 sps:$4 sm:$0xff]   ;;  %v1365_v33 = vld [vmem:[%s1928_s1 + $0x280] ss:$24 sps:$4 sm:$0xff]   ;;  %v1370_v34 = vld [vmem:[%s1928_s1 + $0x2b4] ss:$24 sps:$4 sm:$0xff]  }
 0x140   :  { %v1381_v39 = vpop.eup %1380  ;;  %v133_v62 = vmul.f32 %v125_v9, %v111_v36  ;;  %v132_v13 = vmul.f32 %v121_v10, %v110_v46  ;;  %v1368_v35 = vld [vmem:[%s1928_s1 + $0x2b0] ss:$24 sps:$4 sm:$0xff]   ;;  %v1373_v36 = vld [vmem:[%s1928_s1 + $0x2e4] ss:$24 sps:$4 sm:$0xff]  }
 0x141   :  { %v1383_v41 = vpop.eup %1382  ;;  %v153_v42 = vadd.f32 %v147_v12, %v131_v37  ;;  %v152_v43 = vadd.f32 %v143_v32, %v130_v38  ;;  %v113_v44 = vmul.f32 %v1381_v39, %v1621_v22  ;;  %v112_v45 = vmul.f32 %v1381_v39, %v1617_v21  ;;  %v1371_v37 = vld [vmem:[%s1928_s1 + $0x2e0] ss:$24 sps:$4 sm:$0xff]  }
 0x142   :  { %v115_v6 = vmul.f32 %v1383_v41, %v1637_v11  ;;  %v155_v21 = vadd.f32 %v147_v12, %v133_v62  ;;  %v114_v55 = vmul.f32 %v1383_v41, %v1633_v7  ;;  %v154_v56 = vadd.f32 %v143_v32, %v132_v13  ;;  %v1869_v39 = vld [vmem:[%s1931_s2] sm:$0x3f] }
 0x143   :  { %v161_v1 = vpack.c.bf16 %v153_v42, %v151_v63  ;;  %v1754_v47 = vpack.c.bf16 %v152_v43, %v150_v40  ;;  %v135_v48 = vmul.f32 %v125_v9, %v113_v44  ;;  %v134_v50 = vmul.f32 %v121_v10, %v112_v45 }
 0x144   :  { %v137_v11 = vmul.f32 %v125_v9, %v115_v6  ;;  %v136_v60 = vmul.f32 %v121_v10, %v114_v55  ;;  %v1352_v9 = vld [vmem:[%s1928_s1 + $0x194] ss:$24 sps:$4 sm:$0xff]   ;;  %v1350_v10 = vld [vmem:[%s1928_s1 + $0x190] ss:$24 sps:$4 sm:$0xff]   ;;  %v274_v38 = vsub.s32 2, %v1724_v20  ;;  %v278_v63 = vsub.s32 3, %v1724_v20 }
 0x145   :  { %806 = vmatprep.mubr.bf16.mxu0 %v161_v1  ;;  %867 = vmatprep.mubr.bf16.mxu1 %v161_v1  ;;  %v157_v22 = vadd.f32 %v147_v12, %v135_v48  ;;  %v156_v54 = vadd.f32 %v143_v32, %v134_v50  ;;  %v267_v40 = vrot.slane %v1869_v39, %v1730_v26 }
 0x146   :  { %807 = vmatmul.mubr.bf16.vlgmr.msra.gmra.mrb[0].mxu0 %v1754_v47  ;;  %868 = vmatmul.mubr.bf16.vlgmr.msra.gmra.mrb[0].mxu1 %v1754_v47  ;;  %v159_v57 = vadd.f32 %v147_v12, %v137_v11  ;;  %v158_v19 = vadd.f32 %v143_v32, %v136_v60  ;;  %v1364_v12 = vld [vmem:[%s1928_s1 + $0x254] ss:$24 sps:$4 sm:$0xff]   ;;  %v1367_v32 = vld [vmem:[%s1928_s1 + $0x284] ss:$24 sps:$4 sm:$0xff]   ;;  %v275_v62 = vrot.slane %v1869_v39, %v274_v38 }
 0x147   :  { %897 = vmatpush1.bf16.msra.mxu0 %v1326_v14  ;;  %1214 = vmatpush1.bf16.msra.mxu1 %v1326_v14  ;;  %v163_v51 = vpack.c.bf16 %v157_v22, %v155_v21  ;;  %v1771_v59 = vpack.c.bf16 %v156_v54, %v154_v56  ;;  %v271_v41 = vrot.slane %v1869_v39, %v1727_v25 }
 0x148   :  { %898 = vmatprep.subr.bf16.mxu0 %v1331_v49  ;;  %1199 = vmatprep.subr.bf16.mxu1 %v1331_v49  ;;  %v1778_v7 = vpack.c.bf16 %v159_v57, %v159_v57  ;;  %v1791_v0 = vpack.c.bf16 %v158_v19, %v158_v19  ;;  %v279_v42 = vrot.slane %v1869_v39, %v278_v63 }
 0x149   :  { %816 = vmatprep.mubr.bf16.mxu0 %v163_v51  ;;  %877 = vmatprep.mubr.bf16.mxu1 %v163_v51 }
 0x14b   :  { %899 = vmatpush1.bf16.msra.mxu0 %v1329_v52  ;;  %1215 = vmatpush1.bf16.msra.mxu1 %v1329_v52 }
 0x14c   :  { %900 = vmatprep.subr.bf16.mxu0 %v1334_v53  ;;  %1200 = vmatprep.subr.bf16.mxu1 %v1334_v53 }
 0x14e   :  { %817 = vmatmul.mubr.bf16.gmra.mrb[4].mxu0 %v1771_v59  ;;  %878 = vmatmul.mubr.bf16.gmra.mrb[4].mxu1 %v1771_v59 }
 0x14f   :  { %901 = vmatpush1.bf16.msra.mxu0 %v1332_v58  ;;  %1216 = vmatpush1.bf16.msra.mxu1 %v1332_v58 }
 0x150   :  { %826 = vmatprep.mubr.bf16.mxu0 %v1778_v7  ;;  %887 = vmatprep.mubr.bf16.mxu1 %v1778_v7 }
 0x151   :  { %902 = vmatprep.subr.bf16.mxu0 %v1337_v61  ;;  %1201 = vmatprep.subr.bf16.mxu1 %v1337_v61 }
 0x153   :  { %903 = vmatpush1.bf16.msra.mxu0 %v1335_v15  ;;  %1217 = vmatpush1.bf16.msra.mxu1 %v1335_v15 }
 0x154   :  { %904 = vmatprep.subr.bf16.mxu0 %v1340_v16  ;;  %1202 = vmatprep.subr.bf16.mxu1 %v1340_v16 }
 0x156   :  { %827 = vmatmul.mubr.bf16.gmra.mrb[8].mxu0 %v1791_v0  ;;  %888 = vmatmul.mubr.bf16.gmra.mrb[8].mxu1 %v1791_v0 }
 0x157   :  { %905 = vmatpush1.bf16.msra.mxu0 %v1338_v3  ;;  %1218 = vmatpush1.bf16.msra.mxu1 %v1338_v3 }
 0x158   :  { %928 = vmatprep.mubr.bf16.mxu0 %v161_v1  ;;  %938 = vmatprep.mubr.bf16.mxu1 %v163_v51 }
 0x159   :  { %906 = vmatprep.subr.bf16.mxu0 %v1343_v4  ;;  %1203 = vmatprep.subr.bf16.mxu1 %v1343_v4 }
 0x15b   :  { %907 = vmatpush1.bf16.msra.mxu0 %v1341_v5  ;;  %1219 = vmatpush1.bf16.msra.mxu1 %v1341_v5 }
 0x15c   :  { %908 = vmatprep.subr.bf16.mxu0 %v1346_v23  ;;  %1204 = vmatprep.subr.bf16.mxu1 %v1346_v23 }
 0x15f   :  { %909 = vmatpush1.bf16.msra.mxu0 %v1344_v24  ;;  %1220 = vmatpush1.bf16.msra.mxu1 %v1344_v24 }
 0x160   :  { %910 = vmatprep.subr.bf16.mxu0 %v1349_v8  ;;  %1205 = vmatprep.subr.bf16.mxu1 %v1349_v8 }
 0x163   :  { %911 = vmatpush1.bf16.msra.mxu0 %v1347_v2  ;;  %1221 = vmatpush1.bf16.msra.mxu1 %v1347_v2 }
 0x164   :  { %912 = vmatprep.subr.bf16.mxu0 %v1352_v9  ;;  %1206 = vmatprep.subr.bf16.mxu1 %v1352_v9 }
 0x167   :  { %913 = vmatpush1.bf16.msra.mxu0 %v1350_v10  ;;  %1222 = vmatpush1.bf16.msra.mxu1 %v1350_v10 }
 0x168   :  { %914 = vmatprep.subr.bf16.mxu0 %v1355_v27  ;;  %1207 = vmatprep.subr.bf16.mxu1 %v1355_v27 }
 0x16b   :  { %915 = vmatpush1.bf16.msra.mxu0 %v1353_v28  ;;  %1223 = vmatpush1.bf16.msra.mxu1 %v1353_v28 }
 0x16c   :  { %916 = vmatprep.subr.bf16.mxu0 %v1358_v29  ;;  %1208 = vmatprep.subr.bf16.mxu1 %v1358_v29 }
 0x16f   :  { %917 = vmatpush1.bf16.msra.mxu0 %v1356_v30  ;;  %1224 = vmatpush1.bf16.msra.mxu1 %v1356_v30 }
 0x170   :  { %918 = vmatprep.subr.bf16.mxu0 %v1361_v31  ;;  %1209 = vmatprep.subr.bf16.mxu1 %v1361_v31 }
 0x173   :  { %919 = vmatpush1.bf16.msra.mxu0 %v1359_v17  ;;  %1225 = vmatpush1.bf16.msra.mxu1 %v1359_v17 }
 0x174   :  { %920 = vmatprep.subr.bf16.mxu0 %v1364_v12  ;;  %1210 = vmatprep.subr.bf16.mxu1 %v1364_v12 }
 0x177   :  { %921 = vmatpush1.bf16.msra.mxu0 %v1362_v18  ;;  %1226 = vmatpush1.bf16.msra.mxu1 %v1362_v18 }
 0x178   :  { %922 = vmatprep.subr.bf16.mxu0 %v1367_v32  ;;  %1211 = vmatprep.subr.bf16.mxu1 %v1367_v32 }
 0x17b   :  { %923 = vmatpush1.bf16.msra.mxu0 %v1365_v33  ;;  %1227 = vmatpush1.bf16.msra.mxu1 %v1365_v33 }
 0x17c   :  { %924 = vmatprep.subr.bf16.mxu0 %v1370_v34  ;;  %1212 = vmatprep.subr.bf16.mxu1 %v1370_v34 }
 0x17f   :  { %925 = vmatpush1.bf16.msra.mxu0 %v1368_v35  ;;  %1228 = vmatpush1.bf16.msra.mxu1 %v1368_v35 }
 0x180   :  { %926 = vmatprep.subr.bf16.mxu0 %v1373_v36  ;;  %1213 = vmatprep.subr.bf16.mxu1 %v1373_v36  ;;  %v282_v36 = vsub.s32 4, %v1724_v20 }
 0x182   :  { %v283_v38 = vrot.slane %v1869_v39, %v282_v36 }
 0x183   :  { %927 = vmatpush1.bf16.msra.mxu0 %v1371_v37  ;;  %1229 = vmatpush1.bf16.msra.mxu1 %v1371_v37  ;;  %v286_v37 = vsub.s32 5, %v1724_v20 }
 0x185   :  { %v287_v63 = vrot.slane %v1869_v39, %v286_v37 }
 0x186   :  { %929 = vmatmul.mubr.bf16.vlgmr.msra.gmra.mrb[12].mxu0 %v1754_v47  ;;  %939 = vmatmul.mubr.bf16.vlgmr.msra.gmra.mrb[12].mxu1 %v1771_v59 }
 0x187   :  { %948 = vmatprep.mubr.bf16.mxu1 %v1778_v7 }
 0x18e   :  { %949 = vmatmul.mubr.bf16.gmra.mrb[16].mxu1 %v1791_v0 }
 0x219   :  { %v808_v43 = vpop.f32.mrb[0].mxu0  ;;  %v869_v44 = vpop.f32.mrb[0].mxu1 }
 0x21a   :  { %v809_v45 = vadd.f32 %v808_v43, %v267_v40  ;;  %v870_v46 = vadd.f32 %v869_v44, %v275_v62  ;;  %v810_v6 = vpop.f32.mrb[1].mxu0  ;;  %v871_v1 = vpop.f32.mrb[1].mxu1 }
 0x21b   :  { %v811_v14 = vadd.f32 %v810_v6, %v271_v41  ;;  %v872_v47 = vadd.f32 %v871_v1, %v279_v42  ;;  %v812_v48 = vpop.f32.mrb[2].mxu0  ;;  %v873_v49 = vpop.f32.mrb[2].mxu1 }
 0x21c   :  { %v813_v50 = vadd.f32 %v812_v48, %v267_v40  ;;  %v874_v21 = vadd.f32 %v873_v49, %v275_v62  ;;  %v814_v26 = vpop.f32.mrb[3].mxu0  ;;  %v875_v22 = vpop.f32.mrb[3].mxu1 }
 0x21d   :  { %v1183_v13 = vpack.c.bf16 %v811_v14, %v809_v45  ;;  %v1184_v11 = vpack.c.bf16 %v872_v47, %v870_v46  ;;  %v815_v51 = vadd.f32 %v814_v26, %v271_v41  ;;  %v876_v25 = vadd.f32 %v875_v22, %v279_v42 }
 0x21f   :  { %1053 = vst [vmem:[%s1932_s5] sm:$0xff] %v1183_v13  ;;  %1054 = vst [vmem:[%s1932_s5 + $0x8] sm:$0xff] %v1184_v11  ;;  %v1186_v52 = vpack.c.bf16 %v815_v51, %v813_v50  ;;  %v1187_v53 = vpack.c.bf16 %v876_v25, %v874_v21 }
 0x221   :  { %1056 = vst [vmem:[%s1932_s5 + $0x18] sm:$0xff] %v1186_v52  ;;  %1057 = vst [vmem:[%s1932_s5 + $0x20] sm:$0xff] %v1187_v53  ;;  %v818_v54 = vpop.f32.mrb[4].mxu0  ;;  %v879_v55 = vpop.f32.mrb[4].mxu1 }
 0x222   :  { %v819_v56 = vadd.f32 %v818_v54, %v267_v40  ;;  %v880_v57 = vadd.f32 %v879_v55, %v275_v62  ;;  %v820_v58 = vpop.f32.mrb[5].mxu0  ;;  %v881_v59 = vpop.f32.mrb[5].mxu1 }
 0x223   :  { %v821_v60 = vadd.f32 %v820_v58, %v271_v41  ;;  %v882_v61 = vadd.f32 %v881_v59, %v279_v42  ;;  %v822_v7 = vpop.f32.mrb[6].mxu0  ;;  %v883_v15 = vpop.f32.mrb[6].mxu1 }
 0x224   :  { %v823_v16 = vadd.f32 %v822_v7, %v267_v40  ;;  %v884_v19 = vadd.f32 %v883_v15, %v275_v62  ;;  %v824_v3 = vpop.f32.mrb[7].mxu0  ;;  %v885_v0 = vpop.f32.mrb[7].mxu1 }
 0x225   :  { %v1189_v4 = vpack.c.bf16 %v821_v60, %v819_v56  ;;  %v1190_v5 = vpack.c.bf16 %v882_v61, %v880_v57  ;;  %v825_v23 = vadd.f32 %v824_v3, %v271_v41  ;;  %v886_v24 = vadd.f32 %v885_v0, %v279_v42 }
 0x227   :  { %1059 = vst [vmem:[%s1932_s5 + $0x30] sm:$0xff] %v1189_v4  ;;  %1060 = vst [vmem:[%s1932_s5 + $0x38] sm:$0xff] %v1190_v5  ;;  %v1192_v8 = vpack.c.bf16 %v825_v23, %v823_v16  ;;  %v1193_v2 = vpack.c.bf16 %v886_v24, %v884_v19 }
 0x229   :  { %1062 = vst [vmem:[%s1932_s5 + $0x48] sm:$0xff] %v1192_v8  ;;  %1063 = vst [vmem:[%s1932_s5 + $0x50] sm:$0xff] %v1193_v2  ;;  %v828_v9 = vpop.f32.mrb[8].mxu0  ;;  %v889_v10 = vpop.f32.mrb[8].mxu1 }
 0x22a   :  { %v829_v27 = vadd.f32 %v828_v9, %v267_v40  ;;  %v890_v28 = vadd.f32 %v889_v10, %v275_v62  ;;  %v830_v29 = vpop.f32.mrb[9].mxu0  ;;  %v891_v30 = vpop.f32.mrb[9].mxu1 }
 0x22b   :  { %v831_v31 = vadd.f32 %v830_v29, %v271_v41  ;;  %v892_v17 = vadd.f32 %v891_v30, %v279_v42  ;;  %v832_v12 = vpop.f32.mrb[10].mxu0  ;;  %v893_v18 = vpop.f32.mrb[10].mxu1 }
 0x22c   :  { %v833_v32 = vpop.f32.mrb[11].mxu0  ;;  %v894_v33 = vpop.f32.mrb[11].mxu1 }
 0x22d   :  { %v1195_v34 = vpack.c.bf16 %v831_v31, %v829_v27  ;;  %v1196_v35 = vpack.c.bf16 %v892_v17, %v890_v28 }
 0x22f   :  { %1065 = vst [vmem:[%s1932_s5 + $0x60] sm:$0xff] %v1195_v34  ;;  %1066 = vst [vmem:[%s1932_s5 + $0x68] sm:$0xff] %v1196_v35 }
 0x259   :  { %v930_v40 = vpop.f32.mrb[12].mxu0  ;;  %v940_v62 = vpop.f32.mrb[12].mxu1 }
 0x25a   :  { %v931_v41 = vadd.f32 %v930_v40, %v283_v38  ;;  %v941_v42 = vadd.f32 %v940_v62, %v283_v38  ;;  %v932_v43 = vpop.f32.mrb[13].mxu0  ;;  %v942_v44 = vpop.f32.mrb[13].mxu1 }
 0x25b   :  { %v933_v45 = vadd.f32 %v932_v43, %v287_v63  ;;  %v943_v46 = vadd.f32 %v942_v44, %v287_v63  ;;  %v934_v6 = vpop.f32.mrb[14].mxu0  ;;  %v944_v1 = vpop.f32.mrb[14].mxu1 }
 0x25c   :  { %v935_v14 = vadd.f32 %v934_v6, %v283_v38  ;;  %v945_v47 = vadd.f32 %v944_v1, %v283_v38  ;;  %v936_v48 = vpop.f32.mrb[15].mxu0  ;;  %v946_v49 = vpop.f32.mrb[15].mxu1 }
 0x25d   :  { %v1185_v50 = vpack.c.bf16 %v933_v45, %v931_v41  ;;  %v1191_v20 = vpack.c.bf16 %v943_v46, %v941_v42  ;;  %v937_v21 = vadd.f32 %v936_v48, %v287_v63  ;;  %v947_v26 = vadd.f32 %v946_v49, %v287_v63 }
 0x25f   :  { %1055 = vst [vmem:[%s1932_s5 + $0x10] sm:$0xff] %v1185_v50  ;;  %1061 = vst [vmem:[%s1932_s5 + $0x40] sm:$0xff] %v1191_v20  ;;  %v1188_v39 = vpack.c.bf16 %v937_v21, %v935_v14  ;;  %v1194_v22 = vpack.c.bf16 %v947_v26, %v945_v47 }
 0x261   :  { %1058 = vst [vmem:[%s1932_s5 + $0x28] sm:$0xff] %v1188_v39  ;;  %1064 = vst [vmem:[%s1932_s5 + $0x58] sm:$0xff] %v1194_v22  ;;  %v950_v13 = vpop.f32.mrb[16].mxu1 }
 0x262   :  { %v951_v11 = vadd.f32 %v950_v13, %v283_v38  ;;  %v952_v51 = vpop.f32.mrb[17].mxu1 }
 0x263   :  { %v953_v25 = vadd.f32 %v952_v51, %v287_v63  ;;  %v954_v52 = vpop.f32.mrb[18].mxu1 }
 0x264   :  { %v955_v53 = vpop.f32.mrb[19].mxu1 }
 0x265   :  { %v1197_v54 = vpack.c.bf16 %v953_v25, %v951_v11 }
 0x267   :  { %1067 = vst [vmem:[%s1932_s5 + $0x70] sm:$0xff] %v1197_v54 }

// kernel: encoder_cam_forward.25
= control target key start
LH: loop header
LB: loop body
LE: loop exit
PB: predicated region body
PF: predicated region fallthrough
CT: control target
= control target key end

     0   :  { %vm85_vm0 = vcmask 1043456   ;;  %s4823_s0 = inlined_call_operand.vmem [shape: bf16[36,256], index: 0, kind: input, shape index: {}]   ;;  %s4824_s1 = inlined_call_operand.vmem [shape: bf16[36,256], index: 1, kind: input, shape index: {}]   ;;  %s4825_s4 = inlined_call_operand.vmem [shape: bf16[256,1024], index: 4, kind: input, shape index: {}]   ;;  %s4826_s2 = inlined_call_operand.vmem [shape: f32[1,256], index: 2, kind: input, shape index: {}]   ;;  %s4827_s3 = inlined_call_operand.vmem [shape: f32[1,256], index: 3, kind: input, shape index: {}]   ;;  %s4828_s6 = inlined_call_operand.vmem [shape: bf16[1024,256], index: 6, kind: input, shape index: {}]   ;;  %s4829_s5 = inlined_call_operand.vmem [shape: f32[1,1024], index: 5, kind: input, shape index: {}]   ;;  %s4830_s7 = inlined_call_operand.vmem [shape: f32[1,256], index: 7, kind: input, shape index: {}]   ;;  %s4831_s8 = inlined_call_operand.vmem [shape: bf16[36,256], index: 8, kind: output, shape index: {}]  }
   0x1   :  { %v33_v0 = vld [vmem:[%s4823_s0] sm:$0xff]  ;;  %v35_v2 = vld [vmem:[%s4823_s0 + $0x10] sm:$0xff]  ;;  %v34_v8 = vld [vmem:[%s4823_s0 + $0x8] sm:$0xff] }
   0x2   :  { %v48_v1 = vld [vmem:[%s4824_s1] sm:$0xff]  ;;  %v38_v3 = vunpack.c.l.bf16 %v33_v0  ;;  %v39_v4 = vunpack.c.h.bf16 %v33_v0  ;;  %v50_v7 = vld [vmem:[%s4824_s1 + $0x10] sm:$0xff]  ;;  %v49_v9 = vld [vmem:[%s4824_s1 + $0x8] sm:$0xff]  ;;  %v42_v10 = vunpack.c.l.bf16 %v35_v2  ;;  %v43_v11 = vunpack.c.h.bf16 %v35_v2 }
   0x3   :  { %v53_v5 = vunpack.c.l.bf16 %v48_v1  ;;  %v54_v6 = vunpack.c.h.bf16 %v48_v1  ;;  %v57_v12 = vunpack.c.l.bf16 %v50_v7  ;;  %v58_v13 = vunpack.c.h.bf16 %v50_v7  ;;  %v36_v14 = vld [vmem:[%s4823_s0 + $0x18] sm:$0xff]  ;;  %v37_v24 = vld [vmem:[%s4823_s0 + $0x20] sm:$0x33] }
   0x4   :  { %v51_v15 = vld [vmem:[%s4824_s1 + $0x18] sm:$0xff]  ;;  %v40_v18 = vunpack.c.l.bf16 %v34_v8  ;;  %v41_v19 = vunpack.c.h.bf16 %v34_v8  ;;  %v55_v22 = vunpack.c.l.bf16 %v49_v9  ;;  %v56_v23 = vunpack.c.h.bf16 %v49_v9  ;;  %v52_v25 = vld [vmem:[%s4824_s1 + $0x20] sm:$0x33] }
   0x5   :  { %v3502_v16 = vadd.f32 %v53_v5, %v38_v3  ;;  %v3504_v17 = vadd.f32 %v54_v6, %v39_v4  ;;  %v3506_v20 = vadd.f32 %v57_v12, %v42_v10  ;;  %v3508_v21 = vadd.f32 %v58_v13, %v43_v11  ;;  %v255_v47 = vld [vmem:[%s4825_s4] sm:$0xff] }
   0x6   :  { %v44_v27 = vunpack.c.l.bf16 %v36_v14  ;;  %v45_v28 = vunpack.c.h.bf16 %v36_v14  ;;  %v59_v29 = vunpack.c.l.bf16 %v51_v15  ;;  %v3524_v31 = vadd.f32 %v55_v22, %v40_v18  ;;  %v259_v48 = vld [vmem:[%s4825_s4 + $0x20] sm:$0xff] }
   0x7   :  { %v73_v26 = vadd.f32 %v3504_v17, %v3502_v16  ;;  %240 = vst [vmem:[#allocation3] sm:$0xff] %v3502_v16  ;;  %241 = vst [vmem:[#allocation3 + $0x8] sm:$0xff] %v3504_v17  ;;  %v79_v30 = vadd.f32 %v3508_v21, %v3506_v20  ;;  %v3526_v32 = vadd.f32 %v56_v23, %v41_v19  ;;  %v60_v33 = vunpack.c.h.bf16 %v51_v15  ;;  %v263_v49 = vld [vmem:[%s4825_s4 + $0x40] sm:$0xff] }
   0x8   :  { %244 = vst [vmem:[#allocation3 + $0x20] sm:$0xff] %v3506_v20  ;;  %245 = vst [vmem:[#allocation3 + $0x28] sm:$0xff] %v3508_v21  ;;  %v3528_v34 = vadd.f32 %v59_v29, %v44_v27  ;;  %v46_v35 = vunpack.c.l.bf16 %v37_v24  ;;  %v47_v36 = vunpack.c.h.bf16 %v37_v24  ;;  %v61_v37 = vunpack.c.l.bf16 %v52_v25  ;;  %v267_v52 = vld [vmem:[%s4825_s4 + $0x60] sm:$0xff] }
   0x9   :  { %74 = vadd.xlane.f32.xlu0 %v73_v26  ;;  %80 = vadd.xlane.f32.xlu1 %v79_v30  ;;  %v76_v38 = vadd.f32 %v3526_v32, %v3524_v31  ;;  %242 = vst [vmem:[#allocation3 + $0x10] sm:$0xff] %v3524_v31  ;;  %243 = vst [vmem:[#allocation3 + $0x18] sm:$0xff] %v3526_v32  ;;  %v3534_v39 = vadd.f32 %v60_v33, %v45_v28  ;;  %v62_v40 = vunpack.c.h.bf16 %v52_v25  ;;  %v271_v54 = vld [vmem:[%s4825_s4 + $0x80] sm:$0xff] }
   0xa   :  { %246 = vst [vmem:[#allocation3 + $0x30] sm:$0xff] %v3528_v34  ;;  %v3537_v41 = vadd.f32 %v61_v37, %v46_v35  ;;  %v2850_v50 = vcombine.high %v255_v47, %v259_v48  ;;  %v2849_v51 = vcombine.low %v255_v47, %v259_v48  ;;  %v2858_v53 = vcombine.high %v263_v49, %v267_v52  ;;  %v275_v55 = vld [vmem:[%s4825_s4 + $0xa0] sm:$0xff] }
   0xb   :  { %v82_v42 = vadd.f32 %v3534_v39, %v3528_v34  ;;  %247 = vst [vmem:[#allocation3 + $0x38] sm:$0xff] %v3534_v39  ;;  %v3542_v43 = vadd.f32 %v62_v40, %v47_v36  ;;  %v2857_v56 = vcombine.low %v263_v49, %v267_v52  ;;  %v2866_v57 = vcombine.high %v271_v54, %v275_v55  ;;  %v279_v58 = vld [vmem:[%s4825_s4 + $0xc0] sm:$0xff] }
   0xc   :  { %v86_v44 = vsel %vm85_vm0, %v3537_v41, 0.0  ;;  %248 = vst [vmem:[#allocation3 + $0x40] sm:$0xf] %v3537_v41  ;;  %1092 = vmatprep.subr.bf16.mxu1 %v2850_v50  ;;  %v283_v59 = vld [vmem:[%s4825_s4 + $0xe0] sm:$0xff]  ;;  %v2865_v60 = vcombine.low %v271_v54, %v275_v55 }
   0xd   :  { %77 = vadd.xlane.f32.xlu0 %v76_v38  ;;  %83 = vadd.xlane.f32.xlu1 %v82_v42  ;;  %v87_v45 = vsel %vm85_vm0, %v3542_v43, 0.0  ;;  %249 = vst [vmem:[#allocation3 + $0x48] sm:$0xf] %v3542_v43  ;;  %v2874_v61 = vcombine.high %v279_v58, %v283_v59  ;;  %v287_v62 = vld [vmem:[%s4825_s4 + $0x100] sm:$0xff]  ;;  %v2873_v0 = vcombine.low %v279_v58, %v283_v59 }
   0xe   :  { %v88_v46 = vadd.f32 %v87_v45, %v86_v44  ;;  %1093 = vmatpush1.bf16.msra.mxu1 %v2849_v51  ;;  %v291_v63 = vld [vmem:[%s4825_s4 + $0x120] sm:$0xff] }
   0xf   :  { %1094 = vmatprep.subr.bf16.mxu1 %v2858_v53  ;;  %v2882_v1 = vcombine.high %v287_v62, %v291_v63  ;;  %v295_v2 = vld [vmem:[%s4825_s4 + $0x140] sm:$0xff]  ;;  %v2881_v4 = vcombine.low %v287_v62, %v291_v63 }
  0x10   :  { %v299_v3 = vld [vmem:[%s4825_s4 + $0x160] sm:$0xff] }
  0x11   :  { %89 = vadd.xlane.f32.xlu0 %v88_v46  ;;  %v2890_v5 = vcombine.high %v295_v2, %v299_v3  ;;  %v303_v6 = vld [vmem:[%s4825_s4 + $0x180] sm:$0xff]  ;;  %v2889_v8 = vcombine.low %v295_v2, %v299_v3 }
  0x12   :  { %1095 = vmatpush1.bf16.msra.mxu1 %v2857_v56  ;;  %v307_v7 = vld [vmem:[%s4825_s4 + $0x1a0] sm:$0xff] }
  0x13   :  { %1096 = vmatprep.subr.bf16.mxu1 %v2866_v57  ;;  %v2898_v9 = vcombine.high %v303_v6, %v307_v7  ;;  %v2897_v10 = vcombine.low %v303_v6, %v307_v7  ;;  %v311_v47 = vld [vmem:[%s4825_s4 + $0x1c0] sm:$0xff] }
  0x14   :  { %v319_v52 = vld [vmem:[%s4825_s4 + $0x200] sm:$0xff] }
  0x15   :  { %v323_v53 = vld [vmem:[%s4825_s4 + $0x220] sm:$0xff] }
  0x16   :  { %1097 = vmatpush1.bf16.msra.mxu1 %v2865_v60  ;;  %v2914_v54 = vcombine.high %v319_v52, %v323_v53  ;;  %v2913_v55 = vcombine.low %v319_v52, %v323_v53  ;;  %v327_v56 = vld [vmem:[%s4825_s4 + $0x240] sm:$0xff] }
  0x17   :  { %1098 = vmatprep.subr.bf16.mxu1 %v2874_v61  ;;  %v331_v57 = vld [vmem:[%s4825_s4 + $0x260] sm:$0xff] }
  0x18   :  { %v2922_v58 = vcombine.high %v327_v56, %v331_v57  ;;  %v2921_v59 = vcombine.low %v327_v56, %v331_v57  ;;  %v335_v60 = vld [vmem:[%s4825_s4 + $0x280] sm:$0xff] }
  0x19   :  { %v339_v61 = vld [vmem:[%s4825_s4 + $0x2a0] sm:$0xff] }
  0x1a   :  { %1099 = vmatpush1.bf16.msra.mxu1 %v2873_v0  ;;  %v2930_v62 = vcombine.high %v335_v60, %v339_v61  ;;  %v2929_v63 = vcombine.low %v335_v60, %v339_v61  ;;  %v343_v0 = vld [vmem:[%s4825_s4 + $0x2c0] sm:$0xff] }
  0x1b   :  { %1100 = vmatprep.subr.bf16.mxu1 %v2882_v1  ;;  %v347_v1 = vld [vmem:[%s4825_s4 + $0x2e0] sm:$0xff] }
  0x1c   :  { %v2938_v2 = vcombine.high %v343_v0, %v347_v1  ;;  %v2937_v3 = vcombine.low %v343_v0, %v347_v1 }
  0x1e   :  { %1101 = vmatpush1.bf16.msra.mxu1 %v2881_v4  ;;  %v351_v4 = vld [vmem:[%s4825_s4 + $0x300] sm:$0xff] }
  0x1f   :  { %1102 = vmatprep.subr.bf16.mxu1 %v2890_v5  ;;  %v355_v5 = vld [vmem:[%s4825_s4 + $0x320] sm:$0xff] }
  0x20   :  { %v2946_v6 = vcombine.high %v351_v4, %v355_v5  ;;  %v2945_v7 = vcombine.low %v351_v4, %v355_v5 }
  0x22   :  { %1103 = vmatpush1.bf16.msra.mxu1 %v2889_v8  ;;  %v359_v8 = vld [vmem:[%s4825_s4 + $0x340] sm:$0xff] }
  0x23   :  { %1104 = vmatprep.subr.bf16.mxu1 %v2898_v9  ;;  %v363_v9 = vld [vmem:[%s4825_s4 + $0x360] sm:$0xff] }
  0x26   :  { %1105 = vmatpush1.bf16.msra.mxu1 %v2897_v10  ;;  %v2954_v10 = vcombine.high %v359_v8, %v363_v9 }
  0x96   :  { %v75_v11 = vpop.xlane.xlu0 %74  ;;  %v81_v13 = vpop.xlane.xlu1 %80 }
  0x97   :  { %v92_v12 = vmul.f32 0.00390625, %v75_v11  ;;  %v94_v14 = vmul.f32 0.00390625, %v81_v13  ;;  %v2953_v11 = vcombine.low %v359_v8, %v363_v9  ;;  %v371_v13 = vld [vmem:[%s4825_s4 + $0x3a0] sm:$0xff] }
  0x99   :  { %v3593_v15 = vsub.f32 %v3502_v16, %v92_v12  ;;  %v3596_v18 = vsub.f32 %v3504_v17, %v92_v12  ;;  %v3599_v19 = vsub.f32 %v3506_v20, %v94_v14  ;;  %v3602_v22 = vsub.f32 %v3508_v21, %v94_v14  ;;  %v367_v12 = vld [vmem:[%s4825_s4 + $0x380] sm:$0xff] }
  0x9a   :  { %v78_v23 = vpop.xlane.xlu0 %77  ;;  %v84_v25 = vpop.xlane.xlu1 %83  ;;  %v2962_v14 = vcombine.high %v367_v12, %v371_v13 }
  0x9b   :  { %v93_v24 = vmul.f32 0.00390625, %v78_v23  ;;  %v107_v26 = vmul.f32 %v3593_v15, %v3593_v15  ;;  %v108_v27 = vmul.f32 %v3596_v18, %v3596_v18  ;;  %v95_v16 = vmul.f32 0.00390625, %v84_v25  ;;  %v379_v25 = vld [vmem:[%s4825_s4 + $0x3e0] sm:$0xff] }
  0x9c   :  { %v111_v17 = vmul.f32 %v3599_v19, %v3599_v19  ;;  %v112_v20 = vmul.f32 %v3602_v22, %v3602_v22  ;;  %v2961_v23 = vcombine.low %v367_v12, %v371_v13 }
  0x9d   :  { %v3613_v28 = vsub.f32 %v3524_v31, %v93_v24  ;;  %v3616_v21 = vsub.f32 %v3526_v32, %v93_v24  ;;  %v117_v29 = vadd.f32 %v108_v27, %v107_v26  ;;  %v3619_v30 = vsub.f32 %v3528_v34, %v95_v16  ;;  %v375_v24 = vld [vmem:[%s4825_s4 + $0x3c0] sm:$0xff] }
  0x9e   :  { %v3622_v33 = vsub.f32 %v3534_v39, %v95_v16  ;;  %v90_v35 = vpop.xlane.xlu0 %89  ;;  %v123_v37 = vadd.f32 %v112_v20, %v111_v17  ;;  %v2970_v26 = vcombine.high %v375_v24, %v379_v25  ;;  %v2969_v27 = vcombine.low %v375_v24, %v379_v25  ;;  %v3701_v16 = vld [vmem:[%s4825_s4 + $0x8] sm:$0xff] }
  0x9f   :  { %v96_v36 = vmul.f32 0.00390625, %v90_v35  ;;  %118 = vadd.xlane.f32.xlu1 %v117_v29  ;;  %v109_v38 = vmul.f32 %v3613_v28, %v3613_v28  ;;  %v110_v31 = vmul.f32 %v3616_v21, %v3616_v21  ;;  %v113_v32 = vmul.f32 %v3619_v30, %v3619_v30  ;;  %v3706_v17 = vld [vmem:[%s4825_s4 + $0x28] sm:$0xff] }
  0xa0   :  { %v114_v34 = vmul.f32 %v3622_v33, %v3622_v33  ;;  %v2852_v20 = vcombine.high %v3701_v16, %v3706_v17  ;;  %v2851_v29 = vcombine.low %v3701_v16, %v3706_v17  ;;  %v288_v17 = vld [vmem:[%s4825_s4 + $0x108] sm:$0xff] }
  0xa1   :  { %v3633_v40 = vsub.f32 %v3537_v41, %v96_v36  ;;  %v3636_v39 = vsub.f32 %v3542_v43, %v96_v36  ;;  %v120_v42 = vadd.f32 %v110_v31, %v109_v38  ;;  %v315_v41 = vld [vmem:[%s4825_s4 + $0x1e0] sm:$0xff] }
  0xa2   :  { %v126_v44 = vadd.f32 %v114_v34, %v113_v32  ;;  %v2906_v43 = vcombine.high %v311_v47, %v315_v41  ;;  %v2905_v50 = vcombine.low %v311_v47, %v315_v41 }
  0xa3   :  { %124 = vadd.xlane.f32.xlu1 %v123_v37  ;;  %121 = vadd.xlane.f32.xlu0 %v120_v42  ;;  %v115_v45 = vmul.f32 %v3633_v40, %v3633_v40  ;;  %v116_v46 = vmul.f32 %v3636_v39, %v3636_v39  ;;  %v161_v37 = vlaneseq }
  0xa4   :  { %1106 = vmatprep.subr.bf16.mxu1 %v2906_v43 }
  0xa5   :  { %v129_v48 = vsel %vm85_vm0, %v115_v45, 0.0  ;;  %v130_v49 = vsel %vm85_vm0, %v116_v46, 0.0  ;;  %1107 = vmatpush1.bf16.msra.mxu1 %v2905_v50 }
  0xa6   :  { %v131_v51 = vadd.f32 %v130_v49, %v129_v48  ;;  %1108 = vmatprep.subr.bf16.mxu1 %v2914_v54  ;;  %v181_v54 = vld [vmem:[%s4827_s3] sm:$0x3] }
  0xa7   :  { %127 = vadd.xlane.f32.xlu0 %v126_v44  ;;  %v3712_v44 = vshrl.u32 %v161_v37, 7 }
  0xa8   :  { %132 = vadd.xlane.f32.xlu1 %v131_v51  ;;  %v159_v51 = vld [vmem:[%s4826_s2] sm:$0x3] }
  0xa9   :  { %1109 = vmatpush1.bf16.msra.mxu1 %v2913_v55  ;;  %v3715_v48 = vsub.s32 0, %v3712_v44  ;;  %v3718_v49 = vsub.s32 1, %v3712_v44 }
  0xaa   :  { %1110 = vmatprep.subr.bf16.mxu1 %v2922_v58 }
  0xab   :  { %v164_v55 = vrot.slane %v159_v51, %v3715_v48  ;;  %v168_v56 = vrot.slane %v159_v51, %v3718_v49  ;;  %v186_v58 = vrot.slane %v181_v54, %v3715_v48 }
  0xad   :  { %1111 = vmatpush1.bf16.msra.mxu1 %v2921_v59  ;;  %v190_v59 = vrot.slane %v181_v54, %v3718_v49 }
  0xae   :  { %1112 = vmatprep.subr.bf16.mxu1 %v2930_v62 }
  0xb1   :  { %1113 = vmatpush1.bf16.msra.mxu1 %v2929_v63 }
  0xb2   :  { %1114 = vmatprep.subr.bf16.mxu1 %v2938_v2 }
  0xb5   :  { %1115 = vmatpush1.bf16.msra.mxu1 %v2937_v3 }
  0xb6   :  { %1116 = vmatprep.subr.bf16.mxu1 %v2946_v6 }
  0xb9   :  { %1117 = vmatpush1.bf16.msra.mxu1 %v2945_v7 }
  0xba   :  { %1118 = vmatprep.subr.bf16.mxu1 %v2954_v10 }
  0xbd   :  { %1119 = vmatpush1.bf16.msra.mxu1 %v2953_v11 }
  0xbe   :  { %1120 = vmatprep.subr.bf16.mxu1 %v2962_v14 }
  0xc1   :  { %1121 = vmatpush1.bf16.msra.mxu1 %v2961_v23 }
  0xc2   :  { %1122 = vmatprep.subr.bf16.mxu1 %v2970_v26 }
  0xc5   :  { %1123 = vmatpush1.bf16.msra.mxu1 %v2969_v27 }
  0xc6   :  { %1153 = vmatprep.subr.bf16.mxu1 %v2852_v20  ;;  %v264_v20 = vld [vmem:[%s4825_s4 + $0x48] sm:$0xff] }
 0x12c   :  { %v119_v35 = vpop.xlane.xlu1 %118 }
 0x12d   :  { %v134_v36 = vmul.f32 0.00390625, %v119_v35 }
 0x12f   :  { %v139_v38 = vadd.f32 1e-05, %v134_v36 }
 0x130   :  { %v125_v31 = vpop.xlane.xlu1 %124  ;;  %v122_v32 = vpop.xlane.xlu0 %121 }
 0x131   :  { %3338 = vrsqrt.f32 %v139_v38  ;;  %v136_v34 = vmul.f32 0.00390625, %v125_v31  ;;  %v135_v42 = vmul.f32 0.00390625, %v122_v32  ;;  %v272_v32 = vld [vmem:[%s4825_s4 + $0x88] sm:$0xff] }
 0x133   :  { %v141_v45 = vadd.f32 1e-05, %v136_v34  ;;  %v140_v46 = vadd.f32 1e-05, %v135_v42  ;;  %v276_v34 = vld [vmem:[%s4825_s4 + $0xa8] sm:$0xff] }
 0x134   :  { %v128_v47 = vpop.xlane.xlu0 %127 }
 0x135   :  { %3340 = vrsqrt.f32 %v141_v45  ;;  %v137_v41 = vmul.f32 0.00390625, %v128_v47  ;;  %v133_v43 = vpop.xlane.xlu1 %132  ;;  %v280_v47 = vld [vmem:[%s4825_s4 + $0xc8] sm:$0xff] }
 0x136   :  { %3342 = vrsqrt.f32 %v140_v46  ;;  %v138_v50 = vmul.f32 0.00390625, %v133_v43  ;;  %v2868_v46 = vcombine.high %v272_v32, %v276_v34  ;;  %v2867_v43 = vcombine.low %v272_v32, %v276_v34  ;;  %v3146_v34 = vld [vmem:[%s4828_s6 + $0x4] ss:$8 sps:$4 sm:$0xff]  }
 0x137   :  { %v142_v52 = vadd.f32 1e-05, %v137_v41  ;;  %v284_v41 = vld [vmem:[%s4825_s4 + $0xe8] sm:$0xff]  ;;  %2498 = vmatprep.subr.bf16.mxu0 %v3146_v34  ;;  %v333_v34 = vld [vmem:[%s4825_s4 + $0x270] sm:$0xff] }
 0x138   :  { %v143_v53 = vadd.f32 1e-05, %v138_v50  ;;  %v2876_v16 = vcombine.high %v280_v47, %v284_v41 }
 0x139   :  { %3344 = vrsqrt.f32 %v142_v52 }
 0x13a   :  { %3346 = vrsqrt.f32 %v143_v53  ;;  %v2875_v53 = vcombine.low %v280_v47, %v284_v41  ;;  %v261_v47 = vld [vmem:[%s4825_s4 + $0x30] sm:$0xff]  ;;  %v3148_v41 = vld [vmem:[%s4828_s6] ss:$8 sps:$4 sm:$0xff]  }
 0x13b   :  { %v3339_v57 = vpop.eup %3338  ;;  %2499 = vmatpush1.bf16.msra.mxu0 %v3148_v41 }
 0x13c   :  { %v149_v60 = vmul.f32 %v3339_v57, %v3593_v15  ;;  %v150_v61 = vmul.f32 %v3339_v57, %v3596_v18 }
 0x13e   :  { %v171_v62 = vmul.f32 %v164_v55, %v149_v60  ;;  %v172_v63 = vmul.f32 %v168_v56, %v150_v61  ;;  %v304_v60 = vld [vmem:[%s4825_s4 + $0x188] sm:$0xff] }
 0x13f   :  { %v3341_v0 = vpop.eup %3340  ;;  %v308_v61 = vld [vmem:[%s4825_s4 + $0x1a8] sm:$0xff] }
 0x140   :  { %v3343_v1 = vpop.eup %3342  ;;  %v193_v2 = vadd.f32 %v186_v58, %v171_v62  ;;  %v194_v3 = vadd.f32 %v190_v59, %v172_v63  ;;  %v153_v4 = vmul.f32 %v3341_v0, %v3599_v19  ;;  %v154_v5 = vmul.f32 %v3341_v0, %v3602_v22  ;;  %v312_v0 = vld [vmem:[%s4825_s4 + $0x1c8] sm:$0xff] }
 0x141   :  { %v151_v6 = vmul.f32 %v3343_v1, %v3613_v28  ;;  %v152_v7 = vmul.f32 %v3343_v1, %v3616_v21  ;;  %v2900_v63 = vcombine.high %v304_v60, %v308_v61  ;;  %v316_v1 = vld [vmem:[%s4825_s4 + $0x1e8] sm:$0xff] }
 0x142   :  { %v175_v8 = vmul.f32 %v164_v55, %v153_v4  ;;  %v176_v9 = vmul.f32 %v168_v56, %v154_v5  ;;  %v320_v4 = vld [vmem:[%s4825_s4 + $0x208] sm:$0xff] }
 0x143   :  { %v3345_v10 = vpop.eup %3344  ;;  %v173_v15 = vmul.f32 %v164_v55, %v151_v6  ;;  %v174_v11 = vmul.f32 %v168_v56, %v152_v7  ;;  %v324_v5 = vld [vmem:[%s4825_s4 + $0x228] sm:$0xff]  ;;  %v2907_v6 = vcombine.low %v312_v0, %v316_v1 }
 0x144   :  { %v3347_v18 = vpop.eup %3346  ;;  %v197_v12 = vadd.f32 %v186_v58, %v175_v8  ;;  %v198_v13 = vadd.f32 %v190_v59, %v176_v9  ;;  %v155_v14 = vmul.f32 %v3345_v10, %v3619_v30  ;;  %v156_v23 = vmul.f32 %v3345_v10, %v3622_v33  ;;  %v268_v30 = vld [vmem:[%s4825_s4 + $0x68] sm:$0xff] }
 0x145   :  { %v195_v24 = vadd.f32 %v186_v58, %v173_v15  ;;  %v196_v19 = vadd.f32 %v190_v59, %v174_v11  ;;  %v157_v22 = vmul.f32 %v3347_v18, %v3633_v40  ;;  %v158_v28 = vmul.f32 %v3347_v18, %v3636_v39  ;;  %v328_v8 = vld [vmem:[%s4825_s4 + $0x248] sm:$0xff] }
 0x146   :  { %v177_v25 = vmul.f32 %v164_v55, %v155_v14  ;;  %v178_v21 = vmul.f32 %v168_v56, %v156_v23  ;;  %v2860_v39 = vcombine.high %v264_v20, %v268_v30  ;;  %v2859_v45 = vcombine.low %v264_v20, %v268_v30  ;;  %v332_v9 = vld [vmem:[%s4825_s4 + $0x268] sm:$0xff] }
 0x147   :  { %v179_v26 = vmul.f32 %v164_v55, %v157_v22  ;;  %v180_v27 = vmul.f32 %v168_v56, %v158_v28  ;;  %v3746_v38 = vpack.c.bf16 %v196_v19, %v194_v3  ;;  %v3748_v40 = vpack.c.bf16 %v195_v24, %v193_v2  ;;  %v296_v55 = vld [vmem:[%s4825_s4 + $0x148] sm:$0xff] }
 0x148   :  { %v199_v35 = vadd.f32 %v186_v58, %v177_v25  ;;  %v200_v33 = vadd.f32 %v190_v59, %v178_v21  ;;  %v300_v56 = vld [vmem:[%s4825_s4 + $0x168] sm:$0xff]  ;;  %v2899_v2 = vcombine.low %v304_v60, %v308_v61  ;;  %v2908_v3 = vcombine.high %v312_v0, %v316_v1  ;;  %v3155_v0 = vld [vmem:[%s4828_s6 + $0x34] ss:$8 sps:$4 sm:$0xff]   ;;  %v3157_v1 = vld [vmem:[%s4828_s6 + $0x30] ss:$8 sps:$4 sm:$0xff]  }
 0x149   :  { %v201_v36 = vadd.f32 %v186_v58, %v179_v26  ;;  %v202_v37 = vadd.f32 %v190_v59, %v180_v27  ;;  %1124 = vmatprep.mubr.bf16.mxu1 %v3746_v38  ;;  %v2892_v59 = vcombine.high %v296_v55, %v300_v56  ;;  %v2891_v62 = vcombine.low %v296_v55, %v300_v56  ;;  %v336_v11 = vld [vmem:[%s4825_s4 + $0x288] sm:$0xff]  ;;  %v273_v55 = vld [vmem:[%s4825_s4 + $0x90] sm:$0xff] }
 0x14a   :  { %1125 = vmatmul.mubr.bf16.vlgmr.msra.gmra.mrb[0].mxu1 %v3748_v40  ;;  %v3758_v42 = vpack.c.bf16 %v200_v33, %v198_v13  ;;  %v3770_v50 = vpack.c.bf16 %v199_v35, %v197_v12  ;;  %v2916_v7 = vcombine.high %v320_v4, %v324_v5  ;;  %v2915_v10 = vcombine.low %v320_v4, %v324_v5  ;;  %v340_v18 = vld [vmem:[%s4825_s4 + $0x2a8] sm:$0xff]  ;;  %v277_v56 = vld [vmem:[%s4825_s4 + $0xb0] sm:$0xff] }
 0x14b   :  { %v3114_v31 = vpack.c.bf16 %v202_v37, %v201_v36  ;;  %1154 = vmatpush1.bf16.msra.mxu1 %v2851_v29  ;;  %v292_v29 = vld [vmem:[%s4825_s4 + $0x128] sm:$0xff]  ;;  %v2924_v15 = vcombine.high %v328_v8, %v332_v9  ;;  %v2923_v12 = vcombine.low %v328_v8, %v332_v9  ;;  %v2932_v13 = vcombine.high %v336_v11, %v340_v18  ;;  %v289_v5 = vld [vmem:[%s4825_s4 + $0x110] sm:$0xff] }
 0x14c   :  { %1134 = vmatprep.mubr.bf16.mxu1 %v3758_v42  ;;  %1155 = vmatprep.subr.bf16.mxu1 %v2860_v39  ;;  %v2884_v54 = vcombine.high %v288_v17, %v292_v29  ;;  %v2883_v57 = vcombine.low %v288_v17, %v292_v29  ;;  %v344_v14 = vld [vmem:[%s4825_s4 + $0x2c8] sm:$0xff]  ;;  %v2931_v24 = vcombine.low %v336_v11, %v340_v18  ;;  %v269_v17 = vld [vmem:[%s4825_s4 + $0x70] sm:$0xff] }
 0x14d   :  { %239 = vst [vmem:[#allocation2 + $0x20] sm:$0x33] %v3114_v31  ;;  %v348_v23 = vld [vmem:[%s4825_s4 + $0x2e8] sm:$0xff]  ;;  %v3149_v29 = vld [vmem:[%s4828_s6 + $0x14] ss:$8 sps:$4 sm:$0xff]   ;;  %v2869_v4 = vcombine.low %v273_v55, %v277_v56 }
 0x14e   :  { %v2940_v19 = vcombine.high %v344_v14, %v348_v23  ;;  %v352_v22 = vld [vmem:[%s4825_s4 + $0x308] sm:$0xff]  ;;  %v2939_v25 = vcombine.low %v344_v14, %v348_v23  ;;  %2500 = vmatprep.subr.bf16.mxu0 %v3149_v29  ;;  %v3161_v11 = vld [vmem:[%s4828_s6 + $0x54] ss:$8 sps:$4 sm:$0xff]   ;;  %v3163_v18 = vld [vmem:[%s4828_s6 + $0x50] ss:$8 sps:$4 sm:$0xff]  }
 0x14f   :  { %1156 = vmatpush1.bf16.msra.mxu1 %v2859_v45  ;;  %v356_v28 = vld [vmem:[%s4825_s4 + $0x328] sm:$0xff]  ;;  %v305_v23 = vld [vmem:[%s4825_s4 + $0x190] sm:$0xff] }
 0x150   :  { %1157 = vmatprep.subr.bf16.mxu1 %v2868_v46  ;;  %v2948_v21 = vcombine.high %v352_v22, %v356_v28  ;;  %v360_v26 = vld [vmem:[%s4825_s4 + $0x348] sm:$0xff]  ;;  %v2947_v20 = vcombine.low %v352_v22, %v356_v28  ;;  %v257_v46 = vld [vmem:[%s4825_s4 + $0x10] sm:$0xff] }
 0x151   :  { %v364_v27 = vld [vmem:[%s4825_s4 + $0x368] sm:$0xff]  ;;  %v3167_v28 = vld [vmem:[%s4828_s6 + $0x74] ss:$8 sps:$4 sm:$0xff]  }
 0x152   :  { %1135 = vmatmul.mubr.bf16.gmra.mrb[4].mxu1 %v3770_v50  ;;  %v2956_v30 = vcombine.high %v360_v26, %v364_v27  ;;  %v368_v35 = vld [vmem:[%s4825_s4 + $0x388] sm:$0xff]  ;;  %v2955_v36 = vcombine.low %v360_v26, %v364_v27  ;;  %v317_v26 = vld [vmem:[%s4825_s4 + $0x1f0] sm:$0xff] }
 0x153   :  { %1158 = vmatpush1.bf16.msra.mxu1 %v2867_v43  ;;  %v372_v33 = vld [vmem:[%s4825_s4 + $0x3a8] sm:$0xff] }
 0x154   :  { %v254_v51 = vld [vmem:[#allocation2 + $0x20] sm:$0x33]  ;;  %1159 = vmatprep.subr.bf16.mxu1 %v2876_v16  ;;  %v2964_v37 = vcombine.high %v368_v35, %v372_v33  ;;  %v376_v39 = vld [vmem:[%s4825_s4 + $0x3c8] sm:$0xff]  ;;  %v2963_v32 = vcombine.low %v368_v35, %v372_v33  ;;  %v265_v16 = vld [vmem:[%s4825_s4 + $0x50] sm:$0xff] }
 0x155   :  { %v3779_v52 = vcombine.high %v254_v51, %v254_v51  ;;  %v3788_v58 = vcombine.low %v254_v51, %v254_v51  ;;  %v380_v31 = vld [vmem:[%s4825_s4 + $0x3e8] sm:$0xff]  ;;  %v2854_v51 = vcombine.high %v257_v46, %v261_v47  ;;  %v2861_v61 = vcombine.low %v265_v16, %v269_v17  ;;  %v321_v35 = vld [vmem:[%s4825_s4 + $0x210] sm:$0xff] }
 0x156   :  { %v2972_v45 = vcombine.high %v376_v39, %v380_v31  ;;  %v2971_v43 = vcombine.low %v376_v39, %v380_v31  ;;  %v3154_v60 = vld [vmem:[%s4828_s6 + $0x20] ss:$8 sps:$4 sm:$0xff]   ;;  %v325_v33 = vld [vmem:[%s4825_s4 + $0x230] sm:$0xff] }
 0x157   :  { %1144 = vmatprep.mubr.bf16.mxu1 %v3779_v52  ;;  %1160 = vmatpush1.bf16.msra.mxu1 %v2875_v53  ;;  %v3151_v53 = vld [vmem:[%s4828_s6 + $0x10] ss:$8 sps:$4 sm:$0xff]   ;;  %v3160_v8 = vld [vmem:[%s4828_s6 + $0x40] ss:$8 sps:$4 sm:$0xff]   ;;  %v2917_v41 = vcombine.low %v321_v35, %v325_v33 }
 0x158   :  { %1161 = vmatprep.subr.bf16.mxu1 %v2884_v54  ;;  %2501 = vmatpush1.bf16.msra.mxu0 %v3151_v53  ;;  %v2853_v54 = vcombine.low %v257_v46, %v261_v47  ;;  %v3166_v22 = vld [vmem:[%s4828_s6 + $0x60] ss:$8 sps:$4 sm:$0xff]   ;;  %v2918_v46 = vcombine.high %v321_v35, %v325_v33  ;;  %v3175_v47 = vld [vmem:[%s4828_s6 + $0x90] ss:$8 sps:$4 sm:$0xff]  }
 0x159   :  { %v3172_v39 = vld [vmem:[%s4828_s6 + $0x80] ss:$8 sps:$4 sm:$0xff]   ;;  %v270_v35 = vld [vmem:[%s4825_s4 + $0x78] sm:$0xff] }
 0x15a   :  { %1145 = vmatmul.mubr.bf16.gmra.mrb[8].mxu1 %v3788_v58 }
 0x15b   :  { %1162 = vmatpush1.bf16.msra.mxu1 %v2883_v57  ;;  %1185 = vmatprep.mubr.bf16.mxu1 %v3746_v38  ;;  %v3152_v57 = vld [vmem:[%s4828_s6 + $0x24] ss:$8 sps:$4 sm:$0xff]  }
 0x15c   :  { %1163 = vmatprep.subr.bf16.mxu1 %v2892_v59  ;;  %v2862_v59 = vcombine.high %v265_v16, %v269_v17  ;;  %2502 = vmatprep.subr.bf16.mxu0 %v3152_v57  ;;  %v341_v16 = vld [vmem:[%s4825_s4 + $0x2b0] sm:$0xff]  ;;  %v3176_v17 = vld [vmem:[%s4828_s6 + $0xa4] ss:$8 sps:$4 sm:$0xff]  }
 0x15d   :  { %2503 = vmatpush1.bf16.msra.mxu0 %v3154_v60 }
 0x15e   :  { %2504 = vmatprep.subr.bf16.mxu0 %v3155_v0 }
 0x15f   :  { %1164 = vmatpush1.bf16.msra.mxu1 %v2891_v62  ;;  %v281_v62 = vld [vmem:[%s4825_s4 + $0xd0] sm:$0xff] }
 0x160   :  { %1165 = vmatprep.subr.bf16.mxu1 %v2900_v63  ;;  %v285_v63 = vld [vmem:[%s4825_s4 + $0xf0] sm:$0xff] }
 0x161   :  { %2505 = vmatpush1.bf16.msra.mxu0 %v3157_v1  ;;  %v2877_v9 = vcombine.low %v281_v62, %v285_v63  ;;  %v3184_v1 = vld [vmem:[%s4828_s6 + $0xc0] ss:$8 sps:$4 sm:$0xff]  }
 0x163   :  { %1166 = vmatpush1.bf16.msra.mxu1 %v2899_v2  ;;  %v3158_v2 = vld [vmem:[%s4828_s6 + $0x44] ss:$8 sps:$4 sm:$0xff]  }
 0x164   :  { %1167 = vmatprep.subr.bf16.mxu1 %v2908_v3  ;;  %v2870_v3 = vcombine.high %v273_v55, %v277_v56  ;;  %2506 = vmatprep.subr.bf16.mxu0 %v3158_v2  ;;  %v349_v55 = vld [vmem:[%s4825_s4 + $0x2f0] sm:$0xff] }
 0x165   :  { %2507 = vmatpush1.bf16.msra.mxu0 %v3160_v8  ;;  %v3179_v56 = vld [vmem:[%s4828_s6 + $0xb4] ss:$8 sps:$4 sm:$0xff]  }
 0x166   :  { %2508 = vmatprep.subr.bf16.mxu0 %v3161_v11  ;;  %v369_v11 = vld [vmem:[%s4825_s4 + $0x390] sm:$0xff] }
 0x167   :  { %1168 = vmatpush1.bf16.msra.mxu1 %v2907_v6  ;;  %v293_v6 = vld [vmem:[%s4825_s4 + $0x130] sm:$0xff] }
 0x168   :  { %1169 = vmatprep.subr.bf16.mxu1 %v2916_v7  ;;  %v2878_v7 = vcombine.high %v281_v62, %v285_v63  ;;  %v2885_v14 = vcombine.low %v289_v5, %v293_v6  ;;  %v357_v62 = vld [vmem:[%s4825_s4 + $0x330] sm:$0xff]  ;;  %v3182_v63 = vld [vmem:[%s4828_s6 + $0xc4] ss:$8 sps:$4 sm:$0xff]  }
 0x169   :  { %2509 = vmatpush1.bf16.msra.mxu0 %v3163_v18  ;;  %v373_v18 = vld [vmem:[%s4825_s4 + $0x3b0] sm:$0xff] }
 0x16b   :  { %1170 = vmatpush1.bf16.msra.mxu1 %v2915_v10  ;;  %v297_v10 = vld [vmem:[%s4825_s4 + $0x150] sm:$0xff] }
 0x16c   :  { %1171 = vmatprep.subr.bf16.mxu1 %v2924_v15  ;;  %v301_v15 = vld [vmem:[%s4825_s4 + $0x170] sm:$0xff] }
 0x16f   :  { %1172 = vmatpush1.bf16.msra.mxu1 %v2923_v12  ;;  %v3164_v12 = vld [vmem:[%s4828_s6 + $0x64] ss:$8 sps:$4 sm:$0xff]  }
 0x170   :  { %1173 = vmatprep.subr.bf16.mxu1 %v2932_v13  ;;  %v2886_v13 = vcombine.high %v289_v5, %v293_v6  ;;  %2510 = vmatprep.subr.bf16.mxu0 %v3164_v12  ;;  %v3187_v5 = vld [vmem:[%s4828_s6 + $0xd0] ss:$8 sps:$4 sm:$0xff]  }
 0x171   :  { %2511 = vmatpush1.bf16.msra.mxu0 %v3166_v22  ;;  %v361_v6 = vld [vmem:[%s4825_s4 + $0x350] sm:$0xff]  ;;  %v2965_v22 = vcombine.low %v369_v11, %v373_v18 }
 0x172   :  { %2512 = vmatprep.subr.bf16.mxu0 %v3167_v28  ;;  %v3196_v28 = vld [vmem:[%s4828_s6 + $0x104] ss:$8 sps:$4 sm:$0xff]  }
 0x173   :  { %1174 = vmatpush1.bf16.msra.mxu1 %v2931_v24  ;;  %v309_v24 = vld [vmem:[%s4825_s4 + $0x1b0] sm:$0xff] }
 0x174   :  { %1175 = vmatprep.subr.bf16.mxu1 %v2940_v19  ;;  %v2894_v19 = vcombine.high %v297_v10, %v301_v15  ;;  %v2902_v27 = vcombine.high %v305_v23, %v309_v24 }
 0x177   :  { %1176 = vmatpush1.bf16.msra.mxu1 %v2939_v25  ;;  %v2893_v25 = vcombine.low %v297_v10, %v301_v15  ;;  %v3190_v15 = vld [vmem:[%s4828_s6 + $0xe0] ss:$8 sps:$4 sm:$0xff]  }
 0x178   :  { %1177 = vmatprep.subr.bf16.mxu1 %v2948_v21  ;;  %v313_v21 = vld [vmem:[%s4825_s4 + $0x1d0] sm:$0xff] }
 0x179   :  { %v2909_v31 = vcombine.low %v313_v21, %v317_v26 }
 0x17b   :  { %1178 = vmatpush1.bf16.msra.mxu1 %v2947_v20  ;;  %v3169_v20 = vld [vmem:[%s4828_s6 + $0x70] ss:$8 sps:$4 sm:$0xff]  }
 0x17c   :  { %1179 = vmatprep.subr.bf16.mxu1 %v2956_v30  ;;  %2513 = vmatpush1.bf16.msra.mxu0 %v3169_v20  ;;  %v2901_v30 = vcombine.low %v305_v23, %v309_v24  ;;  %v2966_v23 = vcombine.high %v369_v11, %v373_v18  ;;  %v377_v24 = vld [vmem:[%s4825_s4 + $0x3d0] sm:$0xff]  ;;  %v350_v11 = vld [vmem:[%s4825_s4 + $0x2f8] sm:$0xff] }
 0x17f   :  { %1180 = vmatpush1.bf16.msra.mxu1 %v2955_v36  ;;  %v3170_v36 = vld [vmem:[%s4828_s6 + $0x84] ss:$8 sps:$4 sm:$0xff]  }
 0x180   :  { %1181 = vmatprep.subr.bf16.mxu1 %v2964_v37  ;;  %v2910_v37 = vcombine.high %v313_v21, %v317_v26  ;;  %2514 = vmatprep.subr.bf16.mxu0 %v3170_v36  ;;  %v258_v21 = vld [vmem:[%s4825_s4 + $0x18] sm:$0xff] }
 0x181   :  { %2515 = vmatpush1.bf16.msra.mxu0 %v3172_v39  ;;  %v262_v26 = vld [vmem:[%s4825_s4 + $0x38] sm:$0xff] }
 0x182   :  { %v2856_v20 = vcombine.high %v258_v21, %v262_v26  ;;  %v2855_v33 = vcombine.low %v258_v21, %v262_v26  ;;  %v278_v39 = vld [vmem:[%s4825_s4 + $0xb8] sm:$0xff] }
 0x183   :  { %1182 = vmatpush1.bf16.msra.mxu1 %v2963_v32  ;;  %v329_v32 = vld [vmem:[%s4825_s4 + $0x250] sm:$0xff]  ;;  %v370_v21 = vld [vmem:[%s4825_s4 + $0x398] sm:$0xff] }
 0x184   :  { %1183 = vmatprep.subr.bf16.mxu1 %v2972_v45  ;;  %v3173_v45 = vld [vmem:[%s4828_s6 + $0x94] ss:$8 sps:$4 sm:$0xff]   ;;  %v2926_v29 = vcombine.high %v329_v32, %v333_v34  ;;  %v2925_v53 = vcombine.low %v329_v32, %v333_v34 }
 0x185   :  { %2516 = vmatprep.subr.bf16.mxu0 %v3173_v45  ;;  %v282_v34 = vld [vmem:[%s4825_s4 + $0xd8] sm:$0xff] }
 0x186   :  { %2517 = vmatpush1.bf16.msra.mxu0 %v3175_v47  ;;  %v286_v45 = vld [vmem:[%s4825_s4 + $0xf8] sm:$0xff] }
 0x187   :  { %1184 = vmatpush1.bf16.msra.mxu1 %v2971_v43  ;;  %v337_v43 = vld [vmem:[%s4825_s4 + $0x290] sm:$0xff]  ;;  %2518 = vmatprep.subr.bf16.mxu0 %v3176_v17  ;;  %v2880_v47 = vcombine.high %v282_v34, %v286_v45  ;;  %v374_v26 = vld [vmem:[%s4825_s4 + $0x3b8] sm:$0xff] }
 0x188   :  { %1214 = vmatprep.subr.bf16.mxu1 %v2854_v51  ;;  %v3178_v51 = vld [vmem:[%s4828_s6 + $0xa0] ss:$8 sps:$4 sm:$0xff]   ;;  %v2934_v57 = vcombine.high %v337_v43, %v341_v16  ;;  %v2933_v60 = vcombine.low %v337_v43, %v341_v16  ;;  %v294_v43 = vld [vmem:[%s4825_s4 + $0x138] sm:$0xff]  ;;  %v2879_v16 = vcombine.low %v282_v34, %v286_v45 }
 0x18a   :  { %1186 = vmatmul.mubr.bf16.vlgmr.msra.gmra.mrb[12].mxu1 %v3748_v40  ;;  %2519 = vmatpush1.bf16.msra.mxu0 %v3178_v51  ;;  %v302_v51 = vld [vmem:[%s4825_s4 + $0x178] sm:$0xff] }
 0x18b   :  { %1195 = vmatprep.mubr.bf16.mxu1 %v3758_v42  ;;  %1215 = vmatpush1.bf16.msra.mxu1 %v2853_v54  ;;  %v345_v54 = vld [vmem:[%s4825_s4 + $0x2d0] sm:$0xff] }
 0x18c   :  { %1216 = vmatprep.subr.bf16.mxu1 %v2862_v59  ;;  %v3181_v59 = vld [vmem:[%s4828_s6 + $0xb0] ss:$8 sps:$4 sm:$0xff]   ;;  %2520 = vmatprep.subr.bf16.mxu0 %v3179_v56  ;;  %v2942_v0 = vcombine.high %v345_v54, %v349_v55  ;;  %v2941_v2 = vcombine.low %v345_v54, %v349_v55 }
 0x18d   :  { %v306_v55 = vld [vmem:[%s4825_s4 + $0x198] sm:$0xff] }
 0x18e   :  { %2521 = vmatpush1.bf16.msra.mxu0 %v3181_v59  ;;  %v310_v56 = vld [vmem:[%s4825_s4 + $0x1b8] sm:$0xff] }
 0x18f   :  { %1217 = vmatpush1.bf16.msra.mxu1 %v2861_v61  ;;  %v353_v61 = vld [vmem:[%s4825_s4 + $0x310] sm:$0xff]  ;;  %2522 = vmatprep.subr.bf16.mxu0 %v3182_v63  ;;  %v2904_v59 = vcombine.high %v306_v55, %v310_v56 }
 0x190   :  { %1218 = vmatprep.subr.bf16.mxu1 %v2870_v3  ;;  %v3185_v3 = vld [vmem:[%s4828_s6 + $0xd4] ss:$8 sps:$4 sm:$0xff]   ;;  %v2949_v8 = vcombine.low %v353_v61, %v357_v62 }
 0x192   :  { %1196 = vmatmul.mubr.bf16.gmra.mrb[16].mxu1 %v3770_v50  ;;  %2523 = vmatpush1.bf16.msra.mxu0 %v3184_v1 }
 0x193   :  { %1205 = vmatprep.mubr.bf16.mxu1 %v3779_v52  ;;  %1219 = vmatpush1.bf16.msra.mxu1 %v2869_v4  ;;  %v2950_v4 = vcombine.high %v353_v61, %v357_v62  ;;  %v318_v61 = vld [vmem:[%s4825_s4 + $0x1f8] sm:$0xff]  ;;  %v2903_v62 = vcombine.low %v306_v55, %v310_v56 }
 0x194   :  { %1220 = vmatprep.subr.bf16.mxu1 %v2878_v7  ;;  %v365_v7 = vld [vmem:[%s4825_s4 + $0x370] sm:$0xff]  ;;  %2524 = vmatprep.subr.bf16.mxu0 %v3185_v3  ;;  %v330_v3 = vld [vmem:[%s4825_s4 + $0x258] sm:$0xff] }
 0x195   :  { %v2958_v10 = vcombine.high %v361_v6, %v365_v7  ;;  %v2957_v12 = vcombine.low %v361_v6, %v365_v7  ;;  %v338_v7 = vld [vmem:[%s4825_s4 + $0x298] sm:$0xff] }
 0x196   :  { %2525 = vmatpush1.bf16.msra.mxu0 %v3187_v5 }
 0x197   :  { %1221 = vmatpush1.bf16.msra.mxu1 %v2877_v9  ;;  %v3188_v9 = vld [vmem:[%s4828_s6 + $0xe4] ss:$8 sps:$4 sm:$0xff]  }
 0x198   :  { %1222 = vmatprep.subr.bf16.mxu1 %v2886_v13  ;;  %2526 = vmatprep.subr.bf16.mxu0 %v3188_v9  ;;  %v3191_v13 = vld [vmem:[%s4828_s6 + $0xf4] ss:$8 sps:$4 sm:$0xff]  }
 0x19a   :  { %1206 = vmatmul.mubr.bf16.gmra.mrb[20].mxu1 %v3788_v58  ;;  %2527 = vmatpush1.bf16.msra.mxu0 %v3190_v15  ;;  %v346_v15 = vld [vmem:[%s4825_s4 + $0x2d8] sm:$0xff] }
 0x19b   :  { %1223 = vmatpush1.bf16.msra.mxu1 %v2885_v14  ;;  %1246 = vmatprep.mubr.bf16.mxu1 %v3746_v38  ;;  %v3193_v14 = vld [vmem:[%s4828_s6 + $0xf0] ss:$8 sps:$4 sm:$0xff]  }
 0x19c   :  { %1224 = vmatprep.subr.bf16.mxu1 %v2894_v19  ;;  %v381_v19 = vld [vmem:[%s4825_s4 + $0x3f0] sm:$0xff]  ;;  %2528 = vmatprep.subr.bf16.mxu0 %v3191_v13  ;;  %v354_v13 = vld [vmem:[%s4825_s4 + $0x318] sm:$0xff] }
 0x19e   :  { %2529 = vmatpush1.bf16.msra.mxu0 %v3193_v14  ;;  %v358_v14 = vld [vmem:[%s4825_s4 + $0x338] sm:$0xff] }
 0x19f   :  { %1225 = vmatpush1.bf16.msra.mxu1 %v2893_v25  ;;  %v2974_v25 = vcombine.high %v377_v24, %v381_v19  ;;  %2559 = vmatprep.subr.bf16.mxu0 %v3196_v28  ;;  %v2951_v28 = vcombine.low %v354_v13, %v358_v14 }
 0x1a0   :  { %1226 = vmatprep.subr.bf16.mxu1 %v2902_v27  ;;  %v2973_v27 = vcombine.low %v377_v24, %v381_v19  ;;  %v2952_v24 = vcombine.high %v354_v13, %v358_v14  ;;  %v362_v19 = vld [vmem:[%s4825_s4 + $0x358] sm:$0xff] }
 0x1a3   :  { %1227 = vmatpush1.bf16.msra.mxu1 %v2901_v30  ;;  %v266_v30 = vld [vmem:[%s4825_s4 + $0x58] sm:$0xff] }
 0x1a4   :  { %1228 = vmatprep.subr.bf16.mxu1 %v2910_v37  ;;  %v2864_v36 = vcombine.high %v266_v30, %v270_v35  ;;  %v274_v37 = vld [vmem:[%s4825_s4 + $0x98] sm:$0xff] }
 0x1a5   :  { %v2872_v32 = vcombine.high %v274_v37, %v278_v39 }
 0x1a7   :  { %1229 = vmatpush1.bf16.msra.mxu1 %v2909_v31  ;;  %v2863_v31 = vcombine.low %v266_v30, %v270_v35  ;;  %v378_v30 = vld [vmem:[%s4825_s4 + $0x3d8] sm:$0xff] }
 0x1a8   :  { %1230 = vmatprep.subr.bf16.mxu1 %v2918_v46  ;;  %v2871_v46 = vcombine.low %v274_v37, %v278_v39  ;;  %v382_v35 = vld [vmem:[%s4825_s4 + $0x3f8] sm:$0xff]  ;;  %v4162_v39 = vld [vmem:[%s4829_s5] sm:$0xff] }
 0x1a9   :  { %v2975_v37 = vcombine.low %v378_v30, %v382_v35 }
 0x1ab   :  { %1231 = vmatpush1.bf16.msra.mxu1 %v2917_v41  ;;  %v290_v41 = vld [vmem:[%s4825_s4 + $0x118] sm:$0xff] }
 0x1ac   :  { %1232 = vmatprep.subr.bf16.mxu1 %v2926_v29  ;;  %v2888_v17 = vcombine.high %v290_v41, %v294_v43  ;;  %v298_v29 = vld [vmem:[%s4825_s4 + $0x158] sm:$0xff] }
 0x1ad   :  { %v2896_v54 = vcombine.high %v298_v29, %v302_v51 }
 0x1af   :  { %1233 = vmatpush1.bf16.msra.mxu1 %v2925_v53  ;;  %v2887_v53 = vcombine.low %v290_v41, %v294_v43 }
 0x1b0   :  { %1234 = vmatprep.subr.bf16.mxu1 %v2934_v57  ;;  %v2895_v57 = vcombine.low %v298_v29, %v302_v51 }
 0x1b3   :  { %1235 = vmatpush1.bf16.msra.mxu1 %v2933_v60  ;;  %v314_v60 = vld [vmem:[%s4825_s4 + $0x1d8] sm:$0xff] }
 0x1b4   :  { %1236 = vmatprep.subr.bf16.mxu1 %v2942_v0  ;;  %v2912_v63 = vcombine.high %v314_v60, %v318_v61  ;;  %v322_v0 = vld [vmem:[%s4825_s4 + $0x218] sm:$0xff]  ;;  %v2911_v1 = vcombine.low %v314_v60, %v318_v61 }
 0x1b7   :  { %1237 = vmatpush1.bf16.msra.mxu1 %v2941_v2 }
 0x1b8   :  { %1238 = vmatprep.subr.bf16.mxu1 %v2950_v4  ;;  %v334_v4 = vld [vmem:[%s4825_s4 + $0x278] sm:$0xff] }
 0x1b9   :  { %v2928_v6 = vcombine.high %v330_v3, %v334_v4  ;;  %v2927_v9 = vcombine.low %v330_v3, %v334_v4 }
 0x1bb   :  { %1239 = vmatpush1.bf16.msra.mxu1 %v2949_v8  ;;  %v342_v8 = vld [vmem:[%s4825_s4 + $0x2b8] sm:$0xff] }
 0x1bc   :  { %1240 = vmatprep.subr.bf16.mxu1 %v2958_v10  ;;  %v2936_v10 = vcombine.high %v338_v7, %v342_v8  ;;  %v2935_v18 = vcombine.low %v338_v7, %v342_v8 }
 0x1bf   :  { %1241 = vmatpush1.bf16.msra.mxu1 %v2957_v12  ;;  %v2944_v12 = vcombine.high %v346_v15, %v350_v11 }
 0x1c0   :  { %1242 = vmatprep.subr.bf16.mxu1 %v2966_v23  ;;  %v2943_v23 = vcombine.low %v346_v15, %v350_v11 }
 0x1c3   :  { %1243 = vmatpush1.bf16.msra.mxu1 %v2965_v22  ;;  %v366_v22 = vld [vmem:[%s4825_s4 + $0x378] sm:$0xff] }
 0x1c4   :  { %1244 = vmatprep.subr.bf16.mxu1 %v2974_v25  ;;  %v2960_v25 = vcombine.high %v362_v19, %v366_v22 }
 0x1c7   :  { %1245 = vmatpush1.bf16.msra.mxu1 %v2973_v27  ;;  %v2959_v27 = vcombine.low %v362_v19, %v366_v22 }
 0x1c8   :  { %1275 = vmatprep.subr.bf16.mxu1 %v2856_v20  ;;  %v2968_v20 = vcombine.high %v370_v21, %v374_v26 }
 0x1ca   :  { %1247 = vmatmul.mubr.bf16.vlgmr.msra.gmra.mrb[24].mxu1 %v3748_v40 }
 0x1cb   :  { %1256 = vmatprep.mubr.bf16.mxu1 %v3758_v42  ;;  %1276 = vmatpush1.bf16.msra.mxu1 %v2855_v33  ;;  %v2967_v33 = vcombine.low %v370_v21, %v374_v26 }
 0x1cc   :  { %1277 = vmatprep.subr.bf16.mxu1 %v2864_v36  ;;  %v2976_v36 = vcombine.high %v378_v30, %v382_v35 }
 0x1cf   :  { %1278 = vmatpush1.bf16.msra.mxu1 %v2863_v31  ;;  %v388_v31 = vrot.slane %v4162_v39, %v3715_v48 }
 0x1d0   :  { %1279 = vmatprep.subr.bf16.mxu1 %v2872_v32  ;;  %v392_v32 = vrot.slane %v4162_v39, %v3718_v49 }
 0x1d2   :  { %1257 = vmatmul.mubr.bf16.gmra.mrb[28].mxu1 %v3770_v50 }
 0x1d3   :  { %1266 = vmatprep.mubr.bf16.mxu1 %v3779_v52  ;;  %1280 = vmatpush1.bf16.msra.mxu1 %v2871_v46 }
 0x1d4   :  { %1281 = vmatprep.subr.bf16.mxu1 %v2880_v47 }
 0x1d7   :  { %1282 = vmatpush1.bf16.msra.mxu1 %v2879_v16 }
 0x1d8   :  { %1283 = vmatprep.subr.bf16.mxu1 %v2888_v17 }
 0x1da   :  { %1267 = vmatmul.mubr.bf16.gmra.mrb[32].mxu1 %v3788_v58 }
 0x1db   :  { %1284 = vmatpush1.bf16.msra.mxu1 %v2887_v53  ;;  %1307 = vmatprep.mubr.bf16.mxu1 %v3746_v38  ;;  %v326_v38 = vld [vmem:[%s4825_s4 + $0x238] sm:$0xff] }
 0x1dc   :  { %1285 = vmatprep.subr.bf16.mxu1 %v2896_v54  ;;  %v2920_v2 = vcombine.high %v322_v0, %v326_v38  ;;  %v2919_v5 = vcombine.low %v322_v0, %v326_v38 }
 0x1df   :  { %1286 = vmatpush1.bf16.msra.mxu1 %v2895_v57 }
 0x1e0   :  { %1287 = vmatprep.subr.bf16.mxu1 %v2904_v59 }
 0x1e3   :  { %1288 = vmatpush1.bf16.msra.mxu1 %v2903_v62 }
 0x1e4   :  { %1289 = vmatprep.subr.bf16.mxu1 %v2912_v63 }
 0x1e7   :  { %1290 = vmatpush1.bf16.msra.mxu1 %v2911_v1 }
 0x1e8   :  { %1291 = vmatprep.subr.bf16.mxu1 %v2920_v2 }
 0x1eb   :  { %1292 = vmatpush1.bf16.msra.mxu1 %v2919_v5 }
 0x1ec   :  { %1293 = vmatprep.subr.bf16.mxu1 %v2928_v6 }
 0x1ef   :  { %1294 = vmatpush1.bf16.msra.mxu1 %v2927_v9 }
 0x1f0   :  { %1295 = vmatprep.subr.bf16.mxu1 %v2936_v10 }
 0x1f3   :  { %1296 = vmatpush1.bf16.msra.mxu1 %v2935_v18 }
 0x1f4   :  { %1297 = vmatprep.subr.bf16.mxu1 %v2944_v12 }
 0x1f7   :  { %1298 = vmatpush1.bf16.msra.mxu1 %v2943_v23 }
 0x1f8   :  { %1299 = vmatprep.subr.bf16.mxu1 %v2952_v24 }
 0x1fb   :  { %1300 = vmatpush1.bf16.msra.mxu1 %v2951_v28 }
 0x1fc   :  { %1301 = vmatprep.subr.bf16.mxu1 %v2960_v25 }
 0x1ff   :  { %1302 = vmatpush1.bf16.msra.mxu1 %v2959_v27 }
 0x200   :  { %1303 = vmatprep.subr.bf16.mxu1 %v2968_v20 }
 0x203   :  { %1304 = vmatpush1.bf16.msra.mxu1 %v2967_v33 }
 0x204   :  { %1305 = vmatprep.subr.bf16.mxu1 %v2976_v36 }
 0x207   :  { %1306 = vmatpush1.bf16.msra.mxu1 %v2975_v37 }
 0x20a   :  { %1308 = vmatmul.mubr.bf16.vlgmr.msra.gmra.mrb[36].mxu1 %v3748_v40 }
 0x20b   :  { %1317 = vmatprep.mubr.bf16.mxu1 %v3758_v42 }
 0x212   :  { %1318 = vmatmul.mubr.bf16.gmra.mrb[40].mxu1 %v3770_v50 }
 0x213   :  { %1327 = vmatprep.mubr.bf16.mxu1 %v3779_v52 }
 0x21a   :  { %1328 = vmatmul.mubr.bf16.gmra.mrb[44].mxu1 %v3788_v58 }
 0x21d   :  { %v1126_v40 = vpop.f32.mrb[0].mxu1 }
 0x21e   :  { %v4169_v34 = vadd.f32 %v1126_v40, %v388_v31  ;;  %v1128_v42 = vpop.f32.mrb[1].mxu1 }
 0x21f   :  { %v4171_v50 = vadd.f32 %v1128_v42, %v392_v32  ;;  %v1130_v52 = vpop.f32.mrb[2].mxu1 }
 0x220   :  { %v1336_v45 = vmul.f32 %v4169_v34, %v4169_v34  ;;  %v4175_v46 = vadd.f32 %v1130_v52, %v388_v31  ;;  %v1132_v47 = vpop.f32.mrb[3].mxu1 }
 0x221   :  { %v1337_v58 = vmul.f32 %v4171_v50, %v4171_v50  ;;  %v4179_v41 = vadd.f32 %v1132_v47, %v392_v32 }
 0x222   :  { %v1376_v43 = vmul.f32 %v1336_v45, %v4169_v34  ;;  %v1344_v16 = vmul.f32 %v4175_v46, %v4175_v46 }
 0x223   :  { %v1377_v17 = vmul.f32 %v1337_v58, %v4171_v50  ;;  %v1345_v29 = vmul.f32 %v4179_v41, %v4179_v41 }
 0x224   :  { %v1416_v51 = vmul.f32 0.044715, %v1376_v43  ;;  %v1384_v53 = vmul.f32 %v1344_v16, %v4175_v46 }
 0x225   :  { %v1417_v54 = vmul.f32 0.044715, %v1377_v17  ;;  %v1385_v55 = vmul.f32 %v1345_v29, %v4179_v41  ;;  %v1136_v56 = vpop.f32.mrb[4].mxu1 }
 0x226   :  { %v1456_v57 = vadd.f32 %v1416_v51, %v4169_v34  ;;  %v1424_v59 = vmul.f32 0.044715, %v1384_v53  ;;  %v4190_v60 = vadd.f32 %v1136_v56, %v388_v31  ;;  %v1138_v61 = vpop.f32.mrb[5].mxu1 }
 0x227   :  { %v1425_v62 = vmul.f32 0.044715, %v1385_v55  ;;  %v4192_v63 = vadd.f32 %v1138_v61, %v392_v32  ;;  %v1140_v0 = vpop.f32.mrb[6].mxu1  ;;  %v1457_v38 = vadd.f32 %v1417_v54, %v4171_v50 }
 0x228   :  { %v1496_v1 = vmul.f32 0.7978846, %v1456_v57  ;;  %v1464_v2 = vadd.f32 %v1424_v59, %v4175_v46  ;;  %v1352_v3 = vmul.f32 %v4190_v60, %v4190_v60  ;;  %v4198_v4 = vadd.f32 %v1140_v0, %v388_v31  ;;  %v1142_v5 = vpop.f32.mrb[7].mxu1 }
 0x229   :  { %v1353_v6 = vmul.f32 %v4192_v63, %v4192_v63  ;;  %v4202_v7 = vadd.f32 %v1142_v5, %v392_v32  ;;  %v1465_v8 = vadd.f32 %v1425_v62, %v4179_v41  ;;  %v1497_v9 = vmul.f32 0.7978846, %v1457_v38 }
 0x22a   :  { %3348 = vtanh.f32 %v1496_v1  ;;  %v1504_v10 = vmul.f32 0.7978846, %v1464_v2  ;;  %v1392_v15 = vmul.f32 %v1352_v3, %v4190_v60  ;;  %v1360_v11 = vmul.f32 %v4198_v4, %v4198_v4 }
 0x22b   :  { %v1393_v18 = vmul.f32 %v1353_v6, %v4192_v63  ;;  %v1361_v12 = vmul.f32 %v4202_v7, %v4202_v7  ;;  %v1505_v13 = vmul.f32 0.7978846, %v1465_v8  ;;  %3350 = vtanh.f32 %v1497_v9 }
 0x22c   :  { %3352 = vtanh.f32 %v1504_v10  ;;  %v1432_v14 = vmul.f32 0.044715, %v1392_v15  ;;  %v1400_v23 = vmul.f32 %v1360_v11, %v4198_v4 }
 0x22d   :  { %v1433_v24 = vmul.f32 0.044715, %v1393_v18  ;;  %v1401_v19 = vmul.f32 %v1361_v12, %v4202_v7  ;;  %v1146_v22 = vpop.f32.mrb[8].mxu1  ;;  %3354 = vtanh.f32 %v1505_v13 }
 0x22e   :  { %v1472_v28 = vadd.f32 %v1432_v14, %v4190_v60  ;;  %v1440_v25 = vmul.f32 0.044715, %v1400_v23  ;;  %v4214_v21 = vadd.f32 %v1146_v22, %v388_v31  ;;  %v1148_v26 = vpop.f32.mrb[9].mxu1  ;;  %v3194_v14 = vld [vmem:[%s4828_s6 + $0x100] ss:$8 sps:$4 sm:$0xff]  }
 0x22f   :  { %v1473_v27 = vadd.f32 %v1433_v24, %v4192_v63  ;;  %v1441_v20 = vmul.f32 0.044715, %v1401_v19  ;;  %v4217_v30 = vadd.f32 %v1148_v26, %v392_v32  ;;  %v1150_v35 = vpop.f32.mrb[10].mxu1  ;;  %v3202_v26 = vld [vmem:[%s4828_s6 + $0x124] ss:$8 sps:$4 sm:$0xff]  }
 0x230   :  { %v1512_v33 = vmul.f32 0.7978846, %v1472_v28  ;;  %v1480_v36 = vadd.f32 %v1440_v25, %v4198_v4  ;;  %v1368_v37 = vmul.f32 %v4214_v21, %v4214_v21  ;;  %v1151_v40 = vpop.f32.mrb[11].mxu1  ;;  %v3197_v28 = vld [vmem:[%s4828_s6 + $0x110] ss:$8 sps:$4 sm:$0xff]  }
 0x231   :  { %v1513_v42 = vmul.f32 0.7978846, %v1473_v27  ;;  %v1481_v52 = vadd.f32 %v1441_v20, %v4202_v7  ;;  %v1369_v31 = vmul.f32 %v4217_v30, %v4217_v30 }
 0x232   :  { %3356 = vtanh.f32 %v1512_v33  ;;  %v1520_v45 = vmul.f32 0.7978846, %v1480_v36  ;;  %v1408_v47 = vmul.f32 %v1368_v37, %v4214_v21 }
 0x233   :  { %3358 = vtanh.f32 %v1513_v42  ;;  %v1521_v32 = vmul.f32 0.7978846, %v1481_v52  ;;  %v1409_v58 = vmul.f32 %v1369_v31, %v4217_v30  ;;  %v3200_v31 = vld [vmem:[%s4828_s6 + $0x120] ss:$8 sps:$4 sm:$0xff]  }
 0x234   :  { %v3349_v43 = vpop.eup %3348  ;;  %3360 = vtanh.f32 %v1520_v45  ;;  %v1448_v16 = vmul.f32 0.044715, %v1408_v47 }
 0x235   :  { %v3351_v17 = vpop.eup %3350  ;;  %3362 = vtanh.f32 %v1521_v32  ;;  %v1449_v29 = vmul.f32 0.044715, %v1409_v58  ;;  %v1576_v51 = vadd.f32 1.0, %v3349_v43  ;;  %v3208_v32 = vld [vmem:[%s4828_s6 + $0x144] ss:$8 sps:$4 sm:$0xff]  }
 0x236   :  { %v3353_v53 = vpop.eup %3352  ;;  %v1488_v54 = vadd.f32 %v1448_v16, %v4214_v21  ;;  %v1577_v55 = vadd.f32 1.0, %v3351_v17  ;;  %v3206_v16 = vld [vmem:[%s4828_s6 + $0x140] ss:$8 sps:$4 sm:$0xff]  }
 0x237   :  { %v3355_v56 = vpop.eup %3354  ;;  %v1489_v57 = vadd.f32 %v1449_v29, %v4217_v30  ;;  %v1584_v59 = vadd.f32 1.0, %v3353_v53  ;;  %v1616_v61 = vmul.f32 0.5, %v1576_v51  ;;  %v3209_v29 = vld [vmem:[%s4828_s6 + $0x150] ss:$8 sps:$4 sm:$0xff]   ;;  %v3212_v51 = vld [vmem:[%s4828_s6 + $0x160] ss:$8 sps:$4 sm:$0xff]  }
 0x238   :  { %v1528_v62 = vmul.f32 0.7978846, %v1488_v54  ;;  %v1585_v0 = vadd.f32 1.0, %v3355_v56  ;;  %v1617_v38 = vmul.f32 0.5, %v1577_v55  ;;  %v395_v53 = vsub.s32 2, %v3712_v44 }
 0x239   :  { %v1529_v1 = vmul.f32 0.7978846, %v1489_v57  ;;  %v1624_v2 = vmul.f32 0.5, %v1584_v59  ;;  %v1656_v5 = vmul.f32 %v1616_v61, %v4169_v34  ;;  %v3199_v34 = vld [vmem:[%s4828_s6 + $0x114] ss:$8 sps:$4 sm:$0xff]   ;;  %v399_v55 = vsub.s32 3, %v3712_v44 }
 0x23a   :  { %3364 = vtanh.f32 %v1528_v62  ;;  %v1625_v3 = vmul.f32 0.5, %v1585_v0  ;;  %v1657_v9 = vmul.f32 %v1617_v38, %v4171_v50  ;;  %v3217_v54 = vld [vmem:[%s4828_s6 + $0x174] ss:$8 sps:$4 sm:$0xff]   ;;  %v4284_v56 = vrot.slane %v4162_v39, %v395_v53  ;;  %v3215_v57 = vld [vmem:[%s4828_s6 + $0x170] ss:$8 sps:$4 sm:$0xff]  }
 0x23b   :  { %3366 = vtanh.f32 %v1529_v1  ;;  %v1664_v6 = vmul.f32 %v1624_v2, %v4175_v46  ;;  %v4290_v59 = vrot.slane %v4162_v39, %v399_v55  ;;  %v3220_v61 = vld [vmem:[%s4828_s6 + $0x184] ss:$8 sps:$4 sm:$0xff]   ;;  %v3218_v1 = vld [vmem:[%s4828_s6 + $0x180] ss:$8 sps:$4 sm:$0xff]  }
 0x23c   :  { %v3357_v8 = vpop.eup %3356  ;;  %v1665_v10 = vmul.f32 %v1625_v3, %v4179_v41 }
 0x23d   :  { %v3359_v15 = vpop.eup %3358  ;;  %v1706_v11 = vpack.c.bf16 %v1664_v6, %v1656_v5  ;;  %v1592_v18 = vadd.f32 1.0, %v3357_v8  ;;  %v3223_v5 = vld [vmem:[%s4828_s6 + $0x194] ss:$8 sps:$4 sm:$0xff]  }
 0x23e   :  { %v3361_v12 = vpop.eup %3360  ;;  %v1707_v13 = vpack.c.bf16 %v1665_v10, %v1657_v9  ;;  %v1593_v23 = vadd.f32 1.0, %v3359_v15 }
 0x23f   :  { %v3363_v24 = vpop.eup %3362  ;;  %v1600_v46 = vadd.f32 1.0, %v3361_v12  ;;  %v1632_v19 = vmul.f32 0.5, %v1592_v18  ;;  %v3221_v12 = vld [vmem:[%s4828_s6 + $0x190] ss:$8 sps:$4 sm:$0xff]  }
 0x240   :  { %2530 = vmatprep.mubr.bf16.mxu0 %v1707_v13  ;;  %v1601_v50 = vadd.f32 1.0, %v3363_v24  ;;  %v1633_v41 = vmul.f32 0.5, %v1593_v23  ;;  %v3226_v23 = vld [vmem:[%s4828_s6 + $0x1a4] ss:$8 sps:$4 sm:$0xff]  }
 0x241   :  { %2531 = vmatmul.mubr.bf16.vlgmr.msra.gmra.mrb[0].mxu0 %v1706_v11  ;;  %v1640_v22 = vmul.f32 0.5, %v1600_v46  ;;  %v1672_v27 = vmul.f32 %v1632_v19, %v4190_v60  ;;  %v3205_v60 = vld [vmem:[%s4828_s6 + $0x134] ss:$8 sps:$4 sm:$0xff]  }
 0x242   :  { %2560 = vmatpush1.bf16.msra.mxu0 %v3194_v14  ;;  %v1641_v25 = vmul.f32 0.5, %v1601_v50  ;;  %v1673_v33 = vmul.f32 %v1633_v41, %v4192_v63 }
 0x243   :  { %2561 = vmatprep.subr.bf16.mxu0 %v3199_v34  ;;  %v1680_v20 = vmul.f32 %v1640_v22, %v4198_v4 }
 0x244   :  { %v3365_v35 = vpop.eup %3364  ;;  %v1681_v36 = vmul.f32 %v1641_v25, %v4202_v7  ;;  %v3203_v7 = vld [vmem:[%s4828_s6 + $0x130] ss:$8 sps:$4 sm:$0xff]  }
 0x245   :  { %v3367_v37 = vpop.eup %3366  ;;  %v1714_v40 = vpack.c.bf16 %v1680_v20, %v1672_v27  ;;  %v1608_v42 = vadd.f32 1.0, %v3365_v35 }
 0x246   :  { %2562 = vmatpush1.bf16.msra.mxu0 %v3197_v28  ;;  %v1715_v52 = vpack.c.bf16 %v1681_v36, %v1673_v33  ;;  %v1609_v45 = vadd.f32 1.0, %v3367_v37  ;;  %v3229_v36 = vld [vmem:[%s4828_s6 + $0x1b4] ss:$8 sps:$4 sm:$0xff]  }
 0x247   :  { %2563 = vmatprep.subr.bf16.mxu0 %v3202_v26  ;;  %v1648_v4 = vmul.f32 0.5, %v1608_v42  ;;  %v3224_v26 = vld [vmem:[%s4828_s6 + $0x1a0] ss:$8 sps:$4 sm:$0xff]  }
 0x248   :  { %2540 = vmatprep.mubr.bf16.mxu0 %v1715_v52  ;;  %v1649_v63 = vmul.f32 0.5, %v1609_v45 }
 0x249   :  { %2541 = vmatmul.mubr.bf16.gmra.mrb[4].mxu0 %v1714_v40  ;;  %v1688_v58 = vmul.f32 %v1648_v4, %v4214_v21  ;;  %v3214_v21 = vld [vmem:[%s4828_s6 + $0x164] ss:$8 sps:$4 sm:$0xff]  }
 0x24a   :  { %2564 = vmatpush1.bf16.msra.mxu0 %v3200_v31  ;;  %v1689_v47 = vmul.f32 %v1649_v63, %v4217_v30  ;;  %v3211_v30 = vld [vmem:[%s4828_s6 + $0x154] ss:$8 sps:$4 sm:$0xff]  }
 0x24b   :  { %2565 = vmatprep.subr.bf16.mxu0 %v3205_v60  ;;  %v1722_v17 = vpack.c.bf16 %v1688_v58, %v1688_v58  ;;  %v3227_v58 = vld [vmem:[%s4828_s6 + $0x1b0] ss:$8 sps:$4 sm:$0xff]  }
 0x24c   :  { %v1723_v43 = vpack.c.bf16 %v1689_v47, %v1689_v47 }
 0x24e   :  { %2566 = vmatpush1.bf16.msra.mxu0 %v3203_v7  ;;  %2550 = vmatprep.mubr.bf16.mxu0 %v1723_v43 }
 0x24f   :  { %2567 = vmatprep.subr.bf16.mxu0 %v3208_v32 }
 0x251   :  { %2551 = vmatmul.mubr.bf16.gmra.mrb[8].mxu0 %v1722_v17 }
 0x252   :  { %2568 = vmatpush1.bf16.msra.mxu0 %v3206_v16 }
 0x253   :  { %2569 = vmatprep.subr.bf16.mxu0 %v3211_v30  ;;  %v3232_v30 = vld [vmem:[%s4828_s6 + $0x1c4] ss:$8 sps:$4 sm:$0xff]  }
 0x256   :  { %2570 = vmatpush1.bf16.msra.mxu0 %v3209_v29 }
 0x257   :  { %2571 = vmatprep.subr.bf16.mxu0 %v3214_v21 }
 0x25a   :  { %2572 = vmatpush1.bf16.msra.mxu0 %v3212_v51 }
 0x25b   :  { %2573 = vmatprep.subr.bf16.mxu0 %v3217_v54 }
 0x25d   :  { %v1187_v62 = vpop.f32.mrb[12].mxu1 }
 0x25e   :  { %v4296_v0 = vadd.f32 %v1187_v62, %v4284_v56  ;;  %v1189_v38 = vpop.f32.mrb[13].mxu1  ;;  %2574 = vmatpush1.bf16.msra.mxu0 %v3215_v57 }
 0x25f   :  { %v4302_v2 = vadd.f32 %v1189_v38, %v4290_v59  ;;  %v1191_v3 = vpop.f32.mrb[14].mxu1  ;;  %2575 = vmatprep.subr.bf16.mxu0 %v3220_v61  ;;  %v3230_v38 = vld [vmem:[%s4828_s6 + $0x1c0] ss:$8 sps:$4 sm:$0xff]  }
 0x260   :  { %v1338_v6 = vmul.f32 %v4296_v0, %v4296_v0  ;;  %v4310_v8 = vadd.f32 %v1191_v3, %v4284_v56  ;;  %v1193_v9 = vpop.f32.mrb[15].mxu1 }
 0x261   :  { %v1339_v10 = vmul.f32 %v4302_v2, %v4302_v2  ;;  %v4315_v15 = vadd.f32 %v1193_v9, %v4290_v59  ;;  %v3235_v9 = vld [vmem:[%s4828_s6 + $0x1d4] ss:$8 sps:$4 sm:$0xff]  }
 0x262   :  { %v1378_v11 = vmul.f32 %v1338_v6, %v4296_v0  ;;  %v1346_v18 = vmul.f32 %v4310_v8, %v4310_v8  ;;  %2576 = vmatpush1.bf16.msra.mxu0 %v3218_v1 }
 0x263   :  { %v1379_v13 = vmul.f32 %v1339_v10, %v4302_v2  ;;  %v1347_v14 = vmul.f32 %v4315_v15, %v4315_v15  ;;  %2577 = vmatprep.subr.bf16.mxu0 %v3223_v5 }
 0x264   :  { %v1418_v24 = vmul.f32 0.044715, %v1378_v11  ;;  %v1386_v34 = vmul.f32 %v1346_v18, %v4310_v8 }
 0x265   :  { %v1419_v46 = vmul.f32 0.044715, %v1379_v13  ;;  %v1387_v19 = vmul.f32 %v1347_v14, %v4315_v15  ;;  %v1197_v50 = vpop.f32.mrb[16].mxu1 }
 0x266   :  { %v1458_v41 = vadd.f32 %v1418_v24, %v4296_v0  ;;  %v1426_v22 = vmul.f32 0.044715, %v1386_v34  ;;  %v4333_v28 = vadd.f32 %v1197_v50, %v4284_v56  ;;  %v1199_v25 = vpop.f32.mrb[17].mxu1  ;;  %2578 = vmatpush1.bf16.msra.mxu0 %v3221_v12  ;;  %v3233_v24 = vld [vmem:[%s4828_s6 + $0x1d0] ss:$8 sps:$4 sm:$0xff]  }
 0x267   :  { %v1459_v27 = vadd.f32 %v1419_v46, %v4302_v2  ;;  %v1427_v20 = vmul.f32 0.044715, %v1387_v19  ;;  %v4340_v35 = vadd.f32 %v1199_v25, %v4290_v59  ;;  %v1201_v33 = vpop.f32.mrb[18].mxu1  ;;  %2579 = vmatprep.subr.bf16.mxu0 %v3226_v23  ;;  %v3238_v19 = vld [vmem:[%s4828_s6 + $0x1e4] ss:$8 sps:$4 sm:$0xff]  }
 0x268   :  { %v1498_v37 = vmul.f32 0.7978846, %v1458_v41  ;;  %v1466_v40 = vadd.f32 %v1426_v22, %v4310_v8  ;;  %v1354_v42 = vmul.f32 %v4333_v28, %v4333_v28  ;;  %v4349_v52 = vadd.f32 %v1201_v33, %v4284_v56  ;;  %v1203_v31 = vpop.f32.mrb[19].mxu1  ;;  %v3236_v33 = vld [vmem:[%s4828_s6 + $0x1e0] ss:$8 sps:$4 sm:$0xff]  }
 0x269   :  { %v1499_v45 = vmul.f32 0.7978846, %v1459_v27  ;;  %v1467_v60 = vadd.f32 %v1427_v20, %v4315_v15  ;;  %v1355_v4 = vmul.f32 %v4340_v35, %v4340_v35  ;;  %v4355_v63 = vadd.f32 %v1203_v31, %v4290_v59 }
 0x26a   :  { %3368 = vtanh.f32 %v1498_v37  ;;  %v1506_v7 = vmul.f32 0.7978846, %v1466_v40  ;;  %v1394_v47 = vmul.f32 %v1354_v42, %v4333_v28  ;;  %v1362_v32 = vmul.f32 %v4349_v52, %v4349_v52  ;;  %2580 = vmatpush1.bf16.msra.mxu0 %v3224_v26 }
 0x26b   :  { %3370 = vtanh.f32 %v1499_v45  ;;  %v1507_v43 = vmul.f32 0.7978846, %v1467_v60  ;;  %v1395_v16 = vmul.f32 %v1355_v4, %v4340_v35  ;;  %v1363_v17 = vmul.f32 %v4355_v63, %v4355_v63  ;;  %2581 = vmatprep.subr.bf16.mxu0 %v3229_v36  ;;  %v3241_v45 = vld [vmem:[%s4828_s6 + $0x1f4] ss:$8 sps:$4 sm:$0xff]  }
 0x26c   :  { %3372 = vtanh.f32 %v1506_v7  ;;  %v1434_v29 = vmul.f32 0.044715, %v1394_v47  ;;  %v1402_v21 = vmul.f32 %v1362_v32, %v4349_v52 }
 0x26d   :  { %3374 = vtanh.f32 %v1507_v43  ;;  %v1435_v51 = vmul.f32 0.044715, %v1395_v16  ;;  %v1403_v53 = vmul.f32 %v1363_v17, %v4355_v63  ;;  %v1207_v54 = vpop.f32.mrb[20].mxu1 }
 0x26e   :  { %v1474_v55 = vadd.f32 %v1434_v29, %v4333_v28  ;;  %v1442_v57 = vmul.f32 0.044715, %v1402_v21  ;;  %v4373_v61 = vadd.f32 %v1207_v54, %v4284_v56  ;;  %v1209_v62 = vpop.f32.mrb[21].mxu1  ;;  %2582 = vmatpush1.bf16.msra.mxu0 %v3227_v58  ;;  %v3239_v58 = vld [vmem:[%s4828_s6 + $0x1f0] ss:$8 sps:$4 sm:$0xff]  }
 0x26f   :  { %v1475_v1 = vadd.f32 %v1435_v51, %v4340_v35  ;;  %v1443_v3 = vmul.f32 0.044715, %v1403_v53  ;;  %v4380_v5 = vadd.f32 %v1209_v62, %v4290_v59  ;;  %v1211_v6 = vpop.f32.mrb[22].mxu1  ;;  %2583 = vmatprep.subr.bf16.mxu0 %v3232_v30  ;;  %v3244_v30 = vld [vmem:[%s4828_s6 + $0x204] ss:$8 sps:$4 sm:$0xff]  }
 0x270   :  { %v1514_v56 = vmul.f32 0.7978846, %v1474_v55  ;;  %v1482_v10 = vadd.f32 %v1442_v57, %v4349_v52  ;;  %v1370_v11 = vmul.f32 %v4373_v61, %v4373_v61  ;;  %v1212_v18 = vpop.f32.mrb[23].mxu1 }
 0x271   :  { %v1515_v12 = vmul.f32 0.7978846, %v1475_v1  ;;  %v1483_v13 = vadd.f32 %v1443_v3, %v4355_v63  ;;  %v1371_v59 = vmul.f32 %v4380_v5, %v4380_v5  ;;  %v3247_v1 = vld [vmem:[%s4828_s6 + $0x214] ss:$8 sps:$4 sm:$0xff]  }
 0x272   :  { %3376 = vtanh.f32 %v1514_v56  ;;  %v1522_v14 = vmul.f32 0.7978846, %v1482_v10  ;;  %v1410_v23 = vmul.f32 %v1370_v11, %v4373_v61  ;;  %2584 = vmatpush1.bf16.msra.mxu0 %v3230_v38  ;;  %v3245_v56 = vld [vmem:[%s4828_s6 + $0x210] ss:$8 sps:$4 sm:$0xff]  }
 0x273   :  { %3378 = vtanh.f32 %v1515_v12  ;;  %v1523_v34 = vmul.f32 0.7978846, %v1483_v13  ;;  %v1411_v46 = vmul.f32 %v1371_v59, %v4380_v5  ;;  %2585 = vmatprep.subr.bf16.mxu0 %v3235_v9  ;;  %v3250_v12 = vld [vmem:[%s4828_s6 + $0x224] ss:$8 sps:$4 sm:$0xff]  }
 0x274   :  { %v3369_v50 = vpop.eup %3368  ;;  %3380 = vtanh.f32 %v1522_v14  ;;  %v1450_v41 = vmul.f32 0.044715, %v1410_v23 }
 0x275   :  { %v3371_v22 = vpop.eup %3370  ;;  %v1578_v25 = vadd.f32 1.0, %v3369_v50  ;;  %3382 = vtanh.f32 %v1523_v34  ;;  %v1451_v26 = vmul.f32 0.044715, %v1411_v46 }
 0x276   :  { %v3373_v27 = vpop.eup %3372  ;;  %v1490_v20 = vadd.f32 %v1450_v41, %v4373_v61  ;;  %2586 = vmatpush1.bf16.msra.mxu0 %v3233_v24  ;;  %v1579_v36 = vadd.f32 1.0, %v3371_v22 }
 0x277   :  { %v3375_v37 = vpop.eup %3374  ;;  %v1618_v40 = vmul.f32 0.5, %v1578_v25  ;;  %v1586_v42 = vadd.f32 1.0, %v3373_v27  ;;  %v1491_v31 = vadd.f32 %v1451_v26, %v4380_v5  ;;  %2587 = vmatprep.subr.bf16.mxu0 %v3238_v19  ;;  %v3256_v25 = vld [vmem:[%s4828_s6 + $0x244] ss:$8 sps:$4 sm:$0xff]   ;;  %v3254_v27 = vld [vmem:[%s4828_s6 + $0x240] ss:$8 sps:$4 sm:$0xff]  }
 0x278   :  { %v1530_v60 = vmul.f32 0.7978846, %v1490_v20  ;;  %v1587_v4 = vadd.f32 1.0, %v3375_v37  ;;  %v1619_v7 = vmul.f32 0.5, %v1579_v36  ;;  %v3260_v36 = vld [vmem:[%s4828_s6 + $0x260] ss:$8 sps:$4 sm:$0xff]  }
 0x279   :  { %v1626_v47 = vmul.f32 0.5, %v1586_v42  ;;  %v1531_v32 = vmul.f32 0.7978846, %v1491_v31  ;;  %v1658_v16 = vmul.f32 %v1618_v40, %v4296_v0  ;;  %v3242_v0 = vld [vmem:[%s4828_s6 + $0x200] ss:$8 sps:$4 sm:$0xff]   ;;  %v403_v37 = vsub.s32 4, %v3712_v44 }
 0x27a   :  { %3384 = vtanh.f32 %v1530_v60  ;;  %2588 = vmatpush1.bf16.msra.mxu0 %v3236_v33  ;;  %v1627_v43 = vmul.f32 0.5, %v1587_v4  ;;  %v1659_v21 = vmul.f32 %v1619_v7, %v4302_v2  ;;  %v3262_v33 = vld [vmem:[%s4828_s6 + $0x264] ss:$8 sps:$4 sm:$0xff]   ;;  %v3265_v40 = vld [vmem:[%s4828_s6 + $0x274] ss:$8 sps:$4 sm:$0xff]   ;;  %v407_v42 = vsub.s32 5, %v3712_v44 }
 0x27b   :  { %v1666_v17 = vmul.f32 %v1626_v47, %v4310_v8  ;;  %3386 = vtanh.f32 %v1531_v32  ;;  %2589 = vmatprep.subr.bf16.mxu0 %v3241_v45  ;;  %v4468_v31 = vrot.slane %v4162_v39, %v403_v37  ;;  %v3263_v45 = vld [vmem:[%s4828_s6 + $0x270] ss:$8 sps:$4 sm:$0xff]   ;;  %v3268_v4 = vld [vmem:[%s4828_s6 + $0x284] ss:$8 sps:$4 sm:$0xff]  }
 0x27c   :  { %v3377_v29 = vpop.eup %3376  ;;  %v1667_v51 = vmul.f32 %v1627_v43, %v4315_v15  ;;  %v4474_v60 = vrot.slane %v4162_v39, %v407_v42  ;;  %v3271_v39 = vld [vmem:[%s4828_s6 + $0x294] ss:$8 sps:$4 sm:$0xff]  }
 0x27d   :  { %v3379_v53 = vpop.eup %3378  ;;  %v1708_v54 = vpack.c.bf16 %v1666_v17, %v1658_v16  ;;  %v1594_v55 = vadd.f32 1.0, %v3377_v29 }
 0x27e   :  { %v3381_v57 = vpop.eup %3380  ;;  %2590 = vmatpush1.bf16.msra.mxu0 %v3239_v58  ;;  %v1709_v62 = vpack.c.bf16 %v1667_v51, %v1659_v21  ;;  %v1595_v8 = vadd.f32 1.0, %v3379_v53  ;;  %v3266_v58 = vld [vmem:[%s4828_s6 + $0x280] ss:$8 sps:$4 sm:$0xff]  }
 0x27f   :  { %v3383_v38 = vpop.eup %3382  ;;  %2620 = vmatprep.subr.bf16.mxu0 %v3244_v30  ;;  %v1602_v2 = vadd.f32 1.0, %v3381_v57  ;;  %v1634_v3 = vmul.f32 0.5, %v1594_v55  ;;  %v3269_v55 = vld [vmem:[%s4828_s6 + $0x290] ss:$8 sps:$4 sm:$0xff]  }
 0x280   :  { %2591 = vmatprep.mubr.bf16.mxu0 %v1709_v62  ;;  %v1603_v15 = vadd.f32 1.0, %v3383_v38  ;;  %v1635_v6 = vmul.f32 0.5, %v1595_v8 }
 0x281   :  { %2592 = vmatmul.mubr.bf16.vlgmr.msra.gmra.mrb[0].mxu0 %v1708_v54  ;;  %v1642_v9 = vmul.f32 0.5, %v1602_v2  ;;  %v1674_v11 = vmul.f32 %v1634_v3, %v4333_v28  ;;  %v3248_v28 = vld [vmem:[%s4828_s6 + $0x220] ss:$8 sps:$4 sm:$0xff]  }
 0x282   :  { %2621 = vmatpush1.bf16.msra.mxu0 %v3242_v0  ;;  %v1643_v10 = vmul.f32 0.5, %v1603_v15  ;;  %v1675_v59 = vmul.f32 %v1635_v6, %v4340_v35  ;;  %v3274_v0 = vld [vmem:[%s4828_s6 + $0x2a4] ss:$8 sps:$4 sm:$0xff]  }
 0x283   :  { %2622 = vmatprep.subr.bf16.mxu0 %v3247_v1  ;;  %v1682_v18 = vmul.f32 %v1642_v9, %v4349_v52  ;;  %v3253_v52 = vld [vmem:[%s4828_s6 + $0x234] ss:$8 sps:$4 sm:$0xff]  }
 0x284   :  { %v3385_v13 = vpop.eup %3384  ;;  %v1683_v14 = vmul.f32 %v1643_v10, %v4355_v63  ;;  %v3251_v63 = vld [vmem:[%s4828_s6 + $0x230] ss:$8 sps:$4 sm:$0xff]   ;;  %v3272_v10 = vld [vmem:[%s4828_s6 + $0x2a0] ss:$8 sps:$4 sm:$0xff]  }
 0x285   :  { %v3387_v23 = vpop.eup %3386  ;;  %v1716_v24 = vpack.c.bf16 %v1682_v18, %v1674_v11  ;;  %v1610_v34 = vadd.f32 1.0, %v3385_v13 }
 0x286   :  { %2623 = vmatpush1.bf16.msra.mxu0 %v3245_v56  ;;  %v1717_v46 = vpack.c.bf16 %v1683_v14, %v1675_v59  ;;  %v1611_v19 = vadd.f32 1.0, %v3387_v23  ;;  %v3277_v59 = vld [vmem:[%s4828_s6 + $0x2b4] ss:$8 sps:$4 sm:$0xff]  }
 0x287   :  { %2624 = vmatprep.subr.bf16.mxu0 %v3250_v12  ;;  %v1650_v50 = vmul.f32 0.5, %v1610_v34 }
 0x288   :  { %2601 = vmatprep.mubr.bf16.mxu0 %v1717_v46  ;;  %v1651_v35 = vmul.f32 0.5, %v1611_v19 }
 0x289   :  { %2602 = vmatmul.mubr.bf16.gmra.mrb[4].mxu0 %v1716_v24  ;;  %v1690_v22 = vmul.f32 %v1650_v50, %v4373_v61  ;;  %v3257_v61 = vld [vmem:[%s4828_s6 + $0x250] ss:$8 sps:$4 sm:$0xff]  }
 0x28a   :  { %2625 = vmatpush1.bf16.msra.mxu0 %v3248_v28  ;;  %v1691_v41 = vmul.f32 %v1651_v35, %v4380_v5  ;;  %v3259_v5 = vld [vmem:[%s4828_s6 + $0x254] ss:$8 sps:$4 sm:$0xff]  }
 0x28b   :  { %2626 = vmatprep.subr.bf16.mxu0 %v3253_v52  ;;  %v1724_v20 = vpack.c.bf16 %v1690_v22, %v1690_v22  ;;  %v3275_v22 = vld [vmem:[%s4828_s6 + $0x2b0] ss:$8 sps:$4 sm:$0xff]  }
 0x28c   :  { %v1725_v26 = vpack.c.bf16 %v1691_v41, %v1691_v41 }
 0x28e   :  { %2611 = vmatprep.mubr.bf16.mxu0 %v1725_v26  ;;  %2627 = vmatpush1.bf16.msra.mxu0 %v3251_v63 }
 0x28f   :  { %2628 = vmatprep.subr.bf16.mxu0 %v3256_v25 }
 0x291   :  { %2612 = vmatmul.mubr.bf16.gmra.mrb[12].mxu0 %v1724_v20  ;;  %v3280_v20 = vld [vmem:[%s4828_s6 + $0x2c4] ss:$8 sps:$4 sm:$0xff]  }
 0x292   :  { %2629 = vmatpush1.bf16.msra.mxu0 %v3254_v27 }
 0x293   :  { %2630 = vmatprep.subr.bf16.mxu0 %v3259_v5 }
 0x296   :  { %2631 = vmatpush1.bf16.msra.mxu0 %v3257_v61 }
 0x297   :  { %2632 = vmatprep.subr.bf16.mxu0 %v3262_v33 }
 0x29a   :  { %2633 = vmatpush1.bf16.msra.mxu0 %v3260_v36 }
 0x29b   :  { %2634 = vmatprep.subr.bf16.mxu0 %v3265_v40 }
 0x29d   :  { %v1248_v7 = vpop.f32.mrb[24].mxu1 }
 0x29e   :  { %v4480_v47 = vadd.f32 %v1248_v7, %v4468_v31  ;;  %v1250_v32 = vpop.f32.mrb[25].mxu1  ;;  %2635 = vmatpush1.bf16.msra.mxu0 %v3263_v45  ;;  %v3278_v7 = vld [vmem:[%s4828_s6 + $0x2c0] ss:$8 sps:$4 sm:$0xff]  }
 0x29f   :  { %v4486_v43 = vadd.f32 %v1250_v32, %v4474_v60  ;;  %v1252_v16 = vpop.f32.mrb[26].mxu1  ;;  %2636 = vmatprep.subr.bf16.mxu0 %v3268_v4 }
 0x2a0   :  { %v1340_v17 = vmul.f32 %v4480_v47, %v4480_v47  ;;  %v4494_v30 = vadd.f32 %v1252_v16, %v4468_v31  ;;  %v1254_v29 = vpop.f32.mrb[27].mxu1 }
 0x2a1   :  { %v1341_v21 = vmul.f32 %v4486_v43, %v4486_v43  ;;  %v4499_v51 = vadd.f32 %v1254_v29, %v4474_v60 }
 0x2a2   :  { %v1380_v53 = vmul.f32 %v1340_v17, %v4480_v47  ;;  %v1348_v54 = vmul.f32 %v4494_v30, %v4494_v30  ;;  %2637 = vmatpush1.bf16.msra.mxu0 %v3266_v58  ;;  %v3283_v17 = vld [vmem:[%s4828_s6 + $0x2d4] ss:$8 sps:$4 sm:$0xff]  }
 0x2a3   :  { %v1381_v57 = vmul.f32 %v1341_v21, %v4486_v43  ;;  %v1349_v62 = vmul.f32 %v4499_v51, %v4499_v51  ;;  %2638 = vmatprep.subr.bf16.mxu0 %v3271_v39 }
 0x2a4   :  { %v1420_v8 = vmul.f32 0.044715, %v1380_v53  ;;  %v1388_v38 = vmul.f32 %v1348_v54, %v4494_v30 }
 0x2a5   :  { %v1421_v1 = vmul.f32 0.044715, %v1381_v57  ;;  %v1389_v2 = vmul.f32 %v1349_v62, %v4499_v51  ;;  %v1258_v3 = vpop.f32.mrb[28].mxu1 }
 0x2a6   :  { %v1460_v15 = vadd.f32 %v1420_v8, %v4480_v47  ;;  %v1428_v6 = vmul.f32 0.044715, %v1388_v38  ;;  %v4517_v9 = vadd.f32 %v1258_v3, %v4468_v31  ;;  %v1260_v56 = vpop.f32.mrb[29].mxu1  ;;  %2639 = vmatpush1.bf16.msra.mxu0 %v3269_v55 }
 0x2a7   :  { %v1461_v11 = vadd.f32 %v1421_v1, %v4486_v43  ;;  %v1429_v18 = vmul.f32 0.044715, %v1389_v2  ;;  %v4524_v12 = vadd.f32 %v1260_v56, %v4474_v60  ;;  %v1262_v13 = vpop.f32.mrb[30].mxu1  ;;  %2640 = vmatprep.subr.bf16.mxu0 %v3274_v0  ;;  %v3281_v0 = vld [vmem:[%s4828_s6 + $0x2d0] ss:$8 sps:$4 sm:$0xff]  }
 0x2a8   :  { %v1500_v14 = vmul.f32 0.7978846, %v1460_v15  ;;  %v1468_v23 = vadd.f32 %v1428_v6, %v4494_v30  ;;  %v1356_v24 = vmul.f32 %v4517_v9, %v4517_v9  ;;  %v4533_v34 = vadd.f32 %v1262_v13, %v4468_v31  ;;  %v1264_v46 = vpop.f32.mrb[31].mxu1  ;;  %v3286_v1 = vld [vmem:[%s4828_s6 + $0x2e4] ss:$8 sps:$4 sm:$0xff]  }
 0x2a9   :  { %v1501_v28 = vmul.f32 0.7978846, %v1461_v11  ;;  %v1469_v19 = vadd.f32 %v1429_v18, %v4499_v51  ;;  %v1357_v52 = vmul.f32 %v4524_v12, %v4524_v12  ;;  %v4539_v50 = vadd.f32 %v1264_v46, %v4474_v60  ;;  %v3284_v18 = vld [vmem:[%s4828_s6 + $0x2e0] ss:$8 sps:$4 sm:$0xff]   ;;  %v3289_v46 = vld [vmem:[%s4828_s6 + $0x2f4] ss:$8 sps:$4 sm:$0xff]  }
 0x2aa   :  { %3388 = vtanh.f32 %v1500_v14  ;;  %v1508_v35 = vmul.f32 0.7978846, %v1468_v23  ;;  %v1396_v63 = vmul.f32 %v1356_v24, %v4517_v9  ;;  %v1364_v41 = vmul.f32 %v4533_v34, %v4533_v34  ;;  %2641 = vmatpush1.bf16.msra.mxu0 %v3272_v10 }
 0x2ab   :  { %3390 = vtanh.f32 %v1501_v28  ;;  %v1509_v25 = vmul.f32 0.7978846, %v1469_v19  ;;  %v1397_v26 = vmul.f32 %v1357_v52, %v4524_v12  ;;  %v1365_v27 = vmul.f32 %v4539_v50, %v4539_v50  ;;  %2642 = vmatprep.subr.bf16.mxu0 %v3277_v59 }
 0x2ac   :  { %3392 = vtanh.f32 %v1508_v35  ;;  %v1436_v5 = vmul.f32 0.044715, %v1396_v63  ;;  %v1404_v61 = vmul.f32 %v1364_v41, %v4533_v34  ;;  %v3287_v41 = vld [vmem:[%s4828_s6 + $0x2f0] ss:$8 sps:$4 sm:$0xff]  }
 0x2ad   :  { %3394 = vtanh.f32 %v1509_v25  ;;  %v1437_v33 = vmul.f32 0.044715, %v1397_v26  ;;  %v1405_v36 = vmul.f32 %v1365_v27, %v4539_v50  ;;  %v1268_v37 = vpop.f32.mrb[32].mxu1  ;;  %v3292_v27 = vld [vmem:[%s4828_s6 + $0x304] ss:$8 sps:$4 sm:$0xff]  }
 0x2ae   :  { %v1476_v40 = vadd.f32 %v1436_v5, %v4517_v9  ;;  %v1444_v42 = vmul.f32 0.044715, %v1404_v61  ;;  %v4557_v45 = vadd.f32 %v1268_v37, %v4468_v31  ;;  %v1270_v4 = vpop.f32.mrb[33].mxu1  ;;  %2643 = vmatpush1.bf16.msra.mxu0 %v3275_v22 }
 0x2af   :  { %v1477_v32 = vadd.f32 %v1437_v33, %v4524_v12  ;;  %v1445_v58 = vmul.f32 0.044715, %v1405_v36  ;;  %v4564_v16 = vadd.f32 %v1270_v4, %v4474_v60  ;;  %v1272_v39 = vpop.f32.mrb[34].mxu1  ;;  %2644 = vmatprep.subr.bf16.mxu0 %v3280_v20 }
 0x2b0   :  { %v1516_v31 = vmul.f32 0.7978846, %v1476_v40  ;;  %v1484_v29 = vadd.f32 %v1444_v42, %v4533_v34  ;;  %v1372_v21 = vmul.f32 %v4557_v45, %v4557_v45  ;;  %v1273_v53 = vpop.f32.mrb[35].mxu1 }
 0x2b1   :  { %v1517_v54 = vmul.f32 0.7978846, %v1477_v32  ;;  %v1485_v55 = vadd.f32 %v1445_v58, %v4539_v50  ;;  %v1373_v60 = vmul.f32 %v4564_v16, %v4564_v16  ;;  %v3298_v53 = vld [vmem:[%s4828_s6 + $0x324] ss:$8 sps:$4 sm:$0xff]  }
 0x2b2   :  { %3396 = vtanh.f32 %v1516_v31  ;;  %v1524_v57 = vmul.f32 0.7978846, %v1484_v29  ;;  %v1412_v62 = vmul.f32 %v1372_v21, %v4557_v45  ;;  %2645 = vmatpush1.bf16.msra.mxu0 %v3278_v7  ;;  %v3295_v7 = vld [vmem:[%s4828_s6 + $0x314] ss:$8 sps:$4 sm:$0xff]  }
 0x2b3   :  { %3398 = vtanh.f32 %v1517_v54  ;;  %v1525_v8 = vmul.f32 0.7978846, %v1485_v55  ;;  %v1413_v38 = vmul.f32 %v1373_v60, %v4564_v16  ;;  %2646 = vmatprep.subr.bf16.mxu0 %v3283_v17  ;;  %v3293_v17 = vld [vmem:[%s4828_s6 + $0x310] ss:$8 sps:$4 sm:$0xff]  }
 0x2b4   :  { %v3389_v2 = vpop.eup %3388  ;;  %3400 = vtanh.f32 %v1524_v57  ;;  %v1452_v3 = vmul.f32 0.044715, %v1412_v62 }
 0x2b5   :  { %v3391_v15 = vpop.eup %3390  ;;  %v1580_v6 = vadd.f32 1.0, %v3389_v2  ;;  %3402 = vtanh.f32 %v1525_v8  ;;  %v1453_v56 = vmul.f32 0.044715, %v1413_v38 }
 0x2b6   :  { %v3393_v10 = vpop.eup %3392  ;;  %v1492_v11 = vadd.f32 %v1452_v3, %v4557_v45  ;;  %2647 = vmatpush1.bf16.msra.mxu0 %v3281_v0  ;;  %v1581_v13 = vadd.f32 1.0, %v3391_v15  ;;  %v3304_v15 = vld [vmem:[%s4828_s6 + $0x344] ss:$8 sps:$4 sm:$0xff]  }
 0x2b7   :  { %v3395_v59 = vpop.eup %3394  ;;  %v1620_v14 = vmul.f32 0.5, %v1580_v6  ;;  %v1588_v23 = vadd.f32 1.0, %v3393_v10  ;;  %v1493_v24 = vadd.f32 %v1453_v56, %v4564_v16  ;;  %2648 = vmatprep.subr.bf16.mxu0 %v3286_v1  ;;  %v3302_v56 = vld [vmem:[%s4828_s6 + $0x340] ss:$8 sps:$4 sm:$0xff]  }
 0x2b8   :  { %v1532_v28 = vmul.f32 0.7978846, %v1492_v11  ;;  %v1589_v19 = vadd.f32 1.0, %v3395_v59  ;;  %v1621_v52 = vmul.f32 0.5, %v1581_v13  ;;  %v3310_v11 = vld [vmem:[%s4828_s6 + $0x364] ss:$8 sps:$4 sm:$0xff]  }
 0x2b9   :  { %v1628_v35 = vmul.f32 0.5, %v1588_v23  ;;  %v1533_v63 = vmul.f32 0.7978846, %v1493_v24  ;;  %v1660_v25 = vmul.f32 %v1620_v14, %v4480_v47  ;;  %v3290_v47 = vld [vmem:[%s4828_s6 + $0x300] ss:$8 sps:$4 sm:$0xff]   ;;  %v411_v13 = vsub.s32 6, %v3712_v44 }
 0x2ba   :  { %3404 = vtanh.f32 %v1532_v28  ;;  %2649 = vmatpush1.bf16.msra.mxu0 %v3284_v18  ;;  %v1629_v22 = vmul.f32 0.5, %v1589_v19  ;;  %v1661_v5 = vmul.f32 %v1621_v52, %v4486_v43  ;;  %v3308_v18 = vld [vmem:[%s4828_s6 + $0x360] ss:$8 sps:$4 sm:$0xff]   ;;  %v3313_v59 = vld [vmem:[%s4828_s6 + $0x374] ss:$8 sps:$4 sm:$0xff]   ;;  %v415_v14 = vsub.s32 7, %v3712_v44 }
 0x2bb   :  { %v1668_v26 = vmul.f32 %v1628_v35, %v4494_v30  ;;  %3406 = vtanh.f32 %v1533_v63  ;;  %2650 = vmatprep.subr.bf16.mxu0 %v3289_v46  ;;  %v3428_v23 = vld [vmem:[%s4829_s5] sm:$0xff]  ;;  %v3311_v46 = vld [vmem:[%s4828_s6 + $0x370] ss:$8 sps:$4 sm:$0xff]  }
 0x2bc   :  { %v3397_v20 = vpop.eup %3396  ;;  %v1669_v61 = vmul.f32 %v1629_v22, %v4499_v51  ;;  %v4654_v24 = vrot.slane %v3428_v23, %v411_v13  ;;  %v4659_v28 = vrot.slane %v3428_v23, %v415_v14  ;;  %v3316_v19 = vld [vmem:[%s4828_s6 + $0x384] ss:$8 sps:$4 sm:$0xff]   ;;  %v3314_v63 = vld [vmem:[%s4828_s6 + $0x380] ss:$8 sps:$4 sm:$0xff]  }
 0x2bd   :  { %v3399_v33 = vpop.eup %3398  ;;  %v1710_v36 = vpack.c.bf16 %v1668_v26, %v1660_v25  ;;  %v1596_v37 = vadd.f32 1.0, %v3397_v20  ;;  %v3319_v25 = vld [vmem:[%s4828_s6 + $0x394] ss:$8 sps:$4 sm:$0xff]  }
 0x2be   :  { %v3401_v40 = vpop.eup %3400  ;;  %2651 = vmatpush1.bf16.msra.mxu0 %v3287_v41  ;;  %v1711_v42 = vpack.c.bf16 %v1669_v61, %v1661_v5  ;;  %v1597_v30 = vadd.f32 1.0, %v3399_v33 }
 0x2bf   :  { %v3403_v4 = vpop.eup %3402  ;;  %2681 = vmatprep.subr.bf16.mxu0 %v3292_v27  ;;  %v1604_v43 = vadd.f32 1.0, %v3401_v40  ;;  %v1636_v32 = vmul.f32 0.5, %v1596_v37  ;;  %v3317_v37 = vld [vmem:[%s4828_s6 + $0x390] ss:$8 sps:$4 sm:$0xff]  }
 0x2c0   :  { %2652 = vmatprep.mubr.bf16.mxu0 %v1711_v42  ;;  %v1605_v51 = vadd.f32 1.0, %v3403_v4  ;;  %v1637_v58 = vmul.f32 0.5, %v1597_v30 }
 0x2c1   :  { %2653 = vmatmul.mubr.bf16.vlgmr.msra.gmra.mrb[0].mxu0 %v1710_v36  ;;  %v1644_v39 = vmul.f32 0.5, %v1604_v43  ;;  %v1676_v29 = vmul.f32 %v1636_v32, %v4517_v9  ;;  %v3296_v9 = vld [vmem:[%s4828_s6 + $0x320] ss:$8 sps:$4 sm:$0xff]  }
 0x2c2   :  { %2682 = vmatpush1.bf16.msra.mxu0 %v3290_v47  ;;  %v1645_v31 = vmul.f32 0.5, %v1605_v51  ;;  %v1677_v55 = vmul.f32 %v1637_v58, %v4524_v12  ;;  %v3322_v47 = vld [vmem:[%s4828_s6 + $0x3a4] ss:$8 sps:$4 sm:$0xff]  }
 0x2c3   :  { %2683 = vmatprep.subr.bf16.mxu0 %v3295_v7  ;;  %v1684_v21 = vmul.f32 %v1644_v39, %v4533_v34  ;;  %v3301_v34 = vld [vmem:[%s4828_s6 + $0x334] ss:$8 sps:$4 sm:$0xff]  }
 0x2c4   :  { %v3405_v54 = vpop.eup %3404  ;;  %v1685_v60 = vmul.f32 %v1645_v31, %v4539_v50  ;;  %v3299_v50 = vld [vmem:[%s4828_s6 + $0x330] ss:$8 sps:$4 sm:$0xff]   ;;  %v3320_v31 = vld [vmem:[%s4828_s6 + $0x3a0] ss:$8 sps:$4 sm:$0xff]  }
 0x2c5   :  { %v3407_v57 = vpop.eup %3406  ;;  %v1718_v62 = vpack.c.bf16 %v1684_v21, %v1676_v29  ;;  %v1612_v0 = vadd.f32 1.0, %v3405_v54 }
 0x2c6   :  { %2684 = vmatpush1.bf16.msra.mxu0 %v3293_v17  ;;  %v1719_v8 = vpack.c.bf16 %v1685_v60, %v1677_v55  ;;  %v1613_v38 = vadd.f32 1.0, %v3407_v57  ;;  %v3325_v55 = vld [vmem:[%s4828_s6 + $0x3b4] ss:$8 sps:$4 sm:$0xff]  }
 0x2c7   :  { %2685 = vmatprep.subr.bf16.mxu0 %v3298_v53  ;;  %v1652_v1 = vmul.f32 0.5, %v1612_v0 }
 0x2c8   :  { %2662 = vmatprep.mubr.bf16.mxu0 %v1719_v8  ;;  %v1653_v12 = vmul.f32 0.5, %v1613_v38 }
 0x2c9   :  { %2663 = vmatmul.mubr.bf16.gmra.mrb[4].mxu0 %v1718_v62  ;;  %v1692_v3 = vmul.f32 %v1652_v1, %v4557_v45  ;;  %v3305_v45 = vld [vmem:[%s4828_s6 + $0x350] ss:$8 sps:$4 sm:$0xff]  }
 0x2ca   :  { %2686 = vmatpush1.bf16.msra.mxu0 %v3296_v9  ;;  %v1693_v2 = vmul.f32 %v1653_v12, %v4564_v16  ;;  %v3307_v16 = vld [vmem:[%s4828_s6 + $0x354] ss:$8 sps:$4 sm:$0xff]  }
 0x2cb   :  { %2687 = vmatprep.subr.bf16.mxu0 %v3301_v34  ;;  %v1726_v10 = vpack.c.bf16 %v1692_v3, %v1692_v3  ;;  %v3323_v3 = vld [vmem:[%s4828_s6 + $0x3b0] ss:$8 sps:$4 sm:$0xff]  }
 0x2cc   :  { %v1727_v6 = vpack.c.bf16 %v1693_v2, %v1693_v2 }
 0x2ce   :  { %2672 = vmatprep.mubr.bf16.mxu0 %v1727_v6  ;;  %2688 = vmatpush1.bf16.msra.mxu0 %v3299_v50 }
 0x2cf   :  { %2689 = vmatprep.subr.bf16.mxu0 %v3304_v15 }
 0x2d1   :  { %2673 = vmatmul.mubr.bf16.gmra.mrb[16].mxu0 %v1726_v10  ;;  %v3328_v10 = vld [vmem:[%s4828_s6 + $0x3c4] ss:$8 sps:$4 sm:$0xff]  }
 0x2d2   :  { %2690 = vmatpush1.bf16.msra.mxu0 %v3302_v56 }
 0x2d3   :  { %2691 = vmatprep.subr.bf16.mxu0 %v3307_v16 }
 0x2d6   :  { %2692 = vmatpush1.bf16.msra.mxu0 %v3305_v45 }
 0x2d7   :  { %2693 = vmatprep.subr.bf16.mxu0 %v3310_v11 }
 0x2da   :  { %2694 = vmatpush1.bf16.msra.mxu0 %v3308_v18 }
 0x2db   :  { %2695 = vmatprep.subr.bf16.mxu0 %v3313_v59 }
 0x2dd   :  { %v1309_v52 = vpop.f32.mrb[36].mxu1 }
 0x2de   :  { %v4665_v44 = vadd.f32 %v1309_v52, %v4654_v24  ;;  %v1311_v35 = vpop.f32.mrb[37].mxu1  ;;  %2696 = vmatpush1.bf16.msra.mxu0 %v3311_v46 }
 0x2df   :  { %v4671_v41 = vadd.f32 %v1311_v35, %v4659_v28  ;;  %v1313_v22 = vpop.f32.mrb[38].mxu1  ;;  %2697 = vmatprep.subr.bf16.mxu0 %v3316_v19  ;;  %v3326_v19 = vld [vmem:[%s4828_s6 + $0x3c0] ss:$8 sps:$4 sm:$0xff]  }
 0x2e0   :  { %v1342_v26 = vmul.f32 %v4665_v44, %v4665_v44  ;;  %v4679_v27 = vadd.f32 %v1313_v22, %v4654_v24  ;;  %v1315_v20 = vpop.f32.mrb[39].mxu1 }
 0x2e1   :  { %v1343_v5 = vmul.f32 %v4671_v41, %v4671_v41  ;;  %v4684_v61 = vadd.f32 %v1315_v20, %v4659_v28 }
 0x2e2   :  { %v1382_v33 = vmul.f32 %v1342_v26, %v4665_v44  ;;  %v1350_v36 = vmul.f32 %v4679_v27, %v4679_v27  ;;  %2698 = vmatpush1.bf16.msra.mxu0 %v3314_v63 }
 0x2e3   :  { %v1383_v40 = vmul.f32 %v1343_v5, %v4671_v41  ;;  %v1351_v42 = vmul.f32 %v4684_v61, %v4684_v61  ;;  %2699 = vmatprep.subr.bf16.mxu0 %v3319_v25  ;;  %v3331_v25 = vld [vmem:[%s4828_s6 + $0x3d4] ss:$8 sps:$4 sm:$0xff]  }
 0x2e4   :  { %v1422_v30 = vmul.f32 0.044715, %v1382_v33  ;;  %v1390_v4 = vmul.f32 %v1350_v36, %v4679_v27 }
 0x2e5   :  { %v1423_v7 = vmul.f32 0.044715, %v1383_v40  ;;  %v1391_v43 = vmul.f32 %v1351_v42, %v4684_v61  ;;  %v1319_v32 = vpop.f32.mrb[40].mxu1  ;;  %v3329_v42 = vld [vmem:[%s4828_s6 + $0x3d0] ss:$8 sps:$4 sm:$0xff]  }
 0x2e6   :  { %v1462_v51 = vadd.f32 %v1422_v30, %v4665_v44  ;;  %v1430_v58 = vmul.f32 0.044715, %v1390_v4  ;;  %v4702_v39 = vadd.f32 %v1319_v32, %v4654_v24  ;;  %v1321_v17 = vpop.f32.mrb[41].mxu1  ;;  %2700 = vmatpush1.bf16.msra.mxu0 %v3317_v37  ;;  %v3334_v4 = vld [vmem:[%s4828_s6 + $0x3e4] ss:$8 sps:$4 sm:$0xff]  }
 0x2e7   :  { %v1463_v29 = vadd.f32 %v1423_v7, %v4671_v41  ;;  %v1431_v21 = vmul.f32 0.044715, %v1391_v43  ;;  %v4709_v53 = vadd.f32 %v1321_v17, %v4659_v28  ;;  %v1323_v54 = vpop.f32.mrb[42].mxu1  ;;  %2701 = vmatprep.subr.bf16.mxu0 %v3322_v47 }
 0x2e8   :  { %v1502_v60 = vmul.f32 0.7978846, %v1462_v51  ;;  %v1470_v57 = vadd.f32 %v1430_v58, %v4679_v27  ;;  %v1358_v62 = vmul.f32 %v4702_v39, %v4702_v39  ;;  %v4718_v0 = vadd.f32 %v1323_v54, %v4654_v24  ;;  %v1325_v8 = vpop.f32.mrb[43].mxu1 }
 0x2e9   :  { %v1503_v9 = vmul.f32 0.7978846, %v1463_v29  ;;  %v1471_v38 = vadd.f32 %v1431_v21, %v4684_v61  ;;  %v1359_v34 = vmul.f32 %v4709_v53, %v4709_v53  ;;  %v4724_v1 = vadd.f32 %v1325_v8, %v4659_v28  ;;  %v3332_v29 = vld [vmem:[%s4828_s6 + $0x3e0] ss:$8 sps:$4 sm:$0xff]  }
 0x2ea   :  { %3408 = vtanh.f32 %v1502_v60  ;;  %v1510_v12 = vmul.f32 0.7978846, %v1470_v57  ;;  %v1398_v50 = vmul.f32 %v1358_v62, %v4702_v39  ;;  %v1366_v2 = vmul.f32 %v4718_v0, %v4718_v0  ;;  %2702 = vmatpush1.bf16.msra.mxu0 %v3320_v31  ;;  %v3337_v62 = vld [vmem:[%s4828_s6 + $0x3f4] ss:$8 sps:$4 sm:$0xff]  }
 0x2eb   :  { %3410 = vtanh.f32 %v1503_v9  ;;  %v1511_v15 = vmul.f32 0.7978846, %v1471_v38  ;;  %v1399_v6 = vmul.f32 %v1359_v34, %v4709_v53  ;;  %v1367_v56 = vmul.f32 %v4724_v1, %v4724_v1  ;;  %2703 = vmatprep.subr.bf16.mxu0 %v3325_v55 }
 0x2ec   :  { %3412 = vtanh.f32 %v1510_v12  ;;  %v1438_v16 = vmul.f32 0.044715, %v1398_v50  ;;  %v1406_v45 = vmul.f32 %v1366_v2, %v4718_v0  ;;  %v3335_v50 = vld [vmem:[%s4828_s6 + $0x3f0] ss:$8 sps:$4 sm:$0xff]  }
 0x2ed   :  { %3414 = vtanh.f32 %v1511_v15  ;;  %v1439_v11 = vmul.f32 0.044715, %v1399_v6  ;;  %v1407_v18 = vmul.f32 %v1367_v56, %v4724_v1  ;;  %v1329_v13 = vpop.f32.mrb[44].mxu1 }
 0x2ee   :  { %v1478_v59 = vadd.f32 %v1438_v16, %v4702_v39  ;;  %v1446_v14 = vmul.f32 0.044715, %v1406_v45  ;;  %v4742_v23 = vadd.f32 %v1329_v13, %v4654_v24  ;;  %v1331_v46 = vpop.f32.mrb[45].mxu1  ;;  %2704 = vmatpush1.bf16.msra.mxu0 %v3323_v3 }
 0x2ef   :  { %v1479_v52 = vadd.f32 %v1439_v11, %v4709_v53  ;;  %v1447_v35 = vmul.f32 0.044715, %v1407_v18  ;;  %v4749_v63 = vadd.f32 %v1331_v46, %v4659_v28  ;;  %v1333_v22 = vpop.f32.mrb[46].mxu1  ;;  %2705 = vmatprep.subr.bf16.mxu0 %v3328_v10 }
 0x2f0   :  { %v1518_v24 = vmul.f32 0.7978846, %v1478_v59  ;;  %v1486_v26 = vadd.f32 %v1446_v14, %v4718_v0  ;;  %v1374_v20 = vmul.f32 %v4742_v23, %v4742_v23  ;;  %v1334_v5 = vpop.f32.mrb[47].mxu1 }
 0x2f1   :  { %v1519_v33 = vmul.f32 0.7978846, %v1479_v52  ;;  %v1487_v36 = vadd.f32 %v1447_v35, %v4724_v1  ;;  %v1375_v28 = vmul.f32 %v4749_v63, %v4749_v63 }
 0x2f2   :  { %3416 = vtanh.f32 %v1518_v24  ;;  %v1526_v37 = vmul.f32 0.7978846, %v1486_v26  ;;  %v1414_v40 = vmul.f32 %v1374_v20, %v4742_v23  ;;  %2706 = vmatpush1.bf16.msra.mxu0 %v3326_v19 }
 0x2f3   :  { %3418 = vtanh.f32 %v1519_v33  ;;  %v1527_v47 = vmul.f32 0.7978846, %v1487_v36  ;;  %v1415_v30 = vmul.f32 %v1375_v28, %v4749_v63  ;;  %2707 = vmatprep.subr.bf16.mxu0 %v3331_v25 }
 0x2f4   :  { %v3409_v7 = vpop.eup %3408  ;;  %3420 = vtanh.f32 %v1526_v37  ;;  %v1454_v43 = vmul.f32 0.044715, %v1414_v40 }
 0x2f5   :  { %v3411_v32 = vpop.eup %3410  ;;  %v1582_v51 = vadd.f32 1.0, %v3409_v7  ;;  %3422 = vtanh.f32 %v1527_v47  ;;  %v1455_v58 = vmul.f32 0.044715, %v1415_v30 }
 0x2f6   :  { %v3413_v17 = vpop.eup %3412  ;;  %v1494_v31 = vadd.f32 %v1454_v43, %v4742_v23  ;;  %2708 = vmatpush1.bf16.msra.mxu0 %v3329_v42  ;;  %v1583_v21 = vadd.f32 1.0, %v3411_v32 }
 0x2f7   :  { %v3415_v54 = vpop.eup %3414  ;;  %v1622_v55 = vmul.f32 0.5, %v1582_v51  ;;  %v1590_v60 = vadd.f32 1.0, %v3413_v17  ;;  %v1495_v57 = vadd.f32 %v1455_v58, %v4749_v63  ;;  %2709 = vmatprep.subr.bf16.mxu0 %v3334_v4 }
 0x2f8   :  { %v1534_v8 = vmul.f32 0.7978846, %v1494_v31  ;;  %v1591_v9 = vadd.f32 1.0, %v3415_v54  ;;  %v1623_v38 = vmul.f32 0.5, %v1583_v21  ;;  %v2775_v54 = vld [vmem:[%s4830_s7] sm:$0x3] }
 0x2f9   :  { %v1630_v34 = vmul.f32 0.5, %v1590_v60  ;;  %v1535_v12 = vmul.f32 0.7978846, %v1495_v57  ;;  %v1662_v3 = vmul.f32 %v1622_v55, %v4665_v44  ;;  %v1696_v55 = vld [vmem:[#allocation3] sm:$0xff]  ;;  %v4793_v60 = vrot.slane %v2775_v54, %v3715_v48  ;;  %v1697_v57 = vld [vmem:[#allocation3 + $0x8] sm:$0xff] }
 0x2fa   :  { %3424 = vtanh.f32 %v1534_v8  ;;  %2710 = vmatpush1.bf16.msra.mxu0 %v3332_v29  ;;  %v1631_v2 = vmul.f32 0.5, %v1591_v9  ;;  %v1663_v56 = vmul.f32 %v1623_v38, %v4671_v41  ;;  %v1698_v9 = vld [vmem:[#allocation3 + $0x10] sm:$0xff] }
 0x2fb   :  { %v1670_v15 = vmul.f32 %v1630_v34, %v4679_v27  ;;  %3426 = vtanh.f32 %v1535_v12  ;;  %2711 = vmatprep.subr.bf16.mxu0 %v3337_v62  ;;  %v4796_v62 = vrot.slane %v2775_v54, %v3718_v49  ;;  %v1699_v12 = vld [vmem:[#allocation3 + $0x18] sm:$0xff] }
 0x2fc   :  { %v3417_v6 = vpop.eup %3416  ;;  %v1671_v10 = vmul.f32 %v1631_v2, %v4684_v61 }
 0x2fd   :  { %v3419_v16 = vpop.eup %3418  ;;  %v1712_v45 = vpack.c.bf16 %v1670_v15, %v1662_v3  ;;  %v1598_v11 = vadd.f32 1.0, %v3417_v6 }
 0x2fe   :  { %v3421_v18 = vpop.eup %3420  ;;  %2712 = vmatpush1.bf16.msra.mxu0 %v3335_v50  ;;  %v1713_v13 = vpack.c.bf16 %v1671_v10, %v1663_v56  ;;  %v1599_v59 = vadd.f32 1.0, %v3419_v16 }
 0x2ff   :  { %v3423_v14 = vpop.eup %3422  ;;  %v1606_v46 = vadd.f32 1.0, %v3421_v18  ;;  %v1638_v19 = vmul.f32 0.5, %v1598_v11  ;;  %v1701_v11 = vld [vmem:[#allocation3 + $0x28] sm:$0xff] }
 0x300   :  { %2713 = vmatprep.mubr.bf16.mxu0 %v1713_v13  ;;  %v1607_v44 = vadd.f32 1.0, %v3423_v14  ;;  %v1639_v27 = vmul.f32 0.5, %v1599_v59  ;;  %v1702_v59 = vld [vmem:[#allocation3 + $0x30] sm:$0xff] }
 0x301   :  { %2714 = vmatmul.mubr.bf16.vlgmr.msra.gmra.mrb[0].mxu0 %v1712_v45  ;;  %v1646_v52 = vmul.f32 0.5, %v1606_v46  ;;  %v1678_v41 = vmul.f32 %v1638_v19, %v4702_v39  ;;  %v1700_v45 = vld [vmem:[#allocation3 + $0x20] sm:$0xff]  ;;  %v1703_v19 = vld [vmem:[#allocation3 + $0x38] sm:$0xff] }
 0x302   :  { %v1647_v35 = vmul.f32 0.5, %v1607_v44  ;;  %v1679_v25 = vmul.f32 %v1639_v27, %v4709_v53 }
 0x303   :  { %v1686_v61 = vmul.f32 %v1646_v52, %v4718_v0 }
 0x304   :  { %v3425_v22 = vpop.eup %3424  ;;  %v1687_v24 = vmul.f32 %v1647_v35, %v4724_v1 }
 0x305   :  { %v3427_v26 = vpop.eup %3426  ;;  %v1720_v20 = vpack.c.bf16 %v1686_v61, %v1678_v41  ;;  %v1614_v5 = vadd.f32 1.0, %v3425_v22 }
 0x306   :  { %v1721_v33 = vpack.c.bf16 %v1687_v24, %v1679_v25  ;;  %v1615_v36 = vadd.f32 1.0, %v3427_v26 }
 0x307   :  { %v1654_v28 = vmul.f32 0.5, %v1614_v5  ;;  %v1704_v5 = vld [vmem:[#allocation3 + $0x40] sm:$0xf] }
 0x308   :  { %2723 = vmatprep.mubr.bf16.mxu0 %v1721_v33  ;;  %v1655_v37 = vmul.f32 0.5, %v1615_v36 }
 0x309   :  { %2724 = vmatmul.mubr.bf16.gmra.mrb[4].mxu0 %v1720_v20  ;;  %v1694_v39 = vmul.f32 %v1654_v28, %v4742_v23  ;;  %v1705_v28 = vld [vmem:[#allocation3 + $0x48] sm:$0xf] }
 0x30a   :  { %v1695_v40 = vmul.f32 %v1655_v37, %v4749_v63 }
 0x30b   :  { %v1728_v0 = vpack.c.bf16 %v1694_v39, %v1694_v39 }
 0x30c   :  { %v1729_v42 = vpack.c.bf16 %v1695_v40, %v1695_v40 }
 0x30e   :  { %2733 = vmatprep.mubr.bf16.mxu0 %v1729_v42 }
 0x311   :  { %2734 = vmatmul.mubr.bf16.gmra.mrb[20].mxu0 %v1728_v0 }
 0x324   :  { %v2552_v53 = vpop.f32.mrb[8].mxu0 }
 0x325   :  { %v2554_v47 = vpop.f32.mrb[9].mxu0 }
 0x326   :  { %v2556_v1 = vpop.f32.mrb[10].mxu0 }
 0x327   :  { %v2557_v30 = vpop.f32.mrb[11].mxu0 }
 0x364   :  { %v2613_v4 = vpop.f32.mrb[12].mxu0 }
 0x365   :  { %v2614_v7 = vadd.f32 %v2613_v4, %v2552_v53  ;;  %v2615_v43 = vpop.f32.mrb[13].mxu0 }
 0x366   :  { %v2616_v32 = vadd.f32 %v2615_v43, %v2554_v47  ;;  %v2617_v51 = vpop.f32.mrb[14].mxu0 }
 0x367   :  { %v2618_v58 = vpop.f32.mrb[15].mxu0 }
 0x3a4   :  { %v2674_v17 = vpop.f32.mrb[16].mxu0 }
 0x3a5   :  { %v2675_v31 = vadd.f32 %v2674_v17, %v2614_v7  ;;  %v2676_v29 = vpop.f32.mrb[17].mxu0 }
 0x3a6   :  { %v2677_v63 = vadd.f32 %v2676_v29, %v2616_v32  ;;  %v2678_v21 = vpop.f32.mrb[18].mxu0 }
 0x3a7   :  { %v2679_v23 = vpop.f32.mrb[19].mxu0 }
 0x3d4   :  { %v2715_v8 = vpop.f32.mrb[0].mxu0 }
 0x3d5   :  { %v2742_v38 = vadd.f32 %v2715_v8, %v1696_v55  ;;  %v2717_v34 = vpop.f32.mrb[1].mxu0 }
 0x3d6   :  { %v2743_v50 = vadd.f32 %v2717_v34, %v1697_v57  ;;  %v2719_v2 = vpop.f32.mrb[2].mxu0 }
 0x3d7   :  { %2752 = vst [vmem:[#allocation3] sm:$0xff] %v2742_v38  ;;  %v2787_v3 = vadd.f32 %v4793_v60, %v2742_v38  ;;  %v2744_v15 = vadd.f32 %v2719_v2, %v1698_v9  ;;  %v2721_v6 = vpop.f32.mrb[3].mxu0 }
 0x3d8   :  { %2753 = vst [vmem:[#allocation3 + $0x8] sm:$0xff] %v2743_v50  ;;  %v2788_v48 = vadd.f32 %v4796_v62, %v2743_v50  ;;  %v2745_v56 = vadd.f32 %v2721_v6, %v1699_v12 }
 0x3d9   :  { %2754 = vst [vmem:[#allocation3 + $0x10] sm:$0xff] %v2744_v15  ;;  %v2789_v49 = vadd.f32 %v4793_v60, %v2744_v15 }
 0x3da   :  { %v3115_v10 = vpack.c.bf16 %v2788_v48, %v2787_v3  ;;  %2755 = vst [vmem:[#allocation3 + $0x18] sm:$0xff] %v2745_v56  ;;  %v2790_v16 = vadd.f32 %v4796_v62, %v2745_v56 }
 0x3dc   :  { %2829 = vst [vmem:[%s4831_s8] sm:$0xff] %v3115_v10  ;;  %v3116_v18 = vpack.c.bf16 %v2790_v16, %v2789_v49  ;;  %v2725_v13 = vpop.f32.mrb[4].mxu0 }
 0x3dd   :  { %v2746_v14 = vadd.f32 %v2725_v13, %v1700_v45  ;;  %v2727_v46 = vpop.f32.mrb[5].mxu0 }
 0x3de   :  { %2830 = vst [vmem:[%s4831_s8 + $0x8] sm:$0xff] %v3116_v18  ;;  %v2747_v44 = vadd.f32 %v2727_v46, %v1701_v11  ;;  %v2729_v27 = vpop.f32.mrb[6].mxu0 }
 0x3df   :  { %2756 = vst [vmem:[#allocation3 + $0x20] sm:$0xff] %v2746_v14  ;;  %v2791_v52 = vadd.f32 %v4793_v60, %v2746_v14  ;;  %v2748_v35 = vadd.f32 %v2729_v27, %v1702_v59  ;;  %v2731_v41 = vpop.f32.mrb[7].mxu0 }
 0x3e0   :  { %2757 = vst [vmem:[#allocation3 + $0x28] sm:$0xff] %v2747_v44  ;;  %v2792_v61 = vadd.f32 %v4796_v62, %v2747_v44  ;;  %v2749_v22 = vadd.f32 %v2731_v41, %v1703_v19 }
 0x3e1   :  { %2758 = vst [vmem:[#allocation3 + $0x30] sm:$0xff] %v2748_v35  ;;  %v2793_v25 = vadd.f32 %v4793_v60, %v2748_v35 }
 0x3e2   :  { %v3117_v24 = vpack.c.bf16 %v2792_v61, %v2791_v52  ;;  %2759 = vst [vmem:[#allocation3 + $0x38] sm:$0xff] %v2749_v22  ;;  %v2794_v26 = vadd.f32 %v4796_v62, %v2749_v22 }
 0x3e4   :  { %2831 = vst [vmem:[%s4831_s8 + $0x10] sm:$0xff] %v3117_v24  ;;  %v3118_v20 = vpack.c.bf16 %v2794_v26, %v2793_v25  ;;  %v2735_v33 = vpop.f32.mrb[20].mxu0 }
 0x3e5   :  { %v2736_v36 = vadd.f32 %v2735_v33, %v2675_v31  ;;  %v2737_v37 = vpop.f32.mrb[21].mxu0 }
 0x3e6   :  { %2832 = vst [vmem:[%s4831_s8 + $0x18] sm:$0xff] %v3118_v20  ;;  %v2738_v40 = vadd.f32 %v2737_v37, %v2677_v63  ;;  %v2739_v39 = vpop.f32.mrb[22].mxu0 }
 0x3e7   :  { %v2750_v42 = vadd.f32 %v2736_v36, %v1704_v5  ;;  %v2740_v0 = vpop.f32.mrb[23].mxu0 }
 0x3e8   :  { %v2751_v53 = vadd.f32 %v2738_v40, %v1705_v28 }
 0x3e9   :  { %2760 = vst [vmem:[#allocation3 + $0x40] sm:$0xf] %v2750_v42 }
 0x3ea   :  { %2761 = vst [vmem:[#allocation3 + $0x48] sm:$0xf] %v2751_v53 }
 0x3f0   :  { %v2773_v47 = vld [vmem:[#allocation3 + $0x40] sm:$0xf] }
 0x3f1   :  { %v2795_v1 = vadd.f32 %v4793_v60, %v2773_v47  ;;  %v2774_v30 = vld [vmem:[#allocation3 + $0x48] sm:$0xf] }
 0x3f2   :  { %v2796_v4 = vadd.f32 %v4796_v62, %v2774_v30 }
 0x3f4   :  { %v3119_v7 = vpack.c.bf16 %v2796_v4, %v2795_v1 }
 0x3f6   :  { %2833 = vst [vmem:[%s4831_s8 + $0x20] sm:$0x33] %v3119_v7 }

</bundles_post_ra>
